<compile_context>
chip_gen: v5e
topology: v5e:2x2
jax: 0.10.0
libtpu: 0.0.40
codegen_flags: <defaults>
</compile_context>

<pallas_src>
import math
import numpy as np
import jax
import jax.numpy as jnp
from jax.experimental import pallas as pl
from jax.experimental.pallas import tpu as pltpu


# ------------------------------------------------------------------ kernel ---
def make_tcn_kernel(N, K, H):
    P = (K - 1) // 2
    NN = N * N

    def kernel(qry_ref, map2d_ref, mask_ref, tapmask_ref,
               w_fc_ref, b_fc_ref,
               w_conv_ref, b_conv_ref,
               w_res_ref, b_res_ref,
               w1_ref, b1_ref, w2_ref, b2_ref, w3_ref, b3_ref,
               pred_w_ref,
               out_ref,
               col_ref):
        mask = mask_ref[...]                                   # (1, NN) lane-dense

        # fc(qry): tiny -> VPU mul + lane reduce, gives an (H, 1) channel column.
        q = jnp.sum(w_fc_ref[...] * qry_ref[0], axis=1,
                    keepdims=True) + b_fc_ref[...]             # (H, 1)

        # conv1x1(map2d) * mask : (H,H)@(H,NN) -> (H, NN), 256-lane MXU output.
        x = map2d_ref[0]                                       # (H, NN)
        m = jnp.dot(w_conv_ref[...], x,
                    preferred_element_type=jnp.float32) + b_conv_ref[...]
        m = m * mask

        # map2d_f = F.normalize(q * m, dim=channel) * mask (channel = sublanes)
        f = q * m                                              # (H, NN)
        ss = jnp.sum(f * f, axis=0, keepdims=True)             # (1, NN)
        f = f * jax.lax.rsqrt(jnp.maximum(ss, 1e-24))          # EUP rsqrt
        f = f * mask

        def conv5x5(xin, w2d_ref, b_ref):
            # Build im2col with XLU rolls + precomputed zero-padding masks,
            # then a single deep-K matmul (H, K*K*H) @ (K*K*H, NN).
            for di in range(K):
                for dj in range(K):
                    t = di * K + dj
                    s = (di - P) * N + (dj - P)        # flat spatial shift
                    if s == 0:
                        slab = xin                      # centre tap: no mask needed
                    else:
                        slab = (pltpu.roll(xin, shift=(-s) % NN, axis=1)
                                * tapmask_ref[pl.ds(t, 1), :])
                    col_ref[pl.ds(t * H, H), :] = slab
            return jnp.dot(w2d_ref[...], col_ref[...],
                           preferred_element_type=jnp.float32) + b_ref[...]

        h = jnp.maximum(conv5x5(f, w1_ref, b1_ref), 0.0) * mask
        h = jnp.maximum(conv5x5(h, w2_ref, b2_ref), 0.0) * mask
        h = jnp.maximum(conv5x5(h, w3_ref, b3_ref), 0.0) * mask

        # residual branch: conv_res(map2d_f).relu() * mask
        res = jnp.dot(w_res_ref[...], f,
                      preferred_element_type=jnp.float32) + b_res_ref[...]
        res = jnp.maximum(res, 0.0) * mask
        out = h + res                                          # (H, NN)

        # scores2d = (out * pred_weight).sum(channel); eval epilogue sigmoid*mask
        scores = jnp.sum(out * pred_w_ref[...], axis=0, keepdims=True)  # (1, NN)
        out_ref[0] = jax.nn.sigmoid(scores) * mask

    return kernel


# ----------------------------------------------------------------- wrapper ---
def tcn_base_forward(qry, map2d, mask, params):
    """qry: (B, H) f32, map2d: (B, H, N, N) f32 (NCHW like PyTorch), mask: (N, N)."""
    B, H = qry.shape
    N = mask.shape[0]
    K = params["w1"].shape[0]
    P = (K - 1) // 2
    NN, KK = N * N, K * K

    # ---- host-side layout prep for the lane-dense (H, N*N) kernel layout ----
    qry_row = qry.reshape(B, 1, H)
    map2d_flat = map2d.reshape(B, H, NN)            # NCHW flattens directly
    mask_row = mask.reshape(1, NN)

    # Per-tap validity masks so roll + mask == zero-padded 5x5 conv.
    ii, jj = np.meshgrid(np.arange(N), np.arange(N), indexing="ij")
    taps = []
    for di in range(K):
        for dj in range(K):
            dy, dx = di - P, dj - P
            taps.append(((ii + dy >= 0) & (ii + dy < N) &
                         (jj + dx >= 0) & (jj + dx < N)).reshape(-1))
    tapmask = jnp.asarray(np.stack(taps), dtype=jnp.float32)   # (K*K, NN)

    tr = lambda w: w.T                              # (in, out) -> (out, in)
    colv = lambda b: b.reshape(H, 1)
    # (K, K, in, out) -> (out, K*K*in), matching im2col row order t*H + c_in.
    w5 = lambda w: jnp.transpose(w, (3, 0, 1, 2)).reshape(H, KK * H)

    args = (qry_row, map2d_flat, mask_row, tapmask,
            tr(params["w_fc"]), colv(params["b_fc"]),
            tr(params["w_conv"]), colv(params["b_conv"]),
            tr(params["w_res"]), colv(params["b_res"]),
            w5(params["w1"]), colv(params["b1"]),
            w5(params["w2"]), colv(params["b2"]),
            w5(params["w3"]), colv(params["b3"]),
            params["pred_w"].reshape(H, 1))

    full2 = lambda b: (0, 0)
    in_specs = [
        pl.BlockSpec((1, 1, H), lambda b: (b, 0, 0)),          # qry
        pl.BlockSpec((1, H, NN), lambda b: (b, 0, 0)),         # map2d (flat)
        pl.BlockSpec((1, NN), full2),                          # mask row
        pl.BlockSpec((KK, NN), full2),                         # tap masks
        pl.BlockSpec((H, H), full2), pl.BlockSpec((H, 1), full2),        # fc
        pl.BlockSpec((H, H), full2), pl.BlockSpec((H, 1), full2),        # conv 1x1
        pl.BlockSpec((H, H), full2), pl.BlockSpec((H, 1), full2),        # conv_res
        pl.BlockSpec((H, KK * H), full2), pl.BlockSpec((H, 1), full2),   # conv2d_1
        pl.BlockSpec((H, KK * H), full2), pl.BlockSpec((H, 1), full2),   # conv2d_2
        pl.BlockSpec((H, KK * H), full2), pl.BlockSpec((H, 1), full2),   # conv2d_3
        pl.BlockSpec((H, 1), full2),                           # pred_weight
    ]

    out = pl.pallas_call(
        make_tcn_kernel(N, K, H),
        out_shape=jax.ShapeDtypeStruct((B, 1, NN), jnp.float32),
        grid_spec=pltpu.PrefetchScalarGridSpec(
            num_scalar_prefetch=0,
            grid=(B,),
            in_specs=in_specs,
            out_specs=pl.BlockSpec((1, 1, NN), lambda b: (b, 0, 0)),
            scratch_shapes=[pltpu.VMEM((KK * H, NN), jnp.float32)],
        ),
        compiler_params=pltpu.CompilerParams(
            dimension_semantics=("parallel",)),
    )(*args)
    return out.reshape(B, N, N)


# ------------------------------------------------------------ pure-JAX ref ---
def tcn_base_reference(qry, map2d, mask, params):
    """qry (B, H), map2d (B, H, N, N) NCHW, mask (N, N)."""
    B, H, N, _ = map2d.shape
    K = params["w1"].shape[0]
    P = (K - 1) // 2
    x = jnp.transpose(map2d, (0, 2, 3, 1))                  # (B, N, N, H)
    mask_b = mask[None, :, :, None]

    q = qry @ params["w_fc"] + params["b_fc"]               # (B, H)
    m = x @ params["w_conv"] + params["b_conv"]
    m = m * mask_b
    f = q[:, None, None, :] * m
    norm = jnp.sqrt(jnp.sum(f * f, axis=-1, keepdims=True))
    f = f / jnp.maximum(norm, 1e-12)
    f = f * mask_b

    def conv5x5(xx, w, b):
        xp = jnp.pad(xx, ((0, 0), (P, P), (P, P), (0, 0)))
        acc = jnp.broadcast_to(b, (B, N, N, H)).astype(jnp.float32)
        for di in range(K):
            for dj in range(K):
                acc = acc + xp[:, di:di + N, dj:dj + N, :] @ w[di, dj]
        return acc

    h = jnp.maximum(conv5x5(f, params["w1"], params["b1"]), 0.0) * mask_b
    h = jnp.maximum(conv5x5(h, params["w2"], params["b2"]), 0.0) * mask_b
    h = jnp.maximum(conv5x5(h, params["w3"], params["b3"]), 0.0) * mask_b
    res = jnp.maximum(f @ params["w_res"] + params["b_res"], 0.0) * mask_b
    out = h + res
    scores = jnp.sum(out * params["pred_w"][0], axis=-1)    # (B, N, N)
    return jax.nn.sigmoid(scores) * mask[None]


# ------------------------------------------------------------------- setup ---
def build_mask2d(pooling_counts, N):
    """Same semantics as TCN_BASE.conf_mask / feat2d.mask2d."""
    mask = np.zeros((N, N), dtype=np.float32)
    mask[np.arange(N), np.arange(N)] = 1.0
    stride, offset = 1, 0
    for c in pooling_counts:
        for _ in range(c):
            offset += stride
            i = np.arange(0, N - offset, stride)
            j = np.arange(offset, N, stride)
            n = min(len(i), len(j))
            if n > 0:
                mask[i[:n], j[:n]] = 1.0
        stride *= 2
    return mask


def init_params(key, H, K):
    ks = jax.random.split(key, 16)
    u = lambda k, shape, bound: jax.random.uniform(
        k, shape, jnp.float32, -bound, bound)
    lin_b = 1.0 / math.sqrt(H)           # nn.Linear / 1x1 conv fan_in = H
    conv_b = 1.0 / math.sqrt(H * K * K)  # 5x5 conv fan_in = H*K*K
    return {
        "w_fc":   u(ks[0], (H, H), lin_b),          # stored as (in, out)
        "b_fc":   u(ks[1], (1, H), lin_b),
        "w_conv": u(ks[2], (H, H), lin_b),
        "b_conv": u(ks[3], (1, H), lin_b),
        "w_res":  u(ks[4], (H, H), lin_b),
        "b_res":  u(ks[5], (1, H), lin_b),
        "w1":     u(ks[6], (K, K, H, H), conv_b),   # (kh, kw, in, out)
        "b1":     u(ks[7], (1, H), conv_b),
        "w2":     u(ks[8], (K, K, H, H), conv_b),
        "b2":     u(ks[9], (1, H), conv_b),
        "w3":     u(ks[10], (K, K, H, H), conv_b),
        "b3":     u(ks[11], (1, H), conv_b),
        "pred_w": u(ks[12], (1, H), 1.0 / math.sqrt(H)),
    }


if __name__ == "__main__":
    B, H, N, K = 2, 32, 16, 5

    key = jax.random.PRNGKey(0)
    k_q, k_m, k_p = jax.random.split(key, 3)

    qry = jax.random.normal(k_q, (B, H), jnp.float32)           # query feature
    map2d = jax.random.normal(k_m, (B, H, N, N), jnp.float32)   # NCHW 2D map
    mask = jnp.asarray(build_mask2d([8, 4, 2], N))              # (N, N) f32
    params = init_params(k_p, H, K)

    scores = jax.jit(tcn_base_forward)(qry, map2d, mask, params)
    jax.block_until_ready(scores)

    ref = tcn_base_reference(qry, map2d, mask, params)
    assert scores.shape == (B, N, N)
    np.testing.assert_allclose(np.asarray(scores), np.asarray(ref),
                               rtol=1e-4, atol=1e-4)
    print("KERNEL_OK")
</pallas_src>

<mosaic_0001>
module attributes {stable_mosaic.version = 11 : i64} {
  func.func @kernel(%arg0: i32, %arg1: memref<1x1x32xf32, #tpu.memory_space<vmem>>, %arg2: memref<1x32x256xf32, #tpu.memory_space<vmem>>, %arg3: memref<1x256xf32, #tpu.memory_space<vmem>>, %arg4: memref<25x256xf32, #tpu.memory_space<vmem>>, %arg5: memref<32x32xf32, #tpu.memory_space<vmem>>, %arg6: memref<32x1xf32, #tpu.memory_space<vmem>>, %arg7: memref<32x32xf32, #tpu.memory_space<vmem>>, %arg8: memref<32x1xf32, #tpu.memory_space<vmem>>, %arg9: memref<32x32xf32, #tpu.memory_space<vmem>>, %arg10: memref<32x1xf32, #tpu.memory_space<vmem>>, %arg11: memref<32x800xf32, #tpu.memory_space<vmem>>, %arg12: memref<32x1xf32, #tpu.memory_space<vmem>>, %arg13: memref<32x800xf32, #tpu.memory_space<vmem>>, %arg14: memref<32x1xf32, #tpu.memory_space<vmem>>, %arg15: memref<32x800xf32, #tpu.memory_space<vmem>>, %arg16: memref<32x1xf32, #tpu.memory_space<vmem>>, %arg17: memref<32x1xf32, #tpu.memory_space<vmem>>, %arg18: memref<1x1x256xf32, #tpu.memory_space<vmem>>, %arg19: memref<800x256xf32, #tpu.memory_space<vmem>>) attributes {dimension_semantics = [#tpu.dimension_semantics<parallel>], iteration_bounds = array<i64: 2>, scalar_prefetch = 0 : i64, scratch_operands = 1 : i64, tpu.core_type = #tpu.core_type<tc>, window_params = [{transform_indices = @transform_0, window_bounds = array<i64: 1, 1, 32>}, {transform_indices = @transform_1, window_bounds = array<i64: 1, 32, 256>}, {pipeline_mode = #tpu.pipeline_mode<synchronous>, transform_indices = @transform_2, window_bounds = array<i64: 1, 256>}, {pipeline_mode = #tpu.pipeline_mode<synchronous>, transform_indices = @transform_3, window_bounds = array<i64: 25, 256>}, {pipeline_mode = #tpu.pipeline_mode<synchronous>, transform_indices = @transform_4, window_bounds = array<i64: 32, 32>}, {pipeline_mode = #tpu.pipeline_mode<synchronous>, transform_indices = @transform_5, window_bounds = array<i64: 32, 1>}, {pipeline_mode = #tpu.pipeline_mode<synchronous>, transform_indices = @transform_6, window_bounds = array<i64: 32, 32>}, {pipeline_mode = #tpu.pipeline_mode<synchronous>, transform_indices = @transform_7, window_bounds = array<i64: 32, 1>}, {pipeline_mode = #tpu.pipeline_mode<synchronous>, transform_indices = @transform_8, window_bounds = array<i64: 32, 32>}, {pipeline_mode = #tpu.pipeline_mode<synchronous>, transform_indices = @transform_9, window_bounds = array<i64: 32, 1>}, {pipeline_mode = #tpu.pipeline_mode<synchronous>, transform_indices = @transform_10, window_bounds = array<i64: 32, 800>}, {pipeline_mode = #tpu.pipeline_mode<synchronous>, transform_indices = @transform_11, window_bounds = array<i64: 32, 1>}, {pipeline_mode = #tpu.pipeline_mode<synchronous>, transform_indices = @transform_12, window_bounds = array<i64: 32, 800>}, {pipeline_mode = #tpu.pipeline_mode<synchronous>, transform_indices = @transform_13, window_bounds = array<i64: 32, 1>}, {pipeline_mode = #tpu.pipeline_mode<synchronous>, transform_indices = @transform_14, window_bounds = array<i64: 32, 800>}, {pipeline_mode = #tpu.pipeline_mode<synchronous>, transform_indices = @transform_15, window_bounds = array<i64: 32, 1>}, {pipeline_mode = #tpu.pipeline_mode<synchronous>, transform_indices = @transform_16, window_bounds = array<i64: 32, 1>}, {transform_indices = @transform_17, window_bounds = array<i64: 1, 1, 256>}]} {
    %c0 = arith.constant 0 : index
    %c0_0 = arith.constant 0 : index
    %0 = vector.load %arg3[%c0, %c0_0] : memref<1x256xf32, #tpu.memory_space<vmem>>, vector<1x256xf32>
    %c0_1 = arith.constant 0 : index
    %c0_2 = arith.constant 0 : index
    %1 = vector.load %arg5[%c0_1, %c0_2] : memref<32x32xf32, #tpu.memory_space<vmem>>, vector<32x32xf32>
    %c0_3 = arith.constant 0 : index
    %c0_4 = arith.constant 0 : index
    %c0_5 = arith.constant 0 : index
    %2 = vector.load %arg1[%c0_3, %c0_4, %c0_5] : memref<1x1x32xf32, #tpu.memory_space<vmem>>, vector<1x1x32xf32>
    %3 = vector.shape_cast %2 : vector<1x1x32xf32> to vector<1x32xf32>
    %4 = vector.broadcast %3 : vector<1x32xf32> to vector<32x32xf32>
    %5 = arith.mulf %1, %4 : vector<32x32xf32>
    %cst = arith.constant dense<0.000000e+00> : vector<32xf32>
    %6 = vector.multi_reduction <add>, %5, %cst [1] : vector<32x32xf32> to vector<32xf32>
    %7 = vector.shape_cast %6 : vector<32xf32> to vector<32x1xf32>
    %c0_6 = arith.constant 0 : index
    %c0_7 = arith.constant 0 : index
    %8 = vector.load %arg6[%c0_6, %c0_7] : memref<32x1xf32, #tpu.memory_space<vmem>>, vector<32x1xf32>
    %9 = arith.addf %7, %8 : vector<32x1xf32>
    %c0_8 = arith.constant 0 : index
    %c0_9 = arith.constant 0 : index
    %c0_10 = arith.constant 0 : index
    %10 = vector.load %arg2[%c0_8, %c0_9, %c0_10] : memref<1x32x256xf32, #tpu.memory_space<vmem>>, vector<1x32x256xf32>
    %11 = vector.shape_cast %10 : vector<1x32x256xf32> to vector<32x256xf32>
    %c0_11 = arith.constant 0 : index
    %c0_12 = arith.constant 0 : index
    %12 = vector.load %arg7[%c0_11, %c0_12] : memref<32x32xf32, #tpu.memory_space<vmem>>, vector<32x32xf32>
    %cst_13 = arith.constant dense<0.000000e+00> : vector<32x256xf32>
    %13 = tpu.matmul %12, %11, %cst_13 {dimension_numbers = #tpu.dot_dimension_numbers<[1], [0], [0], [1], [0, 0, 1, 1], [], []>} : vector<32x32xf32>, vector<32x256xf32>, vector<32x256xf32> -> vector<32x256xf32>
    %c0_14 = arith.constant 0 : index
    %c0_15 = arith.constant 0 : index
    %14 = vector.load %arg8[%c0_14, %c0_15] : memref<32x1xf32, #tpu.memory_space<vmem>>, vector<32x1xf32>
    %15 = vector.broadcast %14 : vector<32x1xf32> to vector<32x256xf32>
    %16 = arith.addf %13, %15 : vector<32x256xf32>
    %17 = vector.broadcast %0 : vector<1x256xf32> to vector<32x256xf32>
    %18 = arith.mulf %16, %17 : vector<32x256xf32>
    %19 = vector.broadcast %9 : vector<32x1xf32> to vector<32x256xf32>
    %20 = arith.mulf %19, %18 : vector<32x256xf32>
    %21 = arith.mulf %20, %20 : vector<32x256xf32>
    %cst_16 = arith.constant dense<0.000000e+00> : vector<256xf32>
    %22 = vector.multi_reduction <add>, %21, %cst_16 [0] : vector<32x256xf32> to vector<256xf32>
    %23 = vector.shape_cast %22 : vector<256xf32> to vector<1x256xf32>
    %cst_17 = arith.constant 1.000000e-24 : f32
    %24 = vector.broadcast %cst_17 : f32 to vector<1x256xf32>
    %25 = arith.maximumf %23, %24 : vector<1x256xf32>
    %26 = math.rsqrt %25 : vector<1x256xf32>
    %27 = vector.broadcast %26 : vector<1x256xf32> to vector<32x256xf32>
    %28 = arith.mulf %20, %27 : vector<32x256xf32>
    %29 = vector.broadcast %0 : vector<1x256xf32> to vector<32x256xf32>
    %30 = arith.mulf %28, %29 : vector<32x256xf32>
    %c34_i32 = arith.constant 34 : i32
    %31 = tpu.dynamic_rotate %30 by %c34_i32 dim 1 : vector<32x256xf32>, i32 -> vector<32x256xf32>
    %c0_18 = arith.constant 0 : index
    %c0_19 = arith.constant 0 : index
    %32 = vector.load %arg4[%c0_18, %c0_19] : memref<25x256xf32, #tpu.memory_space<vmem>>, vector<1x256xf32>
    %33 = vector.broadcast %32 : vector<1x256xf32> to vector<32x256xf32>
    %34 = arith.mulf %31, %33 : vector<32x256xf32>
    %c0_20 = arith.constant 0 : index
    %c0_21 = arith.constant 0 : index
    %35 = vector.load %arg19[%c0_20, %c0_21] : memref<800x256xf32, #tpu.memory_space<vmem>>, vector<32x256xf32>
    tpu.vector_store %arg19[%c0_20, %c0_21], %34 {strides = array<i32>} : memref<800x256xf32, #tpu.memory_space<vmem>>, vector<32x256xf32>,
    %c33_i32 = arith.constant 33 : i32
    %36 = tpu.dynamic_rotate %30 by %c33_i32 dim 1 : vector<32x256xf32>, i32 -> vector<32x256xf32>
    %c1 = arith.constant 1 : index
    %c0_22 = arith.constant 0 : index
    %37 = vector.load %arg4[%c1, %c0_22] : memref<25x256xf32, #tpu.memory_space<vmem>>, vector<1x256xf32>
    %38 = vector.broadcast %37 : vector<1x256xf32> to vector<32x256xf32>
    %39 = arith.mulf %36, %38 : vector<32x256xf32>
    %c32 = arith.constant 32 : index
    %c0_23 = arith.constant 0 : index
    %40 = vector.load %arg19[%c32, %c0_23] : memref<800x256xf32, #tpu.memory_space<vmem>>, vector<32x256xf32>
    tpu.vector_store %arg19[%c32, %c0_23], %39 {strides = array<i32>} : memref<800x256xf32, #tpu.memory_space<vmem>>, vector<32x256xf32>,
    %c32_i32 = arith.constant 32 : i32
    %41 = tpu.dynamic_rotate %30 by %c32_i32 dim 1 : vector<32x256xf32>, i32 -> vector<32x256xf32>
    %c2 = arith.constant 2 : index
    %c0_24 = arith.constant 0 : index
    %42 = vector.load %arg4[%c2, %c0_24] : memref<25x256xf32, #tpu.memory_space<vmem>>, vector<1x256xf32>
    %43 = vector.broadcast %42 : vector<1x256xf32> to vector<32x256xf32>
    %44 = arith.mulf %41, %43 : vector<32x256xf32>
    %c64 = arith.constant 64 : index
    %c0_25 = arith.constant 0 : index
    %45 = vector.load %arg19[%c64, %c0_25] : memref<800x256xf32, #tpu.memory_space<vmem>>, vector<32x256xf32>
    tpu.vector_store %arg19[%c64, %c0_25], %44 {strides = array<i32>} : memref<800x256xf32, #tpu.memory_space<vmem>>, vector<32x256xf32>,
    %c31_i32 = arith.constant 31 : i32
    %46 = tpu.dynamic_rotate %30 by %c31_i32 dim 1 : vector<32x256xf32>, i32 -> vector<32x256xf32>
    %c3 = arith.constant 3 : index
    %c0_26 = arith.constant 0 : index
    %47 = vector.load %arg4[%c3, %c0_26] : memref<25x256xf32, #tpu.memory_space<vmem>>, vector<1x256xf32>
    %48 = vector.broadcast %47 : vector<1x256xf32> to vector<32x256xf32>
    %49 = arith.mulf %46, %48 : vector<32x256xf32>
    %c96 = arith.constant 96 : index
    %c0_27 = arith.constant 0 : index
    %50 = vector.load %arg19[%c96, %c0_27] : memref<800x256xf32, #tpu.memory_space<vmem>>, vector<32x256xf32>
    tpu.vector_store %arg19[%c96, %c0_27], %49 {strides = array<i32>} : memref<800x256xf32, #tpu.memory_space<vmem>>, vector<32x256xf32>,
    %c30_i32 = arith.constant 30 : i32
    %51 = tpu.dynamic_rotate %30 by %c30_i32 dim 1 : vector<32x256xf32>, i32 -> vector<32x256xf32>
    %c4 = arith.constant 4 : index
    %c0_28 = arith.constant 0 : index
    %52 = vector.load %arg4[%c4, %c0_28] : memref<25x256xf32, #tpu.memory_space<vmem>>, vector<1x256xf32>
    %53 = vector.broadcast %52 : vector<1x256xf32> to vector<32x256xf32>
    %54 = arith.mulf %51, %53 : vector<32x256xf32>
    %c128 = arith.constant 128 : index
    %c0_29 = arith.constant 0 : index
    %55 = vector.load %arg19[%c128, %c0_29] : memref<800x256xf32, #tpu.memory_space<vmem>>, vector<32x256xf32>
    tpu.vector_store %arg19[%c128, %c0_29], %54 {strides = array<i32>} : memref<800x256xf32, #tpu.memory_space<vmem>>, vector<32x256xf32>,
    %c18_i32 = arith.constant 18 : i32
    %56 = tpu.dynamic_rotate %30 by %c18_i32 dim 1 : vector<32x256xf32>, i32 -> vector<32x256xf32>
    %c5 = arith.constant 5 : index
    %c0_30 = arith.constant 0 : index
    %57 = vector.load %arg4[%c5, %c0_30] : memref<25x256xf32, #tpu.memory_space<vmem>>, vector<1x256xf32>
    %58 = vector.broadcast %57 : vector<1x256xf32> to vector<32x256xf32>
    %59 = arith.mulf %56, %58 : vector<32x256xf32>
    %c160 = arith.constant 160 : index
    %c0_31 = arith.constant 0 : index
    %60 = vector.load %arg19[%c160, %c0_31] : memref<800x256xf32, #tpu.memory_space<vmem>>, vector<32x256xf32>
    tpu.vector_store %arg19[%c160, %c0_31], %59 {strides = array<i32>} : memref<800x256xf32, #tpu.memory_space<vmem>>, vector<32x256xf32>,
    %c17_i32 = arith.constant 17 : i32
    %61 = tpu.dynamic_rotate %30 by %c17_i32 dim 1 : vector<32x256xf32>, i32 -> vector<32x256xf32>
    %c6 = arith.constant 6 : index
    %c0_32 = arith.constant 0 : index
    %62 = vector.load %arg4[%c6, %c0_32] : memref<25x256xf32, #tpu.memory_space<vmem>>, vector<1x256xf32>
    %63 = vector.broadcast %62 : vector<1x256xf32> to vector<32x256xf32>
    %64 = arith.mulf %61, %63 : vector<32x256xf32>
    %c192 = arith.constant 192 : index
    %c0_33 = arith.constant 0 : index
    %65 = vector.load %arg19[%c192, %c0_33] : memref<800x256xf32, #tpu.memory_space<vmem>>, vector<32x256xf32>
    tpu.vector_store %arg19[%c192, %c0_33], %64 {strides = array<i32>} : memref<800x256xf32, #tpu.memory_space<vmem>>, vector<32x256xf32>,
    %c16_i32 = arith.constant 16 : i32
    %66 = tpu.dynamic_rotate %30 by %c16_i32 dim 1 : vector<32x256xf32>, i32 -> vector<32x256xf32>
    %c7 = arith.constant 7 : index
    %c0_34 = arith.constant 0 : index
    %67 = vector.load %arg4[%c7, %c0_34] : memref<25x256xf32, #tpu.memory_space<vmem>>, vector<1x256xf32>
    %68 = vector.broadcast %67 : vector<1x256xf32> to vector<32x256xf32>
    %69 = arith.mulf %66, %68 : vector<32x256xf32>
    %c224 = arith.constant 224 : index
    %c0_35 = arith.constant 0 : index
    %70 = vector.load %arg19[%c224, %c0_35] : memref<800x256xf32, #tpu.memory_space<vmem>>, vector<32x256xf32>
    tpu.vector_store %arg19[%c224, %c0_35], %69 {strides = array<i32>} : memref<800x256xf32, #tpu.memory_space<vmem>>, vector<32x256xf32>,
    %c15_i32 = arith.constant 15 : i32
    %71 = tpu.dynamic_rotate %30 by %c15_i32 dim 1 : vector<32x256xf32>, i32 -> vector<32x256xf32>
    %c8 = arith.constant 8 : index
    %c0_36 = arith.constant 0 : index
    %72 = vector.load %arg4[%c8, %c0_36] : memref<25x256xf32, #tpu.memory_space<vmem>>, vector<1x256xf32>
    %73 = vector.broadcast %72 : vector<1x256xf32> to vector<32x256xf32>
    %74 = arith.mulf %71, %73 : vector<32x256xf32>
    %c256 = arith.constant 256 : index
    %c0_37 = arith.constant 0 : index
    %75 = vector.load %arg19[%c256, %c0_37] : memref<800x256xf32, #tpu.memory_space<vmem>>, vector<32x256xf32>
    tpu.vector_store %arg19[%c256, %c0_37], %74 {strides = array<i32>} : memref<800x256xf32, #tpu.memory_space<vmem>>, vector<32x256xf32>,
    %c14_i32 = arith.constant 14 : i32
    %76 = tpu.dynamic_rotate %30 by %c14_i32 dim 1 : vector<32x256xf32>, i32 -> vector<32x256xf32>
    %c9 = arith.constant 9 : index
    %c0_38 = arith.constant 0 : index
    %77 = vector.load %arg4[%c9, %c0_38] : memref<25x256xf32, #tpu.memory_space<vmem>>, vector<1x256xf32>
    %78 = vector.broadcast %77 : vector<1x256xf32> to vector<32x256xf32>
    %79 = arith.mulf %76, %78 : vector<32x256xf32>
    %c288 = arith.constant 288 : index
    %c0_39 = arith.constant 0 : index
    %80 = vector.load %arg19[%c288, %c0_39] : memref<800x256xf32, #tpu.memory_space<vmem>>, vector<32x256xf32>
    tpu.vector_store %arg19[%c288, %c0_39], %79 {strides = array<i32>} : memref<800x256xf32, #tpu.memory_space<vmem>>, vector<32x256xf32>,
    %c2_i32 = arith.constant 2 : i32
    %81 = tpu.dynamic_rotate %30 by %c2_i32 dim 1 : vector<32x256xf32>, i32 -> vector<32x256xf32>
    %c10 = arith.constant 10 : index
    %c0_40 = arith.constant 0 : index
    %82 = vector.load %arg4[%c10, %c0_40] : memref<25x256xf32, #tpu.memory_space<vmem>>, vector<1x256xf32>
    %83 = vector.broadcast %82 : vector<1x256xf32> to vector<32x256xf32>
    %84 = arith.mulf %81, %83 : vector<32x256xf32>
    %c320 = arith.constant 320 : index
    %c0_41 = arith.constant 0 : index
    %85 = vector.load %arg19[%c320, %c0_41] : memref<800x256xf32, #tpu.memory_space<vmem>>, vector<32x256xf32>
    tpu.vector_store %arg19[%c320, %c0_41], %84 {strides = array<i32>} : memref<800x256xf32, #tpu.memory_space<vmem>>, vector<32x256xf32>,
    %c1_i32 = arith.constant 1 : i32
    %86 = tpu.dynamic_rotate %30 by %c1_i32 dim 1 : vector<32x256xf32>, i32 -> vector<32x256xf32>
    %c11 = arith.constant 11 : index
    %c0_42 = arith.constant 0 : index
    %87 = vector.load %arg4[%c11, %c0_42] : memref<25x256xf32, #tpu.memory_space<vmem>>, vector<1x256xf32>
    %88 = vector.broadcast %87 : vector<1x256xf32> to vector<32x256xf32>
    %89 = arith.mulf %86, %88 : vector<32x256xf32>
    %c352 = arith.constant 352 : index
    %c0_43 = arith.constant 0 : index
    %90 = vector.load %arg19[%c352, %c0_43] : memref<800x256xf32, #tpu.memory_space<vmem>>, vector<32x256xf32>
    tpu.vector_store %arg19[%c352, %c0_43], %89 {strides = array<i32>} : memref<800x256xf32, #tpu.memory_space<vmem>>, vector<32x256xf32>,
    %c384 = arith.constant 384 : index
    %c0_44 = arith.constant 0 : index
    %91 = vector.load %arg19[%c384, %c0_44] : memref<800x256xf32, #tpu.memory_space<vmem>>, vector<32x256xf32>
    tpu.vector_store %arg19[%c384, %c0_44], %30 {strides = array<i32>} : memref<800x256xf32, #tpu.memory_space<vmem>>, vector<32x256xf32>,
    %c255_i32 = arith.constant 255 : i32
    %92 = tpu.dynamic_rotate %30 by %c255_i32 dim 1 : vector<32x256xf32>, i32 -> vector<32x256xf32>
    %c13 = arith.constant 13 : index
    %c0_45 = arith.constant 0 : index
    %93 = vector.load %arg4[%c13, %c0_45] : memref<25x256xf32, #tpu.memory_space<vmem>>, vector<1x256xf32>
    %94 = vector.broadcast %93 : vector<1x256xf32> to vector<32x256xf32>
    %95 = arith.mulf %92, %94 : vector<32x256xf32>
    %c416 = arith.constant 416 : index
    %c0_46 = arith.constant 0 : index
    %96 = vector.load %arg19[%c416, %c0_46] : memref<800x256xf32, #tpu.memory_space<vmem>>, vector<32x256xf32>
    tpu.vector_store %arg19[%c416, %c0_46], %95 {strides = array<i32>} : memref<800x256xf32, #tpu.memory_space<vmem>>, vector<32x256xf32>,
    %c254_i32 = arith.constant 254 : i32
    %97 = tpu.dynamic_rotate %30 by %c254_i32 dim 1 : vector<32x256xf32>, i32 -> vector<32x256xf32>
    %c14 = arith.constant 14 : index
    %c0_47 = arith.constant 0 : index
    %98 = vector.load %arg4[%c14, %c0_47] : memref<25x256xf32, #tpu.memory_space<vmem>>, vector<1x256xf32>
    %99 = vector.broadcast %98 : vector<1x256xf32> to vector<32x256xf32>
    %100 = arith.mulf %97, %99 : vector<32x256xf32>
    %c448 = arith.constant 448 : index
    %c0_48 = arith.constant 0 : index
    %101 = vector.load %arg19[%c448, %c0_48] : memref<800x256xf32, #tpu.memory_space<vmem>>, vector<32x256xf32>
    tpu.vector_store %arg19[%c448, %c0_48], %100 {strides = array<i32>} : memref<800x256xf32, #tpu.memory_space<vmem>>, vector<32x256xf32>,
    %c242_i32 = arith.constant 242 : i32
    %102 = tpu.dynamic_rotate %30 by %c242_i32 dim 1 : vector<32x256xf32>, i32 -> vector<32x256xf32>
    %c15 = arith.constant 15 : index
    %c0_49 = arith.constant 0 : index
    %103 = vector.load %arg4[%c15, %c0_49] : memref<25x256xf32, #tpu.memory_space<vmem>>, vector<1x256xf32>
    %104 = vector.broadcast %103 : vector<1x256xf32> to vector<32x256xf32>
    %105 = arith.mulf %102, %104 : vector<32x256xf32>
    %c480 = arith.constant 480 : index
    %c0_50 = arith.constant 0 : index
    %106 = vector.load %arg19[%c480, %c0_50] : memref<800x256xf32, #tpu.memory_space<vmem>>, vector<32x256xf32>
    tpu.vector_store %arg19[%c480, %c0_50], %105 {strides = array<i32>} : memref<800x256xf32, #tpu.memory_space<vmem>>, vector<32x256xf32>,
    %c241_i32 = arith.constant 241 : i32
    %107 = tpu.dynamic_rotate %30 by %c241_i32 dim 1 : vector<32x256xf32>, i32 -> vector<32x256xf32>
    %c16 = arith.constant 16 : index
    %c0_51 = arith.constant 0 : index
    %108 = vector.load %arg4[%c16, %c0_51] : memref<25x256xf32, #tpu.memory_space<vmem>>, vector<1x256xf32>
    %109 = vector.broadcast %108 : vector<1x256xf32> to vector<32x256xf32>
    %110 = arith.mulf %107, %109 : vector<32x256xf32>
    %c512 = arith.constant 512 : index
    %c0_52 = arith.constant 0 : index
    %111 = vector.load %arg19[%c512, %c0_52] : memref<800x256xf32, #tpu.memory_space<vmem>>, vector<32x256xf32>
    tpu.vector_store %arg19[%c512, %c0_52], %110 {strides = array<i32>} : memref<800x256xf32, #tpu.memory_space<vmem>>, vector<32x256xf32>,
    %c240_i32 = arith.constant 240 : i32
    %112 = tpu.dynamic_rotate %30 by %c240_i32 dim 1 : vector<32x256xf32>, i32 -> vector<32x256xf32>
    %c17 = arith.constant 17 : index
    %c0_53 = arith.constant 0 : index
    %113 = vector.load %arg4[%c17, %c0_53] : memref<25x256xf32, #tpu.memory_space<vmem>>, vector<1x256xf32>
    %114 = vector.broadcast %113 : vector<1x256xf32> to vector<32x256xf32>
    %115 = arith.mulf %112, %114 : vector<32x256xf32>
    %c544 = arith.constant 544 : index
    %c0_54 = arith.constant 0 : index
    %116 = vector.load %arg19[%c544, %c0_54] : memref<800x256xf32, #tpu.memory_space<vmem>>, vector<32x256xf32>
    tpu.vector_store %arg19[%c544, %c0_54], %115 {strides = array<i32>} : memref<800x256xf32, #tpu.memory_space<vmem>>, vector<32x256xf32>,
    %c239_i32 = arith.constant 239 : i32
    %117 = tpu.dynamic_rotate %30 by %c239_i32 dim 1 : vector<32x256xf32>, i32 -> vector<32x256xf32>
    %c18 = arith.constant 18 : index
    %c0_55 = arith.constant 0 : index
    %118 = vector.load %arg4[%c18, %c0_55] : memref<25x256xf32, #tpu.memory_space<vmem>>, vector<1x256xf32>
    %119 = vector.broadcast %118 : vector<1x256xf32> to vector<32x256xf32>
    %120 = arith.mulf %117, %119 : vector<32x256xf32>
    %c576 = arith.constant 576 : index
    %c0_56 = arith.constant 0 : index
    %121 = vector.load %arg19[%c576, %c0_56] : memref<800x256xf32, #tpu.memory_space<vmem>>, vector<32x256xf32>
    tpu.vector_store %arg19[%c576, %c0_56], %120 {strides = array<i32>} : memref<800x256xf32, #tpu.memory_space<vmem>>, vector<32x256xf32>,
    %c238_i32 = arith.constant 238 : i32
    %122 = tpu.dynamic_rotate %30 by %c238_i32 dim 1 : vector<32x256xf32>, i32 -> vector<32x256xf32>
    %c19 = arith.constant 19 : index
    %c0_57 = arith.constant 0 : index
    %123 = vector.load %arg4[%c19, %c0_57] : memref<25x256xf32, #tpu.memory_space<vmem>>, vector<1x256xf32>
    %124 = vector.broadcast %123 : vector<1x256xf32> to vector<32x256xf32>
    %125 = arith.mulf %122, %124 : vector<32x256xf32>
    %c608 = arith.constant 608 : index
    %c0_58 = arith.constant 0 : index
    %126 = vector.load %arg19[%c608, %c0_58] : memref<800x256xf32, #tpu.memory_space<vmem>>, vector<32x256xf32>
    tpu.vector_store %arg19[%c608, %c0_58], %125 {strides = array<i32>} : memref<800x256xf32, #tpu.memory_space<vmem>>, vector<32x256xf32>,
    %c226_i32 = arith.constant 226 : i32
    %127 = tpu.dynamic_rotate %30 by %c226_i32 dim 1 : vector<32x256xf32>, i32 -> vector<32x256xf32>
    %c20 = arith.constant 20 : index
    %c0_59 = arith.constant 0 : index
    %128 = vector.load %arg4[%c20, %c0_59] : memref<25x256xf32, #tpu.memory_space<vmem>>, vector<1x256xf32>
    %129 = vector.broadcast %128 : vector<1x256xf32> to vector<32x256xf32>
    %130 = arith.mulf %127, %129 : vector<32x256xf32>
    %c640 = arith.constant 640 : index
    %c0_60 = arith.constant 0 : index
    %131 = vector.load %arg19[%c640, %c0_60] : memref<800x256xf32, #tpu.memory_space<vmem>>, vector<32x256xf32>
    tpu.vector_store %arg19[%c640, %c0_60], %130 {strides = array<i32>} : memref<800x256xf32, #tpu.memory_space<vmem>>, vector<32x256xf32>,
    %c225_i32 = arith.constant 225 : i32
    %132 = tpu.dynamic_rotate %30 by %c225_i32 dim 1 : vector<32x256xf32>, i32 -> vector<32x256xf32>
    %c21 = arith.constant 21 : index
    %c0_61 = arith.constant 0 : index
    %133 = vector.load %arg4[%c21, %c0_61] : memref<25x256xf32, #tpu.memory_space<vmem>>, vector<1x256xf32>
    %134 = vector.broadcast %133 : vector<1x256xf32> to vector<32x256xf32>
    %135 = arith.mulf %132, %134 : vector<32x256xf32>
    %c672 = arith.constant 672 : index
    %c0_62 = arith.constant 0 : index
    %136 = vector.load %arg19[%c672, %c0_62] : memref<800x256xf32, #tpu.memory_space<vmem>>, vector<32x256xf32>
    tpu.vector_store %arg19[%c672, %c0_62], %135 {strides = array<i32>} : memref<800x256xf32, #tpu.memory_space<vmem>>, vector<32x256xf32>,
    %c224_i32 = arith.constant 224 : i32
    %137 = tpu.dynamic_rotate %30 by %c224_i32 dim 1 : vector<32x256xf32>, i32 -> vector<32x256xf32>
    %c22 = arith.constant 22 : index
    %c0_63 = arith.constant 0 : index
    %138 = vector.load %arg4[%c22, %c0_63] : memref<25x256xf32, #tpu.memory_space<vmem>>, vector<1x256xf32>
    %139 = vector.broadcast %138 : vector<1x256xf32> to vector<32x256xf32>
    %140 = arith.mulf %137, %139 : vector<32x256xf32>
    %c704 = arith.constant 704 : index
    %c0_64 = arith.constant 0 : index
    %141 = vector.load %arg19[%c704, %c0_64] : memref<800x256xf32, #tpu.memory_space<vmem>>, vector<32x256xf32>
    tpu.vector_store %arg19[%c704, %c0_64], %140 {strides = array<i32>} : memref<800x256xf32, #tpu.memory_space<vmem>>, vector<32x256xf32>,
    %c223_i32 = arith.constant 223 : i32
    %142 = tpu.dynamic_rotate %30 by %c223_i32 dim 1 : vector<32x256xf32>, i32 -> vector<32x256xf32>
    %c23 = arith.constant 23 : index
    %c0_65 = arith.constant 0 : index
    %143 = vector.load %arg4[%c23, %c0_65] : memref<25x256xf32, #tpu.memory_space<vmem>>, vector<1x256xf32>
    %144 = vector.broadcast %143 : vector<1x256xf32> to vector<32x256xf32>
    %145 = arith.mulf %142, %144 : vector<32x256xf32>
    %c736 = arith.constant 736 : index
    %c0_66 = arith.constant 0 : index
    %146 = vector.load %arg19[%c736, %c0_66] : memref<800x256xf32, #tpu.memory_space<vmem>>, vector<32x256xf32>
    tpu.vector_store %arg19[%c736, %c0_66], %145 {strides = array<i32>} : memref<800x256xf32, #tpu.memory_space<vmem>>, vector<32x256xf32>,
    %c222_i32 = arith.constant 222 : i32
    %147 = tpu.dynamic_rotate %30 by %c222_i32 dim 1 : vector<32x256xf32>, i32 -> vector<32x256xf32>
    %c24 = arith.constant 24 : index
    %c0_67 = arith.constant 0 : index
    %148 = vector.load %arg4[%c24, %c0_67] : memref<25x256xf32, #tpu.memory_space<vmem>>, vector<1x256xf32>
    %149 = vector.broadcast %148 : vector<1x256xf32> to vector<32x256xf32>
    %150 = arith.mulf %147, %149 : vector<32x256xf32>
    %c768 = arith.constant 768 : index
    %c0_68 = arith.constant 0 : index
    %151 = vector.load %arg19[%c768, %c0_68] : memref<800x256xf32, #tpu.memory_space<vmem>>, vector<32x256xf32>
    tpu.vector_store %arg19[%c768, %c0_68], %150 {strides = array<i32>} : memref<800x256xf32, #tpu.memory_space<vmem>>, vector<32x256xf32>,
    %c0_69 = arith.constant 0 : index
    %c0_70 = arith.constant 0 : index
    %152 = vector.load %arg11[%c0_69, %c0_70] : memref<32x800xf32, #tpu.memory_space<vmem>>, vector<32x800xf32>
    %c0_71 = arith.constant 0 : index
    %c0_72 = arith.constant 0 : index
    %153 = vector.load %arg19[%c0_71, %c0_72] : memref<800x256xf32, #tpu.memory_space<vmem>>, vector<800x256xf32>
    %cst_73 = arith.constant dense<0.000000e+00> : vector<32x256xf32>
    %154 = tpu.matmul %152, %153, %cst_73 {dimension_numbers = #tpu.dot_dimension_numbers<[1], [0], [0], [1], [0, 0, 1, 1], [], []>} : vector<32x800xf32>, vector<800x256xf32>, vector<32x256xf32> -> vector<32x256xf32>
    %c0_74 = arith.constant 0 : index
    %c0_75 = arith.constant 0 : index
    %155 = vector.load %arg12[%c0_74, %c0_75] : memref<32x1xf32, #tpu.memory_space<vmem>>, vector<32x1xf32>
    %156 = vector.broadcast %155 : vector<32x1xf32> to vector<32x256xf32>
    %157 = arith.addf %154, %156 : vector<32x256xf32>
    %cst_76 = arith.constant 0.000000e+00 : f32
    %158 = vector.broadcast %cst_76 : f32 to vector<32x256xf32>
    %159 = arith.maximumf %157, %158 : vector<32x256xf32>
    %160 = vector.broadcast %0 : vector<1x256xf32> to vector<32x256xf32>
    %161 = arith.mulf %159, %160 : vector<32x256xf32>
    %c34_i32_77 = arith.constant 34 : i32
    %162 = tpu.dynamic_rotate %161 by %c34_i32_77 dim 1 : vector<32x256xf32>, i32 -> vector<32x256xf32>
    %c0_78 = arith.constant 0 : index
    %c0_79 = arith.constant 0 : index
    %163 = vector.load %arg4[%c0_78, %c0_79] : memref<25x256xf32, #tpu.memory_space<vmem>>, vector<1x256xf32>
    %164 = vector.broadcast %163 : vector<1x256xf32> to vector<32x256xf32>
    %165 = arith.mulf %162, %164 : vector<32x256xf32>
    %c0_80 = arith.constant 0 : index
    %c0_81 = arith.constant 0 : index
    %166 = vector.load %arg19[%c0_80, %c0_81] : memref<800x256xf32, #tpu.memory_space<vmem>>, vector<32x256xf32>
    tpu.vector_store %arg19[%c0_80, %c0_81], %165 {strides = array<i32>} : memref<800x256xf32, #tpu.memory_space<vmem>>, vector<32x256xf32>,
    %c33_i32_82 = arith.constant 33 : i32
    %167 = tpu.dynamic_rotate %161 by %c33_i32_82 dim 1 : vector<32x256xf32>, i32 -> vector<32x256xf32>
    %c1_83 = arith.constant 1 : index
    %c0_84 = arith.constant 0 : index
    %168 = vector.load %arg4[%c1_83, %c0_84] : memref<25x256xf32, #tpu.memory_space<vmem>>, vector<1x256xf32>
    %169 = vector.broadcast %168 : vector<1x256xf32> to vector<32x256xf32>
    %170 = arith.mulf %167, %169 : vector<32x256xf32>
    %c32_85 = arith.constant 32 : index
    %c0_86 = arith.constant 0 : index
    %171 = vector.load %arg19[%c32_85, %c0_86] : memref<800x256xf32, #tpu.memory_space<vmem>>, vector<32x256xf32>
    tpu.vector_store %arg19[%c32_85, %c0_86], %170 {strides = array<i32>} : memref<800x256xf32, #tpu.memory_space<vmem>>, vector<32x256xf32>,
    %c32_i32_87 = arith.constant 32 : i32
    %172 = tpu.dynamic_rotate %161 by %c32_i32_87 dim 1 : vector<32x256xf32>, i32 -> vector<32x256xf32>
    %c2_88 = arith.constant 2 : index
    %c0_89 = arith.constant 0 : index
    %173 = vector.load %arg4[%c2_88, %c0_89] : memref<25x256xf32, #tpu.memory_space<vmem>>, vector<1x256xf32>
    %174 = vector.broadcast %173 : vector<1x256xf32> to vector<32x256xf32>
    %175 = arith.mulf %172, %174 : vector<32x256xf32>
    %c64_90 = arith.constant 64 : index
    %c0_91 = arith.constant 0 : index
    %176 = vector.load %arg19[%c64_90, %c0_91] : memref<800x256xf32, #tpu.memory_space<vmem>>, vector<32x256xf32>
    tpu.vector_store %arg19[%c64_90, %c0_91], %175 {strides = array<i32>} : memref<800x256xf32, #tpu.memory_space<vmem>>, vector<32x256xf32>,
    %c31_i32_92 = arith.constant 31 : i32
    %177 = tpu.dynamic_rotate %161 by %c31_i32_92 dim 1 : vector<32x256xf32>, i32 -> vector<32x256xf32>
    %c3_93 = arith.constant 3 : index
    %c0_94 = arith.constant 0 : index
    %178 = vector.load %arg4[%c3_93, %c0_94] : memref<25x256xf32, #tpu.memory_space<vmem>>, vector<1x256xf32>
    %179 = vector.broadcast %178 : vector<1x256xf32> to vector<32x256xf32>
    %180 = arith.mulf %177, %179 : vector<32x256xf32>
    %c96_95 = arith.constant 96 : index
    %c0_96 = arith.constant 0 : index
    %181 = vector.load %arg19[%c96_95, %c0_96] : memref<800x256xf32, #tpu.memory_space<vmem>>, vector<32x256xf32>
    tpu.vector_store %arg19[%c96_95, %c0_96], %180 {strides = array<i32>} : memref<800x256xf32, #tpu.memory_space<vmem>>, vector<32x256xf32>,
    %c30_i32_97 = arith.constant 30 : i32
    %182 = tpu.dynamic_rotate %161 by %c30_i32_97 dim 1 : vector<32x256xf32>, i32 -> vector<32x256xf32>
    %c4_98 = arith.constant 4 : index
    %c0_99 = arith.constant 0 : index
    %183 = vector.load %arg4[%c4_98, %c0_99] : memref<25x256xf32, #tpu.memory_space<vmem>>, vector<1x256xf32>
    %184 = vector.broadcast %183 : vector<1x256xf32> to vector<32x256xf32>
    %185 = arith.mulf %182, %184 : vector<32x256xf32>
    %c128_100 = arith.constant 128 : index
    %c0_101 = arith.constant 0 : index
    %186 = vector.load %arg19[%c128_100, %c0_101] : memref<800x256xf32, #tpu.memory_space<vmem>>, vector<32x256xf32>
    tpu.vector_store %arg19[%c128_100, %c0_101], %185 {strides = array<i32>} : memref<800x256xf32, #tpu.memory_space<vmem>>, vector<32x256xf32>,
    %c18_i32_102 = arith.constant 18 : i32
    %187 = tpu.dynamic_rotate %161 by %c18_i32_102 dim 1 : vector<32x256xf32>, i32 -> vector<32x256xf32>
    %c5_103 = arith.constant 5 : index
    %c0_104 = arith.constant 0 : index
    %188 = vector.load %arg4[%c5_103, %c0_104] : memref<25x256xf32, #tpu.memory_space<vmem>>, vector<1x256xf32>
    %189 = vector.broadcast %188 : vector<1x256xf32> to vector<32x256xf32>
    %190 = arith.mulf %187, %189 : vector<32x256xf32>
    %c160_105 = arith.constant 160 : index
    %c0_106 = arith.constant 0 : index
    %191 = vector.load %arg19[%c160_105, %c0_106] : memref<800x256xf32, #tpu.memory_space<vmem>>, vector<32x256xf32>
    tpu.vector_store %arg19[%c160_105, %c0_106], %190 {strides = array<i32>} : memref<800x256xf32, #tpu.memory_space<vmem>>, vector<32x256xf32>,
    %c17_i32_107 = arith.constant 17 : i32
    %192 = tpu.dynamic_rotate %161 by %c17_i32_107 dim 1 : vector<32x256xf32>, i32 -> vector<32x256xf32>
    %c6_108 = arith.constant 6 : index
    %c0_109 = arith.constant 0 : index
    %193 = vector.load %arg4[%c6_108, %c0_109] : memref<25x256xf32, #tpu.memory_space<vmem>>, vector<1x256xf32>
    %194 = vector.broadcast %193 : vector<1x256xf32> to vector<32x256xf32>
    %195 = arith.mulf %192, %194 : vector<32x256xf32>
    %c192_110 = arith.constant 192 : index
    %c0_111 = arith.constant 0 : index
    %196 = vector.load %arg19[%c192_110, %c0_111] : memref<800x256xf32, #tpu.memory_space<vmem>>, vector<32x256xf32>
    tpu.vector_store %arg19[%c192_110, %c0_111], %195 {strides = array<i32>} : memref<800x256xf32, #tpu.memory_space<vmem>>, vector<32x256xf32>,
    %c16_i32_112 = arith.constant 16 : i32
    %197 = tpu.dynamic_rotate %161 by %c16_i32_112 dim 1 : vector<32x256xf32>, i32 -> vector<32x256xf32>
    %c7_113 = arith.constant 7 : index
    %c0_114 = arith.constant 0 : index
    %198 = vector.load %arg4[%c7_113, %c0_114] : memref<25x256xf32, #tpu.memory_space<vmem>>, vector<1x256xf32>
    %199 = vector.broadcast %198 : vector<1x256xf32> to vector<32x256xf32>
    %200 = arith.mulf %197, %199 : vector<32x256xf32>
    %c224_115 = arith.constant 224 : index
    %c0_116 = arith.constant 0 : index
    %201 = vector.load %arg19[%c224_115, %c0_116] : memref<800x256xf32, #tpu.memory_space<vmem>>, vector<32x256xf32>
    tpu.vector_store %arg19[%c224_115, %c0_116], %200 {strides = array<i32>} : memref<800x256xf32, #tpu.memory_space<vmem>>, vector<32x256xf32>,
    %c15_i32_117 = arith.constant 15 : i32
    %202 = tpu.dynamic_rotate %161 by %c15_i32_117 dim 1 : vector<32x256xf32>, i32 -> vector<32x256xf32>
    %c8_118 = arith.constant 8 : index
    %c0_119 = arith.constant 0 : index
    %203 = vector.load %arg4[%c8_118, %c0_119] : memref<25x256xf32, #tpu.memory_space<vmem>>, vector<1x256xf32>
    %204 = vector.broadcast %203 : vector<1x256xf32> to vector<32x256xf32>
    %205 = arith.mulf %202, %204 : vector<32x256xf32>
    %c256_120 = arith.constant 256 : index
    %c0_121 = arith.constant 0 : index
    %206 = vector.load %arg19[%c256_120, %c0_121] : memref<800x256xf32, #tpu.memory_space<vmem>>, vector<32x256xf32>
    tpu.vector_store %arg19[%c256_120, %c0_121], %205 {strides = array<i32>} : memref<800x256xf32, #tpu.memory_space<vmem>>, vector<32x256xf32>,
    %c14_i32_122 = arith.constant 14 : i32
    %207 = tpu.dynamic_rotate %161 by %c14_i32_122 dim 1 : vector<32x256xf32>, i32 -> vector<32x256xf32>
    %c9_123 = arith.constant 9 : index
    %c0_124 = arith.constant 0 : index
    %208 = vector.load %arg4[%c9_123, %c0_124] : memref<25x256xf32, #tpu.memory_space<vmem>>, vector<1x256xf32>
    %209 = vector.broadcast %208 : vector<1x256xf32> to vector<32x256xf32>
    %210 = arith.mulf %207, %209 : vector<32x256xf32>
    %c288_125 = arith.constant 288 : index
    %c0_126 = arith.constant 0 : index
    %211 = vector.load %arg19[%c288_125, %c0_126] : memref<800x256xf32, #tpu.memory_space<vmem>>, vector<32x256xf32>
    tpu.vector_store %arg19[%c288_125, %c0_126], %210 {strides = array<i32>} : memref<800x256xf32, #tpu.memory_space<vmem>>, vector<32x256xf32>,
    %c2_i32_127 = arith.constant 2 : i32
    %212 = tpu.dynamic_rotate %161 by %c2_i32_127 dim 1 : vector<32x256xf32>, i32 -> vector<32x256xf32>
    %c10_128 = arith.constant 10 : index
    %c0_129 = arith.constant 0 : index
    %213 = vector.load %arg4[%c10_128, %c0_129] : memref<25x256xf32, #tpu.memory_space<vmem>>, vector<1x256xf32>
    %214 = vector.broadcast %213 : vector<1x256xf32> to vector<32x256xf32>
    %215 = arith.mulf %212, %214 : vector<32x256xf32>
    %c320_130 = arith.constant 320 : index
    %c0_131 = arith.constant 0 : index
    %216 = vector.load %arg19[%c320_130, %c0_131] : memref<800x256xf32, #tpu.memory_space<vmem>>, vector<32x256xf32>
    tpu.vector_store %arg19[%c320_130, %c0_131], %215 {strides = array<i32>} : memref<800x256xf32, #tpu.memory_space<vmem>>, vector<32x256xf32>,
    %c1_i32_132 = arith.constant 1 : i32
    %217 = tpu.dynamic_rotate %161 by %c1_i32_132 dim 1 : vector<32x256xf32>, i32 -> vector<32x256xf32>
    %c11_133 = arith.constant 11 : index
    %c0_134 = arith.constant 0 : index
    %218 = vector.load %arg4[%c11_133, %c0_134] : memref<25x256xf32, #tpu.memory_space<vmem>>, vector<1x256xf32>
    %219 = vector.broadcast %218 : vector<1x256xf32> to vector<32x256xf32>
    %220 = arith.mulf %217, %219 : vector<32x256xf32>
    %c352_135 = arith.constant 352 : index
    %c0_136 = arith.constant 0 : index
    %221 = vector.load %arg19[%c352_135, %c0_136] : memref<800x256xf32, #tpu.memory_space<vmem>>, vector<32x256xf32>
    tpu.vector_store %arg19[%c352_135, %c0_136], %220 {strides = array<i32>} : memref<800x256xf32, #tpu.memory_space<vmem>>, vector<32x256xf32>,
    %c384_137 = arith.constant 384 : index
    %c0_138 = arith.constant 0 : index
    %222 = vector.load %arg19[%c384_137, %c0_138] : memref<800x256xf32, #tpu.memory_space<vmem>>, vector<32x256xf32>
    tpu.vector_store %arg19[%c384_137, %c0_138], %161 {strides = array<i32>} : memref<800x256xf32, #tpu.memory_space<vmem>>, vector<32x256xf32>,
    %c255_i32_139 = arith.constant 255 : i32
    %223 = tpu.dynamic_rotate %161 by %c255_i32_139 dim 1 : vector<32x256xf32>, i32 -> vector<32x256xf32>
    %c13_140 = arith.constant 13 : index
    %c0_141 = arith.constant 0 : index
    %224 = vector.load %arg4[%c13_140, %c0_141] : memref<25x256xf32, #tpu.memory_space<vmem>>, vector<1x256xf32>
    %225 = vector.broadcast %224 : vector<1x256xf32> to vector<32x256xf32>
    %226 = arith.mulf %223, %225 : vector<32x256xf32>
    %c416_142 = arith.constant 416 : index
    %c0_143 = arith.constant 0 : index
    %227 = vector.load %arg19[%c416_142, %c0_143] : memref<800x256xf32, #tpu.memory_space<vmem>>, vector<32x256xf32>
    tpu.vector_store %arg19[%c416_142, %c0_143], %226 {strides = array<i32>} : memref<800x256xf32, #tpu.memory_space<vmem>>, vector<32x256xf32>,
    %c254_i32_144 = arith.constant 254 : i32
    %228 = tpu.dynamic_rotate %161 by %c254_i32_144 dim 1 : vector<32x256xf32>, i32 -> vector<32x256xf32>
    %c14_145 = arith.constant 14 : index
    %c0_146 = arith.constant 0 : index
    %229 = vector.load %arg4[%c14_145, %c0_146] : memref<25x256xf32, #tpu.memory_space<vmem>>, vector<1x256xf32>
    %230 = vector.broadcast %229 : vector<1x256xf32> to vector<32x256xf32>
    %231 = arith.mulf %228, %230 : vector<32x256xf32>
    %c448_147 = arith.constant 448 : index
    %c0_148 = arith.constant 0 : index
    %232 = vector.load %arg19[%c448_147, %c0_148] : memref<800x256xf32, #tpu.memory_space<vmem>>, vector<32x256xf32>
    tpu.vector_store %arg19[%c448_147, %c0_148], %231 {strides = array<i32>} : memref<800x256xf32, #tpu.memory_space<vmem>>, vector<32x256xf32>,
    %c242_i32_149 = arith.constant 242 : i32
    %233 = tpu.dynamic_rotate %161 by %c242_i32_149 dim 1 : vector<32x256xf32>, i32 -> vector<32x256xf32>
    %c15_150 = arith.constant 15 : index
    %c0_151 = arith.constant 0 : index
    %234 = vector.load %arg4[%c15_150, %c0_151] : memref<25x256xf32, #tpu.memory_space<vmem>>, vector<1x256xf32>
    %235 = vector.broadcast %234 : vector<1x256xf32> to vector<32x256xf32>
    %236 = arith.mulf %233, %235 : vector<32x256xf32>
    %c480_152 = arith.constant 480 : index
    %c0_153 = arith.constant 0 : index
    %237 = vector.load %arg19[%c480_152, %c0_153] : memref<800x256xf32, #tpu.memory_space<vmem>>, vector<32x256xf32>
    tpu.vector_store %arg19[%c480_152, %c0_153], %236 {strides = array<i32>} : memref<800x256xf32, #tpu.memory_space<vmem>>, vector<32x256xf32>,
    %c241_i32_154 = arith.constant 241 : i32
    %238 = tpu.dynamic_rotate %161 by %c241_i32_154 dim 1 : vector<32x256xf32>, i32 -> vector<32x256xf32>
    %c16_155 = arith.constant 16 : index
    %c0_156 = arith.constant 0 : index
    %239 = vector.load %arg4[%c16_155, %c0_156] : memref<25x256xf32, #tpu.memory_space<vmem>>, vector<1x256xf32>
    %240 = vector.broadcast %239 : vector<1x256xf32> to vector<32x256xf32>
    %241 = arith.mulf %238, %240 : vector<32x256xf32>
    %c512_157 = arith.constant 512 : index
    %c0_158 = arith.constant 0 : index
    %242 = vector.load %arg19[%c512_157, %c0_158] : memref<800x256xf32, #tpu.memory_space<vmem>>, vector<32x256xf32>
    tpu.vector_store %arg19[%c512_157, %c0_158], %241 {strides = array<i32>} : memref<800x256xf32, #tpu.memory_space<vmem>>, vector<32x256xf32>,
    %c240_i32_159 = arith.constant 240 : i32
    %243 = tpu.dynamic_rotate %161 by %c240_i32_159 dim 1 : vector<32x256xf32>, i32 -> vector<32x256xf32>
    %c17_160 = arith.constant 17 : index
    %c0_161 = arith.constant 0 : index
    %244 = vector.load %arg4[%c17_160, %c0_161] : memref<25x256xf32, #tpu.memory_space<vmem>>, vector<1x256xf32>
    %245 = vector.broadcast %244 : vector<1x256xf32> to vector<32x256xf32>
    %246 = arith.mulf %243, %245 : vector<32x256xf32>
    %c544_162 = arith.constant 544 : index
    %c0_163 = arith.constant 0 : index
    %247 = vector.load %arg19[%c544_162, %c0_163] : memref<800x256xf32, #tpu.memory_space<vmem>>, vector<32x256xf32>
    tpu.vector_store %arg19[%c544_162, %c0_163], %246 {strides = array<i32>} : memref<800x256xf32, #tpu.memory_space<vmem>>, vector<32x256xf32>,
    %c239_i32_164 = arith.constant 239 : i32
    %248 = tpu.dynamic_rotate %161 by %c239_i32_164 dim 1 : vector<32x256xf32>, i32 -> vector<32x256xf32>
    %c18_165 = arith.constant 18 : index
    %c0_166 = arith.constant 0 : index
    %249 = vector.load %arg4[%c18_165, %c0_166] : memref<25x256xf32, #tpu.memory_space<vmem>>, vector<1x256xf32>
    %250 = vector.broadcast %249 : vector<1x256xf32> to vector<32x256xf32>
    %251 = arith.mulf %248, %250 : vector<32x256xf32>
    %c576_167 = arith.constant 576 : index
    %c0_168 = arith.constant 0 : index
    %252 = vector.load %arg19[%c576_167, %c0_168] : memref<800x256xf32, #tpu.memory_space<vmem>>, vector<32x256xf32>
    tpu.vector_store %arg19[%c576_167, %c0_168], %251 {strides = array<i32>} : memref<800x256xf32, #tpu.memory_space<vmem>>, vector<32x256xf32>,
    %c238_i32_169 = arith.constant 238 : i32
    %253 = tpu.dynamic_rotate %161 by %c238_i32_169 dim 1 : vector<32x256xf32>, i32 -> vector<32x256xf32>
    %c19_170 = arith.constant 19 : index
    %c0_171 = arith.constant 0 : index
    %254 = vector.load %arg4[%c19_170, %c0_171] : memref<25x256xf32, #tpu.memory_space<vmem>>, vector<1x256xf32>
    %255 = vector.broadcast %254 : vector<1x256xf32> to vector<32x256xf32>
    %256 = arith.mulf %253, %255 : vector<32x256xf32>
    %c608_172 = arith.constant 608 : index
    %c0_173 = arith.constant 0 : index
    %257 = vector.load %arg19[%c608_172, %c0_173] : memref<800x256xf32, #tpu.memory_space<vmem>>, vector<32x256xf32>
    tpu.vector_store %arg19[%c608_172, %c0_173], %256 {strides = array<i32>} : memref<800x256xf32, #tpu.memory_space<vmem>>, vector<32x256xf32>,
    %c226_i32_174 = arith.constant 226 : i32
    %258 = tpu.dynamic_rotate %161 by %c226_i32_174 dim 1 : vector<32x256xf32>, i32 -> vector<32x256xf32>
    %c20_175 = arith.constant 20 : index
    %c0_176 = arith.constant 0 : index
    %259 = vector.load %arg4[%c20_175, %c0_176] : memref<25x256xf32, #tpu.memory_space<vmem>>, vector<1x256xf32>
    %260 = vector.broadcast %259 : vector<1x256xf32> to vector<32x256xf32>
    %261 = arith.mulf %258, %260 : vector<32x256xf32>
    %c640_177 = arith.constant 640 : index
    %c0_178 = arith.constant 0 : index
    %262 = vector.load %arg19[%c640_177, %c0_178] : memref<800x256xf32, #tpu.memory_space<vmem>>, vector<32x256xf32>
    tpu.vector_store %arg19[%c640_177, %c0_178], %261 {strides = array<i32>} : memref<800x256xf32, #tpu.memory_space<vmem>>, vector<32x256xf32>,
    %c225_i32_179 = arith.constant 225 : i32
    %263 = tpu.dynamic_rotate %161 by %c225_i32_179 dim 1 : vector<32x256xf32>, i32 -> vector<32x256xf32>
    %c21_180 = arith.constant 21 : index
    %c0_181 = arith.constant 0 : index
    %264 = vector.load %arg4[%c21_180, %c0_181] : memref<25x256xf32, #tpu.memory_space<vmem>>, vector<1x256xf32>
    %265 = vector.broadcast %264 : vector<1x256xf32> to vector<32x256xf32>
    %266 = arith.mulf %263, %265 : vector<32x256xf32>
    %c672_182 = arith.constant 672 : index
    %c0_183 = arith.constant 0 : index
    %267 = vector.load %arg19[%c672_182, %c0_183] : memref<800x256xf32, #tpu.memory_space<vmem>>, vector<32x256xf32>
    tpu.vector_store %arg19[%c672_182, %c0_183], %266 {strides = array<i32>} : memref<800x256xf32, #tpu.memory_space<vmem>>, vector<32x256xf32>,
    %c224_i32_184 = arith.constant 224 : i32
    %268 = tpu.dynamic_rotate %161 by %c224_i32_184 dim 1 : vector<32x256xf32>, i32 -> vector<32x256xf32>
    %c22_185 = arith.constant 22 : index
    %c0_186 = arith.constant 0 : index
    %269 = vector.load %arg4[%c22_185, %c0_186] : memref<25x256xf32, #tpu.memory_space<vmem>>, vector<1x256xf32>
    %270 = vector.broadcast %269 : vector<1x256xf32> to vector<32x256xf32>
    %271 = arith.mulf %268, %270 : vector<32x256xf32>
    %c704_187 = arith.constant 704 : index
    %c0_188 = arith.constant 0 : index
    %272 = vector.load %arg19[%c704_187, %c0_188] : memref<800x256xf32, #tpu.memory_space<vmem>>, vector<32x256xf32>
    tpu.vector_store %arg19[%c704_187, %c0_188], %271 {strides = array<i32>} : memref<800x256xf32, #tpu.memory_space<vmem>>, vector<32x256xf32>,
    %c223_i32_189 = arith.constant 223 : i32
    %273 = tpu.dynamic_rotate %161 by %c223_i32_189 dim 1 : vector<32x256xf32>, i32 -> vector<32x256xf32>
    %c23_190 = arith.constant 23 : index
    %c0_191 = arith.constant 0 : index
    %274 = vector.load %arg4[%c23_190, %c0_191] : memref<25x256xf32, #tpu.memory_space<vmem>>, vector<1x256xf32>
    %275 = vector.broadcast %274 : vector<1x256xf32> to vector<32x256xf32>
    %276 = arith.mulf %273, %275 : vector<32x256xf32>
    %c736_192 = arith.constant 736 : index
    %c0_193 = arith.constant 0 : index
    %277 = vector.load %arg19[%c736_192, %c0_193] : memref<800x256xf32, #tpu.memory_space<vmem>>, vector<32x256xf32>
    tpu.vector_store %arg19[%c736_192, %c0_193], %276 {strides = array<i32>} : memref<800x256xf32, #tpu.memory_space<vmem>>, vector<32x256xf32>,
    %c222_i32_194 = arith.constant 222 : i32
    %278 = tpu.dynamic_rotate %161 by %c222_i32_194 dim 1 : vector<32x256xf32>, i32 -> vector<32x256xf32>
    %c24_195 = arith.constant 24 : index
    %c0_196 = arith.constant 0 : index
    %279 = vector.load %arg4[%c24_195, %c0_196] : memref<25x256xf32, #tpu.memory_space<vmem>>, vector<1x256xf32>
    %280 = vector.broadcast %279 : vector<1x256xf32> to vector<32x256xf32>
    %281 = arith.mulf %278, %280 : vector<32x256xf32>
    %c768_197 = arith.constant 768 : index
    %c0_198 = arith.constant 0 : index
    %282 = vector.load %arg19[%c768_197, %c0_198] : memref<800x256xf32, #tpu.memory_space<vmem>>, vector<32x256xf32>
    tpu.vector_store %arg19[%c768_197, %c0_198], %281 {strides = array<i32>} : memref<800x256xf32, #tpu.memory_space<vmem>>, vector<32x256xf32>,
    %c0_199 = arith.constant 0 : index
    %c0_200 = arith.constant 0 : index
    %283 = vector.load %arg13[%c0_199, %c0_200] : memref<32x800xf32, #tpu.memory_space<vmem>>, vector<32x800xf32>
    %c0_201 = arith.constant 0 : index
    %c0_202 = arith.constant 0 : index
    %284 = vector.load %arg19[%c0_201, %c0_202] : memref<800x256xf32, #tpu.memory_space<vmem>>, vector<800x256xf32>
    %cst_203 = arith.constant dense<0.000000e+00> : vector<32x256xf32>
    %285 = tpu.matmul %283, %284, %cst_203 {dimension_numbers = #tpu.dot_dimension_numbers<[1], [0], [0], [1], [0, 0, 1, 1], [], []>} : vector<32x800xf32>, vector<800x256xf32>, vector<32x256xf32> -> vector<32x256xf32>
    %c0_204 = arith.constant 0 : index
    %c0_205 = arith.constant 0 : index
    %286 = vector.load %arg14[%c0_204, %c0_205] : memref<32x1xf32, #tpu.memory_space<vmem>>, vector<32x1xf32>
    %287 = vector.broadcast %286 : vector<32x1xf32> to vector<32x256xf32>
    %288 = arith.addf %285, %287 : vector<32x256xf32>
    %cst_206 = arith.constant 0.000000e+00 : f32
    %289 = vector.broadcast %cst_206 : f32 to vector<32x256xf32>
    %290 = arith.maximumf %288, %289 : vector<32x256xf32>
    %291 = vector.broadcast %0 : vector<1x256xf32> to vector<32x256xf32>
    %292 = arith.mulf %290, %291 : vector<32x256xf32>
    %c34_i32_207 = arith.constant 34 : i32
    %293 = tpu.dynamic_rotate %292 by %c34_i32_207 dim 1 : vector<32x256xf32>, i32 -> vector<32x256xf32>
    %c0_208 = arith.constant 0 : index
    %c0_209 = arith.constant 0 : index
    %294 = vector.load %arg4[%c0_208, %c0_209] : memref<25x256xf32, #tpu.memory_space<vmem>>, vector<1x256xf32>
    %295 = vector.broadcast %294 : vector<1x256xf32> to vector<32x256xf32>
    %296 = arith.mulf %293, %295 : vector<32x256xf32>
    %c0_210 = arith.constant 0 : index
    %c0_211 = arith.constant 0 : index
    %297 = vector.load %arg19[%c0_210, %c0_211] : memref<800x256xf32, #tpu.memory_space<vmem>>, vector<32x256xf32>
    tpu.vector_store %arg19[%c0_210, %c0_211], %296 {strides = array<i32>} : memref<800x256xf32, #tpu.memory_space<vmem>>, vector<32x256xf32>,
    %c33_i32_212 = arith.constant 33 : i32
    %298 = tpu.dynamic_rotate %292 by %c33_i32_212 dim 1 : vector<32x256xf32>, i32 -> vector<32x256xf32>
    %c1_213 = arith.constant 1 : index
    %c0_214 = arith.constant 0 : index
    %299 = vector.load %arg4[%c1_213, %c0_214] : memref<25x256xf32, #tpu.memory_space<vmem>>, vector<1x256xf32>
    %300 = vector.broadcast %299 : vector<1x256xf32> to vector<32x256xf32>
    %301 = arith.mulf %298, %300 : vector<32x256xf32>
    %c32_215 = arith.constant 32 : index
    %c0_216 = arith.constant 0 : index
    %302 = vector.load %arg19[%c32_215, %c0_216] : memref<800x256xf32, #tpu.memory_space<vmem>>, vector<32x256xf32>
    tpu.vector_store %arg19[%c32_215, %c0_216], %301 {strides = array<i32>} : memref<800x256xf32, #tpu.memory_space<vmem>>, vector<32x256xf32>,
    %c32_i32_217 = arith.constant 32 : i32
    %303 = tpu.dynamic_rotate %292 by %c32_i32_217 dim 1 : vector<32x256xf32>, i32 -> vector<32x256xf32>
    %c2_218 = arith.constant 2 : index
    %c0_219 = arith.constant 0 : index
    %304 = vector.load %arg4[%c2_218, %c0_219] : memref<25x256xf32, #tpu.memory_space<vmem>>, vector<1x256xf32>
    %305 = vector.broadcast %304 : vector<1x256xf32> to vector<32x256xf32>
    %306 = arith.mulf %303, %305 : vector<32x256xf32>
    %c64_220 = arith.constant 64 : index
    %c0_221 = arith.constant 0 : index
    %307 = vector.load %arg19[%c64_220, %c0_221] : memref<800x256xf32, #tpu.memory_space<vmem>>, vector<32x256xf32>
    tpu.vector_store %arg19[%c64_220, %c0_221], %306 {strides = array<i32>} : memref<800x256xf32, #tpu.memory_space<vmem>>, vector<32x256xf32>,
    %c31_i32_222 = arith.constant 31 : i32
    %308 = tpu.dynamic_rotate %292 by %c31_i32_222 dim 1 : vector<32x256xf32>, i32 -> vector<32x256xf32>
    %c3_223 = arith.constant 3 : index
    %c0_224 = arith.constant 0 : index
    %309 = vector.load %arg4[%c3_223, %c0_224] : memref<25x256xf32, #tpu.memory_space<vmem>>, vector<1x256xf32>
    %310 = vector.broadcast %309 : vector<1x256xf32> to vector<32x256xf32>
    %311 = arith.mulf %308, %310 : vector<32x256xf32>
    %c96_225 = arith.constant 96 : index
    %c0_226 = arith.constant 0 : index
    %312 = vector.load %arg19[%c96_225, %c0_226] : memref<800x256xf32, #tpu.memory_space<vmem>>, vector<32x256xf32>
    tpu.vector_store %arg19[%c96_225, %c0_226], %311 {strides = array<i32>} : memref<800x256xf32, #tpu.memory_space<vmem>>, vector<32x256xf32>,
    %c30_i32_227 = arith.constant 30 : i32
    %313 = tpu.dynamic_rotate %292 by %c30_i32_227 dim 1 : vector<32x256xf32>, i32 -> vector<32x256xf32>
    %c4_228 = arith.constant 4 : index
    %c0_229 = arith.constant 0 : index
    %314 = vector.load %arg4[%c4_228, %c0_229] : memref<25x256xf32, #tpu.memory_space<vmem>>, vector<1x256xf32>
    %315 = vector.broadcast %314 : vector<1x256xf32> to vector<32x256xf32>
    %316 = arith.mulf %313, %315 : vector<32x256xf32>
    %c128_230 = arith.constant 128 : index
    %c0_231 = arith.constant 0 : index
    %317 = vector.load %arg19[%c128_230, %c0_231] : memref<800x256xf32, #tpu.memory_space<vmem>>, vector<32x256xf32>
    tpu.vector_store %arg19[%c128_230, %c0_231], %316 {strides = array<i32>} : memref<800x256xf32, #tpu.memory_space<vmem>>, vector<32x256xf32>,
    %c18_i32_232 = arith.constant 18 : i32
    %318 = tpu.dynamic_rotate %292 by %c18_i32_232 dim 1 : vector<32x256xf32>, i32 -> vector<32x256xf32>
    %c5_233 = arith.constant 5 : index
    %c0_234 = arith.constant 0 : index
    %319 = vector.load %arg4[%c5_233, %c0_234] : memref<25x256xf32, #tpu.memory_space<vmem>>, vector<1x256xf32>
    %320 = vector.broadcast %319 : vector<1x256xf32> to vector<32x256xf32>
    %321 = arith.mulf %318, %320 : vector<32x256xf32>
    %c160_235 = arith.constant 160 : index
    %c0_236 = arith.constant 0 : index
    %322 = vector.load %arg19[%c160_235, %c0_236] : memref<800x256xf32, #tpu.memory_space<vmem>>, vector<32x256xf32>
    tpu.vector_store %arg19[%c160_235, %c0_236], %321 {strides = array<i32>} : memref<800x256xf32, #tpu.memory_space<vmem>>, vector<32x256xf32>,
    %c17_i32_237 = arith.constant 17 : i32
    %323 = tpu.dynamic_rotate %292 by %c17_i32_237 dim 1 : vector<32x256xf32>, i32 -> vector<32x256xf32>
    %c6_238 = arith.constant 6 : index
    %c0_239 = arith.constant 0 : index
    %324 = vector.load %arg4[%c6_238, %c0_239] : memref<25x256xf32, #tpu.memory_space<vmem>>, vector<1x256xf32>
    %325 = vector.broadcast %324 : vector<1x256xf32> to vector<32x256xf32>
    %326 = arith.mulf %323, %325 : vector<32x256xf32>
    %c192_240 = arith.constant 192 : index
    %c0_241 = arith.constant 0 : index
    %327 = vector.load %arg19[%c192_240, %c0_241] : memref<800x256xf32, #tpu.memory_space<vmem>>, vector<32x256xf32>
    tpu.vector_store %arg19[%c192_240, %c0_241], %326 {strides = array<i32>} : memref<800x256xf32, #tpu.memory_space<vmem>>, vector<32x256xf32>,
    %c16_i32_242 = arith.constant 16 : i32
    %328 = tpu.dynamic_rotate %292 by %c16_i32_242 dim 1 : vector<32x256xf32>, i32 -> vector<32x256xf32>
    %c7_243 = arith.constant 7 : index
    %c0_244 = arith.constant 0 : index
    %329 = vector.load %arg4[%c7_243, %c0_244] : memref<25x256xf32, #tpu.memory_space<vmem>>, vector<1x256xf32>
    %330 = vector.broadcast %329 : vector<1x256xf32> to vector<32x256xf32>
    %331 = arith.mulf %328, %330 : vector<32x256xf32>
    %c224_245 = arith.constant 224 : index
    %c0_246 = arith.constant 0 : index
    %332 = vector.load %arg19[%c224_245, %c0_246] : memref<800x256xf32, #tpu.memory_space<vmem>>, vector<32x256xf32>
    tpu.vector_store %arg19[%c224_245, %c0_246], %331 {strides = array<i32>} : memref<800x256xf32, #tpu.memory_space<vmem>>, vector<32x256xf32>,
    %c15_i32_247 = arith.constant 15 : i32
    %333 = tpu.dynamic_rotate %292 by %c15_i32_247 dim 1 : vector<32x256xf32>, i32 -> vector<32x256xf32>
    %c8_248 = arith.constant 8 : index
    %c0_249 = arith.constant 0 : index
    %334 = vector.load %arg4[%c8_248, %c0_249] : memref<25x256xf32, #tpu.memory_space<vmem>>, vector<1x256xf32>
    %335 = vector.broadcast %334 : vector<1x256xf32> to vector<32x256xf32>
    %336 = arith.mulf %333, %335 : vector<32x256xf32>
    %c256_250 = arith.constant 256 : index
    %c0_251 = arith.constant 0 : index
    %337 = vector.load %arg19[%c256_250, %c0_251] : memref<800x256xf32, #tpu.memory_space<vmem>>, vector<32x256xf32>
    tpu.vector_store %arg19[%c256_250, %c0_251], %336 {strides = array<i32>} : memref<800x256xf32, #tpu.memory_space<vmem>>, vector<32x256xf32>,
    %c14_i32_252 = arith.constant 14 : i32
    %338 = tpu.dynamic_rotate %292 by %c14_i32_252 dim 1 : vector<32x256xf32>, i32 -> vector<32x256xf32>
    %c9_253 = arith.constant 9 : index
    %c0_254 = arith.constant 0 : index
    %339 = vector.load %arg4[%c9_253, %c0_254] : memref<25x256xf32, #tpu.memory_space<vmem>>, vector<1x256xf32>
    %340 = vector.broadcast %339 : vector<1x256xf32> to vector<32x256xf32>
    %341 = arith.mulf %338, %340 : vector<32x256xf32>
    %c288_255 = arith.constant 288 : index
    %c0_256 = arith.constant 0 : index
    %342 = vector.load %arg19[%c288_255, %c0_256] : memref<800x256xf32, #tpu.memory_space<vmem>>, vector<32x256xf32>
    tpu.vector_store %arg19[%c288_255, %c0_256], %341 {strides = array<i32>} : memref<800x256xf32, #tpu.memory_space<vmem>>, vector<32x256xf32>,
    %c2_i32_257 = arith.constant 2 : i32
    %343 = tpu.dynamic_rotate %292 by %c2_i32_257 dim 1 : vector<32x256xf32>, i32 -> vector<32x256xf32>
    %c10_258 = arith.constant 10 : index
    %c0_259 = arith.constant 0 : index
    %344 = vector.load %arg4[%c10_258, %c0_259] : memref<25x256xf32, #tpu.memory_space<vmem>>, vector<1x256xf32>
    %345 = vector.broadcast %344 : vector<1x256xf32> to vector<32x256xf32>
    %346 = arith.mulf %343, %345 : vector<32x256xf32>
    %c320_260 = arith.constant 320 : index
    %c0_261 = arith.constant 0 : index
    %347 = vector.load %arg19[%c320_260, %c0_261] : memref<800x256xf32, #tpu.memory_space<vmem>>, vector<32x256xf32>
    tpu.vector_store %arg19[%c320_260, %c0_261], %346 {strides = array<i32>} : memref<800x256xf32, #tpu.memory_space<vmem>>, vector<32x256xf32>,
    %c1_i32_262 = arith.constant 1 : i32
    %348 = tpu.dynamic_rotate %292 by %c1_i32_262 dim 1 : vector<32x256xf32>, i32 -> vector<32x256xf32>
    %c11_263 = arith.constant 11 : index
    %c0_264 = arith.constant 0 : index
    %349 = vector.load %arg4[%c11_263, %c0_264] : memref<25x256xf32, #tpu.memory_space<vmem>>, vector<1x256xf32>
    %350 = vector.broadcast %349 : vector<1x256xf32> to vector<32x256xf32>
    %351 = arith.mulf %348, %350 : vector<32x256xf32>
    %c352_265 = arith.constant 352 : index
    %c0_266 = arith.constant 0 : index
    %352 = vector.load %arg19[%c352_265, %c0_266] : memref<800x256xf32, #tpu.memory_space<vmem>>, vector<32x256xf32>
    tpu.vector_store %arg19[%c352_265, %c0_266], %351 {strides = array<i32>} : memref<800x256xf32, #tpu.memory_space<vmem>>, vector<32x256xf32>,
    %c384_267 = arith.constant 384 : index
    %c0_268 = arith.constant 0 : index
    %353 = vector.load %arg19[%c384_267, %c0_268] : memref<800x256xf32, #tpu.memory_space<vmem>>, vector<32x256xf32>
    tpu.vector_store %arg19[%c384_267, %c0_268], %292 {strides = array<i32>} : memref<800x256xf32, #tpu.memory_space<vmem>>, vector<32x256xf32>,
    %c255_i32_269 = arith.constant 255 : i32
    %354 = tpu.dynamic_rotate %292 by %c255_i32_269 dim 1 : vector<32x256xf32>, i32 -> vector<32x256xf32>
    %c13_270 = arith.constant 13 : index
    %c0_271 = arith.constant 0 : index
    %355 = vector.load %arg4[%c13_270, %c0_271] : memref<25x256xf32, #tpu.memory_space<vmem>>, vector<1x256xf32>
    %356 = vector.broadcast %355 : vector<1x256xf32> to vector<32x256xf32>
    %357 = arith.mulf %354, %356 : vector<32x256xf32>
    %c416_272 = arith.constant 416 : index
    %c0_273 = arith.constant 0 : index
    %358 = vector.load %arg19[%c416_272, %c0_273] : memref<800x256xf32, #tpu.memory_space<vmem>>, vector<32x256xf32>
    tpu.vector_store %arg19[%c416_272, %c0_273], %357 {strides = array<i32>} : memref<800x256xf32, #tpu.memory_space<vmem>>, vector<32x256xf32>,
    %c254_i32_274 = arith.constant 254 : i32
    %359 = tpu.dynamic_rotate %292 by %c254_i32_274 dim 1 : vector<32x256xf32>, i32 -> vector<32x256xf32>
    %c14_275 = arith.constant 14 : index
    %c0_276 = arith.constant 0 : index
    %360 = vector.load %arg4[%c14_275, %c0_276] : memref<25x256xf32, #tpu.memory_space<vmem>>, vector<1x256xf32>
    %361 = vector.broadcast %360 : vector<1x256xf32> to vector<32x256xf32>
    %362 = arith.mulf %359, %361 : vector<32x256xf32>
    %c448_277 = arith.constant 448 : index
    %c0_278 = arith.constant 0 : index
    %363 = vector.load %arg19[%c448_277, %c0_278] : memref<800x256xf32, #tpu.memory_space<vmem>>, vector<32x256xf32>
    tpu.vector_store %arg19[%c448_277, %c0_278], %362 {strides = array<i32>} : memref<800x256xf32, #tpu.memory_space<vmem>>, vector<32x256xf32>,
    %c242_i32_279 = arith.constant 242 : i32
    %364 = tpu.dynamic_rotate %292 by %c242_i32_279 dim 1 : vector<32x256xf32>, i32 -> vector<32x256xf32>
    %c15_280 = arith.constant 15 : index
    %c0_281 = arith.constant 0 : index
    %365 = vector.load %arg4[%c15_280, %c0_281] : memref<25x256xf32, #tpu.memory_space<vmem>>, vector<1x256xf32>
    %366 = vector.broadcast %365 : vector<1x256xf32> to vector<32x256xf32>
    %367 = arith.mulf %364, %366 : vector<32x256xf32>
    %c480_282 = arith.constant 480 : index
    %c0_283 = arith.constant 0 : index
    %368 = vector.load %arg19[%c480_282, %c0_283] : memref<800x256xf32, #tpu.memory_space<vmem>>, vector<32x256xf32>
    tpu.vector_store %arg19[%c480_282, %c0_283], %367 {strides = array<i32>} : memref<800x256xf32, #tpu.memory_space<vmem>>, vector<32x256xf32>,
    %c241_i32_284 = arith.constant 241 : i32
    %369 = tpu.dynamic_rotate %292 by %c241_i32_284 dim 1 : vector<32x256xf32>, i32 -> vector<32x256xf32>
    %c16_285 = arith.constant 16 : index
    %c0_286 = arith.constant 0 : index
    %370 = vector.load %arg4[%c16_285, %c0_286] : memref<25x256xf32, #tpu.memory_space<vmem>>, vector<1x256xf32>
    %371 = vector.broadcast %370 : vector<1x256xf32> to vector<32x256xf32>
    %372 = arith.mulf %369, %371 : vector<32x256xf32>
    %c512_287 = arith.constant 512 : index
    %c0_288 = arith.constant 0 : index
    %373 = vector.load %arg19[%c512_287, %c0_288] : memref<800x256xf32, #tpu.memory_space<vmem>>, vector<32x256xf32>
    tpu.vector_store %arg19[%c512_287, %c0_288], %372 {strides = array<i32>} : memref<800x256xf32, #tpu.memory_space<vmem>>, vector<32x256xf32>,
    %c240_i32_289 = arith.constant 240 : i32
    %374 = tpu.dynamic_rotate %292 by %c240_i32_289 dim 1 : vector<32x256xf32>, i32 -> vector<32x256xf32>
    %c17_290 = arith.constant 17 : index
    %c0_291 = arith.constant 0 : index
    %375 = vector.load %arg4[%c17_290, %c0_291] : memref<25x256xf32, #tpu.memory_space<vmem>>, vector<1x256xf32>
    %376 = vector.broadcast %375 : vector<1x256xf32> to vector<32x256xf32>
    %377 = arith.mulf %374, %376 : vector<32x256xf32>
    %c544_292 = arith.constant 544 : index
    %c0_293 = arith.constant 0 : index
    %378 = vector.load %arg19[%c544_292, %c0_293] : memref<800x256xf32, #tpu.memory_space<vmem>>, vector<32x256xf32>
    tpu.vector_store %arg19[%c544_292, %c0_293], %377 {strides = array<i32>} : memref<800x256xf32, #tpu.memory_space<vmem>>, vector<32x256xf32>,
    %c239_i32_294 = arith.constant 239 : i32
    %379 = tpu.dynamic_rotate %292 by %c239_i32_294 dim 1 : vector<32x256xf32>, i32 -> vector<32x256xf32>
    %c18_295 = arith.constant 18 : index
    %c0_296 = arith.constant 0 : index
    %380 = vector.load %arg4[%c18_295, %c0_296] : memref<25x256xf32, #tpu.memory_space<vmem>>, vector<1x256xf32>
    %381 = vector.broadcast %380 : vector<1x256xf32> to vector<32x256xf32>
    %382 = arith.mulf %379, %381 : vector<32x256xf32>
    %c576_297 = arith.constant 576 : index
    %c0_298 = arith.constant 0 : index
    %383 = vector.load %arg19[%c576_297, %c0_298] : memref<800x256xf32, #tpu.memory_space<vmem>>, vector<32x256xf32>
    tpu.vector_store %arg19[%c576_297, %c0_298], %382 {strides = array<i32>} : memref<800x256xf32, #tpu.memory_space<vmem>>, vector<32x256xf32>,
    %c238_i32_299 = arith.constant 238 : i32
    %384 = tpu.dynamic_rotate %292 by %c238_i32_299 dim 1 : vector<32x256xf32>, i32 -> vector<32x256xf32>
    %c19_300 = arith.constant 19 : index
    %c0_301 = arith.constant 0 : index
    %385 = vector.load %arg4[%c19_300, %c0_301] : memref<25x256xf32, #tpu.memory_space<vmem>>, vector<1x256xf32>
    %386 = vector.broadcast %385 : vector<1x256xf32> to vector<32x256xf32>
    %387 = arith.mulf %384, %386 : vector<32x256xf32>
    %c608_302 = arith.constant 608 : index
    %c0_303 = arith.constant 0 : index
    %388 = vector.load %arg19[%c608_302, %c0_303] : memref<800x256xf32, #tpu.memory_space<vmem>>, vector<32x256xf32>
    tpu.vector_store %arg19[%c608_302, %c0_303], %387 {strides = array<i32>} : memref<800x256xf32, #tpu.memory_space<vmem>>, vector<32x256xf32>,
    %c226_i32_304 = arith.constant 226 : i32
    %389 = tpu.dynamic_rotate %292 by %c226_i32_304 dim 1 : vector<32x256xf32>, i32 -> vector<32x256xf32>
    %c20_305 = arith.constant 20 : index
    %c0_306 = arith.constant 0 : index
    %390 = vector.load %arg4[%c20_305, %c0_306] : memref<25x256xf32, #tpu.memory_space<vmem>>, vector<1x256xf32>
    %391 = vector.broadcast %390 : vector<1x256xf32> to vector<32x256xf32>
    %392 = arith.mulf %389, %391 : vector<32x256xf32>
    %c640_307 = arith.constant 640 : index
    %c0_308 = arith.constant 0 : index
    %393 = vector.load %arg19[%c640_307, %c0_308] : memref<800x256xf32, #tpu.memory_space<vmem>>, vector<32x256xf32>
    tpu.vector_store %arg19[%c640_307, %c0_308], %392 {strides = array<i32>} : memref<800x256xf32, #tpu.memory_space<vmem>>, vector<32x256xf32>,
    %c225_i32_309 = arith.constant 225 : i32
    %394 = tpu.dynamic_rotate %292 by %c225_i32_309 dim 1 : vector<32x256xf32>, i32 -> vector<32x256xf32>
    %c21_310 = arith.constant 21 : index
    %c0_311 = arith.constant 0 : index
    %395 = vector.load %arg4[%c21_310, %c0_311] : memref<25x256xf32, #tpu.memory_space<vmem>>, vector<1x256xf32>
    %396 = vector.broadcast %395 : vector<1x256xf32> to vector<32x256xf32>
    %397 = arith.mulf %394, %396 : vector<32x256xf32>
    %c672_312 = arith.constant 672 : index
    %c0_313 = arith.constant 0 : index
    %398 = vector.load %arg19[%c672_312, %c0_313] : memref<800x256xf32, #tpu.memory_space<vmem>>, vector<32x256xf32>
    tpu.vector_store %arg19[%c672_312, %c0_313], %397 {strides = array<i32>} : memref<800x256xf32, #tpu.memory_space<vmem>>, vector<32x256xf32>,
    %c224_i32_314 = arith.constant 224 : i32
    %399 = tpu.dynamic_rotate %292 by %c224_i32_314 dim 1 : vector<32x256xf32>, i32 -> vector<32x256xf32>
    %c22_315 = arith.constant 22 : index
    %c0_316 = arith.constant 0 : index
    %400 = vector.load %arg4[%c22_315, %c0_316] : memref<25x256xf32, #tpu.memory_space<vmem>>, vector<1x256xf32>
    %401 = vector.broadcast %400 : vector<1x256xf32> to vector<32x256xf32>
    %402 = arith.mulf %399, %401 : vector<32x256xf32>
    %c704_317 = arith.constant 704 : index
    %c0_318 = arith.constant 0 : index
    %403 = vector.load %arg19[%c704_317, %c0_318] : memref<800x256xf32, #tpu.memory_space<vmem>>, vector<32x256xf32>
    tpu.vector_store %arg19[%c704_317, %c0_318], %402 {strides = array<i32>} : memref<800x256xf32, #tpu.memory_space<vmem>>, vector<32x256xf32>,
    %c223_i32_319 = arith.constant 223 : i32
    %404 = tpu.dynamic_rotate %292 by %c223_i32_319 dim 1 : vector<32x256xf32>, i32 -> vector<32x256xf32>
    %c23_320 = arith.constant 23 : index
    %c0_321 = arith.constant 0 : index
    %405 = vector.load %arg4[%c23_320, %c0_321] : memref<25x256xf32, #tpu.memory_space<vmem>>, vector<1x256xf32>
    %406 = vector.broadcast %405 : vector<1x256xf32> to vector<32x256xf32>
    %407 = arith.mulf %404, %406 : vector<32x256xf32>
    %c736_322 = arith.constant 736 : index
    %c0_323 = arith.constant 0 : index
    %408 = vector.load %arg19[%c736_322, %c0_323] : memref<800x256xf32, #tpu.memory_space<vmem>>, vector<32x256xf32>
    tpu.vector_store %arg19[%c736_322, %c0_323], %407 {strides = array<i32>} : memref<800x256xf32, #tpu.memory_space<vmem>>, vector<32x256xf32>,
    %c222_i32_324 = arith.constant 222 : i32
    %409 = tpu.dynamic_rotate %292 by %c222_i32_324 dim 1 : vector<32x256xf32>, i32 -> vector<32x256xf32>
    %c24_325 = arith.constant 24 : index
    %c0_326 = arith.constant 0 : index
    %410 = vector.load %arg4[%c24_325, %c0_326] : memref<25x256xf32, #tpu.memory_space<vmem>>, vector<1x256xf32>
    %411 = vector.broadcast %410 : vector<1x256xf32> to vector<32x256xf32>
    %412 = arith.mulf %409, %411 : vector<32x256xf32>
    %c768_327 = arith.constant 768 : index
    %c0_328 = arith.constant 0 : index
    %413 = vector.load %arg19[%c768_327, %c0_328] : memref<800x256xf32, #tpu.memory_space<vmem>>, vector<32x256xf32>
    tpu.vector_store %arg19[%c768_327, %c0_328], %412 {strides = array<i32>} : memref<800x256xf32, #tpu.memory_space<vmem>>, vector<32x256xf32>,
    %c0_329 = arith.constant 0 : index
    %c0_330 = arith.constant 0 : index
    %414 = vector.load %arg15[%c0_329, %c0_330] : memref<32x800xf32, #tpu.memory_space<vmem>>, vector<32x800xf32>
    %c0_331 = arith.constant 0 : index
    %c0_332 = arith.constant 0 : index
    %415 = vector.load %arg19[%c0_331, %c0_332] : memref<800x256xf32, #tpu.memory_space<vmem>>, vector<800x256xf32>
    %cst_333 = arith.constant dense<0.000000e+00> : vector<32x256xf32>
    %416 = tpu.matmul %414, %415, %cst_333 {dimension_numbers = #tpu.dot_dimension_numbers<[1], [0], [0], [1], [0, 0, 1, 1], [], []>} : vector<32x800xf32>, vector<800x256xf32>, vector<32x256xf32> -> vector<32x256xf32>
    %c0_334 = arith.constant 0 : index
    %c0_335 = arith.constant 0 : index
    %417 = vector.load %arg16[%c0_334, %c0_335] : memref<32x1xf32, #tpu.memory_space<vmem>>, vector<32x1xf32>
    %418 = vector.broadcast %417 : vector<32x1xf32> to vector<32x256xf32>
    %419 = arith.addf %416, %418 : vector<32x256xf32>
    %cst_336 = arith.constant 0.000000e+00 : f32
    %420 = vector.broadcast %cst_336 : f32 to vector<32x256xf32>
    %421 = arith.maximumf %419, %420 : vector<32x256xf32>
    %422 = vector.broadcast %0 : vector<1x256xf32> to vector<32x256xf32>
    %423 = arith.mulf %421, %422 : vector<32x256xf32>
    %c0_337 = arith.constant 0 : index
    %c0_338 = arith.constant 0 : index
    %424 = vector.load %arg9[%c0_337, %c0_338] : memref<32x32xf32, #tpu.memory_space<vmem>>, vector<32x32xf32>
    %cst_339 = arith.constant dense<0.000000e+00> : vector<32x256xf32>
    %425 = tpu.matmul %424, %30, %cst_339 {dimension_numbers = #tpu.dot_dimension_numbers<[1], [0], [0], [1], [0, 0, 1, 1], [], []>} : vector<32x32xf32>, vector<32x256xf32>, vector<32x256xf32> -> vector<32x256xf32>
    %c0_340 = arith.constant 0 : index
    %c0_341 = arith.constant 0 : index
    %426 = vector.load %arg10[%c0_340, %c0_341] : memref<32x1xf32, #tpu.memory_space<vmem>>, vector<32x1xf32>
    %427 = vector.broadcast %426 : vector<32x1xf32> to vector<32x256xf32>
    %428 = arith.addf %425, %427 : vector<32x256xf32>
    %cst_342 = arith.constant 0.000000e+00 : f32
    %429 = vector.broadcast %cst_342 : f32 to vector<32x256xf32>
    %430 = arith.maximumf %428, %429 : vector<32x256xf32>
    %431 = vector.broadcast %0 : vector<1x256xf32> to vector<32x256xf32>
    %432 = arith.mulf %430, %431 : vector<32x256xf32>
    %433 = arith.addf %423, %432 : vector<32x256xf32>
    %c0_343 = arith.constant 0 : index
    %c0_344 = arith.constant 0 : index
    %434 = vector.load %arg17[%c0_343, %c0_344] : memref<32x1xf32, #tpu.memory_space<vmem>>, vector<32x1xf32>
    %435 = vector.broadcast %434 : vector<32x1xf32> to vector<32x256xf32>
    %436 = arith.mulf %433, %435 : vector<32x256xf32>
    %cst_345 = arith.constant dense<0.000000e+00> : vector<256xf32>
    %437 = vector.multi_reduction <add>, %436, %cst_345 [0] : vector<32x256xf32> to vector<256xf32>
    %438 = vector.shape_cast %437 : vector<256xf32> to vector<1x256xf32>
    %439 = arith.negf %438 : vector<1x256xf32>
    %440 = math.exp %439 : vector<1x256xf32>
    %cst_346 = arith.constant 1.000000e+00 : f32
    %441 = vector.broadcast %cst_346 : f32 to vector<1x256xf32>
    %442 = arith.addf %441, %440 : vector<1x256xf32>
    %443 = arith.divf %441, %442 : vector<1x256xf32>
    %444 = arith.mulf %443, %0 : vector<1x256xf32>
    %c0_347 = arith.constant 0 : index
    %c0_348 = arith.constant 0 : index
    %c0_349 = arith.constant 0 : index
    %445 = vector.load %arg18[%c0_347, %c0_348, %c0_349] : memref<1x1x256xf32, #tpu.memory_space<vmem>>, vector<1x1x256xf32>
    %446 = vector.shape_cast %445 : vector<1x1x256xf32> to vector<1x256xf32>
    %447 = vector.shape_cast %444 : vector<1x256xf32> to vector<1x1x256xf32>
    tpu.vector_store %arg18[%c0_347, %c0_348, %c0_349], %447 {strides = array<i32>} : memref<1x1x256xf32, #tpu.memory_space<vmem>>, vector<1x1x256xf32>,
    return
  }
  func.func @transform_0(%arg0: i32) -> (i32, i32, i32) {
    %c0_i32 = arith.constant 0 : i32
    %c0_i32_0 = arith.constant 0 : i32
    %c0_i32_1 = arith.constant 0 : i32
    return %arg0, %c0_i32, %c0_i32_0 : i32, i32, i32
  }
  func.func @transform_1(%arg0: i32) -> (i32, i32, i32) {
    %c0_i32 = arith.constant 0 : i32
    %c0_i32_0 = arith.constant 0 : i32
    %c0_i32_1 = arith.constant 0 : i32
    return %arg0, %c0_i32, %c0_i32_0 : i32, i32, i32
  }
  func.func @transform_2(%arg0: i32) -> (i32, i32) {
    %c0_i32 = arith.constant 0 : i32
    %c0_i32_0 = arith.constant 0 : i32
    %c0_i32_1 = arith.constant 0 : i32
    return %c0_i32, %c0_i32_0 : i32, i32
  }
  func.func @transform_3(%arg0: i32) -> (i32, i32) {
    %c0_i32 = arith.constant 0 : i32
    %c0_i32_0 = arith.constant 0 : i32
    %c0_i32_1 = arith.constant 0 : i32
    return %c0_i32, %c0_i32_0 : i32, i32
  }
  func.func @transform_4(%arg0: i32) -> (i32, i32) {
    %c0_i32 = arith.constant 0 : i32
    %c0_i32_0 = arith.constant 0 : i32
    %c0_i32_1 = arith.constant 0 : i32
    return %c0_i32, %c0_i32_0 : i32, i32
  }
  func.func @transform_5(%arg0: i32) -> (i32, i32) {
    %c0_i32 = arith.constant 0 : i32
    %c0_i32_0 = arith.constant 0 : i32
    %c0_i32_1 = arith.constant 0 : i32
    return %c0_i32, %c0_i32_0 : i32, i32
  }
  func.func @transform_6(%arg0: i32) -> (i32, i32) {
    %c0_i32 = arith.constant 0 : i32
    %c0_i32_0 = arith.constant 0 : i32
    %c0_i32_1 = arith.constant 0 : i32
    return %c0_i32, %c0_i32_0 : i32, i32
  }
  func.func @transform_7(%arg0: i32) -> (i32, i32) {
    %c0_i32 = arith.constant 0 : i32
    %c0_i32_0 = arith.constant 0 : i32
    %c0_i32_1 = arith.constant 0 : i32
    return %c0_i32, %c0_i32_0 : i32, i32
  }
  func.func @transform_8(%arg0: i32) -> (i32, i32) {
    %c0_i32 = arith.constant 0 : i32
    %c0_i32_0 = arith.constant 0 : i32
    %c0_i32_1 = arith.constant 0 : i32
    return %c0_i32, %c0_i32_0 : i32, i32
  }
  func.func @transform_9(%arg0: i32) -> (i32, i32) {
    %c0_i32 = arith.constant 0 : i32
    %c0_i32_0 = arith.constant 0 : i32
    %c0_i32_1 = arith.constant 0 : i32
    return %c0_i32, %c0_i32_0 : i32, i32
  }
  func.func @transform_10(%arg0: i32) -> (i32, i32) {
    %c0_i32 = arith.constant 0 : i32
    %c0_i32_0 = arith.constant 0 : i32
    %c0_i32_1 = arith.constant 0 : i32
    return %c0_i32, %c0_i32_0 : i32, i32
  }
  func.func @transform_11(%arg0: i32) -> (i32, i32) {
    %c0_i32 = arith.constant 0 : i32
    %c0_i32_0 = arith.constant 0 : i32
    %c0_i32_1 = arith.constant 0 : i32
    return %c0_i32, %c0_i32_0 : i32, i32
  }
  func.func @transform_12(%arg0: i32) -> (i32, i32) {
    %c0_i32 = arith.constant 0 : i32
    %c0_i32_0 = arith.constant 0 : i32
    %c0_i32_1 = arith.constant 0 : i32
    return %c0_i32, %c0_i32_0 : i32, i32
  }
  func.func @transform_13(%arg0: i32) -> (i32, i32) {
    %c0_i32 = arith.constant 0 : i32
    %c0_i32_0 = arith.constant 0 : i32
    %c0_i32_1 = arith.constant 0 : i32
    return %c0_i32, %c0_i32_0 : i32, i32
  }
  func.func @transform_14(%arg0: i32) -> (i32, i32) {
    %c0_i32 = arith.constant 0 : i32
    %c0_i32_0 = arith.constant 0 : i32
    %c0_i32_1 = arith.constant 0 : i32
    return %c0_i32, %c0_i32_0 : i32, i32
  }
  func.func @transform_15(%arg0: i32) -> (i32, i32) {
    %c0_i32 = arith.constant 0 : i32
    %c0_i32_0 = arith.constant 0 : i32
    %c0_i32_1 = arith.constant 0 : i32
    return %c0_i32, %c0_i32_0 : i32, i32
  }
  func.func @transform_16(%arg0: i32) -> (i32, i32) {
    %c0_i32 = arith.constant 0 : i32
    %c0_i32_0 = arith.constant 0 : i32
    %c0_i32_1 = arith.constant 0 : i32
    return %c0_i32, %c0_i32_0 : i32, i32
  }
  func.func @transform_17(%arg0: i32) -> (i32, i32, i32) {
    %c0_i32 = arith.constant 0 : i32
    %c0_i32_0 = arith.constant 0 : i32
    %c0_i32_1 = arith.constant 0 : i32
    return %arg0, %c0_i32, %c0_i32_0 : i32, i32, i32
  }
}

</mosaic_0001>

<bundles_post_ra>
// kernel: tcn_base_forward.1
= control target key start
LH: loop header
LB: loop body
LE: loop exit
PB: predicated region body
PF: predicated region fallthrough
CT: control target
= control target key end

     0   :  { %s6880_s24 = smov 0   ;;  %s12585_s0 = inlined_call_operand.vmem [shape: f32[2,1,32], index: 0, kind: input, shape index: {}]   ;;  %s12586_s1 = inlined_call_operand.vmem [shape: f32[2,32,256], index: 1, kind: input, shape index: {}]   ;;  %s12587_s2 = inlined_call_operand.vmem [shape: f32[1,256], index: 2, kind: input, shape index: {}]   ;;  %s12588_s3 = inlined_call_operand.vmem [shape: f32[25,256], index: 3, kind: input, shape index: {}]   ;;  %s12589_s4 = inlined_call_operand.vmem [shape: f32[32,32], index: 4, kind: input, shape index: {}]   ;;  %s12590_s5 = inlined_call_operand.vmem [shape: f32[32,1], index: 5, kind: input, shape index: {}]   ;;  %s12591_s6 = inlined_call_operand.vmem [shape: f32[32,32], index: 6, kind: input, shape index: {}]   ;;  %s12592_s7 = inlined_call_operand.vmem [shape: f32[32,1], index: 7, kind: input, shape index: {}]   ;;  %s12593_s8 = inlined_call_operand.vmem [shape: f32[32,32], index: 8, kind: input, shape index: {}]   ;;  %s12594_s9 = inlined_call_operand.vmem [shape: f32[32,1], index: 9, kind: input, shape index: {}]   ;;  %s12595_s10 = inlined_call_operand.vmem [shape: f32[32,800], index: 10, kind: input, shape index: {}]   ;;  %s12596_s11 = inlined_call_operand.vmem [shape: f32[32,1], index: 11, kind: input, shape index: {}]   ;;  %s12597_s12 = inlined_call_operand.vmem [shape: f32[32,800], index: 12, kind: input, shape index: {}]   ;;  %s12598_s13 = inlined_call_operand.vmem [shape: f32[32,1], index: 13, kind: input, shape index: {}]   ;;  %s12599_s14 = inlined_call_operand.vmem [shape: f32[32,800], index: 14, kind: input, shape index: {}]   ;;  %s12600_s15 = inlined_call_operand.vmem [shape: f32[32,1], index: 15, kind: input, shape index: {}]   ;;  %s12601_s16 = inlined_call_operand.vmem [shape: f32[32,1], index: 16, kind: input, shape index: {}]   ;;  %s12602_s17 = inlined_call_operand.vmem [shape: f32[2,1,256], index: 17, kind: output, shape index: {}]  }
   0x1   :  { %12954 = sst [smem:[#allocation121_spill]] %s12585_s0 }
   0x2   :  { %12955 = sst [smem:[#allocation122_spill]] %s12586_s1 }
   0x3   :  { %12956 = sst [smem:[#allocation123_spill]] %s12587_s2 }
   0x4   :  { %12957 = sst [smem:[#allocation124_spill]] %s12589_s4 }
   0x5   :  { %12958 = sst [smem:[#allocation125_spill]] %s12590_s5 }
   0x6   :  { %12959 = sst [smem:[#allocation126_spill]] %s12591_s6 }
   0x7   :  { %12960 = sst [smem:[#allocation127_spill]] %s12592_s7 }
   0x8   :  { %12961 = sst [smem:[#allocation128_spill]] %s12593_s8 }
   0x9   :  { %12962 = sst [smem:[#allocation129_spill]] %s12594_s9 }
   0xa   :  { %12963 = sst [smem:[#allocation130_spill]] %s12595_s10 }
   0xb   :  { %12964 = sst [smem:[#allocation131_spill]] %s12596_s11 }
   0xc   :  { %12965 = sst [smem:[#allocation132_spill]] %s12598_s13 }
   0xd   :  { %12966 = sst [smem:[#allocation133_spill]] %s12600_s15 }
   0xe   :  { %12967 = sst [smem:[#allocation134_spill]] %s12601_s16 }
   0xf   :  { %12968 = sst [smem:[#allocation135_spill]] %s12602_s17 }
  0x10 LB: > { %12969 = sst [smem:[#allocation3_spill]] %s6763_s24  ;;  %s6534_s25 = sadd.s32 4294967295, %s6763_s24   ;;  %s6763_s24 = sphi %s6880_s24, %s27_s24  }
  0x11   : > { %p6538_p0 = scmp.ge.s32.totalorder %s6763_s24, 1  ;;  %p495_p1 = scmp.lt.s32.totalorder %s6763_s24, 3 }
  0x13   : > { %p496_p2 = pnand %p6538_p0, %p495_p1 }
  0x15   : > { %499 = sbr.rel (%p496_p2) target bundleno = 2817 (0xb01), region = 88 }
  0x1a   : > { %p549_p3 = scmp.lt.s32.totalorder %s6534_s25, 1  ;;  %v6765_v0 = vmov 0   ;;  %s12971_s7 = sld [smem:[#allocation127_spill]]  ;;  %vm12786_vm0 = vcmask 261120  }
  0x1b   : > { %6689 = vset.pattern.permute.xlu2 %v6765_v0  ;;  %6690 = vset.pattern.permute.xlu0 %v6765_v0  ;;  %s12972_s0 = sld [smem:[#allocation121_spill]]  ;;  %s12829_s22 = smov 34  }
  0x1c   : > { %s13832_s25 = smov (!%p549_p3, %s6534_s25), 1  ;;  %6691 = vset.pattern.permute.xlu1 %v6765_v0  ;;  %s12973_s4 = sld [smem:[#allocation124_spill]] }
  0x1d   : > { %12970 = sst [smem:[#allocation4_spill]] %s13832_s25  ;;  %s6655_s21 = sshll.u32 %s13832_s25, 6 }
  0x1e   : > { %s12974_s26 = sld [smem:[#allocation122_spill]]  ;;  %s12826_s23 = smov 33  }
  0x1f   : > { %s12975_s6 = sld [smem:[#allocation126_spill]]  ;;  %s12795_s28 = smov 30  }
  0x20   : > { %v607_v1 = vld [vmem:[%s12971_s7] sm:$0xff]  ;;  %v608_v15 = vld [vmem:[%s12971_s7 + $0x8] sm:$0xff]  ;;  %v609_v27 = vld [vmem:[%s12971_s7 + $0x10] sm:$0xff]  ;;  %s12976_s5 = sld [smem:[#allocation125_spill]]  ;;  %s12793_s29 = smov 18  }
  0x21   : > { %613 = vperm.xlu2 %6689, %v607_v1   ;;  %s551_s30 = scalar_lea.vmem %s12972_s0, %s13832_s25  ;;  %v610_v29 = vld [vmem:[%s12971_s7 + $0x18] sm:$0xff]  ;;  %s12977_s2 = sld [smem:[#allocation123_spill]] }
  0x22   : > { %v562_v2 = vld [vmem:[%s12973_s4] sm:$0xff]  ;;  %v564_v3 = vld [vmem:[%s12973_s4 + $0x10] sm:$0xff]  ;;  %v563_v6 = vld [vmem:[%s12973_s4 + $0x8] sm:$0xff]  ;;  %s12760_s0 = smov 17   ;;  %s12716_s17 = smov 15  }
  0x23   : > { %v6692_v4 = vld [vmem:[%s551_s30] ss:$0 sm:$0xff]  ;;  %v565_v10 = vld [vmem:[%s12973_s4 + $0x18] sm:$0xff]  ;;  %s12718_s30 = smov 16   ;;  %s12700_s19 = smov 14  }
  0x24   : > { %s556_s27 = scalar_lea.vmem %s12974_s26, %s6655_s21  ;;  %v570_v5 = vmul.f32 %v6692_v4, %v562_v2  ;;  %v572_v7 = vmul.f32 %v6692_v4, %v564_v3  ;;  %v571_v18 = vmul.f32 %v6692_v4, %v563_v6  ;;  %v573_v19 = vmul.f32 %v6692_v4, %v565_v10  ;;  %s12824_s26 = smov 32  }
  0x25   : > { %v601_v8 = vld [vmem:[%s556_s27 + $0x30] sm:$0xff]  ;;  %v602_v9 = vld [vmem:[%s556_s27 + $0x38] sm:$0xff]  ;;  %v599_v11 = vld [vmem:[%s556_s27 + $0x20] sm:$0xff]  ;;  %s12698_s18 = smov 2   ;;  %s12622_s21 = smov 1  }
  0x26   : > { %655 = vmatpush.msra.mxu0 %v601_v8  ;;  %684 = vmatpush.msra.mxu1 %v602_v9  ;;  %v600_v12 = vld [vmem:[%s556_s27 + $0x28] sm:$0xff]  ;;  %v575_v13 = vsel %vm12786_vm0, %v570_v5, 0.0  ;;  %v581_v14 = vsel %vm12786_vm0, %v572_v7, 0.0  ;;  %v597_v16 = vld [vmem:[%s556_s27 + $0x10] sm:$0xff]  ;;  %v598_v17 = vld [vmem:[%s556_s27 + $0x18] sm:$0xff]  ;;  %v578_v23 = vsel %vm12786_vm0, %v571_v18, 0.0 }
  0x27   : > { %576 = vadd.xlane.f32.xlu0 %v575_v13  ;;  %582 = vadd.xlane.f32.xlu1 %v581_v14  ;;  %v595_v20 = vld [vmem:[%s556_s27] sm:$0xff]  ;;  %v596_v21 = vld [vmem:[%s556_s27 + $0x8] sm:$0xff]  ;;  %v584_v24 = vsel %vm12786_vm0, %v573_v19, 0.0  ;;  %v605_v26 = vld [vmem:[%s12975_s6 + $0x10] sm:$0xff]  ;;  %s12762_s27 = smov 31   ;;  %s12641_s24 = smov 127  }
  0x28   : > { %656 = vmatpush.msra.mxu0 %v599_v11  ;;  %685 = vmatpush.msra.mxu1 %v600_v12  ;;  %v603_v22 = vld [vmem:[%s12975_s6] sm:$0xff]  ;;  %v604_v25 = vld [vmem:[%s12975_s6 + $0x8] sm:$0xff]  ;;  %v606_v28 = vld [vmem:[%s12975_s6 + $0x18] sm:$0xff]  ;;  %s12658_s1 = smov 113   ;;  %s12676_s20 = smov 112  }
  0x29   : > { %618 = vperm.xlu2 %6689, %v608_v15   ;;  %v587_v30 = vld [vmem:[%s12976_s5] sm:$0xff]  ;;  %v588_v33 = vld [vmem:[%s12976_s5 + $0x8] sm:$0xff]  ;;  %v589_v37 = vld [vmem:[%s12976_s5 + $0x10] sm:$0xff]  ;;  %s13094_s10 = sld [smem:[#allocation130_spill]]  ;;  %s13338_s6 = smov 96  }
  0x2a   : > { %657 = vmatpush.msra.mxu0 %v597_v16  ;;  %686 = vmatpush.msra.mxu1 %v598_v17  ;;  %v590_v39 = vld [vmem:[%s12976_s5 + $0x18] sm:$0xff]  ;;  %v561_v51 = vld [vmem:[%s12977_s2] sm:$0x3]  ;;  %s13120_s11 = sld [smem:[#allocation131_spill]]  ;;  %s13331_s2 = smov 98  }
  0x2b   : > { %v6961_v54 = vperm.slane %v561_v51, 0  ;;  %v6963_v55 = vperm.slane %v561_v51, 1  ;;  %s13337_s5 = smov 97   ;;  %s13345_s25 = smov 95  }
  0x2c   : > { %658 = vmatpush.msra.mxu0 %v595_v20  ;;  %687 = vmatpush.msra.mxu1 %v596_v21  ;;  %s13370_s4 = smov 94   ;;  %s13371_s13 = sld [smem:[#allocation132_spill]] }
  0x2d   : > { %6542 = vmatmul.msk.f32.vlgmr.msra.gmra.mxu0 %vm12786_vm0, %v603_v22  ;;  %6546 = vmatmul.msk.f32.vlgmr.msra.gmra.mxu1 %vm12786_vm0, %v603_v22  ;;  %12978 = vst [vmem:[#allocation5_spill] sm:$0xff] %v6961_v54  ;;  %s13542_s7 = smov 30   ;;  %s13545_s8 = smov 18  }
  0x2e   : > { %12979 = vst [vmem:[#allocation6_spill] sm:$0xff] %v6963_v55  ;;  %s13781_s16 = sld [smem:[#allocation128_spill]] }
  0x2f   : > { %579 = vadd.xlane.f32.xlu0 %v578_v23  ;;  %585 = vadd.xlane.f32.xlu1 %v584_v24 }
  0x35   : > { %6543 = vmatmul.msk.f32.gmra.mxu0 %vm12786_vm0, %v604_v25  ;;  %6547 = vmatmul.msk.f32.gmra.mxu1 %vm12786_vm0, %v604_v25 }
  0x3d   : > { %6544 = vmatmul.msk.f32.gmra.mxu0 %vm12786_vm0, %v605_v26  ;;  %6548 = vmatmul.msk.f32.gmra.mxu1 %vm12786_vm0, %v605_v26 }
  0x43   : > { %623 = vperm.xlu0 %6690, %v609_v27  }
  0x45   : > { %6545 = vmatmul.msk.f32.gmra.mxu0 %vm12786_vm0, %v606_v28  ;;  %6549 = vmatmul.msk.f32.gmra.mxu1 %vm12786_vm0, %v606_v28 }
  0x48   : > { %628 = vperm.xlu1 %6691, %v610_v29  }
  0x7b   : > { %v614_v42 = vpop.permute.xlu2 %613 }
  0x83   : > { %v619_v45 = vpop.permute.xlu2 %618 }
  0x9a   : > { %v577_v31 = vpop.xlane.xlu0 %576  ;;  %v583_v36 = vpop.xlane.xlu1 %582 }
  0x9b   : > { %v591_v32 = vadd.f32 %v587_v30, %v577_v31  ;;  %v593_v38 = vadd.f32 %v589_v37, %v583_v36 }
  0x9d   : > { %716 = vperm.xlu2 %6689, %v591_v32  }
  0xa2   : > { %v580_v34 = vpop.xlane.xlu0 %579  ;;  %v586_v40 = vpop.xlane.xlu1 %585 }
  0xa3   : > { %v592_v35 = vadd.f32 %v588_v33, %v580_v34  ;;  %v594_v41 = vadd.f32 %v590_v39, %v586_v40 }
  0xa5   : > { %721 = vperm.xlu2 %6689, %v592_v35  }
  0xaa   : > { %v660_v43 = vpop.f32.mrf.mxu0  ;;  %v689_v44 = vpop.f32.mrf.mxu1 }
  0xab   : > { %v661_v60 = vadd.f32 %v660_v43, %v614_v42  ;;  %v690_v61 = vadd.f32 %v689_v44, %v614_v42 }
  0xad   : > { %726 = vperm.xlu2 %6689, %v593_v38   ;;  %v706_v5 = vmul.f32 %v6961_v54, %v661_v60  ;;  %v707_v6 = vmul.f32 %v6963_v55, %v690_v61 }
  0xb2   : > { %v663_v46 = vpop.f32.mrf.mxu0  ;;  %v692_v47 = vpop.f32.mrf.mxu1 }
  0xb3   : > { %v664_v56 = vadd.f32 %v663_v46, %v619_v45  ;;  %v693_v57 = vadd.f32 %v692_v47, %v619_v45 }
  0xb5   : > { %731 = vperm.xlu2 %6689, %v594_v41   ;;  %v624_v53 = vpop.permute.xlu0 %623  ;;  %v708_v1 = vmul.f32 %v6961_v54, %v664_v56  ;;  %v709_v2 = vmul.f32 %v6963_v55, %v693_v57 }
  0xba   : > { %v666_v49 = vpop.f32.mrf.mxu0  ;;  %v695_v50 = vpop.f32.mrf.mxu1 }
  0xbb   : > { %v667_v58 = vadd.f32 %v666_v49, %v624_v53  ;;  %v696_v59 = vadd.f32 %v695_v50, %v624_v53  ;;  %v629_v0 = vpop.permute.xlu1 %628 }
  0xbd   : > { %v710_v3 = vmul.f32 %v6961_v54, %v667_v58  ;;  %v711_v4 = vmul.f32 %v6963_v55, %v696_v59 }
  0xc2   : > { %v669_v62 = vpop.f32.mrf.mxu0  ;;  %v698_v63 = vpop.f32.mrf.mxu1 }
  0xc3   : > { %v670_v10 = vadd.f32 %v669_v62, %v629_v0  ;;  %v699_v11 = vadd.f32 %v698_v63, %v629_v0 }
  0xc5   : > { %v712_v18 = vmul.f32 %v6961_v54, %v670_v10  ;;  %v713_v19 = vmul.f32 %v6963_v55, %v699_v11 }
  0xf7   : > { %v717_v48 = vpop.permute.xlu2 %716 }
  0xf8   : > { %v734_v12 = vmul.f32 %v717_v48, %v706_v5  ;;  %v6973_v13 = vmul.f32 %v717_v48, %v707_v6 }
  0xfa   : > { %v742_v20 = vmul.f32 %v734_v12, %v734_v12  ;;  %v743_v21 = vmul.f32 %v6973_v13, %v6973_v13 }
  0xff   : > { %v722_v52 = vpop.permute.xlu2 %721 }
 0x100   : > { %v736_v8 = vmul.f32 %v722_v52, %v708_v1  ;;  %v6971_v9 = vmul.f32 %v722_v52, %v709_v2 }
 0x102   : > { %v744_v16 = vmul.f32 %v736_v8, %v736_v8  ;;  %v745_v17 = vmul.f32 %v6971_v9, %v6971_v9 }
 0x104   : > { %v750_v25 = vadd.f32 %v744_v16, %v742_v20  ;;  %v759_v26 = vadd.f32 %v745_v17, %v743_v21 }
 0x107   : > { %v727_v7 = vpop.permute.xlu2 %726 }
 0x108   : > { %v6975_v14 = vmul.f32 %v727_v7, %v710_v3  ;;  %v6977_v15 = vmul.f32 %v727_v7, %v711_v4 }
 0x10a   : > { %v746_v22 = vmul.f32 %v6975_v14, %v6975_v14  ;;  %v747_v23 = vmul.f32 %v6977_v15, %v6977_v15 }
 0x10c   : > { %v751_v29 = vadd.f32 %v750_v25, %v746_v22  ;;  %v760_v30 = vadd.f32 %v759_v26, %v747_v23 }
 0x10f   : > { %v732_v24 = vpop.permute.xlu2 %731 }
 0x110   : > { %v740_v27 = vmul.f32 %v732_v24, %v712_v18  ;;  %v6989_v28 = vmul.f32 %v732_v24, %v713_v19 }
 0x112   : > { %v748_v31 = vmul.f32 %v740_v27, %v740_v27  ;;  %v749_v32 = vmul.f32 %v6989_v28, %v6989_v28 }
 0x114   : > { %v752_v33 = vadd.f32 %v751_v29, %v748_v31  ;;  %v761_v34 = vadd.f32 %v760_v30, %v749_v32 }
 0x116   : > { %v753_v35 = vrot.slane %v752_v33, 4  ;;  %v762_v36 = vrot.slane %v761_v34, 4 }
 0x118   : > { %v754_v37 = vadd.f32 %v753_v35, %v752_v33  ;;  %v763_v38 = vadd.f32 %v762_v36, %v761_v34 }
 0x11a   : > { %v755_v39 = vrot.slane %v754_v37, 2  ;;  %v764_v40 = vrot.slane %v763_v38, 2 }
 0x11c   : > { %v756_v41 = vadd.f32 %v755_v39, %v754_v37  ;;  %v765_v42 = vadd.f32 %v764_v40, %v763_v38 }
 0x11e   : > { %v757_v43 = vrot.slane %v756_v41, 1  ;;  %v766_v44 = vrot.slane %v765_v42, 1 }
 0x120   : > { %v758_v45 = vadd.f32 %v757_v43, %v756_v41  ;;  %v767_v46 = vadd.f32 %v766_v44, %v765_v42  ;;  %v12604_v44 = vlaneseq }
 0x122   : > { %v768_v47 = vmax.f32 %v758_v45, 1e-24  ;;  %v769_v48 = vmax.f32 %v767_v46, 1e-24  ;;  %v7218_v46 = vand.u32 127, %v12604_v44 }
 0x123   : > { %v7215_v45 = vld [vmem:[%s12588_s3 + $0x3] ss:$8 sm:$0x3] }
 0x124   : > { %6693 = vrsqrt.f32 %v768_v47  ;;  %vm776_vm2 = vweird.f32 %v768_v47  ;;  %vm786_vm5 = vweird.f32 %v769_v48  ;;  %vm12894_vm7 = vcmp.lt.s32.totalorder %v7218_v46, 31 }
 0x125   : > { %6695 = vrsqrt.f32 %v769_v48  ;;  %vm12893_vm8 = vcmp.lt.s32.totalorder %v7218_v46, 32  ;;  %vm12743_vm9 = vcmp.lt.s32.totalorder %v7218_v46, 33  ;;  %vm12744_vm10 = vcmp.lt.s32.totalorder %v7218_v46, 34 }
 0x126   : > { %vm1159_vm11 = vcmp.lt.s32.totalorder %v7218_v46, 16  ;;  %vm1111_vm12 = vcmp.lt.s32.totalorder %v7218_v46, 17  ;;  %vm1063_vm13 = vcmp.lt.s32.totalorder %v7218_v46, 18  ;;  %vm1015_vm14 = vcmp.lt.s32.totalorder %v7218_v46, 30 }
 0x127   : > { %vm1351_vm15 = vcmp.lt.s32.totalorder %v7218_v46, 1 }
 0x12a   : > { %v6694_v49 = vpop.eup %6693 }
 0x12b   : > { %v6696_v50 = vpop.eup %6695  ;;  %v771_v51 = vmul.f32 %v6694_v49, %v768_v47  ;;  %vm777_vm1 = vweird.f32 %v6694_v49 }
 0x12c   : > { %v781_v52 = vmul.f32 %v6696_v50, %v769_v48  ;;  %vm778_vm3 = vmor %vm776_vm2, %vm777_vm1  ;;  %vm787_vm4 = vweird.f32 %v6696_v50  ;;  %vm1303_vm1 = vcmp.lt.s32.totalorder %v7218_v46, 2  ;;  %vm1255_vm2 = vcmp.lt.s32.totalorder %v7218_v46, 14 }
 0x12d   : > { %v772_v53 = vmul.f32 %v6694_v49, %v771_v51  ;;  %vm788_vm6 = vmor %vm786_vm5, %vm787_vm4  ;;  %vm1503_vm4 = vcmp.lt.s32.totalorder %v7218_v46, 114  ;;  %vm1455_vm5 = vcmp.lt.s32.totalorder %v7218_v46, 126 }
 0x12e   : > { %v782_v56 = vmul.f32 %v6696_v50, %v781_v52 }
 0x12f   : > { %v773_v57 = vmul.f32 0.5, %v772_v53 }
 0x130   : > { %v783_v58 = vmul.f32 0.5, %v782_v56 }
 0x131   : > { %v774_v59 = vsub.f32 1.5, %v773_v57 }
 0x132   : > { %v784_v60 = vsub.f32 1.5, %v783_v58 }
 0x133   : > { %v775_v61 = vmul.f32 %v6694_v49, %v774_v59 }
 0x134   : > { %v785_v63 = vmul.f32 %v6696_v50, %v784_v60 }
 0x135   : > { %v779_v62 = vsel %vm778_vm3, %v6694_v49, %v775_v61  ;;  %vm12895_vm3 = vcmp.lt.s32.totalorder %v7218_v46, 15 }
 0x136   : > { %v790_v0 = vmul.f32 %v779_v62, %v734_v12  ;;  %v792_v1 = vmul.f32 %v779_v62, %v736_v8  ;;  %v796_v2 = vmul.f32 %v779_v62, %v740_v27  ;;  %v789_v5 = vsel %vm788_vm6, %v6696_v50, %v785_v63 }
 0x137   : > { %v791_v7 = vmul.f32 %v789_v5, %v6973_v13  ;;  %v794_v8 = vmul.f32 %v779_v62, %v6975_v14  ;;  %v795_v10 = vmul.f32 %v789_v5, %v6977_v15  ;;  %v793_v13 = vmul.f32 %v789_v5, %v6971_v9 }
 0x138   : > { %v6994_v3 = vmul.f32 %v790_v0, %v6961_v54  ;;  %v6997_v4 = vmul.f32 %v792_v1, %v6961_v54  ;;  %v7000_v6 = vmul.f32 %v796_v2, %v6961_v54  ;;  %v797_v14 = vmul.f32 %v789_v5, %v6989_v28  ;;  %v7273_v2 = vld [vmem:[%s12588_s3 + $0x2] ss:$8 sm:$0x3] }
 0x139   : > { %v7012_v11 = vmul.f32 %v791_v7, %v6963_v55  ;;  %v7015_v12 = vmul.f32 %v794_v8, %v6961_v54  ;;  %v7018_v16 = vmul.f32 %v795_v10, %v6963_v55  ;;  %v7029_v15 = vmul.f32 %v793_v13, %v6963_v55  ;;  %13014 = vst [vmem:[#allocation41_spill] sm:$0xff] %v7273_v2 }
 0x13a   : > { %12980 = vst [vmem:[#allocation7_spill] sm:$0xff] %v6994_v3  ;;  %808 = vrot.lane.b32.xlu2 %v6997_v4, %s12829_s22  ;;  %806 = vrot.lane.b32.xlu1 %v6994_v3, %s12829_s22  ;;  %v7032_v17 = vmul.f32 %v797_v14, %v6963_v55  ;;  %v979_v50 = vperm.slane %v7215_v45, 0  ;;  %v931_v8 = vperm.slane %v7273_v2, 0  ;;  %vm1407_vm6 = vcmp.lt.s32.totalorder %v7218_v46, 127 }
 0x13b   : > { %12981 = vst [vmem:[#allocation8_spill] sm:$0xff] %v6997_v4  ;;  %812 = vrot.lane.b32.xlu0 %v7000_v6, %s12829_s22 }
 0x13c   : > { %12982 = vst [vmem:[#allocation9_spill] sm:$0xff] %v7000_v6 }
 0x13d   : > { %12983 = vst [vmem:[#allocation10_spill] sm:$0xff] %v7012_v11 }
 0x13e   : > { %12984 = vst [vmem:[#allocation11_spill] sm:$0xff] %v7015_v12 }
 0x13f   : > { %12985 = vst [vmem:[#allocation12_spill] sm:$0xff] %v7018_v16 }
 0x140   : > { %12986 = vst [vmem:[#allocation13_spill] sm:$0xff] %v7029_v15 }
 0x141   : > { %12987 = vst [vmem:[#allocation14_spill] sm:$0xff] %v7032_v17 }
 0x142   : > { %814 = vrot.lane.b32.xlu2 %v7012_v11, %s12829_s22  ;;  %810 = vrot.lane.b32.xlu1 %v7015_v12, %s12829_s22 }
 0x143   : > { %818 = vrot.lane.b32.xlu0 %v7018_v16, %s12829_s22 }
 0x14a   : > { %820 = vrot.lane.b32.xlu2 %v7032_v17, %s12829_s22  ;;  %816 = vrot.lane.b32.xlu1 %v7029_v15, %s12829_s22 }
 0x14b   : > { %857 = vrot.lane.b32.xlu0 %v6997_v4, %s12826_s23 }
 0x152   : > { %859 = vrot.lane.b32.xlu2 %v7015_v12, %s12826_s23  ;;  %855 = vrot.lane.b32.xlu1 %v6994_v3, %s12826_s23 }
 0x153   : > { %863 = vrot.lane.b32.xlu0 %v7012_v11, %s12826_s23 }
 0x15a   : > { %865 = vrot.lane.b32.xlu2 %v7029_v15, %s12826_s23  ;;  %861 = vrot.lane.b32.xlu1 %v7000_v6, %s12826_s23 }
 0x15b   : > { %869 = vrot.lane.b32.xlu0 %v7032_v17, %s12826_s23 }
 0x162   : > { %903 = vrot.lane.b32.xlu2 %v6994_v3, %s12824_s26  ;;  %867 = vrot.lane.b32.xlu1 %v7018_v16, %s12826_s23 }
 0x163   : > { %907 = vrot.lane.b32.xlu0 %v7015_v12, %s12824_s26 }
 0x16a   : > { %909 = vrot.lane.b32.xlu2 %v7000_v6, %s12824_s26  ;;  %905 = vrot.lane.b32.xlu1 %v6997_v4, %s12824_s26 }
 0x16b   : > { %913 = vrot.lane.b32.xlu0 %v7029_v15, %s12824_s26 }
 0x172   : > { %915 = vrot.lane.b32.xlu2 %v7018_v16, %s12824_s26  ;;  %911 = vrot.lane.b32.xlu1 %v7012_v11, %s12824_s26 }
 0x173   : > { %951 = vrot.lane.b32.xlu0 %v6994_v3, %s12762_s27 }
 0x17a   : > { %953 = vrot.lane.b32.xlu2 %v6997_v4, %s12762_s27  ;;  %917 = vrot.lane.b32.xlu1 %v7032_v17, %s12824_s26 }
 0x17b   : > { %957 = vrot.lane.b32.xlu0 %v7000_v6, %s12762_s27 }
 0x182   : > { %959 = vrot.lane.b32.xlu2 %v7012_v11, %s12762_s27  ;;  %955 = vrot.lane.b32.xlu1 %v7015_v12, %s12762_s27 }
 0x183   : > { %963 = vrot.lane.b32.xlu0 %v7018_v16, %s12762_s27 }
 0x18a   : > { %965 = vrot.lane.b32.xlu2 %v7032_v17, %s12762_s27  ;;  %961 = vrot.lane.b32.xlu1 %v7029_v15, %s12762_s27  ;;  %s13203_s27 = smov 31  }
 0x18b   : > { %1001 = vrot.lane.b32.xlu0 %v6997_v4, %s12795_s28 }
 0x192   : > { %1003 = vrot.lane.b32.xlu2 %v7015_v12, %s12795_s28  ;;  %999 = vrot.lane.b32.xlu1 %v6994_v3, %s12795_s28 }
 0x193   : > { %1007 = vrot.lane.b32.xlu0 %v7012_v11, %s12795_s28 }
 0x194   : > { %v7094_v9 = vpop.permute.xlu2 %808 }
 0x195   : > { %12988 = vst [vmem:[#allocation15_spill] sm:$0xff] %v7094_v9 }
 0x19a   : > { %1009 = vrot.lane.b32.xlu2 %v7029_v15, %s12795_s28  ;;  %1005 = vrot.lane.b32.xlu1 %v7000_v6, %s12795_s28 }
 0x19b   : > { %1013 = vrot.lane.b32.xlu0 %v7032_v17, %s12795_s28 }
 0x19c   : > { %v7102_v18 = vpop.permute.xlu2 %814 }
 0x19d   : > { %12989 = vst [vmem:[#allocation16_spill] sm:$0xff] %v7102_v18 }
 0x1a2   : > { %1047 = vrot.lane.b32.xlu2 %v6994_v3, %s12793_s29  ;;  %1011 = vrot.lane.b32.xlu1 %v7018_v16, %s12795_s28 }
 0x1a3   : > { %1051 = vrot.lane.b32.xlu0 %v7015_v12, %s12793_s29 }
 0x1a4   : > { %v7110_v19 = vpop.permute.xlu2 %820 }
 0x1a5   : > { %12990 = vst [vmem:[#allocation17_spill] sm:$0xff] %v7110_v19 }
 0x1aa   : > { %1053 = vrot.lane.b32.xlu2 %v7000_v6, %s12793_s29  ;;  %1049 = vrot.lane.b32.xlu1 %v6997_v4, %s12793_s29 }
 0x1ab   : > { %1057 = vrot.lane.b32.xlu0 %v7029_v15, %s12793_s29 }
 0x1ac   : > { %v7118_v20 = vpop.permute.xlu2 %859  ;;  %v7120_v21 = vpop.permute.xlu1 %806 }
 0x1ad   : > { %12991 = vst [vmem:[#allocation18_spill] sm:$0xff] %v7118_v20  ;;  %v7122_v22 = vpop.permute.xlu0 %812 }
 0x1ae   : > { %12992 = vst [vmem:[#allocation19_spill] sm:$0xff] %v7120_v21  ;;  %v832_v54 = vsel %vm12744_vm10, %v7110_v19, %v7122_v22 }
 0x1af   : > { %12993 = vst [vmem:[#allocation20_spill] sm:$0xff] %v7122_v22 }
 0x1b2   : > { %1059 = vrot.lane.b32.xlu2 %v7018_v16, %s12793_s29  ;;  %1055 = vrot.lane.b32.xlu1 %v7012_v11, %s12793_s29 }
 0x1b3   : > { %1095 = vrot.lane.b32.xlu0 %v6994_v3, %s12760_s0 }
 0x1b4   : > { %v7130_v23 = vpop.permute.xlu2 %865  ;;  %v7132_v24 = vpop.permute.xlu1 %810 }
 0x1b5   : > { %12994 = vst [vmem:[#allocation21_spill] sm:$0xff] %v7130_v23  ;;  %v7134_v25 = vpop.permute.xlu0 %818 }
 0x1b6   : > { %12995 = vst [vmem:[#allocation22_spill] sm:$0xff] %v7132_v24 }
 0x1b7   : > { %12996 = vst [vmem:[#allocation23_spill] sm:$0xff] %v7134_v25 }
 0x1ba   : > { %1097 = vrot.lane.b32.xlu2 %v6997_v4, %s12760_s0  ;;  %1061 = vrot.lane.b32.xlu1 %v7032_v17, %s12793_s29 }
 0x1bb   : > { %1101 = vrot.lane.b32.xlu0 %v7000_v6, %s12760_s0 }
 0x1bc   : > { %v7142_v26 = vpop.permute.xlu2 %903  ;;  %v7144_v27 = vpop.permute.xlu1 %816 }
 0x1bd   : > { %12997 = vst [vmem:[#allocation24_spill] sm:$0xff] %v7142_v26  ;;  %v7146_v28 = vpop.permute.xlu0 %857 }
 0x1be   : > { %12998 = vst [vmem:[#allocation25_spill] sm:$0xff] %v7144_v27 }
 0x1bf   : > { %12999 = vst [vmem:[#allocation26_spill] sm:$0xff] %v7146_v28 }
 0x1c2   : > { %1103 = vrot.lane.b32.xlu2 %v7012_v11, %s12760_s0  ;;  %1099 = vrot.lane.b32.xlu1 %v7015_v12, %s12760_s0 }
 0x1c3   : > { %1107 = vrot.lane.b32.xlu0 %v7018_v16, %s12760_s0 }
 0x1c4   : > { %v7154_v29 = vpop.permute.xlu2 %909  ;;  %v7156_v30 = vpop.permute.xlu1 %855 }
 0x1c5   : > { %13000 = vst [vmem:[#allocation27_spill] sm:$0xff] %v7156_v30  ;;  %v7158_v31 = vpop.permute.xlu0 %863 }
 0x1c6   : > { %13001 = vst [vmem:[#allocation28_spill] sm:$0xff] %v7158_v31 }
 0x1ca   : > { %1109 = vrot.lane.b32.xlu2 %v7032_v17, %s12760_s0  ;;  %1105 = vrot.lane.b32.xlu1 %v7029_v15, %s12760_s0  ;;  %s13204_s0 = smov 17  }
 0x1cb   : > { %1145 = vrot.lane.b32.xlu0 %v6997_v4, %s12718_s30 }
 0x1cc   : > { %v7166_v32 = vpop.permute.xlu2 %915  ;;  %v7168_v33 = vpop.permute.xlu1 %861 }
 0x1cd   : > { %13002 = vst [vmem:[#allocation29_spill] sm:$0xff] %v7166_v32  ;;  %v7170_v34 = vpop.permute.xlu0 %869 }
 0x1ce   : > { %13003 = vst [vmem:[#allocation30_spill] sm:$0xff] %v7168_v33 }
 0x1cf   : > { %13004 = vst [vmem:[#allocation31_spill] sm:$0xff] %v7170_v34 }
 0x1d2   : > { %1147 = vrot.lane.b32.xlu2 %v7015_v12, %s12718_s30  ;;  %1143 = vrot.lane.b32.xlu1 %v6994_v3, %s12718_s30 }
 0x1d3   : > { %1151 = vrot.lane.b32.xlu0 %v7012_v11, %s12718_s30 }
 0x1d4   : > { %v7178_v35 = vpop.permute.xlu2 %953  ;;  %v7180_v36 = vpop.permute.xlu1 %867 }
 0x1d5   : > { %13005 = vst [vmem:[#allocation32_spill] sm:$0xff] %v7180_v36  ;;  %v7182_v37 = vpop.permute.xlu0 %907 }
 0x1d6   : > { %13006 = vst [vmem:[#allocation33_spill] sm:$0xff] %v7182_v37  ;;  %v926_v10 = vsel %vm12893_vm8, %v7166_v32, %v7182_v37 }
 0x1da   : > { %1153 = vrot.lane.b32.xlu2 %v7029_v15, %s12718_s30  ;;  %1149 = vrot.lane.b32.xlu1 %v7000_v6, %s12718_s30 }
 0x1db   : > { %1157 = vrot.lane.b32.xlu0 %v7032_v17, %s12718_s30 }
 0x1dc   : > { %v7190_v38 = vpop.permute.xlu2 %959  ;;  %v7192_v39 = vpop.permute.xlu1 %905 }
 0x1dd   : > { %13007 = vst [vmem:[#allocation34_spill] sm:$0xff] %v7192_v39  ;;  %v7194_v40 = vpop.permute.xlu0 %913 }
 0x1de   : > { %13008 = vst [vmem:[#allocation35_spill] sm:$0xff] %v7194_v40 }
 0x1e2   : > { %1191 = vrot.lane.b32.xlu2 %v6994_v3, %s12716_s17  ;;  %1155 = vrot.lane.b32.xlu1 %v7018_v16, %s12718_s30  ;;  %s13238_s30 = smov 14  }
 0x1e3   : > { %1195 = vrot.lane.b32.xlu0 %v7015_v12, %s12716_s17 }
 0x1e4   : > { %v7202_v41 = vpop.permute.xlu2 %965  ;;  %v7204_v42 = vpop.permute.xlu1 %911 }
 0x1e5   : > { %13009 = vst [vmem:[#allocation36_spill] sm:$0xff] %v7204_v42  ;;  %v7206_v43 = vpop.permute.xlu0 %951 }
 0x1e6   : > { %v972_v1 = vsel %vm12894_vm7, %v7190_v38, %v7206_v43 }
 0x1e7   : > { %v983_v7 = vmul.f32 %v979_v50, %v972_v1  ;;  %v879_v1 = vsel %vm12743_vm9, %v7170_v34, %v7168_v33 }
 0x1ea   : > { %1197 = vrot.lane.b32.xlu2 %v7000_v6, %s12716_s17  ;;  %1193 = vrot.lane.b32.xlu1 %v6997_v4, %s12716_s17 }
 0x1eb   : > { %1201 = vrot.lane.b32.xlu0 %v7029_v15, %s12716_s17 }
 0x1ec   : > { %v7222_v47 = vpop.permute.xlu2 %1003  ;;  %v7224_v48 = vpop.permute.xlu1 %917 }
 0x1ed   : > { %13010 = vst [vmem:[#allocation37_spill] sm:$0xff] %v7222_v47  ;;  %v7227_v49 = vpop.permute.xlu0 %957  ;;  %v927_v5 = vsel %vm12893_vm8, %v7224_v48, %v7154_v29 }
 0x1ee   : > { %v975_v51 = vsel %vm12894_vm7, %v7202_v41, %v7227_v49  ;;  %v941_v13 = vmul.f32 %v931_v8, %v927_v5 }
 0x1ef   : > { %v989_v52 = vmul.f32 %v979_v50, %v975_v51  ;;  %v925_v51 = vsel %vm12893_vm8, %v7194_v40, %v7192_v39  ;;  %v6555_v40 = vld [vmem:[%s12588_s3 + $0x6] ss:$8 sm:$0x3] }
 0x1f1   : > { %2231 = vmatpush.msra.mxu2 %v989_v52 }
 0x1f2   : > { %1203 = vrot.lane.b32.xlu2 %v7018_v16, %s12716_s17  ;;  %1199 = vrot.lane.b32.xlu1 %v7012_v11, %s12716_s17 }
 0x1f3   : > { %1239 = vrot.lane.b32.xlu0 %v6994_v3, %s12700_s19 }
 0x1f4   : > { %v7240_v53 = vpop.permute.xlu2 %1009  ;;  %v7242_v56 = vpop.permute.xlu1 %955 }
 0x1f5   : > { %13011 = vst [vmem:[#allocation38_spill] sm:$0xff] %v7240_v53  ;;  %v7244_v57 = vpop.permute.xlu0 %963 }
 0x1f6   : > { %v974_v58 = vsel %vm12894_vm7, %v7244_v57, %v7242_v56 }
 0x1f7   : > { %v987_v59 = vmul.f32 %v979_v50, %v974_v58  ;;  %v939_v58 = vmul.f32 %v931_v8, %v926_v10  ;;  %v878_v10 = vsel %vm12743_vm9, %v7180_v36, %v7118_v20 }
 0x1f9   : > { %2232 = vmatpush.msra.mxu2 %v987_v59  ;;  %v924_v59 = vsel %vm12893_vm8, %v7204_v42, %v7142_v26 }
 0x1fa   : > { %1241 = vrot.lane.b32.xlu2 %v6997_v4, %s12700_s19  ;;  %1205 = vrot.lane.b32.xlu1 %v7032_v17, %s12716_s17  ;;  %v935_v5 = vmul.f32 %v931_v8, %v924_v59  ;;  %v7337_v59 = vld [vmem:[%s12588_s3] ss:$8 sm:$0x3]  ;;  %s12752_s17 = smov 94  }
 0x1fb   : > { %1245 = vrot.lane.b32.xlu0 %v7000_v6, %s12700_s19  ;;  %13021 = vst [vmem:[#allocation48_spill] sm:$0xff] %v7337_v59  ;;  %v835_v55 = vperm.slane %v7337_v59, 0 }
 0x1fc   : > { %v7256_v60 = vpop.permute.xlu2 %1047  ;;  %v7258_v61 = vpop.permute.xlu1 %961 }
 0x1fd   : > { %13012 = vst [vmem:[#allocation39_spill] sm:$0xff] %v7256_v60  ;;  %v7260_v62 = vpop.permute.xlu0 %1001  ;;  %v973_v63 = vsel %vm12894_vm7, %v7258_v61, %v7178_v35 }
 0x1fe   : > { %13013 = vst [vmem:[#allocation40_spill] sm:$0xff] %v7260_v62  ;;  %v985_v0 = vmul.f32 %v979_v50, %v973_v63  ;;  %v7308_v63 = vld [vmem:[%s12588_s3 + $0x1] ss:$8 sm:$0x3] }
 0x1ff   : > { %13018 = vst [vmem:[#allocation45_spill] sm:$0xff] %v7308_v63 }
 0x200   : > { %2233 = vmatpush.msra.mxu2 %v985_v0  ;;  %v937_v0 = vmul.f32 %v931_v8, %v925_v51 }
 0x202   : > { %1247 = vrot.lane.b32.xlu2 %v7012_v11, %s12700_s19  ;;  %1243 = vrot.lane.b32.xlu1 %v7015_v12, %s12700_s19 }
 0x203   : > { %1251 = vrot.lane.b32.xlu0 %v7018_v16, %s12700_s19  ;;  %2234 = vmatpush.msra.mxu2 %v983_v7  ;;  %v883_v7 = vperm.slane %v7308_v63, 0 }
 0x204   : > { %v7291_v14 = vpop.permute.xlu2 %1053  ;;  %v7293_v50 = vpop.permute.xlu1 %999 }
 0x205   : > { %13015 = vst [vmem:[#allocation42_spill] sm:$0xff] %v7291_v14  ;;  %v7299_v52 = vpop.permute.xlu0 %1007  ;;  %2235 = vmatpush.msra.mxu2 %v941_v13  ;;  %v893_v13 = vmul.f32 %v883_v7, %v879_v1  ;;  %v891_v1 = vmul.f32 %v883_v7, %v878_v10  ;;  %v831_v10 = vsel %vm12744_vm10, %v7134_v25, %v7132_v24 }
 0x206   : > { %13016 = vst [vmem:[#allocation43_spill] sm:$0xff] %v7293_v50  ;;  %v829_v24 = vsel %vm12744_vm10, %v7102_v18, %v7120_v21 }
 0x207   : > { %13017 = vst [vmem:[#allocation44_spill] sm:$0xff] %v7299_v52  ;;  %2236 = vmatpush.msra.mxu2 %v939_v58  ;;  %v877_v58 = vsel %vm12743_vm9, %v7130_v23, %v7146_v28  ;;  %v6556_v23 = vld [vmem:[%s12588_s3 + $0x7] ss:$8 sm:$0x3] }
 0x208   : > { %v889_v44 = vmul.f32 %v883_v7, %v877_v58  ;;  %v1171_v33 = vperm.slane %v6556_v23, 0 }
 0x209   : > { %2237 = vmatpush.msra.mxu2 %v937_v0 }
 0x20a   : > { %1253 = vrot.lane.b32.xlu2 %v7032_v17, %s12700_s19  ;;  %1249 = vrot.lane.b32.xlu1 %v7029_v15, %s12700_s19  ;;  %s12756_s19 = smov 96  }
 0x20b   : > { %1289 = vrot.lane.b32.xlu0 %v6997_v4, %s12698_s18  ;;  %2238 = vmatpush.msra.mxu2 %v935_v5  ;;  %v876_v5 = vsel %vm12743_vm9, %v7158_v31, %v7156_v30 }
 0x20c   : > { %v7326_v8 = vpop.permute.xlu2 %1059  ;;  %v7328_v51 = vpop.permute.xlu1 %1005  ;;  %v887_v28 = vmul.f32 %v883_v7, %v876_v5  ;;  %v830_v7 = vsel %vm12744_vm10, %v7144_v27, %v7094_v9  ;;  %v843_v5 = vmul.f32 %v835_v55, %v831_v10 }
 0x20d   : > { %13019 = vst [vmem:[#allocation46_spill] sm:$0xff] %v7326_v8  ;;  %v7340_v0 = vpop.permute.xlu0 %1013  ;;  %2239 = vmatpush.msra.mxu2 %v893_v13  ;;  %v845_v13 = vmul.f32 %v835_v55, %v832_v54  ;;  %v841_v54 = vmul.f32 %v835_v55, %v830_v7 }
 0x20e   : > { %13020 = vst [vmem:[#allocation47_spill] sm:$0xff] %v7328_v51 }
 0x20f   : > { %13022 = vst [vmem:[#allocation49_spill] sm:$0xff] %v7340_v0  ;;  %2240 = vmatpush.msra.mxu2 %v891_v1 }
 0x211   : > { %2241 = vmatpush.msra.mxu2 %v889_v44 }
 0x212   : > { %1291 = vrot.lane.b32.xlu2 %v7015_v12, %s12698_s18  ;;  %1287 = vrot.lane.b32.xlu1 %v6994_v3, %s12698_s18 }
 0x213   : > { %1295 = vrot.lane.b32.xlu0 %v7012_v11, %s12698_s18  ;;  %2242 = vmatpush.msra.mxu2 %v887_v28  ;;  %v839_v28 = vmul.f32 %v835_v55, %v829_v24 }
 0x214   : > { %v7361_v58 = vpop.permute.xlu2 %1097  ;;  %v7363_v44 = vpop.permute.xlu1 %1011 }
 0x215   : > { %13023 = vst [vmem:[#allocation50_spill] sm:$0xff] %v7361_v58  ;;  %v7369_v1 = vpop.permute.xlu0 %1051  ;;  %2243 = vmatpush.msra.mxu2 %v845_v13 }
 0x216   : > { %13024 = vst [vmem:[#allocation51_spill] sm:$0xff] %v7363_v44 }
 0x217   : > { %13025 = vst [vmem:[#allocation52_spill] sm:$0xff] %v7369_v1  ;;  %2244 = vmatpush.msra.mxu2 %v843_v5 }
 0x219   : > { %2245 = vmatpush.msra.mxu2 %v841_v54 }
 0x21a   : > { %1297 = vrot.lane.b32.xlu2 %v7029_v15, %s12698_s18  ;;  %1293 = vrot.lane.b32.xlu1 %v7000_v6, %s12698_s18 }
 0x21b   : > { %1301 = vrot.lane.b32.xlu0 %v7032_v17, %s12698_s18  ;;  %2246 = vmatpush.msra.mxu2 %v839_v28 }
 0x21c   : > { %v7381_v10 = vpop.permute.xlu2 %1103  ;;  %v7383_v13 = vpop.permute.xlu1 %1049 }
 0x21d   : > { %13026 = vst [vmem:[#allocation53_spill] sm:$0xff] %v7381_v10  ;;  %v7385_v9 = vpop.permute.xlu0 %1057 }
 0x21e   : > { %13027 = vst [vmem:[#allocation54_spill] sm:$0xff] %v7383_v13 }
 0x21f   : > { %13028 = vst [vmem:[#allocation55_spill] sm:$0xff] %v7385_v9 }
 0x222   : > { %1335 = vrot.lane.b32.xlu2 %v6994_v3, %s12622_s21  ;;  %1299 = vrot.lane.b32.xlu1 %v7018_v16, %s12698_s18  ;;  %s13301_s18 = smov 113  }
 0x223   : > { %1339 = vrot.lane.b32.xlu0 %v7015_v12, %s12622_s21 }
 0x224   : > { %v7393_v55 = vpop.permute.xlu2 %1109  ;;  %v7395_v24 = vpop.permute.xlu1 %1055 }
 0x225   : > { %13029 = vst [vmem:[#allocation56_spill] sm:$0xff] %v7393_v55  ;;  %v7397_v7 = vpop.permute.xlu0 %1095 }
 0x226   : > { %13030 = vst [vmem:[#allocation57_spill] sm:$0xff] %v7395_v24 }
 0x227   : > { %13031 = vst [vmem:[#allocation58_spill] sm:$0xff] %v7397_v7 }
 0x22a   : > { %1341 = vrot.lane.b32.xlu2 %v7000_v6, %s12622_s21  ;;  %1337 = vrot.lane.b32.xlu1 %v6997_v4, %s12622_s21 }
 0x22b   : > { %1345 = vrot.lane.b32.xlu0 %v7029_v15, %s12622_s21 }
 0x22c   : > { %v7405_v5 = vpop.permute.xlu2 %1147  ;;  %v7407_v54 = vpop.permute.xlu1 %1061 }
 0x22d   : > { %13032 = vst [vmem:[#allocation59_spill] sm:$0xff] %v7405_v5  ;;  %v7409_v28 = vpop.permute.xlu0 %1101 }
 0x22e   : > { %13033 = vst [vmem:[#allocation60_spill] sm:$0xff] %v7407_v54 }
 0x22f   : > { %13034 = vst [vmem:[#allocation61_spill] sm:$0xff] %v7409_v28 }
 0x232   : > { %1347 = vrot.lane.b32.xlu2 %v7018_v16, %s12622_s21  ;;  %1343 = vrot.lane.b32.xlu1 %v7012_v11, %s12622_s21 }
 0x233   : > { %1391 = vrot.lane.b32.xlu0 %v6994_v3, %s12641_s24 }
 0x234   : > { %v7417_v21 = vpop.permute.xlu2 %1153  ;;  %v7419_v18 = vpop.permute.xlu1 %1099 }
 0x235   : > { %13035 = vst [vmem:[#allocation62_spill] sm:$0xff] %v7417_v21  ;;  %v7421_v27 = vpop.permute.xlu0 %1107 }
 0x236   : > { %13036 = vst [vmem:[#allocation63_spill] sm:$0xff] %v7419_v18 }
 0x237   : > { %13037 = vst [vmem:[#allocation64_spill] sm:$0xff] %v7421_v27 }
 0x23a   : > { %1393 = vrot.lane.b32.xlu2 %v6997_v4, %s12641_s24  ;;  %1349 = vrot.lane.b32.xlu1 %v7032_v17, %s12622_s21  ;;  %s12665_s21 = smov 126  }
 0x23b   : > { %1397 = vrot.lane.b32.xlu0 %v7000_v6, %s12641_s24 }
 0x23c   : > { %v7429_v25 = vpop.permute.xlu2 %1191  ;;  %v7431_v22 = vpop.permute.xlu1 %1105 }
 0x23d   : > { %13038 = vst [vmem:[#allocation65_spill] sm:$0xff] %v7429_v25  ;;  %v7433_v19 = vpop.permute.xlu0 %1145 }
 0x23e   : > { %13039 = vst [vmem:[#allocation66_spill] sm:$0xff] %v7431_v22 }
 0x23f   : > { %13040 = vst [vmem:[#allocation67_spill] sm:$0xff] %v7433_v19 }
 0x242   : > { %1399 = vrot.lane.b32.xlu2 %v7012_v11, %s12641_s24  ;;  %1395 = vrot.lane.b32.xlu1 %v7015_v12, %s12641_s24 }
 0x243   : > { %1403 = vrot.lane.b32.xlu0 %v7018_v16, %s12641_s24 }
 0x244   : > { %v7441_v59 = vpop.permute.xlu2 %1197  ;;  %v7443_v30 = vpop.permute.xlu1 %1143 }
 0x245   : > { %13041 = vst [vmem:[#allocation68_spill] sm:$0xff] %v7441_v59  ;;  %v7445_v31 = vpop.permute.xlu0 %1151 }
 0x246   : > { %13042 = vst [vmem:[#allocation69_spill] sm:$0xff] %v7443_v30 }
 0x247   : > { %13043 = vst [vmem:[#allocation70_spill] sm:$0xff] %v7445_v31 }
 0x24a   : > { %1405 = vrot.lane.b32.xlu2 %v7032_v17, %s12641_s24  ;;  %1401 = vrot.lane.b32.xlu1 %v7029_v15, %s12641_s24  ;;  %s12663_s24 = smov 114  }
 0x24b   : > { %1441 = vrot.lane.b32.xlu0 %v6997_v4, %s12665_s21 }
 0x24c   : > { %v7456_v20 = vpop.permute.xlu2 %1203  ;;  %v7458_v36 = vpop.permute.xlu1 %1149 }
 0x24d   : > { %13044 = vst [vmem:[#allocation71_spill] sm:$0xff] %v7456_v20  ;;  %v7461_v63 = vpop.permute.xlu0 %1157 }
 0x24e   : > { %13045 = vst [vmem:[#allocation72_spill] sm:$0xff] %v7458_v36  ;;  %v1167_v34 = vsel %vm1159_vm11, %v7461_v63, %v7458_v36  ;;  %v1165_v36 = vsel %vm1159_vm11, %v7417_v21, %v7433_v19  ;;  %v1118_v19 = vsel %vm1111_vm12, %v7421_v27, %v7419_v18 }
 0x24f   : > { %13046 = vst [vmem:[#allocation73_spill] sm:$0xff] %v7461_v63  ;;  %v1181_v26 = vmul.f32 %v1171_v33, %v1167_v34  ;;  %v1164_v63 = vsel %vm1159_vm11, %v7445_v31, %v7443_v30  ;;  %v1177_v37 = vmul.f32 %v1171_v33, %v1165_v36  ;;  %v1123_v30 = vperm.slane %v6555_v40, 0 }
 0x250   : > { %v1116_v40 = vsel %vm1111_vm12, %v7381_v10, %v7397_v7  ;;  %v1070_v7 = vsel %vm1063_vm13, %v7326_v8, %v7369_v1 }
 0x251   : > { %2260 = vmatpush.msra.mxu3 %v1181_v26 }
 0x252   : > { %1443 = vrot.lane.b32.xlu2 %v7015_v12, %s12665_s21  ;;  %1439 = vrot.lane.b32.xlu1 %v6994_v3, %s12665_s21 }
 0x253   : > { %1447 = vrot.lane.b32.xlu0 %v7012_v11, %s12665_s21 }
 0x254   : > { %v7473_v42 = vpop.permute.xlu2 %1241  ;;  %v7475_v39 = vpop.permute.xlu1 %1155 }
 0x255   : > { %13047 = vst [vmem:[#allocation74_spill] sm:$0xff] %v7473_v42  ;;  %v7477_v23 = vpop.permute.xlu0 %1195  ;;  %v1166_v26 = vsel %vm1159_vm11, %v7475_v39, %v7405_v5 }
 0x256   : > { %13048 = vst [vmem:[#allocation75_spill] sm:$0xff] %v7475_v39  ;;  %v1179_v34 = vmul.f32 %v1171_v33, %v1166_v26  ;;  %v1119_v26 = vsel %vm1111_vm12, %v7393_v55, %v7409_v28 }
 0x257   : > { %13049 = vst [vmem:[#allocation76_spill] sm:$0xff] %v7477_v23  ;;  %v1133_v5 = vmul.f32 %v1123_v30, %v1119_v26 }
 0x258   : > { %2261 = vmatpush.msra.mxu3 %v1179_v34  ;;  %v1175_v34 = vmul.f32 %v1171_v33, %v1164_v63  ;;  %v1131_v33 = vmul.f32 %v1123_v30, %v1118_v19  ;;  %v6554_v63 = vld [vmem:[%s12588_s3 + $0x5] ss:$8 sm:$0x3]  ;;  %v1071_v19 = vsel %vm1063_vm13, %v7407_v54, %v7291_v14  ;;  %v6560_v54 = vld [vmem:[%s12588_s3 + $0x13] ss:$8 sm:$0x3] }
 0x259   : > { %v1363_v27 = vperm.slane %v6560_v54, 0 }
 0x25a   : > { %1449 = vrot.lane.b32.xlu2 %v7029_v15, %s12665_s21  ;;  %1445 = vrot.lane.b32.xlu1 %v7000_v6, %s12665_s21 }
 0x25b   : > { %1453 = vrot.lane.b32.xlu0 %v7032_v17, %s12665_s21  ;;  %2262 = vmatpush.msra.mxu3 %v1177_v37  ;;  %v1117_v37 = vsel %vm1111_vm12, %v7431_v22, %v7361_v58 }
 0x25c   : > { %v7505_v31 = vpop.permute.xlu2 %1247  ;;  %v7507_v36 = vpop.permute.xlu1 %1193  ;;  %v1129_v26 = vmul.f32 %v1123_v30, %v1117_v37 }
 0x25d   : > { %13050 = vst [vmem:[#allocation77_spill] sm:$0xff] %v7505_v31  ;;  %v7513_v21 = vpop.permute.xlu0 %1201  ;;  %2263 = vmatpush.msra.mxu3 %v1175_v34  ;;  %v1075_v34 = vperm.slane %v6554_v63, 0  ;;  %v6553_v63 = vld [vmem:[%s12588_s3 + $0x4] ss:$8 sm:$0x3] }
 0x25e   : > { %13051 = vst [vmem:[#allocation78_spill] sm:$0xff] %v7507_v36 }
 0x25f   : > { %13052 = vst [vmem:[#allocation79_spill] sm:$0xff] %v7513_v21  ;;  %2264 = vmatpush.msra.mxu3 %v1133_v5  ;;  %v1127_v5 = vmul.f32 %v1123_v30, %v1116_v40  ;;  %v1085_v58 = vmul.f32 %v1075_v34, %v1071_v19  ;;  %v1083_v30 = vmul.f32 %v1075_v34, %v1070_v7 }
 0x260   : > { %v1068_v40 = vsel %vm1063_vm13, %v7395_v24, %v7256_v60 }
 0x261   : > { %2265 = vmatpush.msra.mxu3 %v1131_v33  ;;  %v1079_v7 = vmul.f32 %v1075_v34, %v1068_v40  ;;  %v1020_v40 = vsel %vm1015_vm14, %v7299_v52, %v7293_v50 }
 0x262   : > { %1487 = vrot.lane.b32.xlu2 %v6994_v3, %s12663_s24  ;;  %1451 = vrot.lane.b32.xlu1 %v7018_v16, %s12665_s21  ;;  %s12713_s21 = smov 98  }
 0x263   : > { %1491 = vrot.lane.b32.xlu0 %v7015_v12, %s12663_s24  ;;  %2266 = vmatpush.msra.mxu3 %v1129_v26  ;;  %v1069_v26 = vsel %vm1063_vm13, %v7385_v9, %v7383_v13 }
 0x264   : > { %v7537_v33 = vpop.permute.xlu2 %1253  ;;  %v7539_v37 = vpop.permute.xlu1 %1199  ;;  %v1081_v19 = vmul.f32 %v1075_v34, %v1069_v26 }
 0x265   : > { %13053 = vst [vmem:[#allocation80_spill] sm:$0xff] %v7537_v33  ;;  %v7545_v10 = vpop.permute.xlu0 %1239  ;;  %2267 = vmatpush.msra.mxu3 %v1127_v5  ;;  %v1027_v5 = vperm.slane %v6553_v63, 0 }
 0x266   : > { %13054 = vst [vmem:[#allocation81_spill] sm:$0xff] %v7539_v37 }
 0x267   : > { %13055 = vst [vmem:[#allocation82_spill] sm:$0xff] %v7545_v10  ;;  %2268 = vmatpush.msra.mxu3 %v1085_v58  ;;  %v1023_v58 = vsel %vm1015_vm14, %v7340_v0, %v7328_v51 }
 0x268   : > { %v1037_v13 = vmul.f32 %v1027_v5, %v1023_v58 }
 0x269   : > { %2269 = vmatpush.msra.mxu3 %v1083_v30  ;;  %v1022_v30 = vsel %vm1015_vm14, %v7363_v44, %v7222_v47 }
 0x26a   : > { %1493 = vrot.lane.b32.xlu2 %v7000_v6, %s12663_s24  ;;  %1489 = vrot.lane.b32.xlu1 %v6997_v4, %s12663_s24  ;;  %v1035_v34 = vmul.f32 %v1027_v5, %v1022_v30 }
 0x26b   : > { %1497 = vrot.lane.b32.xlu0 %v7029_v15, %s12663_s24  ;;  %2270 = vmatpush.msra.mxu3 %v1081_v19  ;;  %v1021_v19 = vsel %vm1015_vm14, %v7240_v53, %v7260_v62 }
 0x26c   : > { %v7569_v60 = vpop.permute.xlu2 %1291  ;;  %v7571_v26 = vpop.permute.xlu1 %1205  ;;  %v1033_v63 = vmul.f32 %v1027_v5, %v1021_v19 }
 0x26d   : > { %13056 = vst [vmem:[#allocation83_spill] sm:$0xff] %v7569_v60  ;;  %v7577_v24 = vpop.permute.xlu0 %1245  ;;  %2271 = vmatpush.msra.mxu3 %v1079_v7 }
 0x26e   : > { %13057 = vst [vmem:[#allocation84_spill] sm:$0xff] %v7571_v26 }
 0x26f   : > { %13058 = vst [vmem:[#allocation85_spill] sm:$0xff] %v7577_v24  ;;  %2272 = vmatpush.msra.mxu3 %v1037_v13  ;;  %v1031_v13 = vmul.f32 %v1027_v5, %v1020_v40 }
 0x271   : > { %2273 = vmatpush.msra.mxu3 %v1035_v34 }
 0x272   : > { %1499 = vrot.lane.b32.xlu2 %v7018_v16, %s12663_s24  ;;  %1495 = vrot.lane.b32.xlu1 %v7012_v11, %s12663_s24 }
 0x273   : > { %1535 = vrot.lane.b32.xlu0 %v6994_v3, %s12658_s1  ;;  %2274 = vmatpush.msra.mxu3 %v1033_v63 }
 0x274   : > { %v7593_v58 = vpop.permute.xlu2 %1297  ;;  %v7595_v7 = vpop.permute.xlu1 %1243 }
 0x275   : > { %13059 = vst [vmem:[#allocation86_spill] sm:$0xff] %v7593_v58  ;;  %v7597_v30 = vpop.permute.xlu0 %1251  ;;  %2275 = vmatpush.msra.mxu3 %v1031_v13 }
 0x276   : > { %13060 = vst [vmem:[#allocation87_spill] sm:$0xff] %v7595_v7 }
 0x277   : > { %13061 = vst [vmem:[#allocation88_spill] sm:$0xff] %v7597_v30 }
 0x27a   : > { %1537 = vrot.lane.b32.xlu2 %v6997_v4, %s12658_s1  ;;  %1501 = vrot.lane.b32.xlu1 %v7032_v17, %s12663_s24  ;;  %s12758_s24 = smov 97  }
 0x27b   : > { %1541 = vrot.lane.b32.xlu0 %v7000_v6, %s12658_s1 }
 0x27c   : > { %v7605_v19 = vpop.permute.xlu2 %1335  ;;  %v7607_v34 = vpop.permute.xlu1 %1249 }
 0x27d   : > { %13062 = vst [vmem:[#allocation89_spill] sm:$0xff] %v7605_v19  ;;  %v7609_v5 = vpop.permute.xlu0 %1289 }
 0x27e   : > { %13063 = vst [vmem:[#allocation90_spill] sm:$0xff] %v7607_v34 }
 0x27f   : > { %13064 = vst [vmem:[#allocation91_spill] sm:$0xff] %v7609_v5 }
 0x282   : > { %1543 = vrot.lane.b32.xlu2 %v7012_v11, %s12658_s1  ;;  %1539 = vrot.lane.b32.xlu1 %v7015_v12, %s12658_s1 }
 0x283   : > { %1547 = vrot.lane.b32.xlu0 %v7018_v16, %s12658_s1 }
 0x284   : > { %v7617_v40 = vpop.permute.xlu2 %1341  ;;  %v7619_v63 = vpop.permute.xlu1 %1287 }
 0x285   : > { %13065 = vst [vmem:[#allocation92_spill] sm:$0xff] %v7617_v40  ;;  %v7621_v13 = vpop.permute.xlu0 %1295 }
 0x286   : > { %13066 = vst [vmem:[#allocation93_spill] sm:$0xff] %v7619_v63 }
 0x287   : > { %13067 = vst [vmem:[#allocation94_spill] sm:$0xff] %v7621_v13 }
 0x28a   : > { %1549 = vrot.lane.b32.xlu2 %v7032_v17, %s12658_s1  ;;  %1545 = vrot.lane.b32.xlu1 %v7029_v15, %s12658_s1  ;;  %s12695_s1 = smov 111  }
 0x28b   : > { %1585 = vrot.lane.b32.xlu0 %v6997_v4, %s12676_s20 }
 0x28c   : > { %v7629_v50 = vpop.permute.xlu2 %1347  ;;  %v7631_v52 = vpop.permute.xlu1 %1293 }
 0x28d   : > { %13068 = vst [vmem:[#allocation95_spill] sm:$0xff] %v7629_v50  ;;  %v7633_v62 = vpop.permute.xlu0 %1301 }
 0x28e   : > { %13069 = vst [vmem:[#allocation96_spill] sm:$0xff] %v7631_v52 }
 0x28f   : > { %13070 = vst [vmem:[#allocation97_spill] sm:$0xff] %v7633_v62 }
 0x292   : > { %1587 = vrot.lane.b32.xlu2 %v7015_v12, %s12676_s20  ;;  %1583 = vrot.lane.b32.xlu1 %v6994_v3, %s12676_s20 }
 0x293   : > { %1591 = vrot.lane.b32.xlu0 %v7012_v11, %s12676_s20 }
 0x294   : > { %v7641_v53 = vpop.permute.xlu2 %1393  ;;  %v7643_v47 = vpop.permute.xlu1 %1299 }
 0x295   : > { %13071 = vst [vmem:[#allocation98_spill] sm:$0xff] %v7641_v53  ;;  %v7645_v44 = vpop.permute.xlu0 %1339 }
 0x296   : > { %13072 = vst [vmem:[#allocation99_spill] sm:$0xff] %v7643_v47  ;;  %v1358_v32 = vsel %vm1351_vm15, %v7629_v50, %v7645_v44 }
 0x297   : > { %13073 = vst [vmem:[#allocation100_spill] sm:$0xff] %v7645_v44  ;;  %v1371_v54 = vmul.f32 %v1363_v27, %v1358_v32 }
 0x29a   : > { %1593 = vrot.lane.b32.xlu2 %v7029_v15, %s12676_s20  ;;  %1589 = vrot.lane.b32.xlu1 %v7000_v6, %s12676_s20 }
 0x29b   : > { %1597 = vrot.lane.b32.xlu0 %v7032_v17, %s12676_s20 }
 0x29c   : > { %v7653_v51 = vpop.permute.xlu2 %1399  ;;  %v7655_v0 = vpop.permute.xlu1 %1337 }
 0x29d   : > { %13074 = vst [vmem:[#allocation101_spill] sm:$0xff] %v7653_v51  ;;  %v7657_v9 = vpop.permute.xlu0 %1345 }
 0x29e   : > { %13075 = vst [vmem:[#allocation102_spill] sm:$0xff] %v7655_v0  ;;  %v1357_v2 = vsel %vm1351_vm15, %v7657_v9, %v7655_v0 }
 0x29f   : > { %13076 = vst [vmem:[#allocation103_spill] sm:$0xff] %v7657_v9  ;;  %v1369_v32 = vmul.f32 %v1363_v27, %v1357_v2 }
 0x2a2   : > { %1631 = vrot.lane.b32.xlu2 %v6994_v3, %s12695_s1  ;;  %1595 = vrot.lane.b32.xlu1 %v7018_v16, %s12676_s20  ;;  %s12693_s20 = smov 110  }
 0x2a3   : > { %1635 = vrot.lane.b32.xlu0 %v7015_v12, %s12695_s1 }
 0x2a4   : > { %v7665_v1 = vpop.permute.xlu2 %1405  ;;  %v7667_v8 = vpop.permute.xlu1 %1343 }
 0x2a5   : > { %13077 = vst [vmem:[#allocation104_spill] sm:$0xff] %v7665_v1  ;;  %v7669_v14 = vpop.permute.xlu0 %1391 }
 0x2a6   : > { %13078 = vst [vmem:[#allocation105_spill] sm:$0xff] %v7667_v8 }
 0x2a7   : > { %13079 = vst [vmem:[#allocation106_spill] sm:$0xff] %v7669_v14 }
 0x2aa   : > { %1637 = vrot.lane.b32.xlu2 %v7000_v6, %s12695_s1  ;;  %1633 = vrot.lane.b32.xlu1 %v6997_v4, %s12695_s1 }
 0x2ab   : > { %1641 = vrot.lane.b32.xlu0 %v7029_v15, %s12695_s1 }
 0x2ac   : > { %v7681_v22 = vpop.permute.xlu2 %1443  ;;  %v7683_v18 = vpop.permute.xlu1 %1349 }
 0x2ad   : > { %13080 = vst [vmem:[#allocation107_spill] sm:$0xff] %v7683_v18  ;;  %v7685_v28 = vpop.permute.xlu0 %1397  ;;  %v1359_v55 = vsel %vm1351_vm15, %v7683_v18, %v7617_v40  ;;  %v1309_v40 = vsel %vm1303_vm1, %v7593_v58, %v7609_v5  ;;  %v7909_v58 = vld [vmem:[%s13094_s10 + $0x40] sm:$0xff] }
 0x2ae   : > { %13081 = vst [vmem:[#allocation108_spill] sm:$0xff] %v7685_v28  ;;  %v1373_v39 = vmul.f32 %v1363_v27, %v1359_v55  ;;  %v1356_v55 = vsel %vm1351_vm15, %v7667_v8, %v7605_v19  ;;  %v1311_v19 = vsel %vm1303_vm1, %v7633_v62, %v7631_v52 }
 0x2af   : > { %v1367_v44 = vmul.f32 %v1363_v27, %v1356_v55  ;;  %v1308_v27 = vsel %vm1303_vm1, %v7621_v13, %v7619_v63  ;;  %v1261_v13 = vsel %vm1255_vm2, %v7607_v34, %v7473_v42 }
 0x2b0   : > { %2289 = vmatpush.msrb.mxu0 %v1373_v39  ;;  %v6559_v39 = vld [vmem:[%s12588_s3 + $0x12] ss:$8 sm:$0x3] }
 0x2b1   : > { %v1315_v50 = vperm.slane %v6559_v39, 0 }
 0x2b2   : > { %1643 = vrot.lane.b32.xlu2 %v7018_v16, %s12695_s1  ;;  %1639 = vrot.lane.b32.xlu1 %v7012_v11, %s12695_s1 }
 0x2b3   : > { %1679 = vrot.lane.b32.xlu0 %v6994_v3, %s12693_s20  ;;  %2290 = vmatpush.msrb.mxu0 %v1371_v54  ;;  %v1310_v54 = vsel %vm1303_vm1, %v7643_v47, %v7569_v60  ;;  %v1325_v2 = vmul.f32 %v1315_v50, %v1311_v19  ;;  %v1321_v19 = vmul.f32 %v1315_v50, %v1309_v40  ;;  %v1969_v60 = vld [vmem:[%s13094_s10 + $0x10] sm:$0xff] }
 0x2b4   : > { %v7713_v0 = vpop.permute.xlu2 %1449  ;;  %v7715_v9 = vpop.permute.xlu1 %1395  ;;  %v1323_v18 = vmul.f32 %v1315_v50, %v1310_v54 }
 0x2b5   : > { %13082 = vst [vmem:[#allocation109_spill] sm:$0xff] %v7713_v0  ;;  %v7721_v8 = vpop.permute.xlu0 %1403  ;;  %2291 = vmatpush.msrb.mxu0 %v1369_v32  ;;  %v1263_v32 = vsel %vm1255_vm2, %v7537_v33, %v7577_v24  ;;  %v7890_v33 = vld [vmem:[%s13094_s10 + $0x38] sm:$0xff] }
 0x2b6   : > { %13083 = vst [vmem:[#allocation110_spill] sm:$0xff] %v7715_v9 }
 0x2b7   : > { %13084 = vst [vmem:[#allocation111_spill] sm:$0xff] %v7721_v8  ;;  %2292 = vmatpush.msrb.mxu0 %v1367_v44  ;;  %v6558_v44 = vld [vmem:[%s12588_s3 + $0x11] ss:$8 sm:$0x3] }
 0x2b8   : > { %v1267_v63 = vperm.slane %v6558_v44, 0 }
 0x2b9   : > { %2293 = vmatpush.msrb.mxu0 %v1325_v2  ;;  %v1319_v2 = vmul.f32 %v1315_v50, %v1308_v27  ;;  %v1260_v50 = vsel %vm1255_vm2, %v7505_v31, %v7545_v10  ;;  %v6557_v27 = vld [vmem:[%s12588_s3 + $0x10] ss:$8 sm:$0x3]  ;;  %v1213_v31 = vsel %vm12895_vm3, %v7513_v21, %v7507_v36  ;;  %v7853_v36 = vld [vmem:[%s13094_s10] sm:$0xff]  ;;  %v7866_v21 = vld [vmem:[%s13094_s10 + $0x8] sm:$0xff] }
 0x2ba   : > { %1681 = vrot.lane.b32.xlu2 %v6997_v4, %s12693_s20  ;;  %1645 = vrot.lane.b32.xlu1 %v7032_v17, %s12695_s1  ;;  %v1277_v40 = vmul.f32 %v1267_v63, %v1263_v32  ;;  %v1273_v44 = vmul.f32 %v1267_v63, %v1261_v13  ;;  %v1219_v10 = vperm.slane %v6557_v27, 0  ;;  %s13308_s1 = smov 112  }
 0x2bb   : > { %1685 = vrot.lane.b32.xlu0 %v7000_v6, %s12693_s20  ;;  %2294 = vmatpush.msrb.mxu0 %v1323_v18  ;;  %v1262_v18 = vsel %vm1255_vm2, %v7597_v30, %v7595_v7 }
 0x2bc   : > { %v7745_v55 = vpop.permute.xlu2 %1487  ;;  %v7747_v39 = vpop.permute.xlu1 %1401  ;;  %v1275_v5 = vmul.f32 %v1267_v63, %v1262_v18  ;;  %2247 = vmatmul.f32.vlgmr.msra.gmra.mxu2 %v7853_v36  ;;  %2276 = vmatmul.f32.vlgmr.msra.gmra.mxu3 %v7866_v21 }
 0x2bd   : > { %13085 = vst [vmem:[#allocation112_spill] sm:$0xff] %v7745_v55  ;;  %v7753_v54 = vpop.permute.xlu0 %1441  ;;  %2295 = vmatpush.msrb.mxu0 %v1321_v19 }
 0x2be   : > { %13086 = vst [vmem:[#allocation113_spill] sm:$0xff] %v7747_v39 }
 0x2bf   : > { %13087 = vst [vmem:[#allocation114_spill] sm:$0xff] %v7753_v54  ;;  %2296 = vmatpush.msrb.mxu0 %v1319_v2  ;;  %v1215_v2 = vsel %vm12895_vm3, %v7571_v26, %v7441_v59 }
 0x2c0   : > { %v1229_v13 = vmul.f32 %v1219_v10, %v1215_v2 }
 0x2c1   : > { %2297 = vmatpush.msrb.mxu0 %v1277_v40  ;;  %v1271_v40 = vmul.f32 %v1267_v63, %v1260_v50  ;;  %v1212_v63 = vsel %vm12895_vm3, %v7539_v37, %v7429_v25  ;;  %v1225_v50 = vmul.f32 %v1219_v10, %v1213_v31  ;;  %v6563_v37 = vld [vmem:[%s12588_s3 + $0x17] ss:$8 sm:$0x3] }
 0x2c2   : > { %1687 = vrot.lane.b32.xlu2 %v7012_v11, %s12693_s20  ;;  %1683 = vrot.lane.b32.xlu1 %v7015_v12, %s12693_s20  ;;  %v1515_v59 = vperm.slane %v6563_v37, 0 }
 0x2c3   : > { %1691 = vrot.lane.b32.xlu0 %v7018_v16, %s12693_s20  ;;  %2298 = vmatpush.msrb.mxu0 %v1275_v5  ;;  %v1214_v5 = vsel %vm12895_vm3, %v7456_v20, %v7477_v23 }
 0x2c4   : > { %v7777_v19 = vpop.permute.xlu2 %1493  ;;  %v7779_v32 = vpop.permute.xlu1 %1439  ;;  %v1227_v42 = vmul.f32 %v1219_v10, %v1214_v5  ;;  %2250 = vmatmul.f32.gmra.mxu2 %v7890_v33  ;;  %2279 = vmatmul.f32.gmra.mxu3 %v7909_v58 }
 0x2c5   : > { %13088 = vst [vmem:[#allocation115_spill] sm:$0xff] %v7779_v32  ;;  %v7785_v18 = vpop.permute.xlu0 %1447  ;;  %2299 = vmatpush.msrb.mxu0 %v1273_v44 }
 0x2c6   : > { %13089 = vst [vmem:[#allocation116_spill] sm:$0xff] %v7785_v18 }
 0x2c7   : > { %2300 = vmatpush.msrb.mxu0 %v1271_v40  ;;  %v1223_v40 = vmul.f32 %v1219_v10, %v1212_v63 }
 0x2c9   : > { %2301 = vmatpush.msrb.mxu0 %v1229_v13 }
 0x2ca   : > { %1693 = vrot.lane.b32.xlu2 %v7032_v17, %s12693_s20  ;;  %1689 = vrot.lane.b32.xlu1 %v7029_v15, %s12693_s20  ;;  %s12754_s20 = smov 95  }
 0x2cb   : > { %1729 = vrot.lane.b32.xlu0 %v6997_v4, %s12713_s21  ;;  %2302 = vmatpush.msrb.mxu0 %v1227_v42 }
 0x2cc   : > { %v7805_v27 = vpop.permute.xlu2 %1499  ;;  %v7807_v44 = vpop.permute.xlu1 %1445 }
 0x2cd   : > { %13090 = vst [vmem:[#allocation117_spill] sm:$0xff] %v7807_v44  ;;  %v7809_v2 = vpop.permute.xlu0 %1453  ;;  %2303 = vmatpush.msrb.mxu0 %v1225_v50 }
 0x2ce   : > { %13091 = vst [vmem:[#allocation118_spill] sm:$0xff] %v7809_v2  ;;  %v1459_v62 = vsel %vm1455_vm5, %v7807_v44, %v7809_v2  ;;  %v1457_v2 = vsel %vm1455_vm5, %v7753_v54, %v7713_v0 }
 0x2cf   : > { %2304 = vmatpush.msrb.mxu0 %v1223_v40 }
 0x2d0   : > { %2305 = vmatmul.f32.vlgmr.msrb.gmra.mxu0 %v1969_v60  ;;  %v1456_v60 = vsel %vm1455_vm5, %v7779_v32, %v7785_v18  ;;  %v1409_v32 = vsel %vm1407_vm6, %v7641_v53, %v7747_v39  ;;  %v13098_v53 = vld [vmem:[#allocation35_spill] sm:$0xff] }
 0x2d2   : > { %1731 = vrot.lane.b32.xlu2 %v7015_v12, %s12713_s21  ;;  %1727 = vrot.lane.b32.xlu1 %v6994_v3, %s12713_s21 }
 0x2d3   : > { %1735 = vrot.lane.b32.xlu0 %v7012_v11, %s12713_s21 }
 0x2d4   : > { %v7817_v42 = vpop.permute.xlu2 %1537  ;;  %v7819_v31 = vpop.permute.xlu1 %1451 }
 0x2d5   : > { %v7821_v5 = vpop.permute.xlu0 %1491 }
 0x2d6   : > { %v1506_v30 = vsel %vm1503_vm4, %v7821_v5, %v7805_v27 }
 0x2d7   : > { %v1523_v24 = vmul.f32 %v1515_v59, %v1506_v30  ;;  %v6562_v30 = vld [vmem:[%s12588_s3 + $0x16] ss:$8 sm:$0x3] }
 0x2da   : > { %1737 = vrot.lane.b32.xlu2 %v7029_v15, %s12713_s21  ;;  %1733 = vrot.lane.b32.xlu1 %v7000_v6, %s12713_s21 }
 0x2db   : > { %1741 = vrot.lane.b32.xlu0 %v7032_v17, %s12713_s21 }
 0x2dc   : > { %v7829_v10 = vpop.permute.xlu2 %1543  ;;  %v7831_v13 = vpop.permute.xlu1 %1489 }
 0x2dd   : > { %v7833_v63 = vpop.permute.xlu0 %1497 }
 0x2de   : > { %13092 = vst [vmem:[#allocation119_spill] sm:$0xff] %v7833_v63  ;;  %v1505_v37 = vsel %vm1503_vm4, %v7831_v13, %v7833_v63 }
 0x2e2   : > { %1775 = vrot.lane.b32.xlu2 %v6994_v3, %s12758_s24  ;;  %1739 = vrot.lane.b32.xlu1 %v7018_v16, %s12713_s21  ;;  %s13243_s21 = smov 2  }
 0x2e3   : > { %1779 = vrot.lane.b32.xlu0 %v7015_v12, %s12758_s24 }
 0x2e4   : > { %v7841_v50 = vpop.permute.xlu2 %1549  ;;  %v7843_v40 = vpop.permute.xlu1 %1495 }
 0x2e5   : > { %13093 = vst [vmem:[#allocation120_spill] sm:$0xff] %v7843_v40  ;;  %v7845_v25 = vpop.permute.xlu0 %1535 }
 0x2ea   : > { %1781 = vrot.lane.b32.xlu2 %v7000_v6, %s12758_s24  ;;  %1777 = vrot.lane.b32.xlu1 %v6997_v4, %s12758_s24 }
 0x2eb   : > { %1785 = vrot.lane.b32.xlu0 %v7029_v15, %s12758_s24 }
 0x2ec   : > { %v7868_v23 = vpop.permute.xlu2 %1587  ;;  %v7870_v20 = vpop.permute.xlu1 %1501 }
 0x2ed   : > { %v7873_v26 = vpop.permute.xlu0 %1541  ;;  %v1507_v34 = vsel %vm1503_vm4, %v7777_v19, %v7870_v20 }
 0x2ee   : > { %v1525_v7 = vmul.f32 %v1515_v59, %v1507_v34  ;;  %v1521_v34 = vmul.f32 %v1515_v59, %v1505_v37 }
 0x2f0   : > { %2318 = vmatpush.msrb.mxu1 %v1525_v7  ;;  %v1504_v7 = vsel %vm1503_vm4, %v7745_v55, %v7843_v40  ;;  %v1467_v40 = vperm.slane %v6562_v30, 0  ;;  %v1458_v55 = vsel %vm1455_vm5, %v7681_v22, %v7819_v31  ;;  %v1411_v30 = vsel %vm1407_vm6, %v7685_v28, %v7665_v1  ;;  %v13108_v28 = vld [vmem:[#allocation26_spill] sm:$0xff] }
 0x2f1   : > { %v1519_v37 = vmul.f32 %v1515_v59, %v1504_v7 }
 0x2f2   : > { %1787 = vrot.lane.b32.xlu2 %v7018_v16, %s12758_s24  ;;  %1783 = vrot.lane.b32.xlu1 %v7012_v11, %s12758_s24  ;;  %v1477_v63 = vmul.f32 %v1467_v40, %v1459_v62  ;;  %v1475_v44 = vmul.f32 %v1467_v40, %v1458_v55  ;;  %v6561_v62 = vld [vmem:[%s12588_s3 + $0x15] ss:$8 sm:$0x3]  ;;  %v1473_v59 = vmul.f32 %v1467_v40, %v1457_v2  ;;  %v1976_v55 = vld [vmem:[%s13094_s10 + $0x48] sm:$0xff] }
 0x2f3   : > { %1823 = vrot.lane.b32.xlu0 %v6994_v3, %s12756_s19  ;;  %2319 = vmatpush.msrb.mxu1 %v1523_v24  ;;  %v1419_v18 = vperm.slane %v6561_v62, 0 }
 0x2f4   : > { %v7914_v47 = vpop.permute.xlu2 %1593  ;;  %v7916_v52 = vpop.permute.xlu1 %1539  ;;  %2308 = vmatmul.f32.gmra.mxu0 %v1976_v55 }
 0x2f5   : > { %v7924_v24 = vpop.permute.xlu0 %1547  ;;  %2320 = vmatpush.msrb.mxu1 %v1521_v34  ;;  %v1429_v2 = vmul.f32 %v1419_v18, %v1411_v30  ;;  %v1425_v62 = vmul.f32 %v1419_v18, %v1409_v32  ;;  %v8013_v32 = vld [vmem:[%s13094_s10 + $0xb0] sm:$0xff] }
 0x2f7   : > { %2321 = vmatpush.msrb.mxu1 %v1519_v37  ;;  %v1471_v37 = vmul.f32 %v1467_v40, %v1456_v60  ;;  %v7972_v40 = vld [vmem:[%s13094_s10 + $0x70] sm:$0xff]  ;;  %v1408_v60 = vsel %vm1407_vm6, %v7669_v14, %v7653_v51  ;;  %v1970_v14 = vld [vmem:[%s13094_s10 + $0x18] sm:$0xff] }
 0x2f8   : > { %2253 = vmatmul.f32.gmra.mxu2 %v7972_v40 }
 0x2f9   : > { %2322 = vmatpush.msrb.mxu1 %v1477_v63 }
 0x2fa   : > { %1825 = vrot.lane.b32.xlu2 %v6997_v4, %s12756_s19  ;;  %1789 = vrot.lane.b32.xlu1 %v7032_v17, %s12758_s24  ;;  %s13221_s24 = smov 16  }
 0x2fb   : > { %1829 = vrot.lane.b32.xlu0 %v7000_v6, %s12756_s19  ;;  %2323 = vmatpush.msrb.mxu1 %v1475_v44  ;;  %v1410_v44 = vsel %vm1407_vm6, %v7715_v9, %v7721_v8  ;;  %v13101_v8 = vld [vmem:[#allocation24_spill] sm:$0xff] }
 0x2fc   : > { %v7951_v63 = vpop.permute.xlu2 %1631  ;;  %v7953_v7 = vpop.permute.xlu1 %1545  ;;  %v1427_v1 = vmul.f32 %v1419_v18, %v1410_v44  ;;  %v1423_v44 = vmul.f32 %v1419_v18, %v1408_v60  ;;  %v1983_v18 = vld [vmem:[%s13094_s10 + $0x80] sm:$0xff] }
 0x2fd   : > { %v7959_v34 = vpop.permute.xlu0 %1585  ;;  %2324 = vmatpush.msrb.mxu1 %v1473_v59  ;;  %v7987_v59 = vld [vmem:[%s13094_s10 + $0x78] sm:$0xff]  ;;  %2311 = vmatmul.f32.gmra.mxu0 %v1983_v18  ;;  %v968_v18 = vsel %vm12894_vm7, %v7206_v43, %v7190_v38  ;;  %v923_v38 = vsel %vm12893_vm8, %v7154_v29, %v7224_v48 }
 0x2fe   : > { %2282 = vmatmul.f32.gmra.mxu3 %v7987_v59 }
 0x2ff   : > { %2325 = vmatpush.msrb.mxu1 %v1471_v37 }
 0x301   : > { %2326 = vmatpush.msrb.mxu1 %v1429_v2  ;;  %v971_v2 = vsel %vm12894_vm7, %v7227_v49, %v7202_v41  ;;  %v970_v41 = vsel %vm12894_vm7, %v7242_v56, %v7244_v57  ;;  %v13095_v57 = vld [vmem:[#allocation41_spill] sm:$0xff] }
 0x302   : > { %1831 = vrot.lane.b32.xlu2 %v7012_v11, %s12756_s19  ;;  %1827 = vrot.lane.b32.xlu1 %v7015_v12, %s12756_s19 }
 0x303   : > { %1835 = vrot.lane.b32.xlu0 %v7018_v16, %s12756_s19  ;;  %2327 = vmatpush.msrb.mxu1 %v1427_v1  ;;  %v8001_v1 = vld [vmem:[%s13094_s10 + $0xa8] sm:$0xff] }
 0x304   : > { %v7989_v55 = vpop.permute.xlu2 %1637  ;;  %v7991_v30 = vpop.permute.xlu1 %1583  ;;  %2256 = vmatmul.f32.gmra.mxu2 %v8001_v1 }
 0x305   : > { %v7995_v37 = vpop.permute.xlu0 %1591  ;;  %2328 = vmatpush.msrb.mxu1 %v1425_v62 }
 0x306   : > { %2285 = vmatmul.f32.gmra.mxu3 %v8013_v32 }
 0x307   : > { %2329 = vmatpush.msrb.mxu1 %v1423_v44  ;;  %v980_v44 = vperm.slane %v7215_v45, 1  ;;  %v969_v45 = vsel %vm12894_vm7, %v7178_v35, %v7258_v61  ;;  %v1990_v35 = vld [vmem:[%s13094_s10 + $0xb8] sm:$0xff]  ;;  %v932_v61 = vperm.slane %v13095_v57, 1  ;;  %v13099_v57 = vld [vmem:[#allocation34_spill] sm:$0xff] }
 0x308   : > { %2314 = vmatmul.f32.gmra.mxu0 %v1990_v35 }
 0x309   : > { %2330 = vmatpush.msrb.mxu1 %v7000_v6  ;;  %v990_v49 = vmul.f32 %v980_v44, %v971_v2  ;;  %v988_v39 = vmul.f32 %v980_v44, %v970_v41  ;;  %v986_v56 = vmul.f32 %v980_v44, %v969_v45  ;;  %v984_v2 = vmul.f32 %v980_v44, %v968_v18  ;;  %v1977_v41 = vld [vmem:[%s13094_s10 + $0x50] sm:$0xff]  ;;  %v13097_v45 = vld [vmem:[#allocation33_spill] sm:$0xff]  ;;  %v13100_v18 = vld [vmem:[#allocation36_spill] sm:$0xff] }
 0x30a   : > { %1837 = vrot.lane.b32.xlu2 %v7032_v17, %s12756_s19  ;;  %1833 = vrot.lane.b32.xlu1 %v7029_v15, %s12756_s19  ;;  %v942_v48 = vmul.f32 %v932_v61, %v923_v38  ;;  %v920_v35 = vsel %vm12893_vm8, %v13101_v8, %v13100_v18  ;;  %v13106_v18 = vld [vmem:[#allocation18_spill] sm:$0xff]  ;;  %s13229_s19 = smov 15  }
 0x30b   : > { %1873 = vrot.lane.b32.xlu0 %v6997_v4, %s12754_s20  ;;  %2331 = vmatpush.msrb.mxu1 %v7015_v12 }
 0x30c   : > { %v8022_v60 = vpop.permute.xlu2 %1643  ;;  %v8024_v62 = vpop.permute.xlu1 %1589 }
 0x30d   : > { %v8029_v51 = vpop.permute.xlu0 %1597  ;;  %2332 = vmatpush.msrb.mxu1 %v6997_v4 }
 0x30f   : > { %2333 = vmatpush.msrb.mxu1 %v6994_v3 }
 0x310   : > { %2334 = vmatmul.f32.vlgmr.msrb.gmra.mxu1 %v1970_v14 }
 0x311   : > { %2434 = vmatpush.msra.mxu1 %v990_v49  ;;  %v13096_v49 = vld [vmem:[#allocation29_spill] sm:$0xff] }
 0x312   : > { %1875 = vrot.lane.b32.xlu2 %v7015_v12, %s12754_s20  ;;  %1871 = vrot.lane.b32.xlu1 %v6994_v3, %s12754_s20  ;;  %v922_v29 = vsel %vm12893_vm8, %v13097_v45, %v13096_v49  ;;  %v13104_v45 = vld [vmem:[#allocation45_spill] sm:$0xff] }
 0x313   : > { %2435 = vmatpush.msra.mxu1 %v988_v39  ;;  %1879 = vrot.lane.b32.xlu0 %v7012_v11, %s12754_s20  ;;  %v940_v44 = vmul.f32 %v932_v61, %v922_v29  ;;  %v884_v8 = vperm.slane %v13104_v45, 1  ;;  %v13110_v45 = vld [vmem:[#allocation27_spill] sm:$0xff] }
 0x314   : > { %v8061_v43 = vpop.permute.xlu1 %1595  ;;  %v8066_v39 = vpop.permute.xlu2 %1681 }
 0x315   : > { %2436 = vmatpush.msra.mxu1 %v986_v56  ;;  %v8064_v14 = vpop.permute.xlu0 %1635  ;;  %v921_v56 = vsel %vm12893_vm8, %v13099_v57, %v13098_v53  ;;  %v13102_v53 = vld [vmem:[#allocation31_spill] sm:$0xff]  ;;  %v1984_v57 = vld [vmem:[%s13094_s10 + $0x88] sm:$0xff] }
 0x316   : > { %v938_v38 = vmul.f32 %v932_v61, %v921_v56 }
 0x317   : > { %2437 = vmatpush.msra.mxu1 %v984_v2  ;;  %v13103_v2 = vld [vmem:[#allocation30_spill] sm:$0xff] }
 0x318   : > { %2337 = vmatmul.f32.gmra.mxu1 %v1977_v41  ;;  %v875_v41 = vsel %vm12743_vm9, %v13103_v2, %v13102_v53  ;;  %v13107_v2 = vld [vmem:[#allocation21_spill] sm:$0xff] }
 0x319   : > { %2438 = vmatpush.msra.mxu1 %v942_v48  ;;  %v936_v48 = vmul.f32 %v932_v61, %v920_v35  ;;  %v894_v53 = vmul.f32 %v884_v8, %v875_v41  ;;  %v13109_v35 = vld [vmem:[#allocation28_spill] sm:$0xff] }
 0x31a   : > { %1881 = vrot.lane.b32.xlu2 %v7029_v15, %s12754_s20  ;;  %1877 = vrot.lane.b32.xlu1 %v7000_v6, %s12754_s20  ;;  %v872_v0 = vsel %vm12743_vm9, %v13110_v45, %v13109_v35  ;;  %v13111_v41 = vld [vmem:[#allocation48_spill] sm:$0xff]  ;;  %v1991_v35 = vld [vmem:[%s13094_s10 + $0xc0] sm:$0xff]  ;;  %v13114_v45 = vld [vmem:[#allocation23_spill] sm:$0xff] }
 0x31b   : > { %2439 = vmatpush.msra.mxu1 %v940_v44  ;;  %1885 = vrot.lane.b32.xlu0 %v7032_v17, %s12754_s20  ;;  %v13105_v44 = vld [vmem:[#allocation32_spill] sm:$0xff] }
 0x31c   : > { %v8093_v49 = vpop.permute.xlu1 %1633  ;;  %v874_v56 = vsel %vm12743_vm9, %v13106_v18, %v13105_v44  ;;  %v8105_v9 = vpop.permute.xlu2 %1687  ;;  %v13113_v44 = vld [vmem:[#allocation20_spill] sm:$0xff] }
 0x31d   : > { %2440 = vmatpush.msra.mxu1 %v938_v38  ;;  %v8096_v29 = vpop.permute.xlu0 %1641  ;;  %v873_v38 = vsel %vm12743_vm9, %v13108_v28, %v13107_v2  ;;  %v892_v61 = vmul.f32 %v884_v8, %v874_v56  ;;  %v888_v2 = vmul.f32 %v884_v8, %v872_v0  ;;  %vm12745_vm9 = vcmp.lt.s32.totalorder %v7218_v46, 110 }
 0x31e   : > { %v890_v28 = vmul.f32 %v884_v8, %v873_v38  ;;  %v13118_v8 = vld [vmem:[#allocation16_spill] sm:$0xff] }
 0x31f   : > { %2441 = vmatpush.msra.mxu1 %v936_v48  ;;  %v836_v48 = vperm.slane %v13111_v41, 1 }
 0x320   : > { %2340 = vmatmul.f32.gmra.mxu1 %v1984_v57  ;;  %v13112_v57 = vld [vmem:[#allocation17_spill] sm:$0xff] }
 0x321   : > { %2442 = vmatpush.msra.mxu1 %v894_v53  ;;  %v828_v18 = vsel %vm12744_vm10, %v13113_v44, %v13112_v57  ;;  %v13119_v44 = vld [vmem:[#allocation19_spill] sm:$0xff] }
 0x322   : > { %1919 = vrot.lane.b32.xlu2 %v6994_v3, %s12752_s17  ;;  %1883 = vrot.lane.b32.xlu1 %v7018_v16, %s12754_s20  ;;  %v846_v38 = vmul.f32 %v836_v48, %v828_v18  ;;  %v13116_v3 = vld [vmem:[#allocation25_spill] sm:$0xff]  ;;  %v825_v54 = vsel %vm12744_vm10, %v13119_v44, %v13118_v8  ;;  %s13261_s20 = smov 127  }
 0x323   : > { %2443 = vmatpush.msra.mxu1 %v892_v61  ;;  %1923 = vrot.lane.b32.xlu0 %v7015_v12, %s12752_s17  ;;  %v13115_v61 = vld [vmem:[#allocation22_spill] sm:$0xff]  ;;  %v13117_v12 = vld [vmem:[#allocation15_spill] sm:$0xff] }
 0x324   : > { %v8126_v56 = vpop.permute.xlu1 %1639  ;;  %v827_v41 = vsel %vm12744_vm10, %v13115_v61, %v13114_v45  ;;  %v826_v57 = vsel %vm12744_vm10, %v13117_v12, %v13116_v3  ;;  %v6567_v18 = vld [vmem:[%s12588_s3 + $0x23] ss:$8 sm:$0x3]  ;;  %v840_v45 = vmul.f32 %v836_v48, %v825_v54  ;;  %vm12746_vm10 = vcmp.lt.s32.totalorder %v7218_v46, 111 }
 0x325   : > { %2444 = vmatpush.msra.mxu1 %v890_v28  ;;  %v1680_v53 = vpop.permute.xlu0 %1679  ;;  %v1694_v28 = vpop.permute.xlu2 %1693  ;;  %v844_v0 = vmul.f32 %v836_v48, %v827_v41  ;;  %v842_v3 = vmul.f32 %v836_v48, %v826_v57  ;;  %v1707_v61 = vperm.slane %v6567_v18, 0  ;;  %v2195_v57 = vld [vmem:[%s13120_s11] sm:$0xff] }
 0x327   : > { %2445 = vmatpush.msra.mxu1 %v888_v2  ;;  %v1708_v2 = vperm.slane %v6567_v18, 1 }
 0x328   : > { %2343 = vmatmul.f32.gmra.mxu1 %v1991_v35 }
 0x329   : > { %2446 = vmatpush.msra.mxu1 %v846_v38 }
 0x32a   : > { %1925 = vrot.lane.b32.xlu2 %v7000_v6, %s12752_s17  ;;  %1921 = vrot.lane.b32.xlu1 %v6997_v4, %s12752_s17 }
 0x32b   : > { %2447 = vmatpush.msra.mxu1 %v844_v0  ;;  %1929 = vrot.lane.b32.xlu0 %v7029_v15, %s12752_s17 }
 0x32c   : > { %v1646_v12 = vpop.permute.xlu1 %1645 }
 0x32d   : > { %2448 = vmatpush.msra.mxu1 %v842_v3  ;;  %v1686_v35 = vpop.permute.xlu0 %1685  ;;  %v8165_v54 = vpop.permute.xlu2 %1731 }
 0x32e   : > { %v1703_v41 = vsel %vm12745_vm9, %v1694_v28, %v1686_v35  ;;  %v1699_v38 = vsel %vm12745_vm9, %v1686_v35, %v1694_v28  ;;  %v2196_v35 = vld [vmem:[%s13120_s11 + $0x8] sm:$0xff] }
 0x32f   : > { %v1718_v8 = vmul.f32 %v1708_v2, %v1703_v41  ;;  %2449 = vmatpush.msra.mxu1 %v840_v45  ;;  %v1717_v0 = vmul.f32 %v1707_v61, %v1699_v38  ;;  %v2198_v45 = vld [vmem:[%s13120_s11 + $0x18] sm:$0xff] }
 0x330   : > { %2450 = vmatmul.f32.vlgmr.msra.gmra.mxu1 %v7853_v36 }
 0x331   : > { %2347 = vmatpush.msrb.mxu2 %v1717_v0  ;;  %2550 = vmatpush.msrb.mxu1 %v1718_v8 }
 0x332   : > { %1931 = vrot.lane.b32.xlu2 %v7018_v16, %s12752_s17  ;;  %1927 = vrot.lane.b32.xlu1 %v7012_v11, %s12752_s17 }
 0x333   : > { %2201 = vperm.xlu0 %6690, %v2195_v57   ;;  %v1696_v57 = vsel %vm12745_vm9, %v1680_v53, %v8105_v9 }
 0x334   : > { %v1684_v48 = vpop.permute.xlu1 %1683 }
 0x335   : > { %v1692_v28 = vpop.permute.xlu0 %1691  ;;  %v8180_v38 = vpop.permute.xlu2 %1737 }
 0x336   : > { %v1702_v36 = vsel %vm12745_vm9, %v1692_v28, %v1684_v48  ;;  %v1698_v44 = vsel %vm12745_vm9, %v1684_v48, %v1692_v28  ;;  %v6566_v48 = vld [vmem:[%s12588_s3 + $0x22] ss:$8 sm:$0x3]  ;;  %v1700_v28 = vsel %vm12745_vm9, %v8105_v9, %v1680_v53 }
 0x337   : > { %v1715_v18 = vmul.f32 %v1707_v61, %v1698_v44  ;;  %v1716_v3 = vmul.f32 %v1708_v2, %v1702_v36  ;;  %v1712_v9 = vmul.f32 %v1708_v2, %v1700_v28  ;;  %v1660_v53 = vperm.slane %v6566_v48, 1 }
 0x338   : > { %2453 = vmatmul.f32.gmra.mxu1 %v7890_v33 }
 0x339   : > { %2348 = vmatpush.msrb.mxu2 %v1715_v18  ;;  %2551 = vmatpush.msrb.mxu1 %v1716_v3  ;;  %v1651_v18 = vsel %vm12746_vm10, %v7989_v55, %v1646_v12  ;;  %v1655_v3 = vsel %vm12746_vm10, %v1646_v12, %v7989_v55  ;;  %v1649_v12 = vsel %vm12746_vm10, %v8093_v49, %v8096_v29 }
 0x33a   : > { %2206 = vperm.xlu2 %6689, %v2196_v35   ;;  %1933 = vrot.lane.b32.xlu1 %v7032_v17, %s12752_s17  ;;  %v1711_v35 = vmul.f32 %v1707_v61, %v1696_v57  ;;  %v1648_v57 = vsel %vm12746_vm10, %v7951_v63, %v8126_v56  ;;  %s13251_s17 = smov 1  }
 0x33b   : > { %2216 = vperm.xlu0 %6690, %v2198_v45   ;;  %v1659_v45 = vperm.slane %v6566_v48, 0  ;;  %v6565_v48 = vld [vmem:[%s12588_s3 + $0x21] ss:$8 sm:$0x3] }
 0x33c   : > { %v1690_v41 = vpop.permute.xlu1 %1689 }
 0x33d   : > { %v8182_v8 = vpop.permute.xlu0 %1729  ;;  %v1701_v33 = vsel %vm12745_vm9, %v1690_v41, %v8066_v39  ;;  %v1697_v0 = vsel %vm12745_vm9, %v8066_v39, %v1690_v41  ;;  %v2197_v39 = vld [vmem:[%s13120_s11 + $0x10] sm:$0xff]  ;;  %v1650_v41 = vsel %vm12746_vm10, %v8064_v14, %v8022_v60  ;;  %v1669_v55 = vmul.f32 %v1659_v45, %v1651_v18  ;;  %v8242_v28 = vpop.permute.xlu2 %1775  ;;  %s13541_s11 = smov 32  }
 0x33e   : > { %v1713_v36 = vmul.f32 %v1707_v61, %v1697_v0  ;;  %v1714_v44 = vmul.f32 %v1708_v2, %v1701_v33  ;;  %v1654_v33 = vsel %vm12746_vm10, %v8022_v60, %v8064_v14  ;;  %v1653_v2 = vsel %vm12746_vm10, %v8096_v29, %v8093_v49 }
 0x33f   : > { %v1667_v0 = vmul.f32 %v1659_v45, %v1650_v41  ;;  %v1668_v14 = vmul.f32 %v1660_v53, %v1654_v33  ;;  %vm12748_vm9 = vcmp.lt.s32.totalorder %v7218_v46, 112  ;;  %v1652_v49 = vsel %vm12746_vm10, %v8126_v56, %v7951_v63 }
 0x340   : > { %2456 = vmatmul.f32.gmra.mxu1 %v7972_v40  ;;  %2349 = vmatpush.msrb.mxu2 %v1713_v36  ;;  %v1670_v40 = vmul.f32 %v1660_v53, %v1655_v3  ;;  %v1665_v29 = vmul.f32 %v1659_v45, %v1649_v12  ;;  %v1666_v36 = vmul.f32 %v1660_v53, %v1653_v2  ;;  %v1611_v56 = vperm.slane %v6565_v48, 0 }
 0x341   : > { %2552 = vmatpush.msrb.mxu1 %v1714_v44  ;;  %v1603_v44 = vsel %vm12748_vm9, %v8024_v62, %v8029_v51  ;;  %v1663_v63 = vmul.f32 %v1659_v45, %v1648_v57  ;;  %v1664_v18 = vmul.f32 %v1660_v53, %v1652_v49  ;;  %v1612_v3 = vperm.slane %v6565_v48, 1 }
 0x342   : > { %2211 = vperm.xlu1 %6691, %v2197_v39   ;;  %2350 = vmatpush.msrb.mxu2 %v1711_v35  ;;  %v1607_v39 = vsel %vm12748_vm9, %v8029_v51, %v8024_v62  ;;  %v1602_v35 = vsel %vm12748_vm9, %v7868_v23, %v8061_v43  ;;  %v1621_v51 = vmul.f32 %v1611_v56, %v1603_v44  ;;  %vm12747_vm10 = vcmp.lt.s32.totalorder %v7218_v46, 113 }
 0x343   : > { %2553 = vmatpush.msrb.mxu1 %v1712_v9  ;;  %v1606_v9 = vsel %vm12748_vm9, %v8061_v43, %v7868_v23  ;;  %v1601_v62 = vsel %vm12748_vm9, %v7959_v34, %v7914_v47  ;;  %v1605_v45 = vsel %vm12748_vm9, %v7914_v47, %v7959_v34  ;;  %v1619_v41 = vmul.f32 %v1611_v56, %v1602_v35 }
 0x344   : > { %2351 = vmatpush.msrb.mxu2 %v1669_v55  ;;  %v8226_v61 = vpop.permute.xlu1 %1727  ;;  %v1620_v23 = vmul.f32 %v1612_v3, %v1606_v9  ;;  %v1600_v43 = vsel %vm12748_vm9, %v7991_v30, %v7995_v37  ;;  %v6564_v55 = vld [vmem:[%s12588_s3 + $0x20] ss:$8 sm:$0x3]  ;;  %v1604_v47 = vsel %vm12748_vm9, %v7995_v37, %v7991_v30  ;;  %v1617_v34 = vmul.f32 %v1611_v56, %v1601_v62  ;;  %v6705_v9 = vld [vmem:[%s12588_s3 + $0x7] ss:$8 sm:$0x3] }
 0x345   : > { %v8228_v60 = vpop.permute.xlu0 %1735  ;;  %2554 = vmatpush.msrb.mxu1 %v1670_v40  ;;  %v1618_v40 = vmul.f32 %v1612_v3, %v1605_v45  ;;  %v1555_v12 = vsel %vm12747_vm10, %v7873_v26, %v7841_v50  ;;  %v1559_v2 = vsel %vm12747_vm10, %v7841_v50, %v7873_v26  ;;  %v8293_v57 = vpop.permute.xlu2 %1781  ;;  %v1616_v30 = vmul.f32 %v1612_v3, %v1604_v47  ;;  %v13124_v62 = vld [vmem:[#allocation59_spill] sm:$0xff] }
 0x346   : > { %2352 = vmatpush.msrb.mxu2 %v1667_v0  ;;  %v1615_v0 = vmul.f32 %v1611_v56, %v1600_v43  ;;  %v1564_v37 = vperm.slane %v6564_v55, 1  ;;  %v1554_v48 = vsel %vm12747_vm10, %v7916_v52, %v7924_v24  ;;  %v1558_v49 = vsel %vm12747_vm10, %v7924_v24, %v7916_v52  ;;  %v13125_v43 = vld [vmem:[#allocation62_spill] sm:$0xff] }
 0x347   : > { %2555 = vmatpush.msrb.mxu1 %v1668_v14  ;;  %v1563_v14 = vperm.slane %v6564_v55, 0  ;;  %v1552_v24 = vsel %vm12747_vm10, %v7845_v25, %v7829_v10  ;;  %v1556_v56 = vsel %vm12747_vm10, %v7829_v10, %v7845_v25  ;;  %v1971_v25 = vld [vmem:[%s13094_s10 + $0x20] sm:$0xff]  ;;  %v13123_v10 = vld [vmem:[#allocation75_spill] sm:$0xff]  ;;  %vm12750_vm9 = vcmp.lt.s32.totalorder %v7218_v46, 96 }
 0x348   : > { %2459 = vmatmul.f32.gmra.mxu1 %v8001_v1  ;;  %2353 = vmatpush.msrb.mxu2 %v1665_v29  ;;  %v1622_v1 = vmul.f32 %v1612_v3, %v1607_v39  ;;  %v1574_v50 = vmul.f32 %v1564_v37, %v1559_v2  ;;  %v1553_v29 = vsel %vm12747_vm10, %v7817_v42, %v7953_v7  ;;  %v13126_v55 = vld [vmem:[#allocation67_spill] sm:$0xff]  ;;  %v13127_v2 = vld [vmem:[#allocation70_spill] sm:$0xff] }
 0x349   : > { %2556 = vmatpush.msrb.mxu1 %v1666_v36  ;;  %v1573_v26 = vmul.f32 %v1563_v14, %v1555_v12  ;;  %v1557_v36 = vsel %vm12747_vm10, %v7953_v7, %v7817_v42  ;;  %v1571_v39 = vmul.f32 %v1563_v14, %v1554_v48  ;;  %v1572_v52 = vmul.f32 %v1564_v37, %v1558_v49  ;;  %v13121_v7 = vld [vmem:[#allocation73_spill] sm:$0xff]  ;;  %v13129_v48 = vld [vmem:[#allocation56_spill] sm:$0xff] }
 0x34a   : > { %2354 = vmatpush.msrb.mxu2 %v1663_v63  ;;  %v1569_v42 = vmul.f32 %v1563_v14, %v1553_v29  ;;  %v1570_v35 = vmul.f32 %v1564_v37, %v1557_v36  ;;  %v1162_v45 = vsel %vm1159_vm11, %v13124_v62, %v13123_v10  ;;  %v1161_v47 = vsel %vm1159_vm11, %v13126_v55, %v13125_v43  ;;  %v13130_v49 = vld [vmem:[#allocation61_spill] sm:$0xff] }
 0x34b   : > { %2557 = vmatpush.msrb.mxu1 %v1664_v18  ;;  %v13122_v18 = vld [vmem:[#allocation72_spill] sm:$0xff]  ;;  %v6707_v55 = vld [vmem:[%s12588_s3 + $0x5] ss:$8 sm:$0x3]  ;;  %vm12749_vm10 = vcmp.lt.s32.totalorder %v7218_v46, 95 }
 0x34c   : > { %2355 = vmatpush.msrb.mxu2 %v1621_v51  ;;  %v8269_v53 = vpop.permute.xlu1 %1733  ;;  %v1163_v3 = vsel %vm1159_vm11, %v13122_v18, %v13121_v7  ;;  %v1172_v51 = vperm.slane %v6705_v9, 1  ;;  %v13133_v7 = vld [vmem:[#allocation66_spill] sm:$0xff] }
 0x34d   : > { %v8271_v33 = vpop.permute.xlu0 %1741  ;;  %2558 = vmatpush.msrb.mxu1 %v1622_v1  ;;  %v1567_v1 = vmul.f32 %v1563_v14, %v1552_v24  ;;  %v13132_v24 = vld [vmem:[#allocation63_spill] sm:$0xff]  ;;  %v13134_v18 = vld [vmem:[#allocation50_spill] sm:$0xff] }
 0x34e   : > { %2356 = vmatpush.msrb.mxu2 %v1619_v41  ;;  %v1568_v41 = vmul.f32 %v1564_v37, %v1556_v56  ;;  %v1180_v12 = vmul.f32 %v1172_v51, %v1162_v45  ;;  %v1178_v37 = vmul.f32 %v1172_v51, %v1161_v47  ;;  %v1076_v47 = vperm.slane %v6707_v55, 1 }
 0x34f   : > { %2559 = vmatpush.msrb.mxu1 %v1620_v23  ;;  %v1182_v23 = vmul.f32 %v1172_v51, %v1163_v3  ;;  %v1113_v3 = vsel %vm1111_vm12, %v13134_v18, %v13133_v7  ;;  %v13145_v7 = vld [vmem:[#allocation49_spill] sm:$0xff]  ;;  %v13146_v18 = vld [vmem:[#allocation47_spill] sm:$0xff] }
 0x350   : > { %2357 = vmatpush.msrb.mxu2 %v1617_v34  ;;  %v8341_v34 = vpop.permute.xlu2 %1787 }
 0x351   : > { %2560 = vmatpush.msrb.mxu1 %v1618_v40 }
 0x352   : > { %2358 = vmatpush.msrb.mxu2 %v1615_v0  ;;  %v13128_v0 = vld [vmem:[#allocation69_spill] sm:$0xff] }
 0x353   : > { %2561 = vmatpush.msrb.mxu1 %v1616_v30  ;;  %v1160_v14 = vsel %vm1159_vm11, %v13128_v0, %v13127_v2  ;;  %v1985_v2 = vld [vmem:[%s13094_s10 + $0x90] sm:$0xff]  ;;  %v13139_v0 = vld [vmem:[#allocation46_spill] sm:$0xff] }
 0x354   : > { %2359 = vmatpush.msrb.mxu2 %v1573_v26  ;;  %v8311_v44 = vpop.permute.xlu1 %1739  ;;  %v1115_v26 = vsel %vm1111_vm12, %v13130_v49, %v13129_v48  ;;  %v1176_v36 = vmul.f32 %v1172_v51, %v1160_v14  ;;  %v13135_v51 = vld [vmem:[#allocation53_spill] sm:$0xff]  ;;  %v13140_v14 = vld [vmem:[#allocation52_spill] sm:$0xff]  ;;  %v13141_v49 = vld [vmem:[#allocation55_spill] sm:$0xff] }
 0x355   : > { %v8313_v63 = vpop.permute.xlu0 %1779  ;;  %2562 = vmatpush.msrb.mxu1 %v1574_v50  ;;  %v6706_v50 = vld [vmem:[%s12588_s3 + $0x6] ss:$8 sm:$0x3] }
 0x356   : > { %2360 = vmatpush.msrb.mxu2 %v1571_v39  ;;  %v1124_v29 = vperm.slane %v6706_v50, 1  ;;  %v1978_v39 = vld [vmem:[%s13094_s10 + $0x58] sm:$0xff] }
 0x357   : > { %2563 = vmatpush.msrb.mxu1 %v1572_v52  ;;  %v13131_v52 = vld [vmem:[#allocation64_spill] sm:$0xff] }
 0x358   : > { %2361 = vmatpush.msrb.mxu2 %v1569_v42  ;;  %v1114_v56 = vsel %vm1111_vm12, %v13132_v24, %v13131_v52  ;;  %v1134_v42 = vmul.f32 %v1124_v29, %v1115_v26  ;;  %v8375_v10 = vpop.permute.xlu2 %1825  ;;  %v1130_v45 = vmul.f32 %v1124_v29, %v1113_v3  ;;  %v13142_v26 = vld [vmem:[#allocation54_spill] sm:$0xff]  ;;  %v13144_v52 = vld [vmem:[#allocation39_spill] sm:$0xff]  ;;  %v1019_v3 = vsel %vm1015_vm14, %v13146_v18, %v13145_v7 }
 0x359   : > { %2564 = vmatpush.msrb.mxu1 %v1570_v35  ;;  %v1132_v9 = vmul.f32 %v1124_v29, %v1114_v56  ;;  %v1065_v50 = vsel %vm1063_vm13, %v13142_v26, %v13141_v49 }
 0x35a   : > { %2362 = vmatpush.msrb.mxu2 %v1567_v1  ;;  %v13136_v1 = vld [vmem:[#allocation58_spill] sm:$0xff] }
 0x35b   : > { %2565 = vmatpush.msrb.mxu1 %v1568_v41  ;;  %2363 = vmatmul.f32.vlgmr.msrb.gmra.mxu2 %v1971_v25  ;;  %v13137_v41 = vld [vmem:[#allocation60_spill] sm:$0xff] }
 0x35c   : > { %2463 = vmatpush.msra.mxu2 %v1182_v23  ;;  %v8343_v40 = vpop.permute.xlu1 %1777  ;;  %2566 = vmatmul.f32.vlgmr.msrb.gmra.mxu1 %v1971_v25  ;;  %v1112_v25 = vsel %vm1111_vm12, %v13136_v1, %v13135_v51  ;;  %v13138_v23 = vld [vmem:[#allocation42_spill] sm:$0xff] }
 0x35d   : > { %v8349_v30 = vpop.permute.xlu0 %1785  ;;  %v1067_v43 = vsel %vm1063_vm13, %v13138_v23, %v13137_v41  ;;  %v6708_v51 = vld [vmem:[%s12588_s3 + $0x4] ss:$8 sm:$0x3]  ;;  %v13147_v41 = vld [vmem:[#allocation51_spill] sm:$0xff] }
 0x35e   : > { %2464 = vmatpush.msra.mxu2 %v1180_v12  ;;  %v1128_v12 = vmul.f32 %v1124_v29, %v1112_v25  ;;  %v1086_v48 = vmul.f32 %v1076_v47, %v1067_v43  ;;  %v1028_v1 = vperm.slane %v6708_v51, 1  ;;  %v13148_v23 = vld [vmem:[#allocation37_spill] sm:$0xff] }
 0x35f   : > { %v1018_v43 = vsel %vm1015_vm14, %v13148_v23, %v13147_v41 }
 0x360   : > { %2465 = vmatpush.msra.mxu2 %v1178_v37  ;;  %v1066_v37 = vsel %vm1063_vm13, %v13140_v14, %v13139_v0  ;;  %v1038_v55 = vmul.f32 %v1028_v1, %v1019_v3  ;;  %v6571_v3 = vld [vmem:[%s12588_s3 + $0x27] ss:$8 sm:$0x3] }
 0x361   : > { %v1084_v29 = vmul.f32 %v1076_v47, %v1066_v37  ;;  %v13151_v37 = vld [vmem:[#allocation44_spill] sm:$0xff] }
 0x362   : > { %2466 = vmatpush.msra.mxu2 %v1176_v36 }
 0x363   : > { %2366 = vmatmul.f32.gmra.mxu2 %v1978_v39 }
 0x364   : > { %2467 = vmatpush.msra.mxu2 %v1134_v42  ;;  %v8369_v35 = vpop.permute.xlu1 %1783  ;;  %2569 = vmatmul.f32.gmra.mxu1 %v1978_v39  ;;  %v13143_v39 = vld [vmem:[#allocation57_spill] sm:$0xff]  ;;  %v1082_v42 = vmul.f32 %v1076_v47, %v1065_v50 }
 0x365   : > { %v8377_v62 = vpop.permute.xlu0 %1823  ;;  %v1064_v24 = vsel %vm1063_vm13, %v13144_v52, %v13143_v39 }
 0x366   : > { %2468 = vmatpush.msra.mxu2 %v1132_v9  ;;  %v8409_v9 = vpop.permute.xlu2 %1831  ;;  %v1080_v25 = vmul.f32 %v1076_v47, %v1064_v24  ;;  %v1036_v47 = vmul.f32 %v1028_v1, %v1018_v43 }
 0x368   : > { %2469 = vmatpush.msra.mxu2 %v1130_v45  ;;  %v1992_v45 = vld [vmem:[%s13094_s10 + $0xc8] sm:$0xff] }
 0x36a   : > { %2470 = vmatpush.msra.mxu2 %v1128_v12  ;;  %v13149_v12 = vld [vmem:[#allocation38_spill] sm:$0xff] }
 0x36b   : > { %2369 = vmatmul.f32.gmra.mxu2 %v1985_v2 }
 0x36c   : > { %2471 = vmatpush.msra.mxu2 %v1086_v48  ;;  %v8397_v36 = vpop.permute.xlu1 %1789  ;;  %2572 = vmatmul.f32.gmra.mxu1 %v1985_v2  ;;  %v13150_v2 = vld [vmem:[#allocation40_spill] sm:$0xff]  ;;  %v13152_v48 = vld [vmem:[#allocation43_spill] sm:$0xff] }
 0x36d   : > { %v8403_v56 = vpop.permute.xlu0 %1829  ;;  %v1017_v0 = vsel %vm1015_vm14, %v13150_v2, %v13149_v12  ;;  %v1016_v49 = vsel %vm1015_vm14, %v13152_v48, %v13151_v37 }
 0x36e   : > { %2472 = vmatpush.msra.mxu2 %v1084_v29  ;;  %v1034_v50 = vmul.f32 %v1028_v1, %v1017_v0  ;;  %v1032_v29 = vmul.f32 %v1028_v1, %v1016_v49  ;;  %v1838_v39 = vpop.permute.xlu2 %1837 }
 0x370   : > { %2473 = vmatpush.msra.mxu2 %v1082_v42 }
 0x372   : > { %2474 = vmatpush.msra.mxu2 %v1080_v25 }
 0x373   : > { %2372 = vmatmul.f32.gmra.mxu2 %v1992_v45 }
 0x374   : > { %2475 = vmatpush.msra.mxu2 %v1038_v55  ;;  %v1828_v14 = vpop.permute.xlu1 %1827  ;;  %2575 = vmatmul.f32.gmra.mxu1 %v1992_v45  ;;  %v1900_v45 = vperm.slane %v6571_v3, 1 }
 0x375   : > { %v1836_v26 = vpop.permute.xlu0 %1835 }
 0x376   : > { %2476 = vmatpush.msra.mxu2 %v1036_v47  ;;  %v1876_v42 = vpop.permute.xlu2 %1875 }
 0x378   : > { %2477 = vmatpush.msra.mxu2 %v1034_v50  ;;  %v6570_v50 = vld [vmem:[%s12588_s3 + $0x26] ss:$8 sm:$0x3] }
 0x37a   : > { %2478 = vmatpush.msra.mxu2 %v1032_v29 }
 0x37b   : > { %2479 = vmatmul.f32.vlgmr.msra.gmra.mxu2 %v7866_v21  ;;  %v1899_v21 = vperm.slane %v6571_v3, 0  ;;  %v1843_v3 = vsel %vm12750_vm9, %v8403_v56, %v1838_v39 }
 0x37c   : > { %v1834_v52 = vpop.permute.xlu1 %1833 }
 0x37d   : > { %v1874_v24 = vpop.permute.xlu0 %1873 }
 0x37e   : > { %v1882_v25 = vpop.permute.xlu2 %1881 }
 0x37f   : > { %v1893_v55 = vsel %vm12749_vm10, %v1882_v25, %v1874_v24  ;;  %v1889_v0 = vsel %vm12749_vm10, %v1874_v24, %v1882_v25  ;;  %v1852_v25 = vperm.slane %v6570_v50, 1 }
 0x380   : > { %v1905_v29 = vmul.f32 %v1899_v21, %v1889_v0  ;;  %v1906_v24 = vmul.f32 %v1900_v45, %v1893_v55 }
 0x383   : > { %2482 = vmatmul.f32.gmra.mxu2 %v7909_v58 }
 0x384   : > { %v1872_v7 = vpop.permute.xlu1 %1871 }
 0x385   : > { %v1880_v18 = vpop.permute.xlu0 %1879 }
 0x386   : > { %v8449_v48 = vpop.permute.xlu2 %1919  ;;  %v1888_v49 = vsel %vm12749_vm10, %v1872_v7, %v1880_v18 }
 0x38b   : > { %2485 = vmatmul.f32.gmra.mxu2 %v7987_v59 }
 0x38c   : > { %v1878_v51 = vpop.permute.xlu1 %1877 }
 0x38d   : > { %v1886_v1 = vpop.permute.xlu0 %1885 }
 0x38e   : > { %v1895_v41 = vsel %vm12749_vm10, %v1886_v1, %v1878_v51  ;;  %v1891_v58 = vsel %vm12749_vm10, %v1878_v51, %v1886_v1  ;;  %v1851_v51 = vperm.slane %v6570_v50, 0  ;;  %v1846_v1 = vsel %vm12750_vm9, %v1836_v26, %v1828_v14 }
 0x38f   : > { %v1910_v23 = vmul.f32 %v1900_v45, %v1895_v41  ;;  %v1909_v43 = vmul.f32 %v1899_v21, %v1891_v58  ;;  %v1842_v41 = vsel %vm12750_vm9, %v1828_v14, %v1836_v26  ;;  %v1844_v14 = vsel %vm12750_vm9, %v8409_v9, %v8377_v62 }
 0x390   : > { %v1840_v26 = vsel %vm12750_vm9, %v8377_v62, %v8409_v9  ;;  %v1856_v0 = vmul.f32 %v1852_v25, %v1844_v14 }
 0x391   : > { %2376 = vmatpush.msrb.mxu3 %v1909_v43  ;;  %2579 = vmatpush.msrb.mxu2 %v1910_v23  ;;  %v1861_v23 = vmul.f32 %v1851_v51, %v1843_v3 }
 0x393   : > { %2488 = vmatmul.f32.gmra.mxu2 %v8013_v32  ;;  %v1892_v32 = vsel %vm12749_vm10, %v1880_v18, %v1872_v7  ;;  %v1903_v7 = vmul.f32 %v1899_v21, %v1888_v49 }
 0x394   : > { %v1884_v59 = vpop.permute.xlu1 %1883  ;;  %v1904_v18 = vmul.f32 %v1900_v45, %v1892_v32 }
 0x395   : > { %v1894_v12 = vsel %vm12749_vm10, %v1884_v59, %v1876_v42  ;;  %v1890_v2 = vsel %vm12749_vm10, %v1876_v42, %v1884_v59  ;;  %v1847_v42 = vsel %vm12750_vm9, %v1838_v39, %v8403_v56  ;;  %v1845_v56 = vsel %vm12750_vm9, %v1834_v52, %v8375_v10  ;;  %v6569_v59 = vld [vmem:[%s12588_s3 + $0x25] ss:$8 sm:$0x3]  ;;  %v8499_v9 = vpop.permute.xlu0 %1923 }
 0x396   : > { %v1907_v47 = vmul.f32 %v1899_v21, %v1890_v2  ;;  %v1908_v37 = vmul.f32 %v1900_v45, %v1894_v12  ;;  %v1862_v43 = vmul.f32 %v1852_v25, %v1847_v42  ;;  %v1841_v39 = vsel %vm12750_vm9, %v8375_v10, %v1834_v52  ;;  %v8493_v12 = vpop.permute.xlu2 %1925 }
 0x397   : > { %v1859_v45 = vmul.f32 %v1851_v51, %v1842_v41  ;;  %v1860_v21 = vmul.f32 %v1852_v25, %v1846_v1  ;;  %vm12751_vm10 = vcmp.lt.s32.totalorder %v7218_v46, 97  ;;  %v1857_v10 = vmul.f32 %v1851_v51, %v1841_v39 }
 0x398   : > { %2377 = vmatpush.msrb.mxu3 %v1907_v47  ;;  %2580 = vmatpush.msrb.mxu2 %v1908_v37  ;;  %v1858_v52 = vmul.f32 %v1852_v25, %v1845_v56  ;;  %v1799_v55 = vsel %vm12751_vm10, %v8397_v36, %v8293_v57  ;;  %v1795_v62 = vsel %vm12751_vm10, %v8293_v57, %v8397_v36  ;;  %v1803_v47 = vperm.slane %v6569_v59, 0 }
 0x399   : > { %v1855_v2 = vmul.f32 %v1851_v51, %v1840_v26  ;;  %v1804_v37 = vperm.slane %v6569_v59, 1  ;;  %v1798_v32 = vsel %vm12751_vm10, %v8341_v34, %v8313_v63  ;;  %v1794_v49 = vsel %vm12751_vm10, %v8313_v63, %v8341_v34  ;;  %v6568_v34 = vld [vmem:[%s12588_s3 + $0x24] ss:$8 sm:$0x3] }
 0x39a   : > { %2378 = vmatpush.msrb.mxu3 %v1905_v29  ;;  %2581 = vmatpush.msrb.mxu2 %v1906_v24  ;;  %v1813_v36 = vmul.f32 %v1803_v47, %v1795_v62  ;;  %v1797_v29 = vsel %vm12751_vm10, %v8349_v30, %v8343_v40  ;;  %v1793_v24 = vsel %vm12751_vm10, %v8343_v40, %v8349_v30  ;;  %vm12792_vm9 = vcmp.lt.s32.totalorder %v7218_v46, 98 }
 0x39b   : > { %v1814_v50 = vmul.f32 %v1804_v37, %v1799_v55  ;;  %v1811_v42 = vmul.f32 %v1803_v47, %v1794_v49  ;;  %v1812_v63 = vmul.f32 %v1804_v37, %v1798_v32  ;;  %v1796_v3 = vsel %vm12751_vm10, %v8369_v35, %v8242_v28 }
 0x39c   : > { %2379 = vmatpush.msrb.mxu3 %v1903_v7  ;;  %2582 = vmatpush.msrb.mxu2 %v1904_v18  ;;  %v8469_v58 = vpop.permute.xlu1 %1921  ;;  %v1792_v7 = vsel %vm12751_vm10, %v8242_v28, %v8369_v35  ;;  %v1809_v40 = vmul.f32 %v1803_v47, %v1793_v24  ;;  %v1810_v30 = vmul.f32 %v1804_v37, %v1797_v29  ;;  %v8534_v18 = vld [vmem:[%s12588_s3 + $0x30] ss:$8 sm:$0x3]  ;;  %v1755_v25 = vperm.slane %v6568_v34, 0  ;;  %v1972_v24 = vld [vmem:[%s13094_s10 + $0x28] sm:$0xff] }
 0x39d   : > { %v1747_v51 = vsel %vm12792_vm9, %v8269_v53, %v8271_v33  ;;  %v1751_v28 = vsel %vm12792_vm9, %v8271_v33, %v8269_v53  ;;  %vm12789_vm10 = vcmp.lt.s32.totalorder %v7218_v46, 94  ;;  %v1807_v35 = vmul.f32 %v1803_v47, %v1792_v7  ;;  %v8555_v53 = vpop.permute.xlu0 %1929  ;;  %v13154_v47 = vld [vmem:[#allocation92_spill] sm:$0xff] }
 0x39e   : > { %2380 = vmatpush.msrb.mxu3 %v1861_v23  ;;  %2583 = vmatpush.msrb.mxu2 %v1862_v43  ;;  %v1808_v1 = vmul.f32 %v1804_v37, %v1796_v3  ;;  %v8545_v41 = vpop.permute.xlu2 %1931  ;;  %v1756_v23 = vperm.slane %v6568_v34, 1  ;;  %v1746_v43 = vsel %vm12792_vm9, %v8165_v54, %v8311_v44  ;;  %v1750_v56 = vsel %vm12792_vm9, %v8311_v44, %v8165_v54  ;;  %v6710_v3 = vld [vmem:[%s12588_s3 + $0x17] ss:$8 sm:$0x3] }
 0x39f   : > { %v1947_v33 = vperm.slane %v8534_v18, 0  ;;  %v1745_v44 = vsel %vm12792_vm9, %v8182_v8, %v8180_v38  ;;  %v1749_v26 = vsel %vm12792_vm9, %v8180_v38, %v8182_v8  ;;  %v1744_v62 = vsel %vm12792_vm9, %v8226_v61, %v8228_v60 }
 0x3a0   : > { %2381 = vmatpush.msrb.mxu3 %v1859_v45  ;;  %2584 = vmatpush.msrb.mxu2 %v1860_v21  ;;  %v1765_v45 = vmul.f32 %v1755_v25, %v1747_v51  ;;  %v1938_v21 = vsel %vm12789_vm10, %v8499_v9, %v8545_v41  ;;  %v1766_v54 = vmul.f32 %v1756_v23, %v1751_v28  ;;  %v1516_v7 = vperm.slane %v6710_v3, 1  ;;  %v13157_v51 = vld [vmem:[#allocation103_spill] sm:$0xff]  ;;  %v13172_v3 = vld [vmem:[#allocation114_spill] sm:$0xff] }
 0x3a1   : > { %v1764_v55 = vmul.f32 %v1756_v23, %v1750_v56  ;;  %v1748_v38 = vsel %vm12792_vm9, %v8228_v60, %v8226_v61  ;;  %v1761_v8 = vmul.f32 %v1755_v25, %v1745_v44  ;;  %v1762_v49 = vmul.f32 %v1756_v23, %v1749_v26  ;;  %v6709_v61 = vld [vmem:[%s12588_s3 + $0x13] ss:$8 sm:$0x3]  ;;  %v13161_v56 = vld [vmem:[#allocation89_spill] sm:$0xff] }
 0x3a2   : > { %2382 = vmatpush.msrb.mxu3 %v1857_v10  ;;  %2585 = vmatpush.msrb.mxu2 %v1858_v52  ;;  %v1763_v10 = vmul.f32 %v1755_v25, %v1746_v43  ;;  %v1937_v52 = vsel %vm12789_vm10, %v8469_v58, %v8555_v53  ;;  %v1364_v60 = vperm.slane %v6709_v61, 1  ;;  %v13160_v43 = vld [vmem:[#allocation105_spill] sm:$0xff]  ;;  %v13165_v26 = vld [vmem:[#allocation96_spill] sm:$0xff] }
 0x3a3   : > { %v1953_v29 = vmul.f32 %v1947_v33, %v1937_v52  ;;  %v6711_v52 = vld [vmem:[%s12588_s3 + $0x12] ss:$8 sm:$0x3] }
 0x3a4   : > { %2383 = vmatpush.msrb.mxu3 %v1855_v2  ;;  %2586 = vmatpush.msrb.mxu2 %v1856_v0  ;;  %v8509_v57 = vpop.permute.xlu1 %1927  ;;  %v1955_v2 = vmul.f32 %v1947_v33, %v1938_v21  ;;  %v13153_v0 = vld [vmem:[#allocation107_spill] sm:$0xff]  ;;  %v13162_v21 = vld [vmem:[#allocation112_spill] sm:$0xff] }
 0x3a5   : > { %v1355_v37 = vsel %vm1351_vm15, %v13154_v47, %v13153_v0  ;;  %v1936_v32 = vsel %vm12789_vm10, %v8449_v48, %v8509_v57  ;;  %v1979_v0 = vld [vmem:[%s13094_s10 + $0x60] sm:$0xff]  ;;  %v13168_v47 = vld [vmem:[#allocation99_spill] sm:$0xff] }
 0x3a6   : > { %2384 = vmatpush.msrb.mxu3 %v1813_v36  ;;  %2587 = vmatpush.msrb.mxu2 %v1814_v50  ;;  %v1511_v36 = vsel %vm1503_vm4, %v7870_v20, %v7777_v19  ;;  %v1759_v50 = vmul.f32 %v1755_v25, %v1744_v62  ;;  %v1760_v20 = vmul.f32 %v1756_v23, %v1748_v38  ;;  %v13158_v25 = vld [vmem:[#allocation102_spill] sm:$0xff]  ;;  %v13159_v23 = vld [vmem:[#allocation119_spill] sm:$0xff]  ;;  %v13166_v62 = vld [vmem:[#allocation117_spill] sm:$0xff] }
 0x3a7   : > { %v1374_v19 = vmul.f32 %v1364_v60, %v1355_v37  ;;  %v1353_v28 = vsel %vm1351_vm15, %v13158_v25, %v13157_v51  ;;  %v13167_v38 = vld [vmem:[#allocation118_spill] sm:$0xff]  ;;  %v13169_v37 = vld [vmem:[#allocation83_spill] sm:$0xff]  ;;  %v13177_v25 = vld [vmem:[#allocation116_spill] sm:$0xff] }
 0x3a8   : > { %2385 = vmatpush.msrb.mxu3 %v1811_v42  ;;  %2588 = vmatpush.msrb.mxu2 %v1812_v63  ;;  %v13155_v42 = vld [vmem:[#allocation95_spill] sm:$0xff]  ;;  %v13156_v63 = vld [vmem:[#allocation100_spill] sm:$0xff]  ;;  %v1370_v44 = vmul.f32 %v1364_v60, %v1353_v28 }
 0x3a9   : > { %v1354_v34 = vsel %vm1351_vm15, %v13156_v63, %v13155_v42  ;;  %v13176_v51 = vld [vmem:[#allocation115_spill] sm:$0xff] }
 0x3aa   : > { %2386 = vmatpush.msrb.mxu3 %v1809_v40  ;;  %2589 = vmatpush.msrb.mxu2 %v1810_v30  ;;  %v1510_v40 = vsel %vm1503_vm4, %v7805_v27, %v7821_v5  ;;  %v1951_v30 = vmul.f32 %v1947_v33, %v1936_v32  ;;  %v1509_v27 = vsel %vm1503_vm4, %v13159_v23, %v7831_v13  ;;  %v13164_v13 = vld [vmem:[#allocation97_spill] sm:$0xff]  ;;  %v13178_v23 = vld [vmem:[#allocation80_spill] sm:$0xff] }
 0x3ab   : > { %v1372_v5 = vmul.f32 %v1364_v60, %v1354_v34  ;;  %v1306_v32 = vsel %vm1303_vm1, %v13169_v37, %v13168_v47  ;;  %v8672_v34 = vld [vmem:[%s13094_s10 + $0x68] sm:$0xff]  ;;  %v1460_v28 = vsel %vm1455_vm5, %v13177_v25, %v13176_v51  ;;  %v6715_v51 = vld [vmem:[%s12588_s3 + $0x10] ss:$8 sm:$0x3] }
 0x3ac   : > { %2387 = vmatpush.msrb.mxu3 %v1807_v35  ;;  %2590 = vmatpush.msrb.mxu2 %v1808_v1  ;;  %v8558_v39 = vpop.permute.xlu1 %1933  ;;  %v1526_v35 = vmul.f32 %v1516_v7, %v1511_v36  ;;  %v8624_v1 = vld [vmem:[%s13094_s10 + $0x30] sm:$0xff]  ;;  %v13187_v47 = vld [vmem:[#allocation74_spill] sm:$0xff]  ;;  %v1220_v25 = vperm.slane %v6715_v51, 1 }
 0x3ad   : > { %v1939_v14 = vsel %vm12789_vm10, %v8493_v12, %v8558_v39 }
 0x3ae   : > { %v1957_v59 = vmul.f32 %v1947_v33, %v1939_v14  ;;  %2388 = vmatpush.msrb.mxu3 %v1765_v45  ;;  %2591 = vmatpush.msrb.mxu2 %v1766_v54  ;;  %v1352_v33 = vsel %vm1351_vm15, %v13161_v56, %v13160_v43  ;;  %v1524_v45 = vmul.f32 %v1516_v7, %v1510_v40  ;;  %v13163_v14 = vld [vmem:[#allocation120_spill] sm:$0xff] }
 0x3af   : > { %v1508_v54 = vsel %vm1503_vm4, %v13163_v14, %v13162_v21  ;;  %v13180_v56 = vld [vmem:[#allocation108_spill] sm:$0xff] }
 0x3b0   : > { %2389 = vmatpush.msrb.mxu3 %v1763_v10  ;;  %2417 = vmatpush.msra.mxu0 %v1957_v59  ;;  %v1307_v59 = vsel %vm1303_vm1, %v13165_v26, %v13164_v13  ;;  %v1522_v10 = vmul.f32 %v1516_v7, %v1509_v27  ;;  %v1520_v36 = vmul.f32 %v1516_v7, %v1508_v54  ;;  %v13173_v7 = vld [vmem:[#allocation109_spill] sm:$0xff]  ;;  %v6713_v21 = vld [vmem:[%s12588_s3 + $0x11] ss:$8 sm:$0x3] }
 0x3b1   : > { %2592 = vmatpush.msrb.mxu2 %v1764_v55  ;;  %v1316_v55 = vperm.slane %v6711_v52, 1  ;;  %v13179_v27 = vld [vmem:[#allocation85_spill] sm:$0xff]  ;;  %v1268_v14 = vperm.slane %v6713_v21, 1  ;;  %v13182_v13 = vld [vmem:[#allocation88_spill] sm:$0xff]  ;;  %v13183_v26 = vld [vmem:[#allocation87_spill] sm:$0xff] }
 0x3b2   : > { %2390 = vmatpush.msrb.mxu3 %v1761_v8  ;;  %2418 = vmatpush.msra.mxu0 %v1955_v2  ;;  %v1463_v8 = vsel %vm1455_vm5, %v13167_v38, %v13166_v62  ;;  %v1368_v2 = vmul.f32 %v1364_v60, %v1352_v33  ;;  %v1462_v60 = vsel %vm1455_vm5, %v7819_v31, %v7681_v22  ;;  %v13181_v33 = vld [vmem:[#allocation104_spill] sm:$0xff]  ;;  %v13184_v38 = vld [vmem:[#allocation110_spill] sm:$0xff] }
 0x3b3   : > { %2593 = vmatpush.msrb.mxu2 %v1762_v49  ;;  %v6712_v49 = vld [vmem:[%s12588_s3 + $0x16] ss:$8 sm:$0x3]  ;;  %v1461_v22 = vsel %vm1455_vm5, %v13173_v7, %v13172_v3  ;;  %v1324_v31 = vmul.f32 %v1316_v55, %v1306_v32  ;;  %v13192_v3 = vld [vmem:[#allocation106_spill] sm:$0xff]  ;;  %v13193_v7 = vld [vmem:[#allocation101_spill] sm:$0xff] }
 0x3b4   : > { %2391 = vmatpush.msrb.mxu3 %v1759_v50  ;;  %2419 = vmatpush.msra.mxu0 %v1953_v29  ;;  %v1468_v61 = vperm.slane %v6712_v49, 1  ;;  %v1326_v50 = vmul.f32 %v1316_v55, %v1307_v59  ;;  %v13170_v29 = vld [vmem:[#allocation86_spill] sm:$0xff]  ;;  %v1258_v59 = vsel %vm1255_vm2, %v13183_v26, %v13182_v13  ;;  %v8720_v49 = vld [vmem:[%s13094_s10 + $0xa0] sm:$0xff] }
 0x3b5   : > { %2594 = vmatpush.msrb.mxu2 %v1760_v20  ;;  %2392 = vmatmul.f32.vlgmr.msrb.gmra.mxu3 %v1972_v24  ;;  %v13174_v20 = vld [vmem:[#allocation94_spill] sm:$0xff]  ;;  %v13201_v13 = vld [vmem:[#allocation65_spill] sm:$0xff] }
 0x3b6   : > { %2492 = vmatpush.msra.mxu3 %v1374_v19  ;;  %2420 = vmatpush.msra.mxu0 %v1951_v30  ;;  %v1478_v63 = vmul.f32 %v1468_v61, %v1463_v8  ;;  %v13175_v19 = vld [vmem:[#allocation93_spill] sm:$0xff]  ;;  %v1476_v30 = vmul.f32 %v1468_v61, %v1462_v60  ;;  %v1474_v43 = vmul.f32 %v1468_v61, %v1461_v22  ;;  %v13185_v8 = vld [vmem:[#allocation111_spill] sm:$0xff] }
 0x3b7   : > { %2595 = vmatmul.f32.vlgmr.msrb.gmra.mxu2 %v1972_v24  ;;  %6573 = vmatmul.msk.f32.vlgmr.msra.gmra.mxu0 %vm12786_vm0, %v8624_v1  ;;  %v13171_v24 = vld [vmem:[#allocation91_spill] sm:$0xff]  ;;  %v1304_v40 = vsel %vm1303_vm1, %v13175_v19, %v13174_v20  ;;  %v1472_v62 = vmul.f32 %v1468_v61, %v1460_v28  ;;  %v13188_v61 = vld [vmem:[#allocation98_spill] sm:$0xff]  ;;  %v1412_v22 = vsel %vm1407_vm6, %v13193_v7, %v13192_v3  ;;  %v13194_v20 = vld [vmem:[#allocation84_spill] sm:$0xff]  ;;  %v8814_v3 = vpop.permute.xlu0 %2201 }
 0x3b8   : > { %2521 = vmatpush.msrb.mxu0 %v1526_v35  ;;  %2493 = vmatpush.msra.mxu3 %v1372_v5  ;;  %v1305_v42 = vsel %vm1303_vm1, %v13171_v24, %v13170_v29  ;;  %v1259_v5 = vsel %vm1255_vm2, %v13179_v27, %v13178_v23  ;;  %v1320_v54 = vmul.f32 %v1316_v55, %v1304_v40  ;;  %v13190_v29 = vld [vmem:[#allocation77_spill] sm:$0xff]  ;;  %v13191_v24 = vld [vmem:[#allocation82_spill] sm:$0xff]  ;;  %v13195_v19 = vld [vmem:[#allocation68_spill] sm:$0xff] }
 0x3b9   : > { %v1322_v35 = vmul.f32 %v1316_v55, %v1305_v42  ;;  %v1414_v55 = vsel %vm1407_vm6, %v13185_v8, %v13184_v38  ;;  %v1256_v42 = vsel %vm1255_vm2, %v13191_v24, %v13190_v29  ;;  %v1211_v40 = vsel %vm12895_vm3, %v13195_v19, %v13194_v20  ;;  %v13196_v23 = vld [vmem:[#allocation71_spill] sm:$0xff]  ;;  %v13197_v27 = vld [vmem:[#allocation76_spill] sm:$0xff]  ;;  %v8817_v20 = vpop.permute.xlu2 %2206 }
 0x3ba   : > { %2522 = vmatpush.msrb.mxu0 %v1524_v45  ;;  %2494 = vmatpush.msra.mxu3 %v1370_v44  ;;  %v1415_v45 = vsel %vm1407_vm6, %v13181_v33, %v13180_v56  ;;  %v1986_v44 = vld [vmem:[%s13094_s10 + $0x98] sm:$0xff]  ;;  %v1272_v28 = vmul.f32 %v1268_v14, %v1256_v42  ;;  %v1230_v56 = vmul.f32 %v1220_v25, %v1211_v40  ;;  %v13198_v33 = vld [vmem:[#allocation79_spill] sm:$0xff]  ;;  %v2335_v42 = vpop.f32.mrf.mxu1 }
 0x3bc   : > { %2523 = vmatpush.msrb.mxu0 %v1522_v10  ;;  %2495 = vmatpush.msra.mxu3 %v1368_v2  ;;  %v6714_v10 = vld [vmem:[%s12588_s3 + $0x15] ss:$8 sm:$0x3]  ;;  %v1278_v2 = vmul.f32 %v1268_v14, %v1259_v5  ;;  %v1210_v5 = vsel %vm12895_vm3, %v13197_v27, %v13196_v23 }
 0x3bd   : > { %2395 = vmatmul.f32.gmra.mxu3 %v1979_v0  ;;  %v1420_v52 = vperm.slane %v6714_v10, 1 }
 0x3be   : > { %2524 = vmatpush.msrb.mxu0 %v1520_v36  ;;  %2496 = vmatpush.msra.mxu3 %v1326_v50  ;;  %v13189_v36 = vld [vmem:[#allocation113_spill] sm:$0xff]  ;;  %v1276_v50 = vmul.f32 %v1268_v14, %v1258_v59  ;;  %v1943_v59 = vsel %vm12789_vm10, %v8558_v39, %v8493_v12  ;;  %v1941_v12 = vsel %vm12789_vm10, %v8555_v53, %v8469_v58  ;;  %v6717_v58 = vld [vmem:[%s13094_s10 + $0x18] sm:$0xff] }
 0x3bf   : > { %2598 = vmatmul.f32.gmra.mxu2 %v1979_v0  ;;  %6574 = vmatmul.msk.f32.gmra.mxu0 %vm12786_vm0, %v8672_v34  ;;  %v13186_v0 = vld [vmem:[#allocation90_spill] sm:$0xff]  ;;  %v1430_v32 = vmul.f32 %v1420_v52, %v1415_v45  ;;  %v1413_v60 = vsel %vm1407_vm6, %v13189_v36, %v13188_v61  ;;  %v2277_v61 = vpop.f32.mrf.mxu3  ;;  %v2306_v36 = vpop.f32.mrf.mxu0 }
 0x3c0   : > { %2525 = vmatpush.msrb.mxu0 %v1478_v63  ;;  %2497 = vmatpush.msra.mxu3 %v1324_v31  ;;  %v1257_v37 = vsel %vm1255_vm2, %v13187_v47, %v13186_v0  ;;  %v1428_v63 = vmul.f32 %v1420_v52, %v1414_v55  ;;  %v13199_v45 = vld [vmem:[#allocation78_spill] sm:$0xff]  ;;  %v6722_v0 = vld [vmem:[%s13094_s10 + $0xb8] sm:$0xff]  ;;  %v6723_v47 = vld [vmem:[%s13094_s10 + $0xc0] sm:$0xff] }
 0x3c1   : > { %v1274_v31 = vmul.f32 %v1268_v14, %v1257_v37  ;;  %v1209_v21 = vsel %vm12895_vm3, %v13199_v45, %v13198_v33  ;;  %v1994_v14 = vld [vmem:[%s13094_s10 + $0xd8] sm:$0xff]  ;;  %v6718_v55 = vld [vmem:[%s13094_s10 + $0x48] sm:$0xff]  ;;  %v2248_v37 = vpop.f32.mrf.mxu2 }
 0x3c2   : > { %2526 = vmatpush.msrb.mxu0 %v1476_v30  ;;  %2498 = vmatpush.msra.mxu3 %v1322_v35  ;;  %v1426_v30 = vmul.f32 %v1420_v52, %v1413_v60  ;;  %v1993_v35 = vld [vmem:[%s13094_s10 + $0xd0] sm:$0xff]  ;;  %v1226_v10 = vmul.f32 %v1220_v25, %v1209_v21 }
 0x3c4   : > { %2527 = vmatpush.msrb.mxu0 %v1474_v43  ;;  %2499 = vmatpush.msra.mxu3 %v1320_v54  ;;  %v1424_v43 = vmul.f32 %v1420_v52, %v1412_v22  ;;  %v1228_v54 = vmul.f32 %v1220_v25, %v1210_v5  ;;  %v1948_v52 = vperm.slane %v8534_v18, 1  ;;  %v2338_v22 = vpop.f32.mrf.mxu1 }
 0x3c5   : > { %2398 = vmatmul.f32.gmra.mxu3 %v1986_v44 }
 0x3c6   : > { %2528 = vmatpush.msrb.mxu0 %v1472_v62  ;;  %2500 = vmatpush.msra.mxu3 %v1278_v2  ;;  %v1942_v62 = vsel %vm12789_vm10, %v8545_v41, %v8499_v9  ;;  %v1958_v8 = vmul.f32 %v1948_v52, %v1943_v59  ;;  %v1940_v9 = vsel %vm12789_vm10, %v8509_v57, %v8449_v48  ;;  %v6716_v41 = vld [vmem:[%s13094_s10 + $0x10] sm:$0xff]  ;;  %v6720_v57 = vld [vmem:[%s13094_s10 + $0x80] sm:$0xff]  ;;  %v6721_v2 = vld [vmem:[%s13094_s10 + $0x88] sm:$0xff] }
 0x3c7   : > { %2601 = vmatmul.f32.gmra.mxu2 %v1986_v44  ;;  %6575 = vmatmul.msk.f32.gmra.mxu0 %vm12786_vm0, %v8720_v49  ;;  %v13200_v44 = vld [vmem:[#allocation81_spill] sm:$0xff]  ;;  %v1956_v18 = vmul.f32 %v1948_v52, %v1942_v62  ;;  %v1954_v39 = vmul.f32 %v1948_v52, %v1941_v12  ;;  %v1952_v53 = vmul.f32 %v1948_v52, %v1940_v9  ;;  %v6719_v48 = vld [vmem:[%s13094_s10 + $0x50] sm:$0xff]  ;;  %v2309_v29 = vpop.f32.mrf.mxu0 }
 0x3c8   : > { %2529 = vmatpush.msrb.mxu0 %v1430_v32  ;;  %2501 = vmatpush.msra.mxu3 %v1276_v50  ;;  %v1208_v26 = vsel %vm12895_vm3, %v13201_v13, %v13200_v44  ;;  %v2280_v50 = vpop.f32.mrf.mxu3  ;;  %v8823_v13 = vpop.permute.xlu1 %2211 }
 0x3c9   : > { %v1224_v38 = vmul.f32 %v1220_v25, %v1208_v26  ;;  %v2251_v32 = vpop.f32.mrf.mxu2 }
 0x3ca   : > { %2530 = vmatpush.msrb.mxu0 %v1428_v63  ;;  %2502 = vmatpush.msra.mxu3 %v1274_v31  ;;  %v2252_v51 = vadd.f32 %v2251_v32, %v8817_v20 }
 0x3cc   : > { %2531 = vmatpush.msrb.mxu0 %v1426_v30  ;;  %2503 = vmatpush.msra.mxu3 %v1272_v28  ;;  %v2281_v28 = vadd.f32 %v2280_v50, %v2252_v51 }
 0x3cd   : > { %2401 = vmatmul.f32.gmra.mxu3 %v1993_v35 }
 0x3ce   : > { %2532 = vmatpush.msrb.mxu0 %v1424_v43  ;;  %2504 = vmatpush.msra.mxu3 %v1230_v56  ;;  %v2310_v56 = vadd.f32 %v2309_v29, %v2281_v28 }
 0x3cf   : > { %2604 = vmatmul.f32.gmra.mxu2 %v1993_v35  ;;  %6576 = vmatmul.msk.f32.gmra.mxu0 %vm12786_vm0, %v1994_v14  ;;  %v2341_v35 = vpop.f32.mrf.mxu1 }
 0x3d0   : > { %2533 = vmatpush.msrb.mxu0 %v7032_v17  ;;  %2505 = vmatpush.msra.mxu3 %v1228_v54  ;;  %v2283_v63 = vpop.f32.mrf.mxu3  ;;  %v13202_v54 = vld [vmem:[#allocation5_spill] sm:$0xff] }
 0x3d1   : > { %v2254_v60 = vpop.f32.mrf.mxu2 }
 0x3d2   : > { %2534 = vmatpush.msrb.mxu0 %v7018_v16  ;;  %2506 = vmatpush.msra.mxu3 %v1226_v10  ;;  %v2255_v52 = vadd.f32 %v2254_v60, %v8823_v13  ;;  %v9139_v16 = vld [vmem:[%s12588_s3 + $0x3] ss:$8 sm:$0x3] }
 0x3d3   : > { %13255 = vst [vmem:[#allocation52_spill] sm:$0xff] %v9139_v16 }
 0x3d4   : > { %2535 = vmatpush.msrb.mxu0 %v7029_v15  ;;  %2507 = vmatpush.msra.mxu3 %v1224_v38  ;;  %v2284_v12 = vadd.f32 %v2283_v63, %v2255_v52 }
 0x3d5   : > { %2508 = vmatmul.f32.vlgmr.msra.gmra.mxu3 %v6716_v41 }
 0x3d6   : > { %2620 = vmatpush.msrb.mxu3 %v1958_v8  ;;  %2536 = vmatpush.msrb.mxu0 %v7012_v11 }
 0x3d7   : > { %2537 = vmatmul.f32.vlgmr.msrb.gmra.mxu0 %v6717_v58  ;;  %v2344_v59 = vpop.f32.mrf.mxu1 }
 0x3d8   : > { %2621 = vmatpush.msrb.mxu3 %v1956_v18 }
 0x3d9   : > { %v2257_v24 = vpop.f32.mrf.mxu2 }
 0x3da   : > { %2622 = vmatpush.msrb.mxu3 %v1954_v39 }
 0x3dc   : > { %2623 = vmatpush.msrb.mxu3 %v1952_v53 }
 0x3dd   : > { %2511 = vmatmul.f32.gmra.mxu3 %v6718_v55 }
 0x3df   : > { %2540 = vmatmul.f32.gmra.mxu0 %v6719_v48  ;;  %v2451_v41 = vpop.f32.mrf.mxu1 }
 0x3e1   : > { %v2364_v7 = vpop.f32.mrf.mxu2 }
 0x3e5   : > { %2514 = vmatmul.f32.gmra.mxu3 %v6720_v57  ;;  %v8841_v57 = vpop.permute.xlu0 %2216 }
 0x3e7   : > { %2543 = vmatmul.f32.gmra.mxu0 %v6721_v2 }
 0x3e9   : > { %v2367_v30 = vpop.f32.mrf.mxu2 }
 0x3ed   : > { %2517 = vmatmul.f32.gmra.mxu3 %v6722_v0 }
 0x3ef   : > { %2546 = vmatmul.f32.gmra.mxu0 %v6723_v47  ;;  %v2258_v47 = vadd.f32 %v2257_v24, %v8841_v57 }
 0x3f1   : > { %v2370_v33 = vpop.f32.mrf.mxu2 }
 0x3f5   : > { %6577 = vmatmul.msk.f32.vlgmr.msrb.gmra.mxu3 %vm12786_vm0, %v8624_v1  ;;  %v2312_v1 = vpop.f32.mrf.mxu0 }
 0x3f6   : > { %v2313_v39 = vadd.f32 %v2312_v1, %v2284_v12 }
 0x3f8   : > { %v2342_v53 = vadd.f32 %v2341_v35, %v2313_v39 }
 0x3f9   : > { %v2373_v8 = vpop.f32.mrf.mxu2 }
 0x3fa   : > { %v2371_v0 = vadd.f32 %v2370_v33, %v2342_v53 }
 0x3fd   : > { %6578 = vmatmul.msk.f32.gmra.mxu3 %vm12786_vm0, %v8672_v34  ;;  %v2249_v34 = vadd.f32 %v2248_v37, %v8814_v3  ;;  %v2315_v19 = vpop.f32.mrf.mxu0 }
 0x3ff   : > { %v2278_v31 = vadd.f32 %v2277_v61, %v2249_v34  ;;  %v2454_v61 = vpop.f32.mrf.mxu1 }
 0x401   : > { %v2307_v40 = vadd.f32 %v2306_v36, %v2278_v31  ;;  %v2480_v55 = vpop.f32.mrf.mxu2 }
 0x403   : > { %v2336_v25 = vadd.f32 %v2335_v42, %v2307_v40 }
 0x405   : > { %6579 = vmatmul.msk.f32.gmra.mxu3 %vm12786_vm0, %v8720_v49  ;;  %v2286_v49 = vpop.f32.mrf.mxu3  ;;  %v2365_v23 = vadd.f32 %v2364_v7, %v2336_v25 }
 0x406   : > { %v2287_v36 = vadd.f32 %v2286_v49, %v2258_v47 }
 0x407   : > { %v2457_v1 = vpop.f32.mrf.mxu1 }
 0x408   : > { %v2316_v42 = vadd.f32 %v2315_v19, %v2287_v36  ;;  %v2458_v53 = vadd.f32 %v2457_v1, %v8823_v13 }
 0x409   : > { %v2483_v50 = vpop.f32.mrf.mxu2 }
 0x40a   : > { %v2345_v24 = vadd.f32 %v2344_v59, %v2316_v42 }
 0x40c   : > { %v2374_v34 = vadd.f32 %v2373_v8, %v2345_v24 }
 0x40d   : > { %6580 = vmatmul.msk.f32.gmra.mxu3 %vm12786_vm0, %v1994_v14  ;;  %v2339_v14 = vadd.f32 %v2338_v22, %v2310_v56  ;;  %vm13262_vm0 = vcmp.lt.s32.totalorder %v7218_v46, 33 }
 0x40e   : > { %vm13266_vm10 = vmmov %vm13262_vm0 }
 0x40f   : > { %v2368_v10 = vadd.f32 %v2367_v30, %v2339_v14  ;;  %v2452_v30 = vadd.f32 %v2451_v41, %v8814_v3  ;;  %v2460_v51 = vpop.f32.mrf.mxu1  ;;  %vm13267_vm9 = vmmov %vm13262_vm0 }
 0x410   : > { %v2461_v42 = vadd.f32 %v2460_v51, %v8841_v57 }
 0x411   : > { %v2486_v31 = vpop.f32.mrf.mxu2  ;;  %v2481_v28 = vadd.f32 %v2480_v55, %v2452_v30 }
 0x417   : > { %v2567_v56 = vpop.f32.mrf.mxu1 }
 0x434   : > { %v2422_v5 = vpop.f32.mrf.mxu0 }
 0x438   : > { %v2393_v27 = vpop.f32.mrf.mxu3 }
 0x439   : > { %v2394_v43 = vadd.f32 %v2393_v27, %v2365_v23  ;;  %v2489_v27 = vpop.f32.mrf.mxu2 }
 0x43a   : > { %v2490_v1 = vadd.f32 %v2489_v27, %v2461_v42 }
 0x43b   : > { %v2423_v45 = vadd.f32 %v2422_v5, %v2394_v43 }
 0x43c   : > { %v2425_v38 = vpop.f32.mrf.mxu0 }
 0x43d   : > { %v2637_v21 = vmax.f32 %v2423_v45, 0.0 }
 0x43f   : > { %v8821_v44 = vmul.f32 %v2637_v21, %v13202_v54  ;;  %v2455_v21 = vadd.f32 %v2454_v61, %v8817_v20  ;;  %v13205_v20 = vld [vmem:[#allocation6_spill] sm:$0xff] }
 0x440   : > { %v2396_v26 = vpop.f32.mrf.mxu3 }
 0x441   : > { %2745 = vrot.lane.b32.xlu1 %v8821_v44, %s12824_s26  ;;  %2699 = vrot.lane.b32.xlu0 %v8821_v44, %s12826_s23  ;;  %v2397_v62 = vadd.f32 %v2396_v26, %v2368_v10  ;;  %v2596_v14 = vpop.f32.mrf.mxu2  ;;  %v2484_v26 = vadd.f32 %v2483_v50, %v2455_v21 }
 0x442   : > { %2653 = vrot.lane.b32.xlu2 %v8821_v44, %s12829_s22 }
 0x443   : > { %v2426_v18 = vadd.f32 %v2425_v38, %v2397_v62 }
 0x444   : > { %v2428_v32 = vpop.f32.mrf.mxu0 }
 0x445   : > { %v2639_v58 = vmax.f32 %v2426_v18, 0.0  ;;  %v2570_v18 = vpop.f32.mrf.mxu1 }
 0x447   : > { %v8839_v48 = vmul.f32 %v2639_v58, %v13202_v54 }
 0x448   : > { %v2399_v9 = vpop.f32.mrf.mxu3 }
 0x449   : > { %2883 = vrot.lane.b32.xlu1 %v8821_v44, %s12793_s29  ;;  %2837 = vrot.lane.b32.xlu0 %v8821_v44, %s12795_s28  ;;  %v2400_v37 = vadd.f32 %v2399_v9, %v2371_v0  ;;  %v2599_v39 = vpop.f32.mrf.mxu2 }
 0x44a   : > { %2791 = vrot.lane.b32.xlu2 %v8821_v44, %s13203_s27 }
 0x44b   : > { %v2429_v60 = vadd.f32 %v2428_v32, %v2400_v37 }
 0x44c   : > { %v2431_v19 = vpop.f32.mrf.mxu0 }
 0x44d   : > { %v2641_v63 = vmax.f32 %v2429_v60, 0.0  ;;  %v2573_v36 = vpop.f32.mrf.mxu1 }
 0x44f   : > { %v8857_v7 = vmul.f32 %v2641_v63, %v13202_v54 }
 0x450   : > { %v2402_v2 = vpop.f32.mrf.mxu3 }
 0x451   : > { %2655 = vrot.lane.b32.xlu1 %v8839_v48, %s12829_s22  ;;  %2747 = vrot.lane.b32.xlu0 %v8839_v48, %s12824_s26  ;;  %v2403_v49 = vadd.f32 %v2402_v2, %v2374_v34  ;;  %v2487_v2 = vadd.f32 %v2486_v31, %v2458_v53  ;;  %v2602_v50 = vpop.f32.mrf.mxu2 }
 0x452   : > { %2929 = vrot.lane.b32.xlu2 %v8821_v44, %s13204_s0 }
 0x453   : > { %v2432_v40 = vadd.f32 %v2431_v19, %v2403_v49 }
 0x454   : > { %v2538_v5 = vpop.f32.mrf.mxu0 }
 0x455   : > { %v2643_v35 = vmax.f32 %v2432_v40, 0.0  ;;  %v2576_v40 = vpop.f32.mrf.mxu1 }
 0x457   : > { %v8873_v43 = vmul.f32 %v2643_v35, %v13202_v54 }
 0x458   : > { %v2509_v29 = vpop.f32.mrf.mxu3 }
 0x459   : > { %2793 = vrot.lane.b32.xlu1 %v8839_v48, %s13203_s27  ;;  %2885 = vrot.lane.b32.xlu0 %v8839_v48, %s12793_s29  ;;  %v2510_v23 = vadd.f32 %v2509_v29, %v2481_v28  ;;  %v2605_v51 = vpop.f32.mrf.mxu2 }
 0x45a   : > { %2701 = vrot.lane.b32.xlu2 %v8839_v48, %s12826_s23 }
 0x45b   : > { %v2539_v3 = vadd.f32 %v2538_v5, %v2510_v23 }
 0x45c   : > { %v2541_v62 = vpop.f32.mrf.mxu0 }
 0x45d   : > { %v2568_v45 = vadd.f32 %v2567_v56, %v2539_v3 }
 0x45f   : > { %v2597_v59 = vadd.f32 %v2596_v14, %v2568_v45 }
 0x460   : > { %v2512_v22 = vpop.f32.mrf.mxu3 }
 0x461   : > { %2931 = vrot.lane.b32.xlu1 %v8839_v48, %s13204_s0  ;;  %2657 = vrot.lane.b32.xlu0 %v8857_v7, %s12829_s22  ;;  %v2513_v10 = vadd.f32 %v2512_v22, %v2484_v26 }
 0x462   : > { %2839 = vrot.lane.b32.xlu2 %v8839_v48, %s12795_s28 }
 0x463   : > { %v2542_v12 = vadd.f32 %v2541_v62, %v2513_v10 }
 0x464   : > { %v2544_v37 = vpop.f32.mrf.mxu0 }
 0x465   : > { %v2571_v41 = vadd.f32 %v2570_v18, %v2542_v12 }
 0x467   : > { %v2600_v55 = vadd.f32 %v2599_v39, %v2571_v41 }
 0x468   : > { %v2515_v25 = vpop.f32.mrf.mxu3 }
 0x469   : > { %2703 = vrot.lane.b32.xlu1 %v8857_v7, %s12826_s23  ;;  %2795 = vrot.lane.b32.xlu0 %v8857_v7, %s13203_s27  ;;  %v2516_v47 = vadd.f32 %v2515_v25, %v2487_v2 }
 0x46a   : > { %2749 = vrot.lane.b32.xlu2 %v8857_v7, %s12824_s26 }
 0x46b   : > { %v2545_v61 = vadd.f32 %v2544_v37, %v2516_v47 }
 0x46c   : > { %v2547_v22 = vpop.f32.mrf.mxu0 }
 0x46d   : > { %v2574_v13 = vadd.f32 %v2573_v36, %v2545_v61 }
 0x46f   : > { %v2603_v63 = vadd.f32 %v2602_v50, %v2574_v13 }
 0x470   : > { %v2518_v33 = vpop.f32.mrf.mxu3 }
 0x471   : > { %2841 = vrot.lane.b32.xlu1 %v8857_v7, %s12795_s28  ;;  %2705 = vrot.lane.b32.xlu0 %v8873_v43, %s12826_s23  ;;  %v2519_v34 = vadd.f32 %v2518_v33, %v2490_v1 }
 0x472   : > { %2887 = vrot.lane.b32.xlu2 %v8857_v7, %s12793_s29 }
 0x473   : > { %v2548_v19 = vadd.f32 %v2547_v22, %v2519_v34 }
 0x475   : > { %v2577_v30 = vadd.f32 %v2576_v40, %v2548_v19 }
 0x477   : > { %v2606_v35 = vadd.f32 %v2605_v51, %v2577_v30 }
 0x478   : > { %v2625_v52 = vpop.f32.mrf.mxu3 }
 0x479   : > { %2751 = vrot.lane.b32.xlu1 %v8873_v43, %s12824_s26  ;;  %2843 = vrot.lane.b32.xlu0 %v8873_v43, %s12795_s28  ;;  %v2626_v38 = vadd.f32 %v2625_v52, %v2597_v59 }
 0x47a   : > { %2659 = vrot.lane.b32.xlu2 %v8873_v43, %s12829_s22 }
 0x47b   : > { %v2638_v8 = vmax.f32 %v2626_v38, 0.0 }
 0x47d   : > { %v8889_v9 = vmul.f32 %v2638_v8, %v13205_v20 }
 0x47f   : > { %13206 = vst [vmem:[#allocation41_spill] sm:$0xff] %v8889_v9 }
 0x480   : > { %v2628_v58 = vpop.f32.mrf.mxu3 }
 0x481   : > { %2889 = vrot.lane.b32.xlu1 %v8873_v43, %s12793_s29  ;;  %2753 = vrot.lane.b32.xlu0 %v8889_v9, %s12824_s26  ;;  %v2629_v0 = vadd.f32 %v2628_v58, %v2600_v55 }
 0x482   : > { %2797 = vrot.lane.b32.xlu2 %v8873_v43, %s13203_s27 }
 0x483   : > { %v2640_v32 = vmax.f32 %v2629_v0, 0.0 }
 0x485   : > { %v8905_v60 = vmul.f32 %v2640_v32, %v13205_v20 }
 0x487   : > { %13207 = vst [vmem:[#allocation29_spill] sm:$0xff] %v8905_v60 }
 0x488   : > { %v2631_v29 = vpop.f32.mrf.mxu3 }
 0x489   : > { %2661 = vrot.lane.b32.xlu1 %v8889_v9, %s12829_s22  ;;  %2891 = vrot.lane.b32.xlu0 %v8889_v9, %s12793_s29  ;;  %v2632_v24 = vadd.f32 %v2631_v29, %v2603_v63 }
 0x48a   : > { %2707 = vrot.lane.b32.xlu2 %v8889_v9, %s12826_s23 }
 0x48b   : > { %v2642_v31 = vmax.f32 %v2632_v24, 0.0 }
 0x48d   : > { %v8923_v57 = vmul.f32 %v2642_v31, %v13205_v20 }
 0x490   : > { %v2634_v25 = vpop.f32.mrf.mxu3 }
 0x491   : > { %2799 = vrot.lane.b32.xlu1 %v8889_v9, %s13203_s27  ;;  %2663 = vrot.lane.b32.xlu0 %v8905_v60, %s12829_s22  ;;  %v2635_v23 = vadd.f32 %v2634_v25, %v2606_v35 }
 0x492   : > { %2845 = vrot.lane.b32.xlu2 %v8889_v9, %s12795_s28 }
 0x493   : > { %v2644_v27 = vmax.f32 %v2635_v23, 0.0 }
 0x495   : > { %v8942_v3 = vmul.f32 %v2644_v27, %v13205_v20  ;;  %v2817_v20 = vperm.slane %v9139_v16, 0 }
 0x499   : > { %2709 = vrot.lane.b32.xlu1 %v8905_v60, %s12826_s23  ;;  %2801 = vrot.lane.b32.xlu0 %v8905_v60, %s13203_s27 }
 0x49a   : > { %2755 = vrot.lane.b32.xlu2 %v8905_v60, %s12824_s26 }
 0x49c   : > { %v8920_v49 = vpop.permute.xlu2 %2653 }
 0x49d   : > { %13208 = vst [vmem:[#allocation33_spill] sm:$0xff] %v8920_v49 }
 0x4a1   : > { %2847 = vrot.lane.b32.xlu1 %v8905_v60, %s12795_s28  ;;  %2711 = vrot.lane.b32.xlu0 %v8923_v57, %s12826_s23 }
 0x4a2   : > { %2893 = vrot.lane.b32.xlu2 %v8905_v60, %s12793_s29 }
 0x4a4   : > { %v8931_v28 = vpop.permute.xlu2 %2791 }
 0x4a5   : > { %13209 = vst [vmem:[#allocation35_spill] sm:$0xff] %v8931_v28 }
 0x4a9   : > { %2757 = vrot.lane.b32.xlu1 %v8923_v57, %s12824_s26  ;;  %2849 = vrot.lane.b32.xlu0 %v8923_v57, %s12795_s28 }
 0x4aa   : > { %2665 = vrot.lane.b32.xlu2 %v8923_v57, %s12829_s22 }
 0x4ac   : > { %v8939_v5 = vpop.permute.xlu2 %2929 }
 0x4ad   : > { %13210 = vst [vmem:[#allocation34_spill] sm:$0xff] %v8939_v5 }
 0x4b1   : > { %2895 = vrot.lane.b32.xlu1 %v8923_v57, %s12793_s29  ;;  %2759 = vrot.lane.b32.xlu0 %v8942_v3, %s12824_s26 }
 0x4b2   : > { %2803 = vrot.lane.b32.xlu2 %v8923_v57, %s13203_s27 }
 0x4b3   : > { %v8950_v56 = vpop.permute.xlu0 %2699  ;;  %v8952_v33 = vpop.permute.xlu1 %2745 }
 0x4b4   : > { %13211 = vst [vmem:[#allocation36_spill] sm:$0xff] %v8950_v56  ;;  %v8954_v45 = vpop.permute.xlu2 %2701 }
 0x4b5   : > { %13212 = vst [vmem:[#allocation24_spill] sm:$0xff] %v8952_v33 }
 0x4b6   : > { %13213 = vst [vmem:[#allocation31_spill] sm:$0xff] %v8954_v45 }
 0x4b9   : > { %2667 = vrot.lane.b32.xlu1 %v8942_v3, %s12829_s22  ;;  %2897 = vrot.lane.b32.xlu0 %v8942_v3, %s12793_s29  ;;  %s13285_s29 = smov 114   ;;  %s13317_s22 = smov 111  }
 0x4ba   : > { %2713 = vrot.lane.b32.xlu2 %v8942_v3, %s12826_s23  ;;  %s13325_s23 = smov 110  }
 0x4bb   : > { %v8962_v21 = vpop.permute.xlu0 %2837  ;;  %v8964_v14 = vpop.permute.xlu1 %2883 }
 0x4bc   : > { %13214 = vst [vmem:[#allocation30_spill] sm:$0xff] %v8962_v21  ;;  %v8966_v26 = vpop.permute.xlu2 %2839 }
 0x4bd   : > { %13215 = vst [vmem:[#allocation45_spill] sm:$0xff] %v8964_v14 }
 0x4be   : > { %13216 = vst [vmem:[#allocation32_spill] sm:$0xff] %v8966_v26 }
 0x4c1   : > { %2805 = vrot.lane.b32.xlu1 %v8942_v3, %s13203_s27  ;;  %2933 = vrot.lane.b32.xlu0 %v8857_v7, %s13204_s0 }
 0x4c2   : > { %2851 = vrot.lane.b32.xlu2 %v8942_v3, %s12795_s28  ;;  %s13275_s28 = smov 126  }
 0x4c3   : > { %v8974_v59 = vpop.permute.xlu0 %2747  ;;  %v8976_v10 = vpop.permute.xlu1 %2655 }
 0x4c4   : > { %13217 = vst [vmem:[#allocation18_spill] sm:$0xff] %v8976_v10  ;;  %v8978_v52 = vpop.permute.xlu2 %2749 }
 0x4c9   : > { %2937 = vrot.lane.b32.xlu1 %v8889_v9, %s13204_s0  ;;  %2939 = vrot.lane.b32.xlu0 %v8905_v60, %s13204_s0 }
 0x4ca   : > { %2935 = vrot.lane.b32.xlu2 %v8873_v43, %s13204_s0 }
 0x4cb   : > { %v8986_v62 = vpop.permute.xlu0 %2885  ;;  %v8988_v38 = vpop.permute.xlu1 %2793 }
 0x4cc   : > { %13218 = vst [vmem:[#allocation21_spill] sm:$0xff] %v8986_v62  ;;  %v8990_v8 = vpop.permute.xlu2 %2887 }
 0x4cd   : > { %13219 = vst [vmem:[#allocation26_spill] sm:$0xff] %v8988_v38 }
 0x4ce   : > { %13220 = vst [vmem:[#allocation28_spill] sm:$0xff] %v8990_v8 }
 0x4d1   : > { %2943 = vrot.lane.b32.xlu1 %v8942_v3, %s13204_s0  ;;  %2975 = vrot.lane.b32.xlu0 %v8821_v44, %s13221_s24 }
 0x4d2   : > { %2941 = vrot.lane.b32.xlu2 %v8923_v57, %s13204_s0 }
 0x4d3   : > { %v8998_v12 = vpop.permute.xlu0 %2657  ;;  %v9000_v18 = vpop.permute.xlu1 %2931 }
 0x4d4   : > { %13222 = vst [vmem:[#allocation27_spill] sm:$0xff] %v8998_v12  ;;  %v9002_v41 = vpop.permute.xlu2 %2659 }
 0x4d5   : > { %13223 = vst [vmem:[#allocation48_spill] sm:$0xff] %v9000_v18 }
 0x4d6   : > { %13224 = vst [vmem:[#allocation17_spill] sm:$0xff] %v9002_v41 }
 0x4d9   : > { %2979 = vrot.lane.b32.xlu1 %v8857_v7, %s13221_s24  ;;  %2981 = vrot.lane.b32.xlu0 %v8873_v43, %s13221_s24 }
 0x4da   : > { %2977 = vrot.lane.b32.xlu2 %v8839_v48, %s13221_s24 }
 0x4db   : > { %v9010_v39 = vpop.permute.xlu0 %2795  ;;  %v9012_v58 = vpop.permute.xlu1 %2703 }
 0x4dc   : > { %13225 = vst [vmem:[#allocation20_spill] sm:$0xff] %v9010_v39  ;;  %v9014_v53 = vpop.permute.xlu2 %2797 }
 0x4e1   : > { %2985 = vrot.lane.b32.xlu1 %v8905_v60, %s13221_s24  ;;  %2987 = vrot.lane.b32.xlu0 %v8923_v57, %s13221_s24 }
 0x4e2   : > { %2983 = vrot.lane.b32.xlu2 %v8889_v9, %s13221_s24 }
 0x4e3   : > { %v9022_v55 = vpop.permute.xlu0 %2705  ;;  %v9024_v2 = vpop.permute.xlu1 %2841 }
 0x4e4   : > { %13226 = vst [vmem:[#allocation23_spill] sm:$0xff] %v9022_v55  ;;  %v9026_v0 = vpop.permute.xlu2 %2707 }
 0x4e5   : > { %13227 = vst [vmem:[#allocation22_spill] sm:$0xff] %v9024_v2 }
 0x4e6   : > { %13228 = vst [vmem:[#allocation25_spill] sm:$0xff] %v9026_v0 }
 0x4e9   : > { %3021 = vrot.lane.b32.xlu1 %v8821_v44, %s13229_s19  ;;  %3023 = vrot.lane.b32.xlu0 %v8839_v48, %s13229_s19 }
 0x4ea   : > { %2989 = vrot.lane.b32.xlu2 %v8942_v3, %s13221_s24 }
 0x4eb   : > { %v9034_v47 = vpop.permute.xlu0 %2843  ;;  %v9036_v37 = vpop.permute.xlu1 %2751 }
 0x4ec   : > { %13230 = vst [vmem:[#allocation15_spill] sm:$0xff] %v9034_v47  ;;  %v9038_v32 = vpop.permute.xlu2 %2845 }
 0x4ed   : > { %13231 = vst [vmem:[#allocation16_spill] sm:$0xff] %v9036_v37 }
 0x4ee   : > { %13232 = vst [vmem:[#allocation19_spill] sm:$0xff] %v9038_v32 }
 0x4f1   : > { %3027 = vrot.lane.b32.xlu1 %v8873_v43, %s13229_s19  ;;  %3029 = vrot.lane.b32.xlu0 %v8889_v9, %s13229_s19 }
 0x4f2   : > { %3025 = vrot.lane.b32.xlu2 %v8857_v7, %s13229_s19 }
 0x4f3   : > { %v9046_v61 = vpop.permute.xlu0 %2753  ;;  %v9048_v36 = vpop.permute.xlu1 %2889 }
 0x4f4   : > { %13233 = vst [vmem:[#allocation73_spill] sm:$0xff] %v9046_v61  ;;  %v9050_v13 = vpop.permute.xlu2 %2755 }
 0x4f5   : > { %13234 = vst [vmem:[#allocation72_spill] sm:$0xff] %v9048_v36 }
 0x4f9   : > { %3033 = vrot.lane.b32.xlu1 %v8923_v57, %s13229_s19  ;;  %3035 = vrot.lane.b32.xlu0 %v8942_v3, %s13229_s19 }
 0x4fa   : > { %3031 = vrot.lane.b32.xlu2 %v8905_v60, %s13229_s19 }
 0x4fb   : > { %v9058_v50 = vpop.permute.xlu0 %2891  ;;  %v9060_v29 = vpop.permute.xlu1 %2661 }
 0x4fc   : > { %13235 = vst [vmem:[#allocation75_spill] sm:$0xff] %v9058_v50  ;;  %v9062_v42 = vpop.permute.xlu2 %2893 }
 0x4fd   : > { %13236 = vst [vmem:[#allocation59_spill] sm:$0xff] %v9060_v29 }
 0x4fe   : > { %13237 = vst [vmem:[#allocation62_spill] sm:$0xff] %v9062_v42 }
 0x501   : > { %3069 = vrot.lane.b32.xlu1 %v8839_v48, %s13238_s30  ;;  %3071 = vrot.lane.b32.xlu0 %v8857_v7, %s13238_s30 }
 0x502   : > { %3067 = vrot.lane.b32.xlu2 %v8821_v44, %s13238_s30 }
 0x503   : > { %v9070_v63 = vpop.permute.xlu0 %2663  ;;  %v9072_v1 = vpop.permute.xlu1 %2799 }
 0x504   : > { %13239 = vst [vmem:[#allocation67_spill] sm:$0xff] %v9070_v63  ;;  %v9074_v24 = vpop.permute.xlu2 %2665  ;;  %v2811_v2 = vsel %vm12894_vm7, %v9072_v1, %v8931_v28 }
 0x505   : > { %13240 = vst [vmem:[#allocation70_spill] sm:$0xff] %v9072_v1 }
 0x509   : > { %3075 = vrot.lane.b32.xlu1 %v8889_v9, %s13238_s30  ;;  %3077 = vrot.lane.b32.xlu0 %v8905_v60, %s13238_s30 }
 0x50a   : > { %3073 = vrot.lane.b32.xlu2 %v8873_v43, %s13238_s30 }
 0x50b   : > { %v9082_v34 = vpop.permute.xlu0 %2801  ;;  %v9084_v22 = vpop.permute.xlu1 %2709 }
 0x50c   : > { %13241 = vst [vmem:[#allocation69_spill] sm:$0xff] %v9082_v34  ;;  %v9086_v31 = vpop.permute.xlu2 %2803  ;;  %v2812_v16 = vsel %vm12894_vm7, %v9082_v34, %v8988_v38  ;;  %v2821_v34 = vmul.f32 %v2817_v20, %v2811_v2  ;;  %v9211_v2 = vld [vmem:[%s12588_s3 + $0x1] ss:$8 sm:$0x3] }
 0x50d   : > { %13242 = vst [vmem:[#allocation56_spill] sm:$0xff] %v9084_v22 }
 0x511   : > { %3081 = vrot.lane.b32.xlu1 %v8942_v3, %s13238_s30  ;;  %3113 = vrot.lane.b32.xlu0 %v8821_v44, %s13243_s21 }
 0x512   : > { %3079 = vrot.lane.b32.xlu2 %v8923_v57, %s13238_s30 }
 0x513   : > { %v9094_v19 = vpop.permute.xlu0 %2711  ;;  %v9096_v40 = vpop.permute.xlu1 %2847 }
 0x514   : > { %13244 = vst [vmem:[#allocation61_spill] sm:$0xff] %v9096_v40  ;;  %v9098_v30 = vpop.permute.xlu2 %2713  ;;  %v2813_v40 = vsel %vm12894_vm7, %v9086_v31, %v9010_v39 }
 0x515   : > { %13245 = vst [vmem:[#allocation64_spill] sm:$0xff] %v9098_v30 }
 0x519   : > { %3117 = vrot.lane.b32.xlu1 %v8857_v7, %s13243_s21  ;;  %3119 = vrot.lane.b32.xlu0 %v8873_v43, %s13243_s21 }
 0x51a   : > { %3115 = vrot.lane.b32.xlu2 %v8839_v48, %s13243_s21 }
 0x51b   : > { %v9106_v51 = vpop.permute.xlu0 %2849  ;;  %v9108_v25 = vpop.permute.xlu1 %2757 }
 0x51c   : > { %13246 = vst [vmem:[#allocation63_spill] sm:$0xff] %v9106_v51  ;;  %v9110_v35 = vpop.permute.xlu2 %2851  ;;  %v2825_v51 = vmul.f32 %v2817_v20, %v2813_v40 }
 0x51d   : > { %13247 = vst [vmem:[#allocation66_spill] sm:$0xff] %v9110_v35 }
 0x521   : > { %3123 = vrot.lane.b32.xlu1 %v8905_v60, %s13243_s21  ;;  %3125 = vrot.lane.b32.xlu0 %v8923_v57, %s13243_s21 }
 0x522   : > { %3121 = vrot.lane.b32.xlu2 %v8889_v9, %s13243_s21 }
 0x523   : > { %v9118_v23 = vpop.permute.xlu0 %2759  ;;  %v9120_v27 = vpop.permute.xlu1 %2895 }
 0x524   : > { %13248 = vst [vmem:[#allocation50_spill] sm:$0xff] %v9118_v23  ;;  %v9122_v4 = vpop.permute.xlu2 %2935  ;;  %v2768_v40 = vsel %vm12893_vm8, %v9118_v23, %v9036_v37  ;;  %v2766_v37 = vsel %vm12893_vm8, %v9050_v13, %v8974_v59 }
 0x525   : > { %13249 = vst [vmem:[#allocation53_spill] sm:$0xff] %v9120_v27 }
 0x526   : > { %13250 = vst [vmem:[#allocation58_spill] sm:$0xff] %v9122_v4 }
 0x529   : > { %3159 = vrot.lane.b32.xlu1 %v8821_v44, %s13251_s17  ;;  %3161 = vrot.lane.b32.xlu0 %v8839_v48, %s13251_s17 }
 0x52a   : > { %3127 = vrot.lane.b32.xlu2 %v8942_v3, %s13243_s21 }
 0x52b   : > { %v9130_v6 = vpop.permute.xlu0 %2897  ;;  %v9132_v11 = vpop.permute.xlu1 %2667 }
 0x52c   : > { %13252 = vst [vmem:[#allocation60_spill] sm:$0xff] %v9130_v6  ;;  %v9134_v15 = vpop.permute.xlu2 %2941 }
 0x52d   : > { %13253 = vst [vmem:[#allocation42_spill] sm:$0xff] %v9132_v11 }
 0x52e   : > { %13254 = vst [vmem:[#allocation46_spill] sm:$0xff] %v9134_v15 }
 0x531   : > { %3165 = vrot.lane.b32.xlu1 %v8873_v43, %s13251_s17  ;;  %3167 = vrot.lane.b32.xlu0 %v8889_v9, %s13251_s17 }
 0x532   : > { %3163 = vrot.lane.b32.xlu2 %v8857_v7, %s13251_s17 }
 0x533   : > { %v9147_v17 = vpop.permute.xlu0 %2933  ;;  %v9150_v54 = vpop.permute.xlu1 %2805 }
 0x534   : > { %13256 = vst [vmem:[#allocation55_spill] sm:$0xff] %v9147_v17  ;;  %v9152_v32 = vpop.permute.xlu2 %2977  ;;  %v2814_v21 = vsel %vm12894_vm7, %v9150_v54, %v9014_v53 }
 0x535   : > { %13257 = vst [vmem:[#allocation54_spill] sm:$0xff] %v9152_v32  ;;  %v2827_v26 = vmul.f32 %v2817_v20, %v2814_v21  ;;  %v9177_v21 = vld [vmem:[%s12588_s3 + $0x2] ss:$8 sm:$0x3] }
 0x536   : > { %v2771_v39 = vperm.slane %v9177_v21, 0 }
 0x537   : > { %4029 = vmatpush.msra.mxu0 %v2827_v26  ;;  %v2823_v26 = vmul.f32 %v2817_v20, %v2812_v16  ;;  %v2767_v16 = vsel %vm12893_vm8, %v9108_v25, %v8978_v52  ;;  %v2765_v20 = vsel %vm12893_vm8, %v9046_v61, %v8952_v33  ;;  %v2725_v61 = vperm.slane %v9211_v2, 0 }
 0x538   : > { %v2779_v23 = vmul.f32 %v2771_v39, %v2767_v16  ;;  %v2775_v33 = vmul.f32 %v2771_v39, %v2765_v20  ;;  %v2719_v20 = vsel %vm13267_vm9, %v9026_v0, %v8950_v56  ;;  %vm13268_vm9 = vcmp.lt.s32.totalorder %v7218_v46, 34 }
 0x539   : > { %3171 = vrot.lane.b32.xlu1 %v8923_v57, %s13251_s17  ;;  %3173 = vrot.lane.b32.xlu0 %v8942_v3, %s13251_s17 }
 0x53a   : > { %3169 = vrot.lane.b32.xlu2 %v8905_v60, %s13251_s17  ;;  %4030 = vmatpush.msra.mxu0 %v2825_v51  ;;  %v2781_v51 = vmul.f32 %v2771_v39, %v2768_v40 }
 0x53b   : > { %v9185_v28 = vpop.permute.xlu0 %2939  ;;  %v9187_v1 = vpop.permute.xlu1 %2937 }
 0x53c   : > { %13258 = vst [vmem:[#allocation57_spill] sm:$0xff] %v9185_v28  ;;  %v9189_v38 = vpop.permute.xlu2 %2983  ;;  %4031 = vmatpush.msra.mxu0 %v2823_v26  ;;  %v2722_v26 = vsel %vm13262_vm0, %v9098_v30, %v9022_v55  ;;  %v2720_v55 = vsel %vm13262_vm0, %v9084_v22, %v8954_v45  ;;  %vm13273_vm0 = vmmov %vm13268_vm9 }
 0x53d   : > { %13259 = vst [vmem:[#allocation39_spill] sm:$0xff] %v9187_v1  ;;  %v2674_v22 = vsel %vm13273_vm0, %v9070_v63, %v8976_v10 }
 0x53e   : > { %13260 = vst [vmem:[#allocation49_spill] sm:$0xff] %v9189_v38  ;;  %4032 = vmatpush.msra.mxu0 %v2821_v34  ;;  %v2777_v34 = vmul.f32 %v2771_v39, %v2766_v37  ;;  %v2721_v37 = vsel %vm13266_vm10, %v9094_v19, %v9012_v58  ;;  %v6587_v39 = vld [vmem:[%s12588_s3 + $0x7] ss:$8 sm:$0x3]  ;;  %vm13272_vm10 = vmmov %vm13268_vm9 }
 0x53f   : > { %v2733_v30 = vmul.f32 %v2725_v61, %v2721_v37  ;;  %v3001_v37 = vperm.slane %v6587_v39, 0  ;;  %v2675_v39 = vsel %vm13272_vm10, %v9074_v24, %v8998_v12  ;;  %vm13352_vm10 = vcmp.lt.s32.totalorder %v7218_v46, 33 }
 0x540   : > { %4033 = vmatpush.msra.mxu0 %v2781_v51 }
 0x541   : > { %3215 = vrot.lane.b32.xlu1 %v8839_v48, %s13261_s20  ;;  %3217 = vrot.lane.b32.xlu0 %v8857_v7, %s13261_s20 }
 0x542   : > { %3213 = vrot.lane.b32.xlu2 %v8821_v44, %s13261_s20  ;;  %4034 = vmatpush.msra.mxu0 %v2779_v23  ;;  %v2735_v23 = vmul.f32 %v2725_v61, %v2722_v26  ;;  %v2676_v26 = vsel %vm13268_vm9, %v9132_v11, %v9002_v41  ;;  %vm13274_vm9 = vmmov %vm13273_vm0 }
 0x543   : > { %v9219_v40 = vpop.permute.xlu0 %2975  ;;  %v9221_v16 = vpop.permute.xlu1 %2943  ;;  %vm13353_vm0 = vmmov %vm13352_vm10 }
 0x544   : > { %13263 = vst [vmem:[#allocation47_spill] sm:$0xff] %v9219_v40  ;;  %v9223_v51 = vpop.permute.xlu2 %2989  ;;  %4035 = vmatpush.msra.mxu0 %v2777_v34  ;;  %v2731_v34 = vmul.f32 %v2725_v61, %v2720_v55 }
 0x545   : > { %13264 = vst [vmem:[#allocation51_spill] sm:$0xff] %v9221_v16 }
 0x546   : > { %13265 = vst [vmem:[#allocation37_spill] sm:$0xff] %v9223_v51  ;;  %4036 = vmatpush.msra.mxu0 %v2775_v33  ;;  %v9248_v33 = vld [vmem:[%s12588_s3] ss:$8 sm:$0x3] }
 0x547   : > { %v2679_v55 = vperm.slane %v9248_v33, 0 }
 0x548   : > { %4037 = vmatpush.msra.mxu0 %v2735_v23 }
 0x549   : > { %3221 = vrot.lane.b32.xlu1 %v8889_v9, %s13261_s20  ;;  %3223 = vrot.lane.b32.xlu0 %v8905_v60, %s13261_s20  ;;  %v2689_v11 = vmul.f32 %v2679_v55, %v2676_v26 }
 0x54a   : > { %3219 = vrot.lane.b32.xlu2 %v8873_v43, %s13261_s20  ;;  %4038 = vmatpush.msra.mxu0 %v2733_v30  ;;  %v2729_v30 = vmul.f32 %v2725_v61, %v2719_v20  ;;  %v2673_v61 = vsel %vm13274_vm9, %v9060_v29, %v8920_v49  ;;  %vm13356_vm9 = vmmov %vm13353_vm0 }
 0x54b   : > { %v9256_v23 = vpop.permute.xlu0 %2981  ;;  %v9258_v56 = vpop.permute.xlu1 %2979  ;;  %v2683_v26 = vmul.f32 %v2679_v55, %v2673_v61 }
 0x54c   : > { %13269 = vst [vmem:[#allocation38_spill] sm:$0xff] %v9256_v23  ;;  %v9260_v0 = vpop.permute.xlu2 %3025  ;;  %v2998_v45 = vsel %vm1159_vm11, %v9223_v51, %v9256_v23  ;;  %4039 = vmatpush.msra.mxu0 %v2731_v34  ;;  %v2687_v23 = vmul.f32 %v2679_v55, %v2675_v39  ;;  %v6586_v39 = vld [vmem:[%s12588_s3 + $0x6] ss:$8 sm:$0x3] }
 0x54d   : > { %13270 = vst [vmem:[#allocation40_spill] sm:$0xff] %v9258_v56  ;;  %v3011_v41 = vmul.f32 %v3001_v37, %v2998_v45  ;;  %v2685_v45 = vmul.f32 %v2679_v55, %v2674_v22  ;;  %v2995_v22 = vsel %vm1159_vm11, %v9189_v38, %v9219_v40  ;;  %v2952_v55 = vsel %vm1111_vm12, %v9221_v16, %v9122_v4  ;;  %v6591_v38 = vld [vmem:[%s12588_s3 + $0x13] ss:$8 sm:$0x3] }
 0x54e   : > { %13271 = vst [vmem:[#allocation44_spill] sm:$0xff] %v9260_v0  ;;  %4040 = vmatpush.msra.mxu0 %v2729_v30  ;;  %v3005_v61 = vmul.f32 %v3001_v37, %v2995_v22  ;;  %v2949_v22 = vsel %vm1111_vm12, %v9187_v1, %v8939_v5 }
 0x54f   : > { %4058 = vmatpush.msra.mxu1 %v3011_v41 }
 0x550   : > { %4041 = vmatpush.msra.mxu0 %v2689_v11 }
 0x551   : > { %3227 = vrot.lane.b32.xlu1 %v8942_v3, %s13261_s20  ;;  %3259 = vrot.lane.b32.xlu0 %v8821_v44, %s13275_s28 }
 0x552   : > { %3225 = vrot.lane.b32.xlu2 %v8923_v57, %s13261_s20  ;;  %4042 = vmatpush.msra.mxu0 %v2687_v23 }
 0x553   : > { %v9285_v20 = vpop.permute.xlu0 %2987  ;;  %v9287_v11 = vpop.permute.xlu1 %2985 }
 0x554   : > { %13276 = vst [vmem:[#allocation43_spill] sm:$0xff] %v9285_v20  ;;  %v9289_v41 = vpop.permute.xlu2 %3031  ;;  %v2997_v34 = vsel %vm1159_vm11, %v9285_v20, %v9258_v56  ;;  %4043 = vmatpush.msra.mxu0 %v2685_v45  ;;  %v2996_v30 = vsel %vm1159_vm11, %v9287_v11, %v9152_v32  ;;  %v2955_v45 = vperm.slane %v6586_v39, 0  ;;  %v6585_v39 = vld [vmem:[%s12588_s3 + $0x5] ss:$8 sm:$0x3]  ;;  %v3185_v32 = vperm.slane %v6591_v38, 0 }
 0x555   : > { %13277 = vst [vmem:[#allocation107_spill] sm:$0xff] %v9287_v11  ;;  %v3009_v23 = vmul.f32 %v3001_v37, %v2997_v34  ;;  %v3007_v56 = vmul.f32 %v3001_v37, %v2996_v30  ;;  %v2951_v34 = vsel %vm1111_vm12, %v9134_v15, %v9147_v17 }
 0x556   : > { %13278 = vst [vmem:[#allocation92_spill] sm:$0xff] %v9289_v41  ;;  %4044 = vmatpush.msra.mxu0 %v2683_v26  ;;  %v2965_v4 = vmul.f32 %v2955_v45, %v2952_v55  ;;  %v2963_v37 = vmul.f32 %v2955_v45, %v2951_v34  ;;  %v2906_v55 = vsel %vm1063_vm13, %v9130_v6, %v9048_v36 }
 0x557   : > { %4059 = vmatpush.msra.mxu1 %v3009_v23  ;;  %v2905_v34 = vsel %vm1063_vm13, %v9120_v27, %v8990_v8 }
 0x559   : > { %3263 = vrot.lane.b32.xlu1 %v8857_v7, %s13275_s28  ;;  %3265 = vrot.lane.b32.xlu0 %v8873_v43, %s13275_s28 }
 0x55a   : > { %3261 = vrot.lane.b32.xlu2 %v8839_v48, %s13275_s28  ;;  %4060 = vmatpush.msra.mxu1 %v3007_v56  ;;  %v2950_v56 = vsel %vm1111_vm12, %v9185_v28, %v9000_v18 }
 0x55b   : > { %v9320_v26 = vpop.permute.xlu0 %3023  ;;  %v9322_v30 = vpop.permute.xlu1 %3021  ;;  %v2961_v17 = vmul.f32 %v2955_v45, %v2950_v56 }
 0x55c   : > { %13279 = vst [vmem:[#allocation95_spill] sm:$0xff] %v9320_v26  ;;  %v9324_v23 = vpop.permute.xlu2 %3067  ;;  %4061 = vmatpush.msra.mxu1 %v3005_v61  ;;  %v2909_v61 = vperm.slane %v6585_v39, 0  ;;  %v6584_v39 = vld [vmem:[%s12588_s3 + $0x4] ss:$8 sm:$0x3] }
 0x55d   : > { %13280 = vst [vmem:[#allocation100_spill] sm:$0xff] %v9322_v30 }
 0x55e   : > { %13281 = vst [vmem:[#allocation103_spill] sm:$0xff] %v9324_v23  ;;  %4062 = vmatpush.msra.mxu1 %v2965_v4  ;;  %v2959_v4 = vmul.f32 %v2955_v45, %v2949_v22  ;;  %v2919_v6 = vmul.f32 %v2909_v61, %v2906_v55  ;;  %v2917_v45 = vmul.f32 %v2909_v61, %v2905_v34  ;;  %v13286_v34 = vld [vmem:[#allocation22_spill] sm:$0xff] }
 0x55f   : > { %v2903_v22 = vsel %vm1063_vm13, %v9058_v50, %v8964_v14  ;;  %v2860_v55 = vsel %vm1015_vm14, %v9110_v35, %v9034_v47 }
 0x560   : > { %4063 = vmatpush.msra.mxu1 %v2963_v37 }
 0x561   : > { %3269 = vrot.lane.b32.xlu1 %v8905_v60, %s13275_s28  ;;  %3271 = vrot.lane.b32.xlu0 %v8923_v57, %s13275_s28 }
 0x562   : > { %3267 = vrot.lane.b32.xlu2 %v8889_v9, %s13275_s28  ;;  %4064 = vmatpush.msra.mxu1 %v2961_v17  ;;  %v2904_v17 = vsel %vm1063_vm13, %v9062_v42, %v8986_v62  ;;  %v13291_v62 = vld [vmem:[#allocation32_spill] sm:$0xff]  ;;  %v13292_v42 = vld [vmem:[#allocation61_spill] sm:$0xff] }
 0x563   : > { %v9351_v56 = vpop.permute.xlu0 %3029  ;;  %v9353_v37 = vpop.permute.xlu1 %3027  ;;  %v2915_v8 = vmul.f32 %v2909_v61, %v2904_v17 }
 0x564   : > { %13282 = vst [vmem:[#allocation102_spill] sm:$0xff] %v9351_v56  ;;  %v9355_v36 = vpop.permute.xlu2 %3073  ;;  %4065 = vmatpush.msra.mxu1 %v2959_v4  ;;  %v2863_v4 = vperm.slane %v6584_v39, 0  ;;  %v13294_v39 = vld [vmem:[#allocation19_spill] sm:$0xff] }
 0x565   : > { %13283 = vst [vmem:[#allocation119_spill] sm:$0xff] %v9353_v37 }
 0x566   : > { %13284 = vst [vmem:[#allocation105_spill] sm:$0xff] %v9355_v36  ;;  %4066 = vmatpush.msra.mxu1 %v2919_v6  ;;  %v2913_v6 = vmul.f32 %v2909_v61, %v2903_v22  ;;  %v2873_v50 = vmul.f32 %v2863_v4, %v2860_v55  ;;  %v13293_v22 = vld [vmem:[#allocation30_spill] sm:$0xff] }
 0x568   : > { %4067 = vmatpush.msra.mxu1 %v2917_v45  ;;  %v13287_v45 = vld [vmem:[#allocation63_spill] sm:$0xff] }
 0x569   : > { %3305 = vrot.lane.b32.xlu1 %v8821_v44, %s13285_s29  ;;  %3307 = vrot.lane.b32.xlu0 %v8839_v48, %s13285_s29  ;;  %v2859_v17 = vsel %vm1015_vm14, %v13287_v45, %v13286_v34  ;;  %v2857_v34 = vsel %vm1015_vm14, %v13294_v39, %v13293_v22 }
 0x56a   : > { %3273 = vrot.lane.b32.xlu2 %v8942_v3, %s13275_s28  ;;  %4068 = vmatpush.msra.mxu1 %v2915_v8  ;;  %v2858_v8 = vsel %vm1015_vm14, %v13292_v42, %v13291_v62  ;;  %v2871_v61 = vmul.f32 %v2863_v4, %v2859_v17  ;;  %v2867_v55 = vmul.f32 %v2863_v4, %v2857_v34 }
 0x56b   : > { %v9382_v14 = vpop.permute.xlu0 %3035  ;;  %v9384_v47 = vpop.permute.xlu1 %3033  ;;  %v2869_v45 = vmul.f32 %v2863_v4, %v2858_v8 }
 0x56c   : > { %13288 = vst [vmem:[#allocation89_spill] sm:$0xff] %v9382_v14  ;;  %v9386_v35 = vpop.permute.xlu2 %3079  ;;  %4069 = vmatpush.msra.mxu1 %v2913_v6 }
 0x56d   : > { %13289 = vst [vmem:[#allocation112_spill] sm:$0xff] %v9384_v47 }
 0x56e   : > { %13290 = vst [vmem:[#allocation120_spill] sm:$0xff] %v9386_v35  ;;  %4070 = vmatpush.msra.mxu1 %v2873_v50 }
 0x570   : > { %4071 = vmatpush.msra.mxu1 %v2871_v61 }
 0x571   : > { %3311 = vrot.lane.b32.xlu1 %v8873_v43, %s13285_s29  ;;  %3313 = vrot.lane.b32.xlu0 %v8889_v9, %s13285_s29 }
 0x572   : > { %3309 = vrot.lane.b32.xlu2 %v8857_v7, %s13285_s29  ;;  %4072 = vmatpush.msra.mxu1 %v2869_v45 }
 0x573   : > { %v9402_v50 = vpop.permute.xlu0 %3071  ;;  %v9404_v6 = vpop.permute.xlu1 %3069 }
 0x574   : > { %13295 = vst [vmem:[#allocation97_spill] sm:$0xff] %v9402_v50  ;;  %v9406_v17 = vpop.permute.xlu2 %3115  ;;  %4073 = vmatpush.msra.mxu1 %v2867_v55 }
 0x575   : > { %13296 = vst [vmem:[#allocation96_spill] sm:$0xff] %v9404_v6 }
 0x576   : > { %13297 = vst [vmem:[#allocation117_spill] sm:$0xff] %v9406_v17 }
 0x579   : > { %3317 = vrot.lane.b32.xlu1 %v8923_v57, %s13285_s29  ;;  %3319 = vrot.lane.b32.xlu0 %v8942_v3, %s13285_s29 }
 0x57a   : > { %3315 = vrot.lane.b32.xlu2 %v8905_v60, %s13285_s29 }
 0x57b   : > { %v9414_v8 = vpop.permute.xlu0 %3077  ;;  %v9416_v45 = vpop.permute.xlu1 %3075 }
 0x57c   : > { %13298 = vst [vmem:[#allocation118_spill] sm:$0xff] %v9414_v8  ;;  %v9418_v4 = vpop.permute.xlu2 %3121 }
 0x57d   : > { %13299 = vst [vmem:[#allocation99_spill] sm:$0xff] %v9416_v45 }
 0x57e   : > { %13300 = vst [vmem:[#allocation83_spill] sm:$0xff] %v9418_v4 }
 0x581   : > { %3353 = vrot.lane.b32.xlu1 %v8839_v48, %s13301_s18  ;;  %3355 = vrot.lane.b32.xlu0 %v8857_v7, %s13301_s18 }
 0x582   : > { %3351 = vrot.lane.b32.xlu2 %v8821_v44, %s13301_s18 }
 0x583   : > { %v9426_v34 = vpop.permute.xlu0 %3113  ;;  %v9428_v61 = vpop.permute.xlu1 %3081 }
 0x584   : > { %13302 = vst [vmem:[#allocation86_spill] sm:$0xff] %v9426_v34  ;;  %v9430_v55 = vpop.permute.xlu2 %3127 }
 0x585   : > { %13303 = vst [vmem:[#allocation91_spill] sm:$0xff] %v9428_v61 }
 0x586   : > { %13304 = vst [vmem:[#allocation114_spill] sm:$0xff] %v9430_v55 }
 0x589   : > { %3359 = vrot.lane.b32.xlu1 %v8889_v9, %s13301_s18  ;;  %3361 = vrot.lane.b32.xlu0 %v8905_v60, %s13301_s18 }
 0x58a   : > { %3357 = vrot.lane.b32.xlu2 %v8873_v43, %s13301_s18 }
 0x58b   : > { %v9438_v22 = vpop.permute.xlu0 %3119  ;;  %v9440_v39 = vpop.permute.xlu1 %3117 }
 0x58c   : > { %13305 = vst [vmem:[#allocation109_spill] sm:$0xff] %v9438_v22  ;;  %v9442_v62 = vpop.permute.xlu2 %3163 }
 0x58d   : > { %13306 = vst [vmem:[#allocation94_spill] sm:$0xff] %v9440_v39 }
 0x58e   : > { %13307 = vst [vmem:[#allocation93_spill] sm:$0xff] %v9442_v62 }
 0x591   : > { %3365 = vrot.lane.b32.xlu1 %v8942_v3, %s13301_s18  ;;  %3397 = vrot.lane.b32.xlu0 %v8821_v44, %s13308_s1 }
 0x592   : > { %3363 = vrot.lane.b32.xlu2 %v8923_v57, %s13301_s18 }
 0x593   : > { %v9450_v42 = vpop.permute.xlu0 %3125  ;;  %v9452_v27 = vpop.permute.xlu1 %3123 }
 0x594   : > { %13309 = vst [vmem:[#allocation115_spill] sm:$0xff] %v9450_v42  ;;  %v9454_v5 = vpop.permute.xlu2 %3169 }
 0x595   : > { %13310 = vst [vmem:[#allocation116_spill] sm:$0xff] %v9452_v27 }
 0x596   : > { %13311 = vst [vmem:[#allocation80_spill] sm:$0xff] %v9454_v5 }
 0x599   : > { %3401 = vrot.lane.b32.xlu1 %v8857_v7, %s13308_s1  ;;  %3403 = vrot.lane.b32.xlu0 %v8873_v43, %s13308_s1 }
 0x59a   : > { %3399 = vrot.lane.b32.xlu2 %v8839_v48, %s13308_s1 }
 0x59b   : > { %v9462_v1 = vpop.permute.xlu0 %3161  ;;  %v9464_v18 = vpop.permute.xlu1 %3159 }
 0x59c   : > { %13312 = vst [vmem:[#allocation85_spill] sm:$0xff] %v9462_v1  ;;  %v9466_v28 = vpop.permute.xlu2 %3213  ;;  %v3180_v38 = vsel %vm1351_vm15, %v9454_v5, %v9462_v1 }
 0x59d   : > { %13313 = vst [vmem:[#allocation108_spill] sm:$0xff] %v9464_v18 }
 0x59e   : > { %13314 = vst [vmem:[#allocation104_spill] sm:$0xff] %v9466_v28 }
 0x5a1   : > { %3407 = vrot.lane.b32.xlu1 %v8905_v60, %s13308_s1  ;;  %3409 = vrot.lane.b32.xlu0 %v8923_v57, %s13308_s1 }
 0x5a2   : > { %3405 = vrot.lane.b32.xlu2 %v8889_v9, %s13308_s1 }
 0x5a3   : > { %v9474_v15 = vpop.permute.xlu0 %3167  ;;  %v9476_v16 = vpop.permute.xlu1 %3165 }
 0x5a4   : > { %13315 = vst [vmem:[#allocation88_spill] sm:$0xff] %v9474_v15  ;;  %v9478_v40 = vpop.permute.xlu2 %3219  ;;  %v3179_v12 = vsel %vm1351_vm15, %v9474_v15, %v9464_v18 }
 0x5a5   : > { %13316 = vst [vmem:[#allocation87_spill] sm:$0xff] %v9478_v40  ;;  %v3189_v5 = vmul.f32 %v3185_v32, %v3179_v12  ;;  %v3133_v12 = vsel %vm1303_vm1, %v9418_v4, %v9426_v34  ;;  %v9691_v4 = vld [vmem:[%s12597_s12 + $0x8] sm:$0xff] }
 0x5a6   : > { %4074 = vmatmul.f32.vlgmr.msra.gmra.mxu1 %v9691_v4 }
 0x5a9   : > { %3443 = vrot.lane.b32.xlu1 %v8821_v44, %s13317_s22  ;;  %3445 = vrot.lane.b32.xlu0 %v8839_v48, %s13317_s22 }
 0x5aa   : > { %3411 = vrot.lane.b32.xlu2 %v8942_v3, %s13308_s1 }
 0x5ab   : > { %v9489_v11 = vpop.permute.xlu0 %3173  ;;  %v9491_v20 = vpop.permute.xlu1 %3171 }
 0x5ac   : > { %v9493_v51 = vpop.permute.xlu2 %3225  ;;  %v3182_v49 = vsel %vm1351_vm15, %v9489_v11, %v9476_v16  ;;  %v3181_v10 = vsel %vm1351_vm15, %v9491_v20, %v9442_v62 }
 0x5ad   : > { %13318 = vst [vmem:[#allocation110_spill] sm:$0xff] %v9493_v51  ;;  %v3195_v29 = vmul.f32 %v3185_v32, %v3182_v49  ;;  %v3193_v63 = vmul.f32 %v3185_v32, %v3181_v10  ;;  %v6590_v49 = vld [vmem:[%s12588_s3 + $0x12] ss:$8 sm:$0x3]  ;;  %v3191_v10 = vmul.f32 %v3185_v32, %v3180_v38 }
 0x5ae   : > { %v3139_v62 = vperm.slane %v6590_v49, 0  ;;  %v3090_v49 = vsel %vm1255_vm2, %v9428_v61, %v9355_v36  ;;  %v3088_v36 = vsel %vm1255_vm2, %v9414_v8, %v9404_v6  ;;  %v3767_v6 = vld [vmem:[%s12597_s12 + $0x10] sm:$0xff] }
 0x5af   : > { %4087 = vmatpush.msra.mxu2 %v3195_v29  ;;  %v3136_v29 = vsel %vm1303_vm1, %v9430_v55, %v9438_v22  ;;  %v3134_v22 = vsel %vm1303_vm1, %v9452_v27, %v9406_v17 }
 0x5b0   : > { %v3149_v38 = vmul.f32 %v3139_v62, %v3136_v29  ;;  %v3145_v32 = vmul.f32 %v3139_v62, %v3134_v22 }
 0x5b1   : > { %3449 = vrot.lane.b32.xlu1 %v8873_v43, %s13317_s22  ;;  %3451 = vrot.lane.b32.xlu0 %v8889_v9, %s13317_s22 }
 0x5b2   : > { %3447 = vrot.lane.b32.xlu2 %v8857_v7, %s13317_s22  ;;  %4088 = vmatpush.msra.mxu2 %v3193_v63  ;;  %v3135_v63 = vsel %vm1303_vm1, %v9450_v42, %v9440_v39 }
 0x5b3   : > { %v9524_v18 = vpop.permute.xlu0 %3217  ;;  %v9526_v15 = vpop.permute.xlu1 %3215  ;;  %v3147_v55 = vmul.f32 %v3139_v62, %v3135_v63 }
 0x5b4   : > { %13319 = vst [vmem:[#allocation111_spill] sm:$0xff] %v9524_v18  ;;  %v9528_v1 = vpop.permute.xlu2 %3261  ;;  %4089 = vmatpush.msra.mxu2 %v3191_v10 }
 0x5b5   : > { %13320 = vst [vmem:[#allocation90_spill] sm:$0xff] %v9526_v15 }
 0x5b6   : > { %13321 = vst [vmem:[#allocation74_spill] sm:$0xff] %v9528_v1  ;;  %4090 = vmatpush.msra.mxu2 %v3189_v5  ;;  %v6589_v5 = vld [vmem:[%s12588_s3 + $0x11] ss:$8 sm:$0x3] }
 0x5b7   : > { %v3093_v34 = vperm.slane %v6589_v5, 0 }
 0x5b8   : > { %4091 = vmatpush.msra.mxu2 %v3149_v38  ;;  %v3143_v38 = vmul.f32 %v3139_v62, %v3133_v12  ;;  %v3087_v62 = vsel %vm1255_vm2, %v9416_v45, %v9324_v23  ;;  %v6588_v12 = vld [vmem:[%s12588_s3 + $0x10] ss:$8 sm:$0x3] }
 0x5b9   : > { %3455 = vrot.lane.b32.xlu1 %v8923_v57, %s13317_s22  ;;  %3457 = vrot.lane.b32.xlu0 %v8942_v3, %s13317_s22  ;;  %v3103_v22 = vmul.f32 %v3093_v34, %v3090_v49  ;;  %v3099_v5 = vmul.f32 %v3093_v34, %v3088_v36  ;;  %v3047_v23 = vperm.slane %v6588_v12, 0 }
 0x5ba   : > { %3453 = vrot.lane.b32.xlu2 %v8905_v60, %s13317_s22  ;;  %4092 = vmatpush.msra.mxu2 %v3147_v55  ;;  %v3089_v55 = vsel %vm1255_vm2, %v9386_v35, %v9402_v50  ;;  %v9681_v50 = vld [vmem:[%s12597_s12] sm:$0xff] }
 0x5bb   : > { %v9555_v10 = vpop.permute.xlu0 %3223  ;;  %v9557_v29 = vpop.permute.xlu1 %3221  ;;  %v3101_v61 = vmul.f32 %v3093_v34, %v3089_v55  ;;  %4045 = vmatmul.f32.vlgmr.msra.gmra.mxu0 %v9681_v50 }
 0x5bc   : > { %13322 = vst [vmem:[#allocation98_spill] sm:$0xff] %v9555_v10  ;;  %v9559_v63 = vpop.permute.xlu2 %3267  ;;  %4093 = vmatpush.msra.mxu2 %v3145_v32  ;;  %v3044_v32 = vsel %vm12895_vm3, %v9382_v14, %v9353_v37  ;;  %v3042_v37 = vsel %vm12895_vm3, %v9289_v41, %v9320_v26 }
 0x5bd   : > { %13323 = vst [vmem:[#allocation113_spill] sm:$0xff] %v9557_v29  ;;  %v3057_v36 = vmul.f32 %v3047_v23, %v3044_v32 }
 0x5be   : > { %13324 = vst [vmem:[#allocation77_spill] sm:$0xff] %v9559_v63  ;;  %4094 = vmatpush.msra.mxu2 %v3143_v38 }
 0x5c0   : > { %4095 = vmatpush.msra.mxu2 %v3103_v22  ;;  %v3097_v22 = vmul.f32 %v3093_v34, %v3087_v62  ;;  %v3041_v34 = vsel %vm12895_vm3, %v9351_v56, %v9322_v30  ;;  %v3053_v62 = vmul.f32 %v3047_v23, %v3042_v37  ;;  %v6594_v56 = vld [vmem:[%s12588_s3 + $0x17] ss:$8 sm:$0x3] }
 0x5c1   : > { %3491 = vrot.lane.b32.xlu1 %v8839_v48, %s13325_s23  ;;  %3493 = vrot.lane.b32.xlu0 %v8857_v7, %s13325_s23  ;;  %v3331_v26 = vperm.slane %v6594_v56, 0 }
 0x5c2   : > { %3489 = vrot.lane.b32.xlu2 %v8821_v44, %s13325_s23  ;;  %4096 = vmatpush.msra.mxu2 %v3101_v61  ;;  %v3043_v61 = vsel %vm12895_vm3, %v9384_v47, %v9260_v0 }
 0x5c3   : > { %v9586_v49 = vpop.permute.xlu0 %3259  ;;  %v9588_v38 = vpop.permute.xlu1 %3227  ;;  %v3055_v14 = vmul.f32 %v3047_v23, %v3043_v61 }
 0x5c4   : > { %13326 = vst [vmem:[#allocation82_spill] sm:$0xff] %v9586_v49  ;;  %v9590_v55 = vpop.permute.xlu2 %3273  ;;  %4097 = vmatpush.msra.mxu2 %v3099_v5 }
 0x5c5   : > { %13327 = vst [vmem:[#allocation106_spill] sm:$0xff] %v9588_v38 }
 0x5c6   : > { %13328 = vst [vmem:[#allocation101_spill] sm:$0xff] %v9590_v55  ;;  %4098 = vmatpush.msra.mxu2 %v3097_v22  ;;  %v3051_v22 = vmul.f32 %v3047_v23, %v3041_v34 }
 0x5c8   : > { %4099 = vmatpush.msra.mxu2 %v3057_v36 }
 0x5c9   : > { %3499 = vrot.lane.b32.xlu0 %v8905_v60, %s13325_s23  ;;  %3497 = vrot.lane.b32.xlu1 %v8889_v9, %s13325_s23 }
 0x5ca   : > { %3495 = vrot.lane.b32.xlu2 %v8873_v43, %s13325_s23  ;;  %4100 = vmatpush.msra.mxu2 %v3055_v14 }
 0x5cb   : > { %v9610_v12 = vpop.permute.xlu0 %3265  ;;  %v9612_v5 = vpop.permute.xlu1 %3263 }
 0x5cc   : > { %13329 = vst [vmem:[#allocation84_spill] sm:$0xff] %v9610_v12  ;;  %v9614_v32 = vpop.permute.xlu2 %3309  ;;  %4101 = vmatpush.msra.mxu2 %v3053_v62  ;;  %v3278_v17 = vsel %vm1455_vm5, %v9610_v12, %v9590_v55  ;;  %v9727_v12 = vld [vmem:[%s12597_s12 + $0x38] sm:$0xff] }
 0x5cd   : > { %13330 = vst [vmem:[#allocation68_spill] sm:$0xff] %v9612_v5  ;;  %4048 = vmatmul.f32.gmra.mxu0 %v9727_v12 }
 0x5ce   : > { %4102 = vmatpush.msra.mxu2 %v3051_v22 }
 0x5cf   : > { %4103 = vmatmul.f32.vlgmr.msra.gmra.mxu2 %v3767_v6 }
 0x5d1   : > { %3535 = vrot.lane.b32.xlu0 %v8821_v44, %s13331_s2  ;;  %3503 = vrot.lane.b32.xlu1 %v8942_v3, %s13325_s23 }
 0x5d2   : > { %3501 = vrot.lane.b32.xlu2 %v8923_v57, %s13325_s23 }
 0x5d3   : > { %v9622_v14 = vpop.permute.xlu0 %3271  ;;  %v9624_v37 = vpop.permute.xlu1 %3269 }
 0x5d4   : > { %13332 = vst [vmem:[#allocation71_spill] sm:$0xff] %v9622_v14  ;;  %v9626_v61 = vpop.permute.xlu2 %3315 }
 0x5d5   : > { %13333 = vst [vmem:[#allocation76_spill] sm:$0xff] %v9624_v37 }
 0x5d6   : > { %13334 = vst [vmem:[#allocation79_spill] sm:$0xff] %v9626_v61 }
 0x5d9   : > { %3541 = vrot.lane.b32.xlu0 %v8873_v43, %s13331_s2  ;;  %3539 = vrot.lane.b32.xlu1 %v8857_v7, %s13331_s2 }
 0x5da   : > { %3537 = vrot.lane.b32.xlu2 %v8839_v48, %s13331_s2 }
 0x5db   : > { %v9634_v23 = vpop.permute.xlu0 %3307  ;;  %v9636_v36 = vpop.permute.xlu1 %3305 }
 0x5dc   : > { %13335 = vst [vmem:[#allocation78_spill] sm:$0xff] %v9636_v36  ;;  %v9638_v34 = vpop.permute.xlu2 %3351  ;;  %v3322_v35 = vsel %vm1503_vm4, %v9634_v23, %v9626_v61 }
 0x5e1   : > { %3547 = vrot.lane.b32.xlu0 %v8923_v57, %s13331_s2  ;;  %3545 = vrot.lane.b32.xlu1 %v8905_v60, %s13331_s2 }
 0x5e2   : > { %3543 = vrot.lane.b32.xlu2 %v8889_v9, %s13331_s2 }
 0x5e3   : > { %v9646_v62 = vpop.permute.xlu0 %3313  ;;  %v9648_v22 = vpop.permute.xlu1 %3311 }
 0x5e4   : > { %13336 = vst [vmem:[#allocation81_spill] sm:$0xff] %v9646_v62  ;;  %v9650_v30 = vpop.permute.xlu2 %3357  ;;  %v3321_v6 = vsel %vm1503_vm4, %v9636_v36, %v9646_v62 }
 0x5e5   : > { %v3335_v62 = vmul.f32 %v3331_v26, %v3321_v6 }
 0x5e9   : > { %3583 = vrot.lane.b32.xlu0 %v8839_v48, %s13337_s5  ;;  %3581 = vrot.lane.b32.xlu1 %v8821_v44, %s13337_s5 }
 0x5ea   : > { %3549 = vrot.lane.b32.xlu2 %v8942_v3, %s13331_s2 }
 0x5eb   : > { %v9661_v41 = vpop.permute.xlu0 %3319  ;;  %v9663_v0 = vpop.permute.xlu1 %3317 }
 0x5ec   : > { %v9665_v47 = vpop.permute.xlu2 %3363  ;;  %v3324_v45 = vsel %vm1503_vm4, %v9648_v22, %v9661_v41  ;;  %v3323_v56 = vsel %vm1503_vm4, %v9614_v32, %v9663_v0 }
 0x5ed   : > { %v3341_v8 = vmul.f32 %v3331_v26, %v3324_v45  ;;  %v3339_v45 = vmul.f32 %v3331_v26, %v3323_v56  ;;  %v3337_v56 = vmul.f32 %v3331_v26, %v3322_v35  ;;  %v3774_v35 = vld [vmem:[%s12597_s12 + $0x48] sm:$0xff]  ;;  %v3276_v26 = vsel %vm1455_vm5, %v9528_v1, %v9624_v37 }
 0x5ee   : > { %4106 = vmatmul.f32.gmra.mxu2 %v3774_v35 }
 0x5ef   : > { %4116 = vmatpush.msra.mxu3 %v3341_v8  ;;  %v6593_v8 = vld [vmem:[%s12588_s3 + $0x16] ss:$8 sm:$0x3] }
 0x5f0   : > { %v3285_v36 = vperm.slane %v6593_v8, 0  ;;  %v9737_v8 = vld [vmem:[%s12597_s12 + $0x40] sm:$0xff] }
 0x5f1   : > { %3589 = vrot.lane.b32.xlu0 %v8889_v9, %s13337_s5  ;;  %3587 = vrot.lane.b32.xlu1 %v8873_v43, %s13337_s5 }
 0x5f2   : > { %3585 = vrot.lane.b32.xlu2 %v8857_v7, %s13337_s5  ;;  %4117 = vmatpush.msra.mxu3 %v3339_v45  ;;  %v3277_v45 = vsel %vm1455_vm5, %v9612_v5, %v9622_v14  ;;  %v3295_v55 = vmul.f32 %v3285_v36, %v3278_v17  ;;  %v3275_v17 = vsel %vm1455_vm5, %v9586_v49, %v9559_v63  ;;  %v13343_v14 = vld [vmem:[#allocation70_spill] sm:$0xff]  ;;  %v13344_v5 = vld [vmem:[#allocation35_spill] sm:$0xff] }
 0x5f3   : > { %v9710_v27 = vpop.permute.xlu0 %3355  ;;  %v9712_v39 = vpop.permute.xlu1 %3353  ;;  %v3293_v6 = vmul.f32 %v3285_v36, %v3277_v45  ;;  %4077 = vmatmul.f32.gmra.mxu1 %v9737_v8  ;;  %v3289_v49 = vmul.f32 %v3285_v36, %v3275_v17  ;;  %v2807_v61 = vsel %vm12894_vm7, %v13344_v5, %v13343_v14 }
 0x5f4   : > { %v9715_v42 = vpop.permute.xlu2 %3399  ;;  %4118 = vmatpush.msra.mxu3 %v3337_v56  ;;  %v3232_v56 = vsel %vm1407_vm6, %v9478_v40, %v9588_v38  ;;  %v9773_v40 = vld [vmem:[%s12597_s12 + $0x70] sm:$0xff] }
 0x5f5   : > { %4051 = vmatmul.f32.gmra.mxu0 %v9773_v40 }
 0x5f6   : > { %4119 = vmatpush.msra.mxu3 %v3335_v62  ;;  %v3291_v62 = vmul.f32 %v3285_v36, %v3276_v26  ;;  %v3781_v26 = vld [vmem:[%s12597_s12 + $0x80] sm:$0xff]  ;;  %v3230_v36 = vsel %vm1407_vm6, %v9526_v15, %v9555_v10  ;;  %v3768_v10 = vld [vmem:[%s12597_s12 + $0x18] sm:$0xff] }
 0x5f7   : > { %4109 = vmatmul.f32.gmra.mxu2 %v3781_v26  ;;  %v13340_v15 = vld [vmem:[#allocation20_spill] sm:$0xff] }
 0x5f8   : > { %4120 = vmatpush.msra.mxu3 %v3295_v55  ;;  %v6592_v55 = vld [vmem:[%s12588_s3 + $0x15] ss:$8 sm:$0x3] }
 0x5f9   : > { %3595 = vrot.lane.b32.xlu0 %v8942_v3, %s13337_s5  ;;  %3593 = vrot.lane.b32.xlu1 %v8923_v57, %s13337_s5  ;;  %v3239_v37 = vperm.slane %v6592_v55, 0  ;;  %v9783_v55 = vld [vmem:[%s12597_s12 + $0x78] sm:$0xff] }
 0x5fa   : > { %3591 = vrot.lane.b32.xlu2 %v8905_v60, %s13337_s5  ;;  %4121 = vmatpush.msra.mxu3 %v3293_v6  ;;  %v3231_v6 = vsel %vm1407_vm6, %v9524_v18, %v9493_v51  ;;  %v13341_v51 = vld [vmem:[#allocation69_spill] sm:$0xff]  ;;  %v13342_v18 = vld [vmem:[#allocation26_spill] sm:$0xff] }
 0x5fb   : > { %v9756_v35 = vpop.permute.xlu0 %3361  ;;  %v9758_v45 = vpop.permute.xlu1 %3359  ;;  %v3249_v38 = vmul.f32 %v3239_v37, %v3232_v56  ;;  %v3247_v17 = vmul.f32 %v3239_v37, %v3231_v6  ;;  %4080 = vmatmul.f32.gmra.mxu1 %v9783_v55 }
 0x5fc   : > { %v9761_v63 = vpop.permute.xlu2 %3405  ;;  %4122 = vmatpush.msra.mxu3 %v3291_v62 }
 0x5fe   : > { %4123 = vmatpush.msra.mxu3 %v3289_v49  ;;  %v3229_v49 = vsel %vm1407_vm6, %v9466_v28, %v9557_v29  ;;  %v3788_v29 = vld [vmem:[%s12597_s12 + $0xb8] sm:$0xff] }
 0x5ff   : > { %v3243_v6 = vmul.f32 %v3239_v37, %v3229_v49  ;;  %4112 = vmatmul.f32.gmra.mxu2 %v3788_v29  ;;  %v2810_v29 = vsel %vm12894_vm7, %v9014_v53, %v9150_v54  ;;  %v2809_v54 = vsel %vm12894_vm7, %v13340_v15, %v9086_v31  ;;  %v13347_v31 = vld [vmem:[#allocation16_spill] sm:$0xff] }
 0x600   : > { %4124 = vmatpush.msra.mxu3 %v3249_v38  ;;  %v3245_v38 = vmul.f32 %v3239_v37, %v3230_v36  ;;  %v9808_v36 = vld [vmem:[%s12597_s12 + $0xa8] sm:$0xff] }
 0x601   : > { %3631 = vrot.lane.b32.xlu0 %v8857_v7, %s13338_s6  ;;  %3629 = vrot.lane.b32.xlu1 %v8839_v48, %s13338_s6 }
 0x602   : > { %3627 = vrot.lane.b32.xlu2 %v8821_v44, %s13338_s6  ;;  %4125 = vmatpush.msra.mxu3 %v3247_v17  ;;  %v9815_v17 = vld [vmem:[%s12597_s12 + $0xb0] sm:$0xff] }
 0x603   : > { %v9795_v62 = vpop.permute.xlu0 %3397  ;;  %v9797_v56 = vpop.permute.xlu1 %3365  ;;  %4054 = vmatmul.f32.gmra.mxu0 %v9808_v36  ;;  %4083 = vmatmul.f32.gmra.mxu1 %v9815_v17 }
 0x604   : > { %v9800_v26 = vpop.permute.xlu2 %3411  ;;  %4126 = vmatpush.msra.mxu3 %v3245_v38  ;;  %v13339_v38 = vld [vmem:[#allocation52_spill] sm:$0xff] }
 0x606   : > { %4127 = vmatpush.msra.mxu3 %v3243_v6  ;;  %v2818_v6 = vperm.slane %v13339_v38, 1  ;;  %v2808_v38 = vsel %vm12894_vm7, %v13342_v18, %v13341_v51  ;;  %v13346_v18 = vld [vmem:[#allocation50_spill] sm:$0xff] }
 0x607   : > { %v2764_v51 = vsel %vm12893_vm8, %v13347_v31, %v13346_v18  ;;  %v13349_v18 = vld [vmem:[#allocation24_spill] sm:$0xff] }
 0x608   : > { %4128 = vmatpush.msra.mxu3 %v8873_v43  ;;  %v2828_v53 = vmul.f32 %v2818_v6, %v2810_v29  ;;  %v2826_v1 = vmul.f32 %v2818_v6, %v2809_v54  ;;  %v2824_v15 = vmul.f32 %v2818_v6, %v2808_v38  ;;  %v2822_v14 = vmul.f32 %v2818_v6, %v2807_v61  ;;  %v13348_v6 = vld [vmem:[#allocation73_spill] sm:$0xff] }
 0x609   : > { %3637 = vrot.lane.b32.xlu0 %v8905_v60, %s13338_s6  ;;  %3635 = vrot.lane.b32.xlu1 %v8889_v9, %s13338_s6  ;;  %v2772_v54 = vperm.slane %v9177_v21, 1  ;;  %v2761_v21 = vsel %vm12893_vm8, %v13349_v18, %v13348_v6  ;;  %v13354_v6 = vld [vmem:[#allocation56_spill] sm:$0xff]  ;;  %v13355_v18 = vld [vmem:[#allocation31_spill] sm:$0xff] }
 0x60a   : > { %3633 = vrot.lane.b32.xlu2 %v8873_v43, %s13338_s6  ;;  %4129 = vmatpush.msra.mxu3 %v8857_v7 }
 0x60b   : > { %v9828_v37 = vpop.permute.xlu0 %3403  ;;  %v9830_v49 = vpop.permute.xlu1 %3401  ;;  %v2782_v38 = vmul.f32 %v2772_v54, %v2764_v51 }
 0x60c   : > { %v9834_v28 = vpop.permute.xlu2 %3447  ;;  %4130 = vmatpush.msra.mxu3 %v8839_v48 }
 0x60e   : > { %4131 = vmatpush.msra.mxu3 %v8821_v44 }
 0x60f   : > { %4132 = vmatmul.f32.vlgmr.msra.gmra.mxu3 %v3768_v10 }
 0x610   : > { %4232 = vmatpush.msrb.mxu3 %v2828_v53  ;;  %v2763_v53 = vsel %vm12893_vm8, %v8978_v52, %v9108_v25 }
 0x611   : > { %3673 = vrot.lane.b32.xlu0 %v8821_v44, %s13345_s25  ;;  %3641 = vrot.lane.b32.xlu1 %v8942_v3, %s13338_s6  ;;  %v2780_v61 = vmul.f32 %v2772_v54, %v2763_v53  ;;  %v3782_v53 = vld [vmem:[%s12597_s12 + $0x88] sm:$0xff] }
 0x612   : > { %4233 = vmatpush.msrb.mxu3 %v2826_v1  ;;  %3639 = vrot.lane.b32.xlu2 %v8923_v57, %s13338_s6  ;;  %v3775_v1 = vld [vmem:[%s12597_s12 + $0x50] sm:$0xff] }
 0x613   : > { %v9863_v10 = vpop.permute.xlu0 %3409  ;;  %v9865_v29 = vpop.permute.xlu1 %3407 }
 0x614   : > { %4234 = vmatpush.msrb.mxu3 %v2824_v15  ;;  %v9867_v5 = vpop.permute.xlu2 %3453  ;;  %v2762_v15 = vsel %vm12893_vm8, %v8974_v59, %v9050_v13  ;;  %v13350_v59 = vld [vmem:[#allocation64_spill] sm:$0xff]  ;;  %v13351_v13 = vld [vmem:[#allocation23_spill] sm:$0xff] }
 0x615   : > { %v2778_v52 = vmul.f32 %v2772_v54, %v2762_v15  ;;  %v2718_v25 = vsel %vm13352_vm10, %v13351_v13, %v13350_v59  ;;  %v2717_v15 = vsel %vm13353_vm0, %v9012_v58, %v9094_v19  ;;  %v13358_v59 = vld [vmem:[#allocation36_spill] sm:$0xff]  ;;  %vm13359_vm10 = vmmov %vm13353_vm0  ;;  %v13360_v19 = vld [vmem:[#allocation42_spill] sm:$0xff]  ;;  %vm13362_vm0 = vcmp.lt.s32.totalorder %v7218_v46, 34 }
 0x616   : > { %4235 = vmatpush.msrb.mxu3 %v2822_v14  ;;  %v13361_v13 = vld [vmem:[#allocation17_spill] sm:$0xff] }
 0x617   : > { %4135 = vmatmul.f32.gmra.mxu3 %v3775_v1  ;;  %v2776_v1 = vmul.f32 %v2772_v54, %v2761_v21  ;;  %v13357_v21 = vld [vmem:[#allocation25_spill] sm:$0xff] }
 0x618   : > { %4236 = vmatpush.msrb.mxu3 %v2782_v38  ;;  %v2726_v38 = vperm.slane %v9211_v2, 1  ;;  %v2715_v2 = vsel %vm13359_vm10, %v13358_v59, %v13357_v21  ;;  %v13365_v59 = vld [vmem:[#allocation67_spill] sm:$0xff]  ;;  %vm13367_vm10 = vmmov %vm13362_vm0 }
 0x619   : > { %3679 = vrot.lane.b32.xlu0 %v8873_v43, %s13345_s25  ;;  %3677 = vrot.lane.b32.xlu1 %v8857_v7, %s13345_s25 }
 0x61a   : > { %4237 = vmatpush.msrb.mxu3 %v2780_v61  ;;  %3675 = vrot.lane.b32.xlu2 %v8839_v48, %s13345_s25  ;;  %v2736_v61 = vmul.f32 %v2726_v38, %v2718_v25  ;;  %v2734_v54 = vmul.f32 %v2726_v38, %v2717_v15  ;;  %v2672_v25 = vsel %vm13362_vm0, %v13361_v13, %v13360_v19  ;;  %v13366_v19 = vld [vmem:[#allocation18_spill] sm:$0xff]  ;;  %v13369_v13 = vld [vmem:[#allocation33_spill] sm:$0xff] }
 0x61b   : > { %v9895_v31 = vpop.permute.xlu0 %3445  ;;  %v9897_v51 = vpop.permute.xlu1 %3443 }
 0x61c   : > { %4238 = vmatpush.msrb.mxu3 %v2778_v52  ;;  %v9899_v14 = vpop.permute.xlu2 %3489  ;;  %v2716_v52 = vsel %vm13356_vm9, %v13355_v18, %v13354_v6  ;;  %v3789_v6 = vld [vmem:[%s12597_s12 + $0xc0] sm:$0xff]  ;;  %v2680_v18 = vperm.slane %v9248_v33, 1  ;;  %vm13364_vm9 = vmmov %vm13362_vm0 }
 0x61d   : > { %v2732_v58 = vmul.f32 %v2726_v38, %v2716_v52  ;;  %v13363_v52 = vld [vmem:[#allocation27_spill] sm:$0xff] }
 0x61e   : > { %4239 = vmatpush.msrb.mxu3 %v2776_v1  ;;  %v2690_v21 = vmul.f32 %v2680_v18, %v2672_v25 }
 0x61f   : > { %4138 = vmatmul.f32.gmra.mxu3 %v3782_v53 }
 0x620   : > { %4240 = vmatpush.msrb.mxu3 %v2736_v61  ;;  %v2730_v61 = vmul.f32 %v2726_v38, %v2715_v2  ;;  %v13368_v2 = vld [vmem:[#allocation59_spill] sm:$0xff] }
 0x621   : > { %3685 = vrot.lane.b32.xlu0 %v8923_v57, %s13345_s25  ;;  %3683 = vrot.lane.b32.xlu1 %v8905_v60, %s13345_s25  ;;  %v2669_v33 = vsel %vm13362_vm0, %v13369_v13, %v13368_v2 }
 0x622   : > { %4241 = vmatpush.msrb.mxu3 %v2734_v54  ;;  %3681 = vrot.lane.b32.xlu2 %v8889_v9, %s13345_s25  ;;  %v2671_v54 = vsel %vm13364_vm9, %v13363_v52, %v9074_v24  ;;  %v2684_v52 = vmul.f32 %v2680_v18, %v2669_v33  ;;  %vm13372_vm9 = vcmp.lt.s32.totalorder %v7218_v46, 110 }
 0x623   : > { %v9927_v1 = vpop.permute.xlu0 %3451  ;;  %v9929_v53 = vpop.permute.xlu1 %3449  ;;  %v2688_v38 = vmul.f32 %v2680_v18, %v2671_v54  ;;  %vm13374_vm0 = vmmov %vm13372_vm9 }
 0x624   : > { %4242 = vmatpush.msrb.mxu3 %v2732_v58  ;;  %v3496_v15 = vpop.permute.xlu2 %3495  ;;  %v2670_v58 = vsel %vm13367_vm10, %v13366_v19, %v13365_v59  ;;  %v6598_v59 = vld [vmem:[%s12588_s3 + $0x23] ss:$8 sm:$0x3]  ;;  %vm13373_vm10 = vmmov %vm13372_vm9 }
 0x625   : > { %v2686_v24 = vmul.f32 %v2680_v18, %v2670_v58  ;;  %v3515_v58 = vperm.slane %v6598_v59, 0  ;;  %vm13375_vm8 = vmmov %vm13374_vm0 }
 0x626   : > { %4243 = vmatpush.msrb.mxu3 %v2730_v61  ;;  %vm13376_vm7 = vmmov %vm13374_vm0 }
 0x627   : > { %4141 = vmatmul.f32.gmra.mxu3 %v3789_v6  ;;  %vm13377_vm3 = vmmov %vm13374_vm0 }
 0x628   : > { %4244 = vmatpush.msrb.mxu3 %v2690_v21  ;;  %v3993_v21 = vld [vmem:[%s13371_s13] sm:$0xff] }
 0x629   : > { %3721 = vrot.lane.b32.xlu0 %v8839_v48, %s13370_s4  ;;  %3719 = vrot.lane.b32.xlu1 %v8821_v44, %s13370_s4 }
 0x62a   : > { %4245 = vmatpush.msrb.mxu3 %v2688_v38  ;;  %3687 = vrot.lane.b32.xlu2 %v8942_v3, %s13345_s25  ;;  %v3516_v38 = vperm.slane %v6598_v59, 1 }
 0x62b   : > { %v3458_v25 = vpop.permute.xlu0 %3457  ;;  %v9953_v61 = vpop.permute.xlu1 %3455 }
 0x62c   : > { %4246 = vmatpush.msrb.mxu3 %v2686_v24  ;;  %v3502_v6 = vpop.permute.xlu2 %3501 }
 0x62e   : > { %4247 = vmatpush.msrb.mxu3 %v2684_v52 }
 0x62f   : > { %4248 = vmatmul.f32.vlgmr.msrb.gmra.mxu3 %v9681_v50 }
 0x631   : > { %3727 = vrot.lane.b32.xlu0 %v8889_v9, %s13370_s4  ;;  %3725 = vrot.lane.b32.xlu1 %v8873_v43, %s13370_s4  ;;  %v3996_v9 = vld [vmem:[%s13371_s13 + $0x18] sm:$0xff] }
 0x632   : > { %3723 = vrot.lane.b32.xlu2 %v8857_v7, %s13370_s4  ;;  %v3995_v7 = vld [vmem:[%s13371_s13 + $0x10] sm:$0xff] }
 0x633   : > { %v3494_v44 = vpop.permute.xlu0 %3493  ;;  %v3492_v48 = vpop.permute.xlu1 %3491 }
 0x634   : > { %v9962_v54 = vpop.permute.xlu2 %3537  ;;  %v3507_v13 = vsel %vm13372_vm9, %v3494_v44, %v3502_v6  ;;  %v3511_v52 = vsel %vm13375_vm8, %v3502_v6, %v3494_v44  ;;  %vm13378_vm9 = vmmov %vm13374_vm0  ;;  %v6597_v44 = vld [vmem:[%s12588_s3 + $0x22] ss:$8 sm:$0x3]  ;;  %vm13380_vm8 = vcmp.lt.s32.totalorder %v7218_v46, 111 }
 0x635   : > { %v3524_v6 = vmul.f32 %v3516_v38, %v3511_v52 }
 0x637   : > { %4251 = vmatmul.f32.gmra.mxu3 %v9727_v12  ;;  %v3994_v12 = vld [vmem:[%s13371_s13 + $0x8] sm:$0xff]  ;;  %s13535_s13 = smov 34  }
 0x639   : > { %3733 = vrot.lane.b32.xlu0 %v8942_v3, %s13370_s4  ;;  %3731 = vrot.lane.b32.xlu1 %v8923_v57, %s13370_s4 }
 0x63a   : > { %3729 = vrot.lane.b32.xlu2 %v8905_v60, %s13370_s4  ;;  %v3523_v60 = vmul.f32 %v3515_v58, %v3507_v13  ;;  %s13540_s4 = smov 33  }
 0x63b   : > { %v3500_v50 = vpop.permute.xlu0 %3499  ;;  %v3498_v43 = vpop.permute.xlu1 %3497 }
 0x63c   : > { %v9971_v18 = vpop.permute.xlu2 %3543  ;;  %v3510_v59 = vsel %vm13377_vm3, %v3500_v50, %v3492_v48  ;;  %vm13381_vm3 = vmmov %vm13380_vm8 }
 0x63d   : > { %v3466_v13 = vsel %vm13381_vm3, %v3458_v25, %v9929_v53 }
 0x63f   : > { %4254 = vmatmul.f32.gmra.mxu3 %v9773_v40 }
 0x641   : > { %4009 = vperm.xlu0 %6690, %v3995_v7   ;;  %4004 = vperm.xlu1 %6691, %v3994_v12  }
 0x642   : > { %3999 = vperm.xlu2 %6689, %v3993_v21   ;;  %v3506_v21 = vsel %vm13376_vm7, %v3492_v48, %v3500_v50  ;;  %vm13379_vm7 = vmmov %vm13374_vm0  ;;  %v3462_v50 = vsel %vm13380_vm8, %v9929_v53, %v3458_v25 }
 0x643   : > { %v9986_v19 = vpop.permute.xlu0 %3535  ;;  %v3504_v2 = vpop.permute.xlu1 %3503  ;;  %v3521_v48 = vmul.f32 %v3515_v58, %v3506_v21 }
 0x644   : > { %v9990_v40 = vpop.permute.xlu2 %3549  ;;  %v3508_v33 = vsel %vm13373_vm10, %v3496_v15, %v3504_v2  ;;  %v3512_v24 = vsel %vm13374_vm0, %v3504_v2, %v3496_v15  ;;  %v3505_v15 = vsel %vm13378_vm9, %v9899_v14, %v3498_v43  ;;  %v3522_v2 = vmul.f32 %v3516_v38, %v3510_v59  ;;  %vm13382_vm10 = vmmov %vm13381_vm3  ;;  %v6596_v59 = vld [vmem:[%s12588_s3 + $0x21] ss:$8 sm:$0x3] }
 0x645   : > { %v3525_v7 = vmul.f32 %v3515_v58, %v3508_v33  ;;  %v3526_v12 = vmul.f32 %v3516_v38, %v3512_v24  ;;  %v3519_v52 = vmul.f32 %v3515_v58, %v3505_v15  ;;  %vm13383_vm0 = vmmov %vm13381_vm3 }
 0x646   : > { %v3465_v53 = vsel %vm13383_vm0, %v9953_v61, %v9834_v28  ;;  %vm13384_vm9 = vmmov %vm13383_vm0 }
 0x647   : > { %4257 = vmatmul.f32.gmra.mxu3 %v9808_v36  ;;  %4145 = vmatpush.msrb.mxu0 %v3525_v7  ;;  %v3509_v36 = vsel %vm13379_vm7, %v3498_v43, %v9899_v14  ;;  %v3469_v14 = vperm.slane %v6597_v44, 0  ;;  %v3470_v7 = vperm.slane %v6597_v44, 1  ;;  %v3460_v58 = vsel %vm13384_vm9, %v9895_v31, %v9867_v5  ;;  %vm13385_vm7 = vmmov %vm13383_vm0 }
 0x648   : > { %4348 = vmatpush.msra.mxu3 %v3526_v12  ;;  %vm13386_vm8 = vmmov %vm13383_vm0 }
 0x649   : > { %4146 = vmatpush.msrb.mxu0 %v3523_v60  ;;  %v3461_v60 = vsel %vm13382_vm10, %v9834_v28, %v9953_v61  ;;  %v3479_v25 = vmul.f32 %v3469_v14, %v3462_v50  ;;  %v3480_v12 = vmul.f32 %v3470_v7, %v3466_v13  ;;  %v3459_v28 = vsel %vm13386_vm8, %v9897_v51, %v9927_v1  ;;  %vm13387_vm3 = vmmov %vm13383_vm0 }
 0x64a   : > { %4014 = vperm.xlu2 %6689, %v3996_v9   ;;  %4349 = vmatpush.msra.mxu3 %v3524_v6  ;;  %v3520_v9 = vmul.f32 %v3516_v38, %v3509_v36  ;;  %v3464_v38 = vsel %vm13385_vm7, %v9867_v5, %v9895_v31  ;;  %v3477_v21 = vmul.f32 %v3469_v14, %v3461_v60  ;;  %vm13388_vm10 = vcmp.lt.s32.totalorder %v7218_v46, 112 }
 0x64b   : > { %v10021_v33 = vpop.permute.xlu0 %3541  ;;  %4147 = vmatpush.msrb.mxu0 %v3521_v48  ;;  %v10023_v24 = vpop.permute.xlu1 %3539  ;;  %v3478_v61 = vmul.f32 %v3470_v7, %v3465_v53  ;;  %v3463_v15 = vsel %vm13387_vm3, %v9927_v1, %v9897_v51  ;;  %v3475_v5 = vmul.f32 %v3469_v14, %v3460_v58  ;;  %v3416_v31 = vsel %vm13388_vm10, %v9828_v37, %v9800_v26  ;;  %vm13389_vm0 = vmmov %vm13388_vm10  ;;  %v6595_v53 = vld [vmem:[%s12588_s3 + $0x20] ss:$8 sm:$0x3] }
 0x64c   : > { %v10029_v43 = vpop.permute.xlu2 %3585  ;;  %4350 = vmatpush.msra.mxu3 %v3522_v2  ;;  %v3476_v6 = vmul.f32 %v3470_v7, %v3464_v38  ;;  %v3420_v44 = vsel %vm13389_vm0, %v9800_v26, %v9828_v37  ;;  %v3473_v51 = vmul.f32 %v3469_v14, %v3459_v28  ;;  %v3423_v1 = vperm.slane %v6596_v59, 0  ;;  %vm13390_vm9 = vmmov %vm13389_vm0 }
 0x64d   : > { %4148 = vmatpush.msrb.mxu0 %v3519_v52  ;;  %v3415_v50 = vsel %vm13390_vm9, %v9830_v49, %v9863_v10  ;;  %v3474_v13 = vmul.f32 %v3470_v7, %v3463_v15  ;;  %v3424_v52 = vperm.slane %v6596_v59, 1  ;;  %vm13391_vm7 = vmmov %vm13389_vm0  ;;  %vm13395_vm9 = vcmp.lt.s32.totalorder %v7218_v46, 113 }
 0x64e   : > { %4351 = vmatpush.msra.mxu3 %v3520_v9  ;;  %v3419_v26 = vsel %vm13391_vm7, %v9863_v10, %v9830_v49  ;;  %v3433_v37 = vmul.f32 %v3423_v1, %v3416_v31  ;;  %vm13392_vm8 = vmmov %vm13389_vm0  ;;  %v3431_v7 = vmul.f32 %v3423_v1, %v3415_v50  ;;  %v3378_v15 = vperm.slane %v6595_v53, 1  ;;  %v13403_v50 = vld [vmem:[#allocation37_spill] sm:$0xff] }
 0x64f   : > { %4149 = vmatpush.msrb.mxu0 %v3479_v25  ;;  %v3414_v14 = vsel %vm13392_vm8, %v9715_v42, %v9865_v29  ;;  %v3434_v60 = vmul.f32 %v3424_v52, %v3420_v44  ;;  %vm13393_vm3 = vmmov %vm13389_vm0  ;;  %v3432_v10 = vmul.f32 %v3424_v52, %v3419_v26  ;;  %v3417_v25 = vsel %vm13389_vm0, %v9761_v63, %v9795_v62 }
 0x650   : > { %4352 = vmatpush.msra.mxu3 %v3480_v12  ;;  %v3418_v9 = vsel %vm13393_vm3, %v9865_v29, %v9715_v42  ;;  %vm13394_vm10 = vmmov %vm13389_vm0  ;;  %v3429_v42 = vmul.f32 %v3423_v1, %v3414_v14  ;;  %v3370_v29 = vsel %vm13395_vm9, %v9650_v30, %v9797_v56  ;;  %v3428_v59 = vmul.f32 %v3424_v52, %v3417_v25  ;;  %v13407_v25 = vld [vmem:[#allocation107_spill] sm:$0xff] }
 0x651   : > { %4150 = vmatpush.msrb.mxu0 %v3477_v21  ;;  %v3413_v49 = vsel %vm13394_vm10, %v9795_v62, %v9761_v63  ;;  %v3430_v58 = vmul.f32 %v3424_v52, %v3418_v9  ;;  %vm13396_vm7 = vmmov %vm13395_vm9  ;;  %v3377_v62 = vperm.slane %v6595_v53, 0  ;;  %v6724_v52 = vld [vmem:[%s12588_s3 + $0x7] ss:$8 sm:$0x3]  ;;  %v13406_v9 = vld [vmem:[#allocation40_spill] sm:$0xff] }
 0x652   : > { %4353 = vmatpush.msra.mxu3 %v3478_v61  ;;  %v3374_v12 = vsel %vm13396_vm7, %v9797_v56, %v9650_v30  ;;  %v3427_v63 = vmul.f32 %v3423_v1, %v3413_v49  ;;  %vm13397_vm8 = vmmov %vm13396_vm7  ;;  %v3002_v26 = vperm.slane %v6724_v52, 1 }
 0x653   : > { %v10062_v36 = vpop.permute.xlu0 %3547  ;;  %4151 = vmatpush.msrb.mxu0 %v3475_v5  ;;  %v10064_v48 = vpop.permute.xlu1 %3545  ;;  %v3369_v28 = vsel %vm13397_vm8, %v9710_v27, %v9665_v47  ;;  %vm13398_vm3 = vmmov %vm13396_vm7  ;;  %v3387_v56 = vmul.f32 %v3377_v62, %v3370_v29  ;;  %v3388_v31 = vmul.f32 %v3378_v15, %v3374_v12  ;;  %v13409_v12 = vld [vmem:[#allocation49_spill] sm:$0xff]  ;;  %vm13435_vm8 = vcmp.lt.s32.totalorder %v7218_v46, 95 }
 0x654   : > { %v10070_v2 = vpop.permute.xlu2 %3591  ;;  %4354 = vmatpush.msra.mxu3 %v3476_v6  ;;  %v3373_v30 = vsel %vm13398_vm3, %v9665_v47, %v9710_v27  ;;  %vm13399_vm10 = vmmov %vm13398_vm3  ;;  %v3385_v44 = vmul.f32 %v3377_v62, %v3369_v28 }
 0x655   : > { %4152 = vmatpush.msrb.mxu0 %v3473_v51  ;;  %v3368_v5 = vsel %vm13399_vm10, %v9712_v39, %v9756_v35  ;;  %vm13400_vm0 = vmmov %vm13398_vm3  ;;  %v3386_v27 = vmul.f32 %v3378_v15, %v3373_v30 }
 0x656   : > { %4355 = vmatpush.msra.mxu3 %v3474_v13  ;;  %v3372_v6 = vsel %vm13400_vm0, %v9756_v35, %v9712_v39  ;;  %vm13401_vm9 = vmmov %vm13400_vm0  ;;  %v3383_v1 = vmul.f32 %v3377_v62, %v3368_v5  ;;  %v13404_v13 = vld [vmem:[#allocation38_spill] sm:$0xff] }
 0x657   : > { %4153 = vmatpush.msrb.mxu0 %v3433_v37  ;;  %v3367_v47 = vsel %vm13401_vm9, %v9638_v34, %v9758_v45  ;;  %vm13402_vm7 = vmmov %vm13400_vm0  ;;  %v2994_v39 = vsel %vm1159_vm11, %v13404_v13, %v13403_v50  ;;  %v3384_v35 = vmul.f32 %v3378_v15, %v3372_v6  ;;  %v3776_v6 = vld [vmem:[%s12597_s12 + $0x58] sm:$0xff] }
 0x658   : > { %4356 = vmatpush.msra.mxu3 %v3434_v60  ;;  %v3371_v51 = vsel %vm13402_vm7, %v9758_v45, %v9638_v34  ;;  %v3381_v34 = vmul.f32 %v3377_v62, %v3367_v47  ;;  %v3769_v45 = vld [vmem:[%s12597_s12 + $0x20] sm:$0xff]  ;;  %v13405_v60 = vld [vmem:[#allocation43_spill] sm:$0xff]  ;;  %v3012_v53 = vmul.f32 %v3002_v26, %v2994_v39  ;;  %vm13436_vm3 = vmmov %vm13435_vm8 }
 0x659   : > { %4154 = vmatpush.msrb.mxu0 %v3431_v7  ;;  %v2993_v7 = vsel %vm1159_vm11, %v13406_v9, %v13405_v60  ;;  %v13415_v39 = vld [vmem:[#allocation57_spill] sm:$0xff]  ;;  %vm13437_vm10 = vmmov %vm13436_vm3 }
 0x65a   : > { %4357 = vmatpush.msra.mxu3 %v3432_v10  ;;  %v3382_v10 = vmul.f32 %v3378_v15, %v3371_v51  ;;  %v13412_v15 = vld [vmem:[#allocation58_spill] sm:$0xff]  ;;  %v13414_v51 = vld [vmem:[#allocation55_spill] sm:$0xff]  ;;  %vm13438_vm0 = vmmov %vm13436_vm3 }
 0x65b   : > { %v10103_v38 = vpop.permute.xlu0 %3583  ;;  %4155 = vmatpush.msrb.mxu0 %v3429_v42  ;;  %v10105_v21 = vpop.permute.xlu1 %3581  ;;  %v13408_v42 = vld [vmem:[#allocation54_spill] sm:$0xff]  ;;  %vm13439_vm9 = vmmov %vm13438_vm0 }
 0x65c   : > { %v10111_v61 = vpop.permute.xlu2 %3627  ;;  %4358 = vmatpush.msra.mxu3 %v3430_v58  ;;  %v2992_v29 = vsel %vm1159_vm11, %v13408_v42, %v13407_v25  ;;  %v3010_v58 = vmul.f32 %v3002_v26, %v2993_v7  ;;  %v13419_v7 = vld [vmem:[#allocation60_spill] sm:$0xff]  ;;  %vm13440_vm7 = vmmov %vm13438_vm0 }
 0x65d   : > { %4156 = vmatpush.msrb.mxu0 %v3427_v63  ;;  %v13410_v63 = vld [vmem:[#allocation47_spill] sm:$0xff]  ;;  %v3008_v28 = vmul.f32 %v3002_v26, %v2992_v29 }
 0x65e   : > { %4359 = vmatpush.msra.mxu3 %v3428_v59  ;;  %v2991_v62 = vsel %vm1159_vm11, %v13410_v63, %v13409_v12  ;;  %v13411_v59 = vld [vmem:[#allocation51_spill] sm:$0xff]  ;;  %v6726_v12 = vld [vmem:[%s12588_s3 + $0x5] ss:$8 sm:$0x3] }
 0x65f   : > { %4157 = vmatpush.msrb.mxu0 %v3387_v56  ;;  %v2948_v30 = vsel %vm1111_vm12, %v13412_v15, %v13411_v59  ;;  %v2910_v63 = vperm.slane %v6726_v12, 1  ;;  %v13431_v12 = vld [vmem:[#allocation61_spill] sm:$0xff] }
 0x660   : > { %4360 = vmatpush.msra.mxu3 %v3388_v31  ;;  %v3006_v31 = vmul.f32 %v3002_v26, %v2991_v62  ;;  %v13421_v62 = vld [vmem:[#allocation53_spill] sm:$0xff] }
 0x661   : > { %4158 = vmatpush.msrb.mxu0 %v3385_v44  ;;  %v6725_v44 = vld [vmem:[%s12588_s3 + $0x6] ss:$8 sm:$0x3] }
 0x662   : > { %4361 = vmatpush.msra.mxu3 %v3386_v27  ;;  %v2956_v47 = vperm.slane %v6725_v44, 1  ;;  %v13413_v27 = vld [vmem:[#allocation46_spill] sm:$0xff] }
 0x663   : > { %v10140_v37 = vpop.permute.xlu0 %3589  ;;  %4159 = vmatpush.msrb.mxu0 %v3383_v1  ;;  %v10142_v14 = vpop.permute.xlu1 %3587  ;;  %v2947_v1 = vsel %vm1111_vm12, %v13414_v51, %v13413_v27  ;;  %v13425_v27 = vld [vmem:[#allocation75_spill] sm:$0xff]  ;;  %v13426_v51 = vld [vmem:[#allocation45_spill] sm:$0xff] }
 0x664   : > { %v10151_v49 = vpop.permute.xlu2 %3633  ;;  %4362 = vmatpush.msra.mxu3 %v3384_v35  ;;  %v2966_v13 = vmul.f32 %v2956_v47, %v2948_v30  ;;  %v13416_v35 = vld [vmem:[#allocation48_spill] sm:$0xff]  ;;  %v2964_v26 = vmul.f32 %v2956_v47, %v2947_v1  ;;  %v13423_v30 = vld [vmem:[#allocation62_spill] sm:$0xff]  ;;  %v2899_v1 = vsel %vm1063_vm13, %v13426_v51, %v13425_v27 }
 0x665   : > { %4160 = vmatpush.msrb.mxu0 %v3381_v34  ;;  %v2946_v52 = vsel %vm1111_vm12, %v13416_v35, %v13415_v39  ;;  %v13417_v34 = vld [vmem:[#allocation39_spill] sm:$0xff]  ;;  %v13427_v39 = vld [vmem:[#allocation66_spill] sm:$0xff] }
 0x666   : > { %4363 = vmatpush.msra.mxu3 %v3382_v10  ;;  %4161 = vmatmul.f32.vlgmr.msrb.gmra.mxu0 %v3769_v45  ;;  %v2962_v9 = vmul.f32 %v2956_v47, %v2946_v52  ;;  %v13420_v10 = vld [vmem:[#allocation72_spill] sm:$0xff]  ;;  %v13428_v35 = vld [vmem:[#allocation15_spill] sm:$0xff] }
 0x667   : > { %4261 = vmatpush.msra.mxu0 %v3012_v53  ;;  %4364 = vmatmul.f32.vlgmr.msra.gmra.mxu3 %v3769_v45  ;;  %v13418_v45 = vld [vmem:[#allocation34_spill] sm:$0xff]  ;;  %v2902_v53 = vsel %vm1063_vm13, %v13420_v10, %v13419_v7  ;;  %v2856_v52 = vsel %vm1015_vm14, %v13428_v35, %v13427_v39  ;;  %v13429_v10 = vld [vmem:[#allocation63_spill] sm:$0xff] }
 0x668   : > { %v2945_v60 = vsel %vm1111_vm12, %v13418_v45, %v13417_v34  ;;  %v2920_v15 = vmul.f32 %v2910_v63, %v2902_v53  ;;  %v2914_v45 = vmul.f32 %v2910_v63, %v2899_v1  ;;  %v13430_v53 = vld [vmem:[#allocation22_spill] sm:$0xff] }
 0x669   : > { %4262 = vmatpush.msra.mxu0 %v3010_v58  ;;  %v2960_v29 = vmul.f32 %v2956_v47, %v2945_v60  ;;  %v3783_v58 = vld [vmem:[%s12597_s12 + $0x90] sm:$0xff]  ;;  %v3790_v60 = vld [vmem:[%s12597_s12 + $0xc8] sm:$0xff] }
 0x66a   : > { %v6602_v1 = vld [vmem:[%s12588_s3 + $0x27] ss:$8 sm:$0x3] }
 0x66b   : > { %4263 = vmatpush.msra.mxu0 %v3008_v28  ;;  %v10165_v56 = vpop.permute.xlu0 %3595  ;;  %v10167_v5 = vpop.permute.xlu1 %3593  ;;  %v13422_v28 = vld [vmem:[#allocation28_spill] sm:$0xff]  ;;  %v3699_v39 = vperm.slane %v6602_v1, 0  ;;  %v3700_v35 = vperm.slane %v6602_v1, 1 }
 0x66c   : > { %v10179_v50 = vpop.permute.xlu2 %3639  ;;  %v2901_v59 = vsel %vm1063_vm13, %v13422_v28, %v13421_v62  ;;  %v13432_v62 = vld [vmem:[#allocation32_spill] sm:$0xff] }
 0x66d   : > { %4264 = vmatpush.msra.mxu0 %v3006_v31  ;;  %v13424_v31 = vld [vmem:[#allocation21_spill] sm:$0xff]  ;;  %v2918_v47 = vmul.f32 %v2910_v63, %v2901_v59  ;;  %v13433_v59 = vld [vmem:[#allocation19_spill] sm:$0xff] }
 0x66e   : > { %4164 = vmatmul.f32.gmra.mxu0 %v3776_v6 }
 0x66f   : > { %4265 = vmatpush.msra.mxu0 %v2966_v13  ;;  %4367 = vmatmul.f32.gmra.mxu3 %v3776_v6  ;;  %v2900_v6 = vsel %vm1063_vm13, %v13424_v31, %v13423_v30 }
 0x670   : > { %v2916_v13 = vmul.f32 %v2910_v63, %v2900_v6  ;;  %v2854_v63 = vsel %vm1015_vm14, %v13432_v62, %v13431_v12 }
 0x671   : > { %4266 = vmatpush.msra.mxu0 %v2964_v26 }
 0x673   : > { %4267 = vmatpush.msra.mxu0 %v2962_v9  ;;  %v10193_v25 = vpop.permute.xlu0 %3631  ;;  %v10195_v42 = vpop.permute.xlu1 %3629  ;;  %v6727_v9 = vld [vmem:[%s12588_s3 + $0x4] ss:$8 sm:$0x3] }
 0x674   : > { %v3676_v44 = vpop.permute.xlu2 %3675  ;;  %v2864_v7 = vperm.slane %v6727_v9, 1 }
 0x675   : > { %4268 = vmatpush.msra.mxu0 %v2960_v29  ;;  %v2855_v29 = vsel %vm1015_vm14, %v13430_v53, %v13429_v10 }
 0x676   : > { %4167 = vmatmul.f32.gmra.mxu0 %v3783_v58  ;;  %v2872_v28 = vmul.f32 %v2864_v7, %v2855_v29  ;;  %v2870_v6 = vmul.f32 %v2864_v7, %v2854_v63 }
 0x677   : > { %4269 = vmatpush.msra.mxu0 %v2920_v15  ;;  %4370 = vmatmul.f32.gmra.mxu3 %v3783_v58  ;;  %v2874_v58 = vmul.f32 %v2864_v7, %v2856_v52  ;;  %v13434_v15 = vld [vmem:[#allocation30_spill] sm:$0xff] }
 0x678   : > { %v2853_v30 = vsel %vm1015_vm14, %v13434_v15, %v13433_v59  ;;  %v6601_v15 = vld [vmem:[%s12588_s3 + $0x26] ss:$8 sm:$0x3] }
 0x679   : > { %4270 = vmatpush.msra.mxu0 %v2918_v47  ;;  %v2868_v51 = vmul.f32 %v2864_v7, %v2853_v30  ;;  %v3654_v1 = vperm.slane %v6601_v15, 1 }
 0x67b   : > { %4271 = vmatpush.msra.mxu0 %v2916_v13  ;;  %v10219_v26 = vpop.permute.xlu0 %3637  ;;  %v10221_v34 = vpop.permute.xlu1 %3635 }
 0x67c   : > { %v3682_v31 = vpop.permute.xlu2 %3681 }
 0x67d   : > { %4272 = vmatpush.msra.mxu0 %v2914_v45 }
 0x67e   : > { %4170 = vmatmul.f32.gmra.mxu0 %v3790_v60 }
 0x67f   : > { %4273 = vmatpush.msra.mxu0 %v2874_v58  ;;  %4373 = vmatmul.f32.gmra.mxu3 %v3790_v60 }
 0x681   : > { %4274 = vmatpush.msra.mxu0 %v2872_v28 }
 0x683   : > { %4275 = vmatpush.msra.mxu0 %v2870_v6  ;;  %v3674_v47 = vpop.permute.xlu0 %3673  ;;  %v3642_v27 = vpop.permute.xlu1 %3641 }
 0x684   : > { %v3688_v13 = vpop.permute.xlu2 %3687 }
 0x685   : > { %4276 = vmatpush.msra.mxu0 %v2868_v51 }
 0x686   : > { %4277 = vmatmul.f32.vlgmr.msra.gmra.mxu0 %v9691_v4 }
 0x68b   : > { %v3680_v52 = vpop.permute.xlu0 %3679  ;;  %v3678_v45 = vpop.permute.xlu1 %3677 }
 0x68c   : > { %v3692_v60 = vsel %vm13435_vm8, %v3680_v52, %v3688_v13  ;;  %v3696_v9 = vsel %vm13436_vm3, %v3688_v13, %v3680_v52  ;;  %vm13441_vm8 = vmmov %vm13438_vm0 }
 0x68d   : > { %v3709_v10 = vmul.f32 %v3699_v39, %v3692_v60  ;;  %v3710_v7 = vmul.f32 %v3700_v35, %v3696_v9  ;;  %vm13442_vm3 = vmmov %vm13438_vm0 }
 0x68e   : > { %4280 = vmatmul.f32.gmra.mxu0 %v9737_v8  ;;  %v3689_v8 = vsel %vm13441_vm8, %v3674_v47, %v3682_v31  ;;  %v3693_v59 = vsel %vm13442_vm3, %v3682_v31, %v3674_v47  ;;  %v3653_v47 = vperm.slane %v6601_v15, 0 }
 0x68f   : > { %4174 = vmatpush.msrb.mxu1 %v3709_v10  ;;  %4377 = vmatpush.msrb.mxu0 %v3710_v7  ;;  %v3703_v31 = vmul.f32 %v3699_v39, %v3689_v8 }
 0x693   : > { %v3686_v4 = vpop.permute.xlu0 %3685  ;;  %v3684_v53 = vpop.permute.xlu1 %3683 }
 0x694   : > { %v3691_v29 = vsel %vm13437_vm10, %v3678_v45, %v3686_v4  ;;  %v3695_v58 = vsel %vm13438_vm0, %v3686_v4, %v3678_v45  ;;  %v3690_v12 = vsel %vm13439_vm9, %v3676_v44, %v3684_v53  ;;  %v3694_v62 = vsel %vm13440_vm7, %v3684_v53, %v3676_v44 }
 0x695   : > { %v3707_v63 = vmul.f32 %v3699_v39, %v3691_v29  ;;  %v3708_v28 = vmul.f32 %v3700_v35, %v3695_v58  ;;  %v3705_v30 = vmul.f32 %v3699_v39, %v3690_v12  ;;  %v3706_v6 = vmul.f32 %v3700_v35, %v3694_v62  ;;  %v10320_v62 = vpop.permute.xlu2 %3723 }
 0x696   : > { %4283 = vmatmul.f32.gmra.mxu0 %v9783_v55  ;;  %vm13443_vm10 = vcmp.lt.s32.totalorder %v7218_v46, 96  ;;  %v3704_v55 = vmul.f32 %v3700_v35, %v3693_v59 }
 0x697   : > { %4175 = vmatpush.msrb.mxu1 %v3707_v63  ;;  %4378 = vmatpush.msrb.mxu0 %v3708_v28  ;;  %v3646_v44 = vsel %vm13443_vm10, %v10151_v49, %v3642_v27  ;;  %vm13444_vm0 = vmmov %vm13443_vm10 }
 0x698   : > { %v3650_v51 = vsel %vm13444_vm0, %v3642_v27, %v10151_v49  ;;  %vm13445_vm9 = vmmov %vm13444_vm0  ;;  %v3663_v27 = vmul.f32 %v3653_v47, %v3646_v44  ;;  %v3647_v10 = vsel %vm13444_vm0, %v10221_v34, %v10111_v61 }
 0x699   : > { %4176 = vmatpush.msrb.mxu1 %v3705_v30  ;;  %4379 = vmatpush.msrb.mxu0 %v3706_v6  ;;  %v3645_v13 = vsel %vm13445_vm9, %v10193_v25, %v10179_v50  ;;  %vm13446_vm7 = vmmov %vm13444_vm0  ;;  %v3664_v39 = vmul.f32 %v3654_v1, %v3650_v51  ;;  %vm13450_vm9 = vcmp.lt.s32.totalorder %v7218_v46, 97  ;;  %v6599_v6 = vld [vmem:[%s12588_s3 + $0x24] ss:$8 sm:$0x3] }
 0x69a   : > { %v3649_v52 = vsel %vm13446_vm7, %v10179_v50, %v10193_v25  ;;  %vm13447_vm8 = vmmov %vm13444_vm0  ;;  %v3661_v50 = vmul.f32 %v3653_v47, %v3645_v13  ;;  %v3600_v4 = vsel %vm13450_vm9, %v10142_v14, %v10165_v56 }
 0x69b   : > { %v10280_v45 = vpop.permute.xlu0 %3721  ;;  %4177 = vmatpush.msrb.mxu1 %v3703_v31  ;;  %4380 = vmatpush.msrb.mxu0 %v3704_v55  ;;  %v10282_v49 = vpop.permute.xlu1 %3719  ;;  %v3644_v35 = vsel %vm13447_vm8, %v10195_v42, %v10219_v26  ;;  %vm13448_vm3 = vmmov %vm13444_vm0  ;;  %v3662_v25 = vmul.f32 %v3654_v1, %v3649_v52  ;;  %v3561_v55 = vperm.slane %v6599_v6, 0 }
 0x69c   : > { %v3648_v60 = vsel %vm13448_vm3, %v10219_v26, %v10195_v42  ;;  %vm13449_vm10 = vmmov %vm13444_vm0  ;;  %v6600_v42 = vld [vmem:[%s12588_s3 + $0x25] ss:$8 sm:$0x3]  ;;  %v3659_v26 = vmul.f32 %v3653_v47, %v3644_v35 }
 0x69d   : > { %4178 = vmatpush.msrb.mxu1 %v3663_v27  ;;  %4381 = vmatpush.msrb.mxu0 %v3664_v39  ;;  %v3643_v9 = vsel %vm13449_vm10, %v10111_v61, %v10221_v34  ;;  %v3660_v7 = vmul.f32 %v3654_v1, %v3648_v60  ;;  %vm13451_vm7 = vmmov %vm13450_vm9  ;;  %v3658_v34 = vmul.f32 %v3654_v1, %v3647_v10  ;;  %v3607_v53 = vperm.slane %v6600_v42, 0 }
 0x69e   : > { %4286 = vmatmul.f32.gmra.mxu0 %v9815_v17  ;;  %v3604_v61 = vsel %vm13451_vm7, %v10165_v56, %v10142_v14  ;;  %v3657_v17 = vmul.f32 %v3653_v47, %v3643_v9  ;;  %v3608_v29 = vperm.slane %v6600_v42, 1  ;;  %vm13452_vm8 = vmmov %vm13451_vm7  ;;  %v3562_v47 = vperm.slane %v6599_v6, 1  ;;  %v13473_v6 = vld [vmem:[#allocation88_spill] sm:$0xff] }
 0x69f   : > { %4179 = vmatpush.msrb.mxu1 %v3661_v50  ;;  %4382 = vmatpush.msrb.mxu0 %v3662_v25  ;;  %v3599_v58 = vsel %vm13452_vm8, %v10029_v43, %v10167_v5  ;;  %vm13453_vm3 = vmmov %vm13451_vm7  ;;  %v3617_v56 = vmul.f32 %v3607_v53, %v3600_v4  ;;  %vm13458_vm8 = vcmp.lt.s32.totalorder %v7218_v46, 98  ;;  %v10387_v50 = vpop.permute.xlu2 %3729  ;;  %v3178_v4 = vsel %vm1351_vm15, %v9476_v16, %v9489_v11  ;;  %v3770_v16 = vld [vmem:[%s12597_s12 + $0x28] sm:$0xff]  ;;  %v13470_v11 = vld [vmem:[#allocation93_spill] sm:$0xff] }
 0x6a0   : > { %v3603_v12 = vsel %vm13453_vm3, %v10167_v5, %v10029_v43  ;;  %v3618_v28 = vmul.f32 %v3608_v29, %v3604_v61  ;;  %vm13454_vm10 = vmmov %vm13453_vm3  ;;  %v3615_v5 = vmul.f32 %v3607_v53, %v3599_v58  ;;  %v3554_v44 = vsel %vm13458_vm8, %v10021_v33, %v9990_v40 }
 0x6a1   : > { %4180 = vmatpush.msrb.mxu1 %v3659_v26  ;;  %4383 = vmatpush.msrb.mxu0 %v3660_v7  ;;  %v3598_v8 = vsel %vm13454_vm10, %v10103_v38, %v10070_v2  ;;  %vm13455_vm0 = vmmov %vm13453_vm3  ;;  %v3616_v59 = vmul.f32 %v3608_v29, %v3603_v12  ;;  %v3571_v27 = vmul.f32 %v3561_v55, %v3554_v44  ;;  %v13475_v44 = vld [vmem:[#allocation79_spill] sm:$0xff] }
 0x6a2   : > { %v3602_v43 = vsel %vm13455_vm0, %v10070_v2, %v10103_v38  ;;  %vm13456_vm9 = vmmov %vm13455_vm0  ;;  %v3613_v2 = vmul.f32 %v3607_v53, %v3598_v8  ;;  %v3328_v58 = vsel %vm1503_vm4, %v9661_v41, %v9648_v22  ;;  %v3327_v22 = vsel %vm1503_vm4, %v9663_v0, %v9614_v32 }
 0x6a3   : > { %v10322_v63 = vpop.permute.xlu0 %3727  ;;  %4181 = vmatpush.msrb.mxu1 %v3657_v17  ;;  %4384 = vmatpush.msrb.mxu0 %v3658_v34  ;;  %v10324_v14 = vpop.permute.xlu1 %3725  ;;  %v3597_v15 = vsel %vm13456_vm9, %v10105_v21, %v10140_v37  ;;  %vm13457_vm7 = vmmov %vm13455_vm0  ;;  %v3614_v38 = vmul.f32 %v3608_v29, %v3602_v43 }
 0x6a4   : > { %v3601_v30 = vsel %vm13457_vm7, %v10140_v37, %v10105_v21  ;;  %vm13459_vm3 = vmmov %vm13458_vm8  ;;  %v10356_v21 = vld [vmem:[%s12588_s3 + $0x30] ss:$8 sm:$0x3]  ;;  %v3611_v37 = vmul.f32 %v3607_v53, %v3597_v15  ;;  %vm13463_vm7 = vcmp.lt.s32.totalorder %v7218_v46, 94 }
 0x6a5   : > { %4182 = vmatpush.msrb.mxu1 %v3617_v56  ;;  %4385 = vmatpush.msrb.mxu0 %v3618_v28  ;;  %v3558_v51 = vsel %vm13459_vm3, %v9990_v40, %v10021_v33  ;;  %v3612_v31 = vmul.f32 %v3608_v29, %v3601_v30  ;;  %vm13460_vm10 = vmmov %vm13459_vm3  ;;  %v3745_v33 = vperm.slane %v10356_v21, 0  ;;  %v3177_v29 = vsel %vm1351_vm15, %v13470_v11, %v9491_v20  ;;  %v6729_v28 = vld [vmem:[%s12588_s3 + $0x17] ss:$8 sm:$0x3] }
 0x6a6   : > { %v3553_v1 = vsel %vm13460_vm10, %v10023_v24, %v10062_v36  ;;  %vm13461_vm0 = vmmov %vm13459_vm3  ;;  %v3572_v39 = vmul.f32 %v3562_v47, %v3558_v51  ;;  %v3332_v8 = vperm.slane %v6729_v28, 1  ;;  %v10429_v20 = vld [vmem:[%s12597_s12 + $0x30] sm:$0xff]  ;;  %v3326_v51 = vsel %vm1503_vm4, %v13475_v44, %v9634_v23 }
 0x6a7   : > { %4183 = vmatpush.msrb.mxu1 %v3615_v5  ;;  %4386 = vmatpush.msrb.mxu0 %v3616_v59  ;;  %v3557_v40 = vsel %vm13461_vm0, %v10062_v36, %v10023_v24  ;;  %vm13462_vm9 = vmmov %vm13461_vm0  ;;  %v3569_v9 = vmul.f32 %v3561_v55, %v3553_v1  ;;  %v13471_v5 = vld [vmem:[#allocation80_spill] sm:$0xff]  ;;  %v13472_v59 = vld [vmem:[#allocation85_spill] sm:$0xff] }
 0x6a8   : > { %v3552_v35 = vsel %vm13462_vm9, %v9962_v54, %v10064_v48  ;;  %vm13464_vm8 = vmmov %vm13463_vm7  ;;  %v3570_v26 = vmul.f32 %v3562_v47, %v3557_v40  ;;  %v3176_v41 = vsel %vm1351_vm15, %v13472_v59, %v13471_v5  ;;  %v3342_v15 = vmul.f32 %v3332_v8, %v3328_v58  ;;  %v13480_v1 = vld [vmem:[#allocation81_spill] sm:$0xff]  ;;  %v13489_v11 = vld [vmem:[#allocation83_spill] sm:$0xff] }
 0x6a9   : > { %4184 = vmatpush.msrb.mxu1 %v3613_v2  ;;  %4387 = vmatpush.msrb.mxu0 %v3614_v38  ;;  %vm13465_vm3 = vmmov %vm13461_vm0  ;;  %v13474_v2 = vld [vmem:[#allocation108_spill] sm:$0xff]  ;;  %v3340_v32 = vmul.f32 %v3332_v8, %v3327_v22  ;;  %v13494_v5 = vld [vmem:[#allocation91_spill] sm:$0xff] }
 0x6aa   : > { %v3556_v60 = vsel %vm13465_vm3, %v10064_v48, %v9962_v54  ;;  %vm13466_vm10 = vmmov %vm13461_vm0  ;;  %v3567_v48 = vmul.f32 %v3561_v55, %v3552_v35  ;;  %v3175_v38 = vsel %vm1351_vm15, %v13474_v2, %v13473_v6  ;;  %v13495_v59 = vld [vmem:[#allocation105_spill] sm:$0xff]  ;;  %v13496_v22 = vld [vmem:[#allocation82_spill] sm:$0xff] }
 0x6ab   : > { %v10367_v13 = vpop.permute.xlu0 %3733  ;;  %4185 = vmatpush.msrb.mxu1 %v3611_v37  ;;  %4388 = vmatpush.msrb.mxu0 %v3612_v31  ;;  %v10369_v52 = vpop.permute.xlu1 %3731  ;;  %v3551_v10 = vsel %vm13466_vm10, %v9986_v19, %v9971_v18  ;;  %vm13467_vm0 = vmmov %vm13463_vm7  ;;  %v3568_v17 = vmul.f32 %v3562_v47, %v3556_v60  ;;  %v13477_v37 = vld [vmem:[#allocation114_spill] sm:$0xff]  ;;  %v13478_v31 = vld [vmem:[#allocation109_spill] sm:$0xff] }
 0x6ac   : > { %v3738_v24 = vsel %vm13463_vm7, %v10324_v14, %v10367_v13  ;;  %v3737_v36 = vsel %vm13464_vm8, %v10320_v62, %v10369_v52  ;;  %v3736_v42 = vsel %vm13467_vm0, %v10280_v45, %v10387_v50  ;;  %vm13468_vm9 = vmmov %vm13465_vm3  ;;  %v3565_v34 = vmul.f32 %v3561_v55, %v3551_v10  ;;  %v6732_v44 = vld [vmem:[%s12588_s3 + $0x11] ss:$8 sm:$0x3] }
 0x6ad   : > { %v3755_v25 = vmul.f32 %v3745_v33, %v3738_v24  ;;  %4186 = vmatpush.msrb.mxu1 %v3571_v27  ;;  %4389 = vmatpush.msrb.mxu0 %v3572_v39  ;;  %v3555_v54 = vsel %vm13468_vm9, %v9971_v18, %v9986_v19  ;;  %v3753_v7 = vmul.f32 %v3745_v33, %v3737_v36  ;;  %vm13469_vm7 = vmmov %vm13467_vm0  ;;  %v6728_v18 = vld [vmem:[%s12588_s3 + $0x13] ss:$8 sm:$0x3]  ;;  %vm13476_vm8 = vcmask 261120   ;;  %v3777_v27 = vld [vmem:[%s12597_s12 + $0x60] sm:$0xff] }
 0x6ae   : > { %v3735_v61 = vsel %vm13469_vm7, %v10282_v49, %v10322_v63  ;;  %v3186_v19 = vperm.slane %v6728_v18, 1  ;;  %v3751_v53 = vmul.f32 %v3745_v33, %v3736_v42  ;;  %v3566_v12 = vmul.f32 %v3562_v47, %v3555_v54  ;;  %v13479_v47 = vld [vmem:[#allocation78_spill] sm:$0xff]  ;;  %v6730_v39 = vld [vmem:[%s12588_s3 + $0x12] ss:$8 sm:$0x3]  ;;  %vm13493_vm3 = vmmov %vm13476_vm8 }
 0x6af   : > { %4187 = vmatpush.msrb.mxu1 %v3569_v9  ;;  %4215 = vmatpush.msrb.mxu2 %v3755_v25  ;;  %v3749_v43 = vmul.f32 %v3745_v33, %v3735_v61  ;;  %v3132_v55 = vsel %vm1303_vm1, %v13478_v31, %v13477_v37  ;;  %v3325_v40 = vsel %vm1503_vm4, %v13480_v1, %v13479_v47  ;;  %v3140_v35 = vperm.slane %v6730_v39, 1  ;;  %v13481_v24 = vld [vmem:[#allocation115_spill] sm:$0xff]  ;;  %v13482_v36 = vld [vmem:[#allocation94_spill] sm:$0xff]  ;;  %v13483_v25 = vld [vmem:[#allocation84_spill] sm:$0xff] }
 0x6b0   : > { %4390 = vmatpush.msrb.mxu0 %v3570_v26  ;;  %v3196_v56 = vmul.f32 %v3186_v19, %v3178_v4  ;;  %v3194_v30 = vmul.f32 %v3186_v19, %v3177_v29  ;;  %v3192_v0 = vmul.f32 %v3186_v19, %v3176_v41  ;;  %v3190_v23 = vmul.f32 %v3186_v19, %v3175_v38  ;;  %v13484_v9 = vld [vmem:[#allocation101_spill] sm:$0xff]  ;;  %v10474_v54 = vld [vmem:[%s12597_s12 + $0x68] sm:$0xff]  ;;  %v13485_v4 = vld [vmem:[#allocation116_spill] sm:$0xff] }
 0x6b1   : > { %4188 = vmatpush.msrb.mxu1 %v3567_v48  ;;  %4216 = vmatpush.msrb.mxu2 %v3753_v7  ;;  %v3338_v33 = vmul.f32 %v3332_v8, %v3326_v51  ;;  %v3131_v60 = vsel %vm1303_vm1, %v13482_v36, %v13481_v24  ;;  %v3282_v10 = vsel %vm1455_vm5, %v13484_v9, %v13483_v25  ;;  %v6731_v48 = vld [vmem:[%s12588_s3 + $0x16] ss:$8 sm:$0x3]  ;;  %v13486_v61 = vld [vmem:[#allocation117_spill] sm:$0xff]  ;;  %v13490_v29 = vld [vmem:[#allocation86_spill] sm:$0xff]  ;;  %v3094_v51 = vperm.slane %v6732_v44, 1 }
 0x6b2   : > { %4391 = vmatpush.msrb.mxu0 %v3568_v17  ;;  %v3150_v42 = vmul.f32 %v3140_v35, %v3132_v55  ;;  %v3336_v26 = vmul.f32 %v3332_v8, %v3325_v40  ;;  %v3286_v7 = vperm.slane %v6731_v48, 1  ;;  %v3130_v17 = vsel %vm1303_vm1, %v13486_v61, %v13485_v4  ;;  %v13487_v18 = vld [vmem:[#allocation68_spill] sm:$0xff]  ;;  %v13488_v19 = vld [vmem:[#allocation71_spill] sm:$0xff]  ;;  %v13501_v55 = vld [vmem:[#allocation106_spill] sm:$0xff] }
 0x6b3   : > { %4189 = vmatpush.msrb.mxu1 %v3565_v34  ;;  %4217 = vmatpush.msrb.mxu2 %v3751_v53  ;;  %v3281_v34 = vsel %vm1455_vm5, %v13488_v19, %v13487_v18  ;;  %v3148_v53 = vmul.f32 %v3140_v35, %v3131_v60  ;;  %v3129_v58 = vsel %vm1303_vm1, %v13490_v29, %v13489_v11  ;;  %v3784_v38 = vld [vmem:[%s12597_s12 + $0x98] sm:$0xff]  ;;  %v13500_v31 = vld [vmem:[#allocation87_spill] sm:$0xff]  ;;  %v13502_v39 = vld [vmem:[#allocation118_spill] sm:$0xff]  ;;  %vm13513_vm0 = vcmp.lt.s32.totalorder %v7218_v46, 15 }
 0x6b4   : > { %4392 = vmatpush.msrb.mxu0 %v3566_v12  ;;  %4190 = vmatmul.f32.vlgmr.msrb.gmra.mxu1 %v3770_v16  ;;  %v13491_v12 = vld [vmem:[#allocation74_spill] sm:$0xff]  ;;  %v3146_v8 = vmul.f32 %v3140_v35, %v3130_v17  ;;  %v3086_v41 = vsel %vm1255_vm2, %v13495_v59, %v13494_v5  ;;  %v3144_v6 = vmul.f32 %v3140_v35, %v3129_v58  ;;  %v13503_v35 = vld [vmem:[#allocation96_spill] sm:$0xff]  ;;  %v13504_v36 = vld [vmem:[#allocation111_spill] sm:$0xff] }
 0x6b5   : > { %4290 = vmatpush.msra.mxu1 %v3196_v56  ;;  %4218 = vmatpush.msrb.mxu2 %v3749_v43  ;;  %v13492_v56 = vld [vmem:[#allocation76_spill] sm:$0xff]  ;;  %v3294_v43 = vmul.f32 %v3286_v7, %v3281_v34  ;;  %v3236_v47 = vsel %vm1407_vm6, %v13501_v55, %v13500_v31  ;;  %v3104_v1 = vmul.f32 %v3094_v51, %v3086_v41  ;;  %v13505_v60 = vld [vmem:[#allocation110_spill] sm:$0xff]  ;;  %vm13510_vm10 = vmmov %vm13493_vm3  ;;  %v3746_v31 = vperm.slane %v10356_v21, 1 }
 0x6b6   : > { %6604 = vmatmul.msk.f32.vlgmr.msrb.gmra.mxu2 %vm13476_vm8, %v10429_v20  ;;  %4393 = vmatmul.f32.vlgmr.msrb.gmra.mxu0 %v3770_v16  ;;  %v3296_v16 = vmul.f32 %v3286_v7, %v3282_v10  ;;  %v3280_v28 = vsel %vm1455_vm5, %v13492_v56, %v13491_v12  ;;  %v3084_v24 = vsel %vm1255_vm2, %v13503_v35, %v13502_v39  ;;  %v13509_v4 = vld [vmem:[#allocation98_spill] sm:$0xff]  ;;  %v13511_v19 = vld [vmem:[#allocation89_spill] sm:$0xff]  ;;  %v13512_v34 = vld [vmem:[#allocation119_spill] sm:$0xff]  ;;  %v4046_v35 = vpop.f32.mrf.mxu0 }
 0x6b7   : > { %4291 = vmatpush.msra.mxu1 %v3194_v30  ;;  %4319 = vmatpush.msra.mxu2 %v3342_v15  ;;  %v13497_v15 = vld [vmem:[#allocation77_spill] sm:$0xff]  ;;  %v3292_v2 = vmul.f32 %v3286_v7, %v3280_v28  ;;  %v3235_v25 = vsel %vm1407_vm6, %v13505_v60, %v13504_v36  ;;  %v3100_v17 = vmul.f32 %v3094_v51, %v3084_v24  ;;  %v3791_v56 = vld [vmem:[%s12597_s12 + $0xd0] sm:$0xff]  ;;  %v13517_v5 = vld [vmem:[#allocation44_spill] sm:$0xff]  ;;  %v4075_v60 = vpop.f32.mrf.mxu1 }
 0x6b8   : > { %v3279_v30 = vsel %vm1455_vm5, %v13497_v15, %v13496_v22  ;;  %v13515_v11 = vld [vmem:[#allocation113_spill] sm:$0xff]  ;;  %v6734_v28 = vld [vmem:[%s12588_s3 + $0x10] ss:$8 sm:$0x3]  ;;  %vm13518_vm9 = vmmov %vm13513_vm0 }
 0x6b9   : > { %4292 = vmatpush.msra.mxu1 %v3192_v0  ;;  %4320 = vmatpush.msra.mxu2 %v3340_v32  ;;  %v13498_v0 = vld [vmem:[#allocation120_spill] sm:$0xff]  ;;  %v13499_v32 = vld [vmem:[#allocation97_spill] sm:$0xff]  ;;  %v3290_v40 = vmul.f32 %v3286_v7, %v3279_v30  ;;  %v13508_v7 = vld [vmem:[#allocation90_spill] sm:$0xff] }
 0x6ba   : > { %v3085_v37 = vsel %vm1255_vm2, %v13499_v32, %v13498_v0  ;;  %v3234_v61 = vsel %vm1407_vm6, %v13509_v4, %v13508_v7  ;;  %v3792_v15 = vld [vmem:[%s12597_s12 + $0xd8] sm:$0xff]  ;;  %vm13521_vm7 = vmmov %vm13513_vm0  ;;  %v13522_v44 = vld [vmem:[#allocation102_spill] sm:$0xff] }
 0x6bb   : > { %4293 = vmatpush.msra.mxu1 %v3190_v23  ;;  %4321 = vmatpush.msra.mxu2 %v3338_v33  ;;  %v10522_v23 = vld [vmem:[%s12597_s12 + $0xa0] sm:$0xff]  ;;  %v6733_v33 = vld [vmem:[%s12588_s3 + $0x15] ss:$8 sm:$0x3]  ;;  %v3102_v9 = vmul.f32 %v3094_v51, %v3085_v37  ;;  %vm13524_vm8 = vmmov %vm13513_vm0 }
 0x6bc   : > { %4193 = vmatmul.f32.gmra.mxu1 %v3777_v27  ;;  %v13519_v30 = vld [vmem:[#allocation92_spill] sm:$0xff]  ;;  %v6742_v39 = vld [vmem:[%s12597_s12 + $0xc0] sm:$0xff] }
 0x6bd   : > { %4294 = vmatpush.msra.mxu1 %v3150_v42  ;;  %4322 = vmatpush.msra.mxu2 %v3336_v26  ;;  %v13506_v42 = vld [vmem:[#allocation99_spill] sm:$0xff] }
 0x6be   : > { %6605 = vmatmul.msk.f32.gmra.mxu2 %vm13493_vm3, %v10474_v54  ;;  %4396 = vmatmul.f32.gmra.mxu0 %v3777_v27  ;;  %v3240_v27 = vperm.slane %v6733_v33, 1  ;;  %v13507_v26 = vld [vmem:[#allocation103_spill] sm:$0xff]  ;;  %v6740_v33 = vld [vmem:[%s12597_s12 + $0x88] sm:$0xff]  ;;  %v4049_v24 = vpop.f32.mrf.mxu0 }
 0x6bf   : > { %4295 = vmatpush.msra.mxu1 %v3148_v53  ;;  %4323 = vmatpush.msra.mxu2 %v3296_v16  ;;  %v3083_v48 = vsel %vm1255_vm2, %v13507_v26, %v13506_v42  ;;  %v3040_v53 = vsel %vm13513_vm0, %v13512_v34, %v13511_v19  ;;  %v13514_v16 = vld [vmem:[#allocation104_spill] sm:$0xff]  ;;  %v4133_v42 = vpop.f32.mrf.mxu3  ;;  %v10630_v34 = vpop.permute.xlu1 %4004 }
 0x6c0   : > { %v3250_v10 = vmul.f32 %v3240_v27, %v3236_v47  ;;  %v3248_v18 = vmul.f32 %v3240_v27, %v3235_v25  ;;  %v3233_v29 = vsel %vm1407_vm6, %v13515_v11, %v13514_v16  ;;  %v3098_v58 = vmul.f32 %v3094_v51, %v3083_v48  ;;  %v13523_v51 = vld [vmem:[#allocation100_spill] sm:$0xff] }
 0x6c1   : > { %4296 = vmatpush.msra.mxu1 %v3146_v8  ;;  %4324 = vmatpush.msra.mxu2 %v3294_v43  ;;  %v3246_v12 = vmul.f32 %v3240_v27, %v3234_v61  ;;  %v3048_v8 = vperm.slane %v6734_v28, 1  ;;  %v13516_v43 = vld [vmem:[#allocation112_spill] sm:$0xff]  ;;  %v3244_v22 = vmul.f32 %v3240_v27, %v3233_v29  ;;  %v3037_v0 = vsel %vm13524_vm8, %v13523_v51, %v13522_v44  ;;  %vm13531_vm8 = vmmov %vm13493_vm3  ;;  %v10627_v61 = vpop.permute.xlu2 %3999 }
 0x6c2   : > { %v3039_v59 = vsel %vm13518_vm9, %v13517_v5, %v13516_v43  ;;  %v6741_v27 = vld [vmem:[%s12597_s12 + $0xb8] sm:$0xff]  ;;  %v4050_v16 = vadd.f32 %v4049_v24, %v10630_v34 }
 0x6c3   : > { %4297 = vmatpush.msra.mxu1 %v3144_v6  ;;  %4325 = vmatpush.msra.mxu2 %v3292_v2  ;;  %v3058_v41 = vmul.f32 %v3048_v8, %v3040_v53  ;;  %v13520_v6 = vld [vmem:[#allocation95_spill] sm:$0xff]  ;;  %v3052_v47 = vmul.f32 %v3048_v8, %v3037_v0 }
 0x6c4   : > { %4196 = vmatmul.f32.gmra.mxu1 %v3784_v38  ;;  %v3038_v2 = vsel %vm13521_vm7, %v13520_v6, %v13519_v30 }
 0x6c5   : > { %4298 = vmatpush.msra.mxu1 %v3104_v1  ;;  %4326 = vmatpush.msra.mxu2 %v3290_v40  ;;  %v3054_v37 = vmul.f32 %v3048_v8, %v3038_v2  ;;  %v6739_v40 = vld [vmem:[%s12597_s12 + $0x80] sm:$0xff] }
 0x6c6   : > { %6606 = vmatmul.msk.f32.gmra.mxu2 %vm13510_vm10, %v10522_v23  ;;  %4399 = vmatmul.f32.gmra.mxu0 %v3784_v38  ;;  %v3056_v38 = vmul.f32 %v3048_v8, %v3039_v59  ;;  %vm13525_vm10 = vcmp.lt.s32.totalorder %v7218_v46, 94  ;;  %v4052_v36 = vpop.f32.mrf.mxu0  ;;  %v10633_v8 = vpop.permute.xlu0 %4009 }
 0x6c7   : > { %4299 = vmatpush.msra.mxu1 %v3102_v9  ;;  %4327 = vmatpush.msra.mxu2 %v3250_v10  ;;  %v3742_v32 = vsel %vm13525_vm10, %v10367_v13, %v10324_v14  ;;  %vm13526_vm0 = vmmov %vm13525_vm10  ;;  %v13530_v13 = vld [vmem:[#allocation41_spill] sm:$0xff]  ;;  %v4104_v9 = vpop.f32.mrf.mxu2  ;;  %v4078_v10 = vpop.f32.mrf.mxu1  ;;  %v4053_v5 = vadd.f32 %v4052_v36, %v10633_v8 }
 0x6c8   : > { %v3741_v55 = vsel %vm13526_vm0, %v10369_v52, %v10320_v62  ;;  %v3756_v1 = vmul.f32 %v3746_v31, %v3742_v32  ;;  %vm13527_vm9 = vmmov %vm13526_vm0  ;;  %v4136_v4 = vpop.f32.mrf.mxu3 }
 0x6c9   : > { %4300 = vmatpush.msra.mxu1 %v3100_v17  ;;  %4328 = vmatpush.msra.mxu2 %v3248_v18  ;;  %v3740_v14 = vsel %vm13527_vm9, %v10387_v50, %v10280_v45  ;;  %v3754_v21 = vmul.f32 %v3746_v31, %v3741_v55  ;;  %vm13529_vm7 = vmmov %vm13526_vm0  ;;  %v6736_v45 = vld [vmem:[%s12597_s12 + $0x18] sm:$0xff]  ;;  %v4047_v17 = vadd.f32 %v4046_v35, %v10627_v61  ;;  %v10636_v51 = vpop.permute.xlu2 %4014  ;;  %vm13575_vm9 = vcmp.lt.s32.totalorder %v7218_v46, 31 }
 0x6ca   : > { %v3739_v62 = vsel %vm13529_vm7, %v10322_v63, %v10282_v49  ;;  %v3752_v52 = vmul.f32 %v3746_v31, %v3740_v14  ;;  %v6737_v49 = vld [vmem:[%s12597_s12 + $0x48] sm:$0xff]  ;;  %v6738_v63 = vld [vmem:[%s12597_s12 + $0x50] sm:$0xff]  ;;  %vm13532_vm10 = vmmov %vm13493_vm3 }
 0x6cb   : > { %4301 = vmatpush.msra.mxu1 %v3098_v58  ;;  %4329 = vmatpush.msra.mxu2 %v3246_v12  ;;  %v3750_v50 = vmul.f32 %v3746_v31, %v3739_v62  ;;  %vm13533_vm0 = vmmov %vm13493_vm3  ;;  %v4076_v19 = vadd.f32 %v4075_v60, %v4047_v17 }
 0x6cc   : > { %4199 = vmatmul.f32.gmra.mxu1 %v3791_v56  ;;  %vm13576_vm7 = vmmov %vm13575_vm9 }
 0x6cd   : > { %4302 = vmatpush.msra.mxu1 %v3058_v41  ;;  %4330 = vmatpush.msra.mxu2 %v3244_v22  ;;  %v4105_v11 = vadd.f32 %v4104_v9, %v4076_v19 }
 0x6ce   : > { %6607 = vmatmul.msk.f32.gmra.mxu2 %vm13493_vm3, %v3792_v15  ;;  %4402 = vmatmul.f32.gmra.mxu0 %v3791_v56  ;;  %v4055_v25 = vpop.f32.mrf.mxu0  ;;  %v4079_v56 = vadd.f32 %v4078_v10, %v4050_v16 }
 0x6cf   : > { %4303 = vmatpush.msra.mxu1 %v3056_v38  ;;  %4331 = vmatpush.msra.mxu2 %v8942_v3  ;;  %v13528_v3 = vld [vmem:[#allocation29_spill] sm:$0xff]  ;;  %v4107_v48 = vpop.f32.mrf.mxu2  ;;  %v4081_v7 = vpop.f32.mrf.mxu1  ;;  %v4134_v28 = vadd.f32 %v4133_v42, %v4105_v11  ;;  %v4056_v55 = vadd.f32 %v4055_v25, %v10636_v51 }
 0x6d0   : > { %v4108_v59 = vadd.f32 %v4107_v48, %v4079_v56  ;;  %v4082_v2 = vadd.f32 %v4081_v7, %v4053_v5 }
 0x6d1   : > { %4304 = vmatpush.msra.mxu1 %v3054_v37  ;;  %4332 = vmatpush.msra.mxu2 %v8923_v57  ;;  %v6735_v57 = vld [vmem:[%s12597_s12 + $0x10] sm:$0xff]  ;;  %v13534_v37 = vld [vmem:[#allocation5_spill] sm:$0xff] }
 0x6d2   : > { %v4137_v38 = vadd.f32 %v4136_v4, %v4108_v59 }
 0x6d3   : > { %4305 = vmatpush.msra.mxu1 %v3052_v47  ;;  %4333 = vmatpush.msra.mxu2 %v13528_v3 }
 0x6d4   : > { %4306 = vmatmul.f32.vlgmr.msra.gmra.mxu1 %v6735_v57 }
 0x6d5   : > { %4418 = vmatpush.msrb.mxu1 %v3756_v1  ;;  %4334 = vmatpush.msra.mxu2 %v13530_v13 }
 0x6d6   : > { %4335 = vmatmul.f32.vlgmr.msra.gmra.mxu2 %v6736_v45 }
 0x6d7   : > { %4419 = vmatpush.msrb.mxu1 %v3754_v21  ;;  %v4084_v18 = vpop.f32.mrf.mxu1 }
 0x6d8   : > { %v4085_v57 = vadd.f32 %v4084_v18, %v4056_v55 }
 0x6d9   : > { %4420 = vmatpush.msrb.mxu1 %v3752_v52 }
 0x6db   : > { %4421 = vmatpush.msrb.mxu1 %v3750_v50 }
 0x6dc   : > { %4309 = vmatmul.f32.gmra.mxu1 %v6737_v49 }
 0x6de   : > { %4338 = vmatmul.f32.gmra.mxu2 %v6738_v63 }
 0x6e3   : > { %v4162_v26 = vpop.f32.mrf.mxu0 }
 0x6e4   : > { %4312 = vmatmul.f32.gmra.mxu1 %v6739_v40  ;;  %v4163_v43 = vadd.f32 %v4162_v26, %v4134_v28 }
 0x6e6   : > { %4341 = vmatmul.f32.gmra.mxu2 %v6740_v33 }
 0x6ec   : > { %4315 = vmatmul.f32.gmra.mxu1 %v6741_v27 }
 0x6ee   : > { %4344 = vmatmul.f32.gmra.mxu2 %v6742_v39 }
 0x6f4   : > { %6608 = vmatmul.msk.f32.vlgmr.msrb.gmra.mxu1 %vm13531_vm8, %v10429_v20  ;;  %v4165_v20 = vpop.f32.mrf.mxu0  ;;  %vm13577_vm8 = vmmov %vm13576_vm7 }
 0x6f5   : > { %v4166_v32 = vadd.f32 %v4165_v20, %v4137_v38 }
 0x6fc   : > { %6609 = vmatmul.msk.f32.gmra.mxu1 %vm13493_vm3, %v10474_v54  ;;  %v4110_v54 = vpop.f32.mrf.mxu2  ;;  %v4168_v53 = vpop.f32.mrf.mxu0  ;;  %vm13578_vm3 = vmmov %vm13576_vm7 }
 0x6fd   : > { %v4111_v47 = vadd.f32 %v4110_v54, %v4082_v2 }
 0x704   : > { %6610 = vmatmul.msk.f32.gmra.mxu1 %vm13532_vm10, %v10522_v23  ;;  %v4139_v23 = vpop.f32.mrf.mxu3  ;;  %v4113_v29 = vpop.f32.mrf.mxu2  ;;  %vm13580_vm10 = vcmp.lt.s32.totalorder %v7218_v46, 32 }
 0x705   : > { %v4171_v41 = vpop.f32.mrf.mxu0  ;;  %v4140_v13 = vadd.f32 %v4139_v23, %v4111_v47  ;;  %v4114_v49 = vadd.f32 %v4113_v29, %v4085_v57 }
 0x707   : > { %v4169_v52 = vadd.f32 %v4168_v53, %v4140_v13 }
 0x70c   : > { %6611 = vmatmul.msk.f32.gmra.mxu1 %vm13533_vm0, %v3792_v15  ;;  %v4142_v12 = vpop.f32.mrf.mxu3  ;;  %vm13584_vm0 = vmmov %vm13580_vm10 }
 0x70d   : > { %v4278_v21 = vpop.f32.mrf.mxu0  ;;  %v4143_v35 = vadd.f32 %v4142_v12, %v4114_v49 }
 0x70f   : > { %v4172_v60 = vadd.f32 %v4171_v41, %v4143_v35 }
 0x714   : > { %v4249_v0 = vpop.f32.mrf.mxu3 }
 0x715   : > { %v4281_v24 = vpop.f32.mrf.mxu0  ;;  %v4250_v53 = vadd.f32 %v4249_v0, %v10627_v61 }
 0x717   : > { %v4279_v11 = vadd.f32 %v4278_v21, %v4250_v53 }
 0x71c   : > { %v4252_v63 = vpop.f32.mrf.mxu3 }
 0x71d   : > { %v4284_v4 = vpop.f32.mrf.mxu0 }
 0x724   : > { %v4255_v42 = vpop.f32.mrf.mxu3 }
 0x725   : > { %v4287_v18 = vpop.f32.mrf.mxu0  ;;  %v4256_v38 = vadd.f32 %v4255_v42, %v10633_v8 }
 0x727   : > { %v4285_v0 = vadd.f32 %v4284_v4, %v4256_v38 }
 0x72c   : > { %v4258_v17 = vpop.f32.mrf.mxu3 }
 0x72d   : > { %v4259_v57 = vadd.f32 %v4258_v17, %v10636_v51 }
 0x731   : > { %v4191_v58 = vpop.f32.mrf.mxu1 }
 0x732   : > { %v4192_v22 = vadd.f32 %v4191_v58, %v4163_v43  ;;  %v4253_v43 = vadd.f32 %v4252_v63, %v10630_v34 }
 0x733   : > { %v4394_v58 = vpop.f32.mrf.mxu0 }
 0x734   : > { %v4365_v16 = vpop.f32.mrf.mxu3  ;;  %v4282_v5 = vadd.f32 %v4281_v24, %v4253_v43 }
 0x739   : > { %v4194_v15 = vpop.f32.mrf.mxu1  ;;  %v4220_v30 = vpop.f32.mrf.mxu2 }
 0x73a   : > { %v4221_v6 = vadd.f32 %v4220_v30, %v4192_v22  ;;  %v4195_v1 = vadd.f32 %v4194_v15, %v4166_v32 }
 0x73c   : > { %v4435_v44 = vmax.f32 %v4221_v6, 0.0  ;;  %v4368_v41 = vpop.f32.mrf.mxu3  ;;  %v4397_v6 = vpop.f32.mrf.mxu0 }
 0x73e   : > { %v10639_v31 = vmul.f32 %v4435_v44, %v13534_v37 }
 0x740   : > { %4451 = vrot.lane.b32.xlu1 %v10639_v31, %s13535_s13 }
 0x741   : > { %v4197_v14 = vpop.f32.mrf.mxu1  ;;  %v4223_v3 = vpop.f32.mrf.mxu2 }
 0x742   : > { %v4224_v62 = vadd.f32 %v4223_v3, %v4195_v1  ;;  %v4198_v40 = vadd.f32 %v4197_v14, %v4169_v52  ;;  %v13536_v1 = vld [vmem:[#allocation6_spill] sm:$0xff] }
 0x744   : > { %v4437_v45 = vmax.f32 %v4224_v62, 0.0  ;;  %v4371_v34 = vpop.f32.mrf.mxu3  ;;  %v4400_v8 = vpop.f32.mrf.mxu0 }
 0x746   : > { %v10645_v50 = vmul.f32 %v4437_v45, %v13534_v37  ;;  %v4288_v45 = vadd.f32 %v4287_v18, %v4259_v57 }
 0x748   : > { %4453 = vrot.lane.b32.xlu0 %v10645_v50, %s13535_s13 }
 0x749   : > { %v4200_v33 = vpop.f32.mrf.mxu1  ;;  %v4226_v27 = vpop.f32.mrf.mxu2 }
 0x74a   : > { %v4227_v39 = vadd.f32 %v4226_v27, %v4198_v40  ;;  %v4201_v9 = vadd.f32 %v4200_v33, %v4172_v60 }
 0x74c   : > { %v4439_v36 = vmax.f32 %v4227_v39, 0.0  ;;  %v4374_v35 = vpop.f32.mrf.mxu3 }
 0x74e   : > { %v10650_v25 = vmul.f32 %v4439_v36, %v13534_v37 }
 0x750   : > { %4455 = vrot.lane.b32.xlu2 %v10650_v25, %s13535_s13 }
 0x751   : > { %v4229_v10 = vpop.f32.mrf.mxu2  ;;  %v4307_v48 = vpop.f32.mrf.mxu1 }
 0x752   : > { %v4230_v26 = vadd.f32 %v4229_v10, %v4201_v9  ;;  %v4308_v29 = vadd.f32 %v4307_v48, %v4279_v11  ;;  %v4403_v9 = vpop.f32.mrf.mxu0 }
 0x754   : > { %v4441_v7 = vmax.f32 %v4230_v26, 0.0 }
 0x756   : > { %v10655_v20 = vmul.f32 %v4441_v7, %v13534_v37 }
 0x758   : > { %4457 = vrot.lane.b32.xlu1 %v10655_v20, %s13535_s13 }
 0x759   : > { %v4310_v54 = vpop.f32.mrf.mxu1  ;;  %v4336_v23 = vpop.f32.mrf.mxu2 }
 0x75a   : > { %v4337_v12 = vadd.f32 %v4336_v23, %v4308_v29  ;;  %v4311_v22 = vadd.f32 %v4310_v54, %v4282_v5 }
 0x75c   : > { %v4366_v59 = vadd.f32 %v4365_v16, %v4337_v12 }
 0x75e   : > { %v4395_v15 = vadd.f32 %v4394_v58, %v4366_v59 }
 0x761   : > { %v4313_v19 = vpop.f32.mrf.mxu1  ;;  %v4339_v56 = vpop.f32.mrf.mxu2 }
 0x762   : > { %v4340_v30 = vadd.f32 %v4339_v56, %v4311_v22  ;;  %v4314_v47 = vadd.f32 %v4313_v19, %v4285_v0 }
 0x764   : > { %v4369_v32 = vadd.f32 %v4368_v41, %v4340_v30 }
 0x766   : > { %v4398_v3 = vadd.f32 %v4397_v6, %v4369_v32 }
 0x769   : > { %v4316_v28 = vpop.f32.mrf.mxu1  ;;  %v4342_v44 = vpop.f32.mrf.mxu2 }
 0x76a   : > { %v4343_v21 = vadd.f32 %v4342_v44, %v4314_v47  ;;  %v4317_v40 = vadd.f32 %v4316_v28, %v4288_v45 }
 0x76c   : > { %v4372_v52 = vadd.f32 %v4371_v34, %v4343_v21 }
 0x76e   : > { %v4401_v27 = vadd.f32 %v4400_v8, %v4372_v52  ;;  %v10892_v8 = vld [vmem:[%s12588_s3 + $0x3] ss:$8 sm:$0x3] }
 0x771   : > { %v4423_v2 = vpop.f32.mrf.mxu1  ;;  %v4345_v63 = vpop.f32.mrf.mxu2 }
 0x772   : > { %v4424_v61 = vadd.f32 %v4423_v2, %v4395_v15  ;;  %v4346_v39 = vadd.f32 %v4345_v63, %v4317_v40 }
 0x774   : > { %v4436_v55 = vmax.f32 %v4424_v61, 0.0  ;;  %v4375_v60 = vadd.f32 %v4374_v35, %v4346_v39 }
 0x776   : > { %v10663_v14 = vmul.f32 %v4436_v55, %v13536_v1  ;;  %v4404_v42 = vadd.f32 %v4403_v9, %v4375_v60  ;;  %v10926_v60 = vld [vmem:[%s12588_s3 + $0x2] ss:$8 sm:$0x3] }
 0x777   : > { %13579 = vst [vmem:[#allocation46_spill] sm:$0xff] %v10926_v60 }
 0x778   : > { %13537 = vst [vmem:[#allocation65_spill] sm:$0xff] %v10663_v14  ;;  %4459 = vrot.lane.b32.xlu0 %v10663_v14, %s13535_s13 }
 0x779   : > { %v4426_v62 = vpop.f32.mrf.mxu1 }
 0x77a   : > { %v4427_v13 = vadd.f32 %v4426_v62, %v4398_v3 }
 0x77c   : > { %v4438_v49 = vmax.f32 %v4427_v13, 0.0 }
 0x77e   : > { %v10669_v33 = vmul.f32 %v4438_v49, %v13536_v1  ;;  %v4615_v49 = vperm.slane %v10892_v8, 0 }
 0x780   : > { %13538 = vst [vmem:[#allocation52_spill] sm:$0xff] %v10669_v33  ;;  %4461 = vrot.lane.b32.xlu2 %v10669_v33, %s13535_s13 }
 0x781   : > { %v4429_v24 = vpop.f32.mrf.mxu1 }
 0x782   : > { %v4430_v36 = vadd.f32 %v4429_v24, %v4401_v27 }
 0x784   : > { %v4440_v51 = vmax.f32 %v4430_v36, 0.0 }
 0x786   : > { %v10674_v10 = vmul.f32 %v4440_v51, %v13536_v1 }
 0x788   : > { %13539 = vst [vmem:[#allocation20_spill] sm:$0xff] %v10674_v10  ;;  %4463 = vrot.lane.b32.xlu1 %v10674_v10, %s13535_s13  ;;  %4497 = vrot.lane.b32.xlu2 %v10639_v31, %s13540_s4 }
 0x789   : > { %v4432_v26 = vpop.f32.mrf.mxu1 }
 0x78a   : > { %v4433_v48 = vadd.f32 %v4432_v26, %v4404_v42 }
 0x78c   : > { %v4442_v7 = vmax.f32 %v4433_v48, 0.0 }
 0x78e   : > { %v10681_v4 = vmul.f32 %v4442_v7, %v13536_v1 }
 0x790   : > { %4503 = vrot.lane.b32.xlu2 %v10655_v20, %s13540_s4  ;;  %4499 = vrot.lane.b32.xlu1 %v10645_v50, %s13540_s4 }
 0x791   : > { %4465 = vrot.lane.b32.xlu0 %v10681_v4, %s13535_s13  ;;  %s13713_s13 = sld [smem:[#allocation134_spill]] }
 0x798   : > { %4509 = vrot.lane.b32.xlu2 %v10674_v10, %s13540_s4  ;;  %4505 = vrot.lane.b32.xlu1 %v10663_v14, %s13540_s4 }
 0x799   : > { %4501 = vrot.lane.b32.xlu0 %v10650_v25, %s13540_s4 }
 0x7a0   : > { %4545 = vrot.lane.b32.xlu2 %v10645_v50, %s13541_s11  ;;  %4511 = vrot.lane.b32.xlu1 %v10681_v4, %s13540_s4 }
 0x7a1   : > { %4507 = vrot.lane.b32.xlu0 %v10669_v33, %s13540_s4 }
 0x7a8   : > { %4551 = vrot.lane.b32.xlu2 %v10663_v14, %s13541_s11  ;;  %4547 = vrot.lane.b32.xlu1 %v10650_v25, %s13541_s11 }
 0x7a9   : > { %4543 = vrot.lane.b32.xlu0 %v10639_v31, %s13541_s11 }
 0x7aa   : > { %v10737_v54 = vpop.permute.xlu2 %4455 }
 0x7ab   : > { %13543 = vst [vmem:[#allocation69_spill] sm:$0xff] %v10737_v54 }
 0x7b0   : > { %4557 = vrot.lane.b32.xlu2 %v10681_v4, %s13541_s11  ;;  %4553 = vrot.lane.b32.xlu1 %v10669_v33, %s13541_s11 }
 0x7b1   : > { %4549 = vrot.lane.b32.xlu0 %v10655_v20, %s13541_s11 }
 0x7b2   : > { %v10761_v23 = vpop.permute.xlu1 %4451 }
 0x7b3   : > { %13547 = vst [vmem:[#allocation35_spill] sm:$0xff] %v10761_v23 }
 0x7b8   : > { %4593 = vrot.lane.b32.xlu2 %v10650_v25, %s13203_s27  ;;  %4589 = vrot.lane.b32.xlu1 %v10639_v31, %s13203_s27 }
 0x7b9   : > { %4555 = vrot.lane.b32.xlu0 %v10674_v10, %s13541_s11 }
 0x7ba   : > { %v10775_v11 = vpop.permute.xlu0 %4453 }
 0x7bb   : > { %13551 = vst [vmem:[#allocation24_spill] sm:$0xff] %v10775_v11 }
 0x7c0   : > { %4599 = vrot.lane.b32.xlu2 %v10669_v33, %s13203_s27  ;;  %4595 = vrot.lane.b32.xlu1 %v10655_v20, %s13203_s27 }
 0x7c1   : > { %4591 = vrot.lane.b32.xlu0 %v10645_v50, %s13203_s27 }
 0x7c8   : > { %4635 = vrot.lane.b32.xlu2 %v10639_v31, %s13542_s7  ;;  %4601 = vrot.lane.b32.xlu1 %v10674_v10, %s13203_s27 }
 0x7c9   : > { %4597 = vrot.lane.b32.xlu0 %v10663_v14, %s13203_s27 }
 0x7ca   : > { %v10771_v53 = vpop.permute.xlu1 %4457 }
 0x7cb   : > { %13549 = vst [vmem:[#allocation16_spill] sm:$0xff] %v10771_v53 }
 0x7d0   : > { %4641 = vrot.lane.b32.xlu2 %v10655_v20, %s13542_s7  ;;  %4637 = vrot.lane.b32.xlu1 %v10645_v50, %s13542_s7 }
 0x7d1   : > { %4603 = vrot.lane.b32.xlu0 %v10681_v4, %s13203_s27 }
 0x7d8   : > { %4647 = vrot.lane.b32.xlu2 %v10674_v10, %s13542_s7  ;;  %4643 = vrot.lane.b32.xlu1 %v10663_v14, %s13542_s7 }
 0x7d9   : > { %4639 = vrot.lane.b32.xlu0 %v10650_v25, %s13542_s7 }
 0x7da   : > { %v10745_v17 = vpop.permute.xlu2 %4461 }
 0x7db   : > { %13544 = vst [vmem:[#allocation26_spill] sm:$0xff] %v10745_v17 }
 0x7e0   : > { %4683 = vrot.lane.b32.xlu2 %v10645_v50, %s13545_s8  ;;  %4649 = vrot.lane.b32.xlu1 %v10681_v4, %s13542_s7 }
 0x7e1   : > { %4645 = vrot.lane.b32.xlu0 %v10669_v33, %s13542_s7  ;;  %s13827_s7 = sld [smem:[#allocation4_spill]] }
 0x7e2   : > { %v10753_v18 = vpop.permute.xlu2 %4497 }
 0x7e3   : > { %13546 = vst [vmem:[#allocation70_spill] sm:$0xff] %v10753_v18 }
 0x7e8   : > { %4689 = vrot.lane.b32.xlu2 %v10663_v14, %s13545_s8  ;;  %4685 = vrot.lane.b32.xlu1 %v10650_v25, %s13545_s8 }
 0x7e9   : > { %4681 = vrot.lane.b32.xlu0 %v10639_v31, %s13545_s8 }
 0x7ea   : > { %v10763_v19 = vpop.permute.xlu2 %4503  ;;  %v10787_v12 = vpop.permute.xlu0 %4459 }
 0x7eb   : > { %13548 = vst [vmem:[#allocation50_spill] sm:$0xff] %v10763_v19 }
 0x7ec   : > { %13554 = vst [vmem:[#allocation56_spill] sm:$0xff] %v10787_v12 }
 0x7f0   : > { %4695 = vrot.lane.b32.xlu2 %v10681_v4, %s13545_s8  ;;  %4691 = vrot.lane.b32.xlu1 %v10669_v33, %s13545_s8 }
 0x7f1   : > { %4687 = vrot.lane.b32.xlu0 %v10655_v20, %s13545_s8 }
 0x7f2   : > { %v10773_v16 = vpop.permute.xlu2 %4509 }
 0x7f3   : > { %13550 = vst [vmem:[#allocation73_spill] sm:$0xff] %v10773_v16 }
 0x7f8   : > { %4731 = vrot.lane.b32.xlu2 %v10650_v25, %s13204_s0  ;;  %4727 = vrot.lane.b32.xlu1 %v10639_v31, %s13204_s0 }
 0x7f9   : > { %4693 = vrot.lane.b32.xlu0 %v10674_v10, %s13545_s8  ;;  %s6541_s8 = sshll.u32 %s13827_s7, 1 }
 0x7fa   : > { %v10783_v29 = vpop.permute.xlu2 %4545  ;;  %v10785_v58 = vpop.permute.xlu1 %4463 }
 0x7fb   : > { %13552 = vst [vmem:[#allocation64_spill] sm:$0xff] %v10783_v29 }
 0x7fc   : > { %13553 = vst [vmem:[#allocation23_spill] sm:$0xff] %v10785_v58 }
 0x800   : > { %4737 = vrot.lane.b32.xlu2 %v10669_v33, %s13204_s0  ;;  %4733 = vrot.lane.b32.xlu1 %v10655_v20, %s13204_s0 }
 0x801   : > { %4729 = vrot.lane.b32.xlu0 %v10645_v50, %s13204_s0 }
 0x802   : > { %v10795_v56 = vpop.permute.xlu2 %4551  ;;  %v10797_v28 = vpop.permute.xlu1 %4499 }
 0x803   : > { %13555 = vst [vmem:[#allocation31_spill] sm:$0xff] %v10795_v56  ;;  %v10799_v43 = vpop.permute.xlu0 %4465 }
 0x804   : > { %13556 = vst [vmem:[#allocation25_spill] sm:$0xff] %v10797_v28 }
 0x805   : > { %13557 = vst [vmem:[#allocation36_spill] sm:$0xff] %v10799_v43 }
 0x808   : > { %4773 = vrot.lane.b32.xlu2 %v10639_v31, %s13221_s24  ;;  %4739 = vrot.lane.b32.xlu1 %v10674_v10, %s13204_s0 }
 0x809   : > { %4735 = vrot.lane.b32.xlu0 %v10663_v14, %s13204_s0 }
 0x80a   : > { %v10807_v5 = vpop.permute.xlu2 %4557  ;;  %v10809_v59 = vpop.permute.xlu1 %4505 }
 0x80b   : > { %13558 = vst [vmem:[#allocation42_spill] sm:$0xff] %v10807_v5  ;;  %v10811_v41 = vpop.permute.xlu0 %4501 }
 0x80c   : > { %13559 = vst [vmem:[#allocation17_spill] sm:$0xff] %v10809_v59 }
 0x80d   : > { %13560 = vst [vmem:[#allocation27_spill] sm:$0xff] %v10811_v41 }
 0x810   : > { %4779 = vrot.lane.b32.xlu2 %v10655_v20, %s13221_s24  ;;  %4775 = vrot.lane.b32.xlu1 %v10645_v50, %s13221_s24 }
 0x811   : > { %4741 = vrot.lane.b32.xlu0 %v10681_v4, %s13204_s0  ;;  %s13828_s0 = sld [smem:[#allocation135_spill]] }
 0x812   : > { %v10819_v22 = vpop.permute.xlu2 %4593  ;;  %v10821_v15 = vpop.permute.xlu1 %4511 }
 0x813   : > { %13561 = vst [vmem:[#allocation67_spill] sm:$0xff] %v10821_v15  ;;  %v10823_v30 = vpop.permute.xlu0 %4507 }
 0x814   : > { %13562 = vst [vmem:[#allocation18_spill] sm:$0xff] %v10823_v30 }
 0x818   : > { %4785 = vrot.lane.b32.xlu2 %v10674_v10, %s13221_s24  ;;  %4781 = vrot.lane.b32.xlu1 %v10663_v14, %s13221_s24 }
 0x819   : > { %4777 = vrot.lane.b32.xlu0 %v10650_v25, %s13221_s24 }
 0x81a   : > { %v10831_v6 = vpop.permute.xlu2 %4599  ;;  %v10833_v2 = vpop.permute.xlu1 %4547 }
 0x81b   : > { %13563 = vst [vmem:[#allocation59_spill] sm:$0xff] %v10833_v2  ;;  %v10835_v38 = vpop.permute.xlu0 %4543 }
 0x81c   : > { %13564 = vst [vmem:[#allocation33_spill] sm:$0xff] %v10835_v38 }
 0x820   : > { %4821 = vrot.lane.b32.xlu2 %v10645_v50, %s13229_s19  ;;  %4787 = vrot.lane.b32.xlu1 %v10681_v4, %s13221_s24 }
 0x821   : > { %4783 = vrot.lane.b32.xlu0 %v10669_v33, %s13221_s24 }
 0x822   : > { %v10843_v61 = vpop.permute.xlu2 %4635  ;;  %v10845_v44 = vpop.permute.xlu1 %4553 }
 0x823   : > { %13565 = vst [vmem:[#allocation37_spill] sm:$0xff] %v10843_v61  ;;  %v10847_v0 = vpop.permute.xlu0 %4549 }
 0x824   : > { %13566 = vst [vmem:[#allocation38_spill] sm:$0xff] %v10845_v44  ;;  %v4566_v9 = vsel %vm13580_vm10, %v10807_v5, %v10847_v0 }
 0x825   : > { %13567 = vst [vmem:[#allocation43_spill] sm:$0xff] %v10847_v0 }
 0x828   : > { %4827 = vrot.lane.b32.xlu2 %v10663_v14, %s13229_s19  ;;  %4823 = vrot.lane.b32.xlu1 %v10650_v25, %s13229_s19 }
 0x829   : > { %4819 = vrot.lane.b32.xlu0 %v10639_v31, %s13229_s19 }
 0x82a   : > { %v10855_v32 = vpop.permute.xlu2 %4641  ;;  %v10857_v55 = vpop.permute.xlu1 %4589 }
 0x82b   : > { %13568 = vst [vmem:[#allocation40_spill] sm:$0xff] %v10855_v32  ;;  %v10859_v47 = vpop.permute.xlu0 %4555 }
 0x82c   : > { %13569 = vst [vmem:[#allocation107_spill] sm:$0xff] %v10857_v55 }
 0x82d   : > { %13570 = vst [vmem:[#allocation54_spill] sm:$0xff] %v10859_v47 }
 0x830   : > { %4833 = vrot.lane.b32.xlu2 %v10681_v4, %s13229_s19  ;;  %4829 = vrot.lane.b32.xlu1 %v10669_v33, %s13229_s19 }
 0x831   : > { %4825 = vrot.lane.b32.xlu0 %v10655_v20, %s13229_s19 }
 0x832   : > { %v10867_v34 = vpop.permute.xlu2 %4647  ;;  %v10869_v3 = vpop.permute.xlu1 %4595 }
 0x833   : > { %13571 = vst [vmem:[#allocation49_spill] sm:$0xff] %v10867_v34  ;;  %v10871_v21 = vpop.permute.xlu0 %4591 }
 0x834   : > { %v4610_v35 = vsel %vm13577_vm8, %v10831_v6, %v10871_v21  ;;  %vm13587_vm8 = vcmp.lt.s32.totalorder %v7218_v46, 33 }
 0x835   : > { %v4621_v51 = vmul.f32 %v4615_v49, %v4610_v35 }
 0x838   : > { %4869 = vrot.lane.b32.xlu2 %v10650_v25, %s13238_s30  ;;  %4865 = vrot.lane.b32.xlu1 %v10639_v31, %s13238_s30 }
 0x839   : > { %4831 = vrot.lane.b32.xlu0 %v10674_v10, %s13229_s19  ;;  %s13694_s19 = smov 94  }
 0x83a   : > { %v10879_v62 = vpop.permute.xlu2 %4683  ;;  %v10881_v57 = vpop.permute.xlu1 %4601 }
 0x83b   : > { %13572 = vst [vmem:[#allocation47_spill] sm:$0xff] %v10879_v62  ;;  %v10883_v13 = vpop.permute.xlu0 %4597  ;;  %v4611_v40 = vsel %vm13575_vm9, %v10881_v57, %v10819_v22  ;;  %vm13585_vm9 = vmmov %vm13584_vm0 }
 0x83c   : > { %v4623_v24 = vmul.f32 %v4615_v49, %v4611_v40  ;;  %v4609_v36 = vsel %vm13578_vm3, %v10883_v13, %v10857_v55  ;;  %v4569_v40 = vperm.slane %v10926_v60, 0  ;;  %v4564_v35 = vsel %vm13585_vm9, %v10845_v44, %v10783_v29  ;;  %vm13590_vm3 = vmmov %vm13587_vm8  ;;  %v11109_v55 = vld [vmem:[%s12588_s3 + $0x10] ss:$8 sm:$0x3] }
 0x83d   : > { %v4619_v7 = vmul.f32 %v4615_v49, %v4609_v36  ;;  %v6612_v36 = vld [vmem:[%s12588_s3 + $0x1] ss:$8 sm:$0x3]  ;;  %vm13591_vm10 = vmmov %vm13590_vm3  ;;  %vm13593_vm9 = vcmp.lt.s32.totalorder %v7218_v46, 34 }
 0x83e   : > { %v4523_v1 = vperm.slane %v6612_v36, 0  ;;  %v4474_v36 = vsel %vm13593_vm9, %v10799_v43, %v10771_v53 }
 0x840   : > { %4875 = vrot.lane.b32.xlu2 %v10669_v33, %s13238_s30  ;;  %4871 = vrot.lane.b32.xlu1 %v10655_v20, %s13238_s30 }
 0x841   : > { %4867 = vrot.lane.b32.xlu0 %v10645_v50, %s13238_s30 }
 0x842   : > { %v10896_v45 = vpop.permute.xlu2 %4689  ;;  %v10898_v52 = vpop.permute.xlu1 %4637 }
 0x843   : > { %13573 = vst [vmem:[#allocation51_spill] sm:$0xff] %v10896_v45  ;;  %v10901_v63 = vpop.permute.xlu0 %4603 }
 0x844   : > { %13574 = vst [vmem:[#allocation58_spill] sm:$0xff] %v10898_v52  ;;  %v4612_v27 = vsel %vm13576_vm7, %v10901_v63, %v10869_v3  ;;  %vm13586_vm7 = vmmov %vm13584_vm0 }
 0x845   : > { %v4625_v39 = vmul.f32 %v4615_v49, %v4612_v27  ;;  %v4565_v27 = vsel %vm13584_vm0, %v10859_v47, %v10833_v2  ;;  %v4563_v49 = vsel %vm13586_vm7, %v10795_v56, %v10835_v38  ;;  %vm13592_vm0 = vmmov %vm13590_vm3 }
 0x846   : > { %v4573_v37 = vmul.f32 %v4569_v40, %v4563_v49  ;;  %vm13597_vm7 = vmmov %vm13593_vm9 }
 0x847   : > { %5827 = vmatpush.msrb.mxu2 %v4625_v39  ;;  %v4579_v39 = vmul.f32 %v4569_v40, %v4566_v9  ;;  %v4520_v9 = vsel %vm13587_vm8, %v10821_v15, %v10763_v19  ;;  %v4518_v19 = vsel %vm13591_vm10, %v10823_v30, %v10797_v28  ;;  %vm13598_vm8 = vmmov %vm13597_vm7 }
 0x848   : > { %4911 = vrot.lane.b32.xlu2 %v10639_v31, %s13243_s21  ;;  %4877 = vrot.lane.b32.xlu1 %v10674_v10, %s13238_s30  ;;  %v4529_v49 = vmul.f32 %v4523_v1, %v4518_v19  ;;  %v4472_v53 = vsel %vm13598_vm8, %v10745_v17, %v10775_v11 }
 0x849   : > { %4873 = vrot.lane.b32.xlu0 %v10663_v14, %s13238_s30  ;;  %5828 = vmatpush.msrb.mxu2 %v4623_v24  ;;  %v4577_v24 = vmul.f32 %v4569_v40, %v4565_v27 }
 0x84a   : > { %v10934_v42 = vpop.permute.xlu2 %4695  ;;  %v10936_v26 = vpop.permute.xlu1 %4643 }
 0x84b   : > { %13581 = vst [vmem:[#allocation55_spill] sm:$0xff] %v10934_v42  ;;  %v10938_v48 = vpop.permute.xlu0 %4639  ;;  %5829 = vmatpush.msrb.mxu2 %v4621_v51  ;;  %v4575_v51 = vmul.f32 %v4569_v40, %v4564_v35  ;;  %v4533_v35 = vmul.f32 %v4523_v1, %v4520_v9  ;;  %v4517_v40 = vsel %vm13592_vm0, %v10809_v59, %v10753_v18 }
 0x84c   : > { %13582 = vst [vmem:[#allocation57_spill] sm:$0xff] %v10936_v26 }
 0x84d   : > { %13583 = vst [vmem:[#allocation48_spill] sm:$0xff] %v10938_v48  ;;  %5830 = vmatpush.msrb.mxu2 %v4619_v7 }
 0x84f   : > { %5831 = vmatpush.msrb.mxu2 %v4579_v39 }
 0x850   : > { %4917 = vrot.lane.b32.xlu2 %v10655_v20, %s13243_s21  ;;  %4913 = vrot.lane.b32.xlu1 %v10645_v50, %s13243_s21 }
 0x851   : > { %4879 = vrot.lane.b32.xlu0 %v10681_v4, %s13238_s30  ;;  %5832 = vmatpush.msrb.mxu2 %v4577_v24  ;;  %v4519_v24 = vsel %vm13590_vm3, %v10773_v16, %v10811_v41  ;;  %vm13599_vm3 = vmmov %vm13597_vm7 }
 0x852   : > { %v10966_v7 = vpop.permute.xlu2 %4731  ;;  %v10968_v27 = vpop.permute.xlu1 %4649  ;;  %v4531_v15 = vmul.f32 %v4523_v1, %v4519_v24 }
 0x853   : > { %13588 = vst [vmem:[#allocation39_spill] sm:$0xff] %v10968_v27  ;;  %v10970_v39 = vpop.permute.xlu0 %4645  ;;  %5833 = vmatpush.msrb.mxu2 %v4575_v51 }
 0x854   : > { %13589 = vst [vmem:[#allocation34_spill] sm:$0xff] %v10970_v39 }
 0x855   : > { %5834 = vmatpush.msrb.mxu2 %v4573_v37  ;;  %v4475_v37 = vld [vmem:[%s12588_s3] ss:$8 sm:$0x3] }
 0x856   : > { %v4477_v18 = vperm.slane %v4475_v37, 0 }
 0x857   : > { %5835 = vmatpush.msrb.mxu2 %v4533_v35  ;;  %v4527_v35 = vmul.f32 %v4523_v1, %v4517_v40  ;;  %v4471_v1 = vsel %vm13599_vm3, %v10787_v12, %v10761_v23 }
 0x858   : > { %4923 = vrot.lane.b32.xlu2 %v10674_v10, %s13243_s21  ;;  %4919 = vrot.lane.b32.xlu1 %v10663_v14, %s13243_s21  ;;  %v4487_v19 = vmul.f32 %v4477_v18, %v4474_v36  ;;  %v4483_v40 = vmul.f32 %v4477_v18, %v4472_v53 }
 0x859   : > { %4915 = vrot.lane.b32.xlu0 %v10650_v25, %s13243_s21  ;;  %5836 = vmatpush.msrb.mxu2 %v4531_v15  ;;  %v4473_v15 = vsel %vm13597_vm7, %v10785_v58, %v10737_v54  ;;  %v6618_v54 = vld [vmem:[%s12588_s3 + $0x7] ss:$8 sm:$0x3] }
 0x85a   : > { %v10997_v51 = vpop.permute.xlu2 %4737  ;;  %v10999_v9 = vpop.permute.xlu1 %4685  ;;  %v4485_v43 = vmul.f32 %v4477_v18, %v4473_v15  ;;  %v4800_v58 = vperm.slane %v6618_v54, 1  ;;  %v4799_v29 = vperm.slane %v6618_v54, 0 }
 0x85b   : > { %13594 = vst [vmem:[#allocation60_spill] sm:$0xff] %v10997_v51  ;;  %v11001_v24 = vpop.permute.xlu0 %4681  ;;  %5837 = vmatpush.msrb.mxu2 %v4529_v49 }
 0x85c   : > { %13595 = vst [vmem:[#allocation72_spill] sm:$0xff] %v10999_v9 }
 0x85d   : > { %13596 = vst [vmem:[#allocation53_spill] sm:$0xff] %v11001_v24  ;;  %5838 = vmatpush.msrb.mxu2 %v4527_v35  ;;  %v4481_v35 = vmul.f32 %v4477_v18, %v4471_v1 }
 0x85f   : > { %5839 = vmatpush.msrb.mxu2 %v4487_v19 }
 0x860   : > { %4959 = vrot.lane.b32.xlu2 %v10645_v50, %s13251_s17  ;;  %4925 = vrot.lane.b32.xlu1 %v10681_v4, %s13243_s21 }
 0x861   : > { %4921 = vrot.lane.b32.xlu0 %v10669_v33, %s13243_s21  ;;  %5840 = vmatpush.msrb.mxu2 %v4485_v43 }
 0x862   : > { %v4774_v37 = vpop.permute.xlu2 %4773  ;;  %v11021_v49 = vpop.permute.xlu1 %4691 }
 0x863   : > { %13600 = vst [vmem:[#allocation28_spill] sm:$0xff] %v11021_v49  ;;  %v11023_v36 = vpop.permute.xlu0 %4687  ;;  %5841 = vmatpush.msrb.mxu2 %v4483_v40 }
 0x864   : > { %13601 = vst [vmem:[#allocation62_spill] sm:$0xff] %v11023_v36 }
 0x865   : > { %5842 = vmatpush.msrb.mxu2 %v4481_v35 }
 0x868   : > { %5117 = vrot.lane.b32.xlu2 %v10681_v4, %s13285_s29  ;;  %4961 = vrot.lane.b32.xlu1 %v10650_v25, %s13251_s17 }
 0x869   : > { %4957 = vrot.lane.b32.xlu0 %v10639_v31, %s13251_s17 }
 0x86a   : > { %v4780_v15 = vpop.permute.xlu2 %4779  ;;  %v11031_v43 = vpop.permute.xlu1 %4727 }
 0x86b   : > { %13602 = vst [vmem:[#allocation21_spill] sm:$0xff] %v11031_v43  ;;  %v11033_v53 = vpop.permute.xlu0 %4693 }
 0x86c   : > { %13603 = vst [vmem:[#allocation75_spill] sm:$0xff] %v11033_v53 }
 0x870   : > { %5107 = vrot.lane.b32.xlu2 %v10650_v25, %s13285_s29  ;;  %4963 = vrot.lane.b32.xlu1 %v10655_v20, %s13251_s17 }
 0x871   : > { %5109 = vrot.lane.b32.xlu0 %v10655_v20, %s13285_s29 }
 0x872   : > { %v4786_v18 = vpop.permute.xlu2 %4785  ;;  %v11041_v19 = vpop.permute.xlu1 %4733 }
 0x873   : > { %v11043_v1 = vpop.permute.xlu0 %4729 }
 0x874   : > { %13604 = vst [vmem:[#allocation45_spill] sm:$0xff] %v11043_v1 }
 0x878   : > { %5105 = vrot.lane.b32.xlu2 %v10645_v50, %s13285_s29  ;;  %5115 = vrot.lane.b32.xlu1 %v10674_v10, %s13285_s29 }
 0x879   : > { %4971 = vrot.lane.b32.xlu0 %v10681_v4, %s13251_s17 }
 0x87a   : > { %v11051_v40 = vpop.permute.xlu2 %4821  ;;  %v11053_v35 = vpop.permute.xlu1 %4739 }
 0x87b   : > { %v11055_v23 = vpop.permute.xlu0 %4735 }
 0x87c   : > { %13605 = vst [vmem:[#allocation66_spill] sm:$0xff] %v11055_v23 }
 0x880   : > { %5103 = vrot.lane.b32.xlu2 %v10639_v31, %s13285_s29  ;;  %5113 = vrot.lane.b32.xlu1 %v10669_v33, %s13285_s29 }
 0x881   : > { %4969 = vrot.lane.b32.xlu0 %v10674_v10, %s13251_s17 }
 0x882   : > { %v4828_v12 = vpop.permute.xlu2 %4827  ;;  %v4776_v11 = vpop.permute.xlu1 %4775 }
 0x883   : > { %v11063_v17 = vpop.permute.xlu0 %4741 }
 0x888   : > { %5063 = vrot.lane.b32.xlu2 %v10655_v20, %s13275_s28  ;;  %5111 = vrot.lane.b32.xlu1 %v10663_v14, %s13285_s29 }
 0x889   : > { %4967 = vrot.lane.b32.xlu0 %v10669_v33, %s13251_s17 }
 0x88a   : > { %v11074_v59 = vpop.permute.xlu2 %4833  ;;  %v4782_v28 = vpop.permute.xlu1 %4781 }
 0x88b   : > { %v4778_v30 = vpop.permute.xlu0 %4777  ;;  %v4789_v41 = vsel %vm1159_vm11, %v4774_v37, %v4782_v28 }
 0x88c   : > { %v4791_v16 = vsel %vm1159_vm11, %v4778_v30, %v4786_v18  ;;  %v11080_v38 = vmul.f32 %v4800_v58, %v4789_v41 }
 0x88d   : > { %v11082_v56 = vmul.f32 %v4800_v58, %v4791_v16 }
 0x88e   : > { %13606 = vst [vmem:[#allocation15_spill] sm:$0xff] %v11080_v38  ;;  %v4795_v38 = vsel %vm1159_vm11, %v4786_v18, %v4778_v30  ;;  %v4793_v30 = vsel %vm1159_vm11, %v4782_v28, %v4774_v37  ;;  %v4750_v28 = vsel %vm1111_vm12, %v11063_v17, %v11041_v19 }
 0x88f   : > { %13607 = vst [vmem:[#allocation63_spill] sm:$0xff] %v11082_v56 }
 0x890   : > { %5069 = vrot.lane.b32.xlu2 %v10674_v10, %s13275_s28  ;;  %5071 = vrot.lane.b32.xlu1 %v10681_v4, %s13275_s28 }
 0x891   : > { %4965 = vrot.lane.b32.xlu0 %v10663_v14, %s13251_s17 }
 0x892   : > { %v11090_v44 = vpop.permute.xlu2 %4869  ;;  %v4788_v2 = vpop.permute.xlu1 %4787 }
 0x893   : > { %v4784_v47 = vpop.permute.xlu0 %4783  ;;  %v4792_v41 = vsel %vm1159_vm11, %v4780_v15, %v4788_v2  ;;  %v4796_v16 = vsel %vm1159_vm11, %v4788_v2, %v4780_v15  ;;  %v4807_v2 = vmul.f32 %v4799_v29, %v4795_v38 }
 0x894   : > { %v4790_v56 = vsel %vm1159_vm11, %v4776_v11, %v4784_v47  ;;  %v4809_v60 = vmul.f32 %v4799_v29, %v4796_v16  ;;  %v11100_v0 = vmul.f32 %v4800_v58, %v4792_v41  ;;  %v4794_v5 = vsel %vm1159_vm11, %v4784_v47, %v4776_v11  ;;  %v6617_v11 = vld [vmem:[%s12588_s3 + $0x6] ss:$8 sm:$0x3] }
 0x895   : > { %v11102_v54 = vmul.f32 %v4800_v58, %v4790_v56  ;;  %v4805_v58 = vmul.f32 %v4799_v29, %v4794_v5  ;;  %v4846_v56 = vperm.slane %v11109_v55, 1  ;;  %v4753_v15 = vperm.slane %v6617_v11, 0 }
 0x896   : > { %5856 = vmatpush.msrb.mxu3 %v4809_v60  ;;  %v4803_v60 = vmul.f32 %v4799_v29, %v4793_v30  ;;  %v4749_v5 = vsel %vm1111_vm12, %v11053_v35, %v10966_v7  ;;  %vm13608_vm11 = vcmp.lt.s32.totalorder %v7218_v46, 15  ;;  %v4748_v29 = vsel %vm1111_vm12, %v10997_v51, %v11043_v1 }
 0x897   : > { %vm13609_vm10 = vmmov %vm13608_vm11  ;;  %v4761_v30 = vmul.f32 %v4753_v15, %v4749_v5  ;;  %v4747_v11 = vsel %vm1111_vm12, %v11055_v23, %v11031_v43 }
 0x898   : > { %5057 = vrot.lane.b32.xlu2 %v10639_v31, %s13275_s28  ;;  %5059 = vrot.lane.b32.xlu1 %v10645_v50, %s13275_s28  ;;  %vm13611_vm0 = vmmov %vm13609_vm10 }
 0x899   : > { %5061 = vrot.lane.b32.xlu0 %v10650_v25, %s13275_s28  ;;  %5857 = vmatpush.msrb.mxu3 %v4807_v2  ;;  %v4763_v2 = vmul.f32 %v4753_v15, %v4750_v28  ;;  %v4704_v28 = vsel %vm1063_vm13, %v10934_v42, %v11023_v36  ;;  %vm13612_vm9 = vmmov %vm13611_vm0 }
 0x89a   : > { %v11127_v38 = vpop.permute.xlu2 %4875  ;;  %v4824_v47 = vpop.permute.xlu1 %4823  ;;  %vm13613_vm7 = vmmov %vm13611_vm0 }
 0x89b   : > { %v4820_v37 = vpop.permute.xlu0 %4819  ;;  %5858 = vmatpush.msrb.mxu3 %v4805_v58  ;;  %v4759_v58 = vmul.f32 %v4753_v15, %v4748_v29  ;;  %v4757_v29 = vmul.f32 %v4753_v15, %v4747_v11  ;;  %vm13614_vm8 = vmmov %vm13611_vm0  ;;  %v4702_v11 = vsel %vm1063_vm13, %v11021_v49, %v10879_v62 }
 0x89c   : > { %v4835_v18 = vsel %vm13608_vm11, %v4820_v37, %v4828_v12  ;;  %v11137_v41 = vsel %vm13609_vm10, %v4828_v12, %v4820_v37  ;;  %v6616_v12 = vld [vmem:[%s12588_s3 + $0x5] ss:$8 sm:$0x3]  ;;  %vm13617_vm3 = vmmov %vm13611_vm0  ;;  %vm13642_vm10 = vcmp.lt.s32.totalorder %v7218_v46, 32 }
 0x89d   : > { %v11139_v16 = vmul.f32 %v4846_v56, %v4835_v18  ;;  %5859 = vmatpush.msrb.mxu3 %v4803_v60  ;;  %vm13618_vm11 = vmmov %vm13611_vm0 }
 0x89f   : > { %13610 = vst [vmem:[#allocation22_spill] sm:$0xff] %v11139_v16  ;;  %5860 = vmatpush.msrb.mxu3 %v4763_v2  ;;  %v4703_v16 = vsel %vm1063_vm13, %v11033_v53, %v10999_v9  ;;  %v6622_v9 = vld [vmem:[%s12588_s3 + $0x13] ss:$8 sm:$0x3] }
 0x8a0   : > { %5025 = vrot.lane.b32.xlu2 %v10681_v4, %s13261_s20  ;;  %5065 = vrot.lane.b32.xlu1 %v10663_v14, %s13275_s28 }
 0x8a1   : > { %5067 = vrot.lane.b32.xlu0 %v10669_v33, %s13275_s28  ;;  %5861 = vmatpush.msrb.mxu3 %v4761_v30  ;;  %v4707_v30 = vperm.slane %v6616_v12, 0 }
 0x8a2   : > { %v11162_v60 = vpop.permute.xlu2 %4911  ;;  %v4830_v37 = vpop.permute.xlu1 %4829 }
 0x8a3   : > { %v4826_v5 = vpop.permute.xlu0 %4825  ;;  %5862 = vmatpush.msrb.mxu3 %v4759_v58  ;;  %v4836_v18 = vsel %vm13611_vm0, %v11051_v40, %v4830_v37  ;;  %v11170_v2 = vsel %vm13612_vm9, %v4830_v37, %v11051_v40  ;;  %v4717_v15 = vmul.f32 %v4707_v30, %v4704_v28  ;;  %v4715_v12 = vmul.f32 %v4707_v30, %v4703_v16 }
 0x8a4   : > { %v4838_v58 = vsel %vm13613_vm7, %v4826_v5, %v11074_v59  ;;  %v11182_v36 = vsel %vm13614_vm8, %v11074_v59, %v4826_v5  ;;  %v11184_v42 = vmul.f32 %v4846_v56, %v4836_v18  ;;  %v4701_v37 = vsel %vm1063_vm13, %v10896_v45, %v11001_v24  ;;  %v6615_v59 = vld [vmem:[%s12588_s3 + $0x4] ss:$8 sm:$0x3]  ;;  %vm13648_vm7 = vmmov %vm13642_vm10 }
 0x8a5   : > { %v11186_v40 = vmul.f32 %v4846_v56, %v4838_v58  ;;  %5863 = vmatpush.msrb.mxu3 %v4757_v29  ;;  %v4713_v16 = vmul.f32 %v4707_v30, %v4702_v11  ;;  %v4658_v28 = vsel %vm1015_vm14, %v10968_v27, %v10855_v32  ;;  %v4711_v58 = vmul.f32 %v4707_v30, %v4701_v37  ;;  %v11230_v37 = vld [vmem:[%s12588_s3 + $0x11] ss:$8 sm:$0x3]  ;;  %vm13651_vm8 = vmmov %vm13648_vm7 }
 0x8a6   : > { %13615 = vst [vmem:[#allocation61_spill] sm:$0xff] %v11184_v42  ;;  %v4657_v42 = vsel %vm1015_vm14, %v10867_v34, %v10938_v48  ;;  %v4656_v30 = vsel %vm1015_vm14, %v10970_v39, %v10898_v52  ;;  %vm13643_vm0 = vcmp.lt.s32.totalorder %v7218_v46, 95 }
 0x8a7   : > { %13616 = vst [vmem:[#allocation32_spill] sm:$0xff] %v11186_v40  ;;  %5864 = vmatpush.msrb.mxu3 %v4717_v15  ;;  %v4661_v15 = vperm.slane %v6615_v59, 0  ;;  %vm13644_vm9 = vmmov %vm13643_vm0 }
 0x8a8   : > { %5013 = vrot.lane.b32.xlu2 %v10645_v50, %s13261_s20  ;;  %5015 = vrot.lane.b32.xlu1 %v10650_v25, %s13261_s20 }
 0x8a9   : > { %5017 = vrot.lane.b32.xlu0 %v10655_v20, %s13261_s20  ;;  %5865 = vmatpush.msrb.mxu3 %v4715_v12  ;;  %v4671_v32 = vmul.f32 %v4661_v15, %v4658_v28  ;;  %v4669_v59 = vmul.f32 %v4661_v15, %v4657_v42 }
 0x8aa   : > { %v11209_v5 = vpop.permute.xlu2 %4917  ;;  %v4866_v18 = vpop.permute.xlu1 %4865 }
 0x8ab   : > { %v4832_v29 = vpop.permute.xlu0 %4831  ;;  %5866 = vmatpush.msrb.mxu3 %v4713_v16  ;;  %v4667_v16 = vmul.f32 %v4661_v15, %v4656_v30 }
 0x8ac   : > { %v4837_v11 = vsel %vm13617_vm3, %v4824_v47, %v4832_v29  ;;  %v11219_v12 = vsel %vm13618_vm11, %v4832_v29, %v4824_v47  ;;  %v4892_v47 = vperm.slane %v11230_v37, 1  ;;  %vm13654_vm3 = vmmov %vm13648_vm7 }
 0x8ad   : > { %v11221_v40 = vmul.f32 %v4846_v56, %v4837_v11  ;;  %5867 = vmatpush.msrb.mxu3 %v4711_v58  ;;  %v4655_v56 = vsel %vm1015_vm14, %v10936_v26, %v10843_v61  ;;  %vm13655_vm11 = vmmov %vm13643_vm0 }
 0x8ae   : > { %v4665_v29 = vmul.f32 %v4661_v15, %v4655_v56 }
 0x8af   : > { %13619 = vst [vmem:[#allocation19_spill] sm:$0xff] %v11221_v40  ;;  %5868 = vmatpush.msrb.mxu3 %v4671_v32 }
 0x8b0   : > { %5019 = vrot.lane.b32.xlu2 %v10663_v14, %s13261_s20  ;;  %5021 = vrot.lane.b32.xlu1 %v10669_v33, %s13261_s20 }
 0x8b1   : > { %5023 = vrot.lane.b32.xlu0 %v10674_v10, %s13261_s20  ;;  %5869 = vmatpush.msrb.mxu3 %v4669_v59 }
 0x8b2   : > { %v11243_v32 = vpop.permute.xlu2 %4923  ;;  %v4872_v42 = vpop.permute.xlu1 %4871 }
 0x8b3   : > { %v4868_v28 = vpop.permute.xlu0 %4867  ;;  %5870 = vmatpush.msrb.mxu3 %v4667_v16 }
 0x8b4   : > { %v4882_v58 = vsel %vm1255_vm2, %v4868_v28, %v11127_v38  ;;  %v11251_v11 = vsel %vm1255_vm2, %v11127_v38, %v4868_v28 }
 0x8b5   : > { %v11253_v40 = vmul.f32 %v4892_v47, %v4882_v58  ;;  %5871 = vmatpush.msrb.mxu3 %v4665_v29 }
 0x8b7   : > { %13620 = vst [vmem:[#allocation30_spill] sm:$0xff] %v11253_v40 }
 0x8b8   : > { %5291 = vrot.lane.b32.xlu2 %v10650_v25, %s13325_s23  ;;  %5293 = vrot.lane.b32.xlu1 %v10655_v20, %s13325_s23 }
 0x8b9   : > { %5011 = vrot.lane.b32.xlu0 %v10639_v31, %s13261_s20 }
 0x8ba   : > { %v11261_v15 = vpop.permute.xlu2 %4959  ;;  %v4878_v30 = vpop.permute.xlu1 %4877 }
 0x8bb   : > { %v4874_v59 = vpop.permute.xlu0 %4873  ;;  %v4883_v38 = vsel %vm1255_vm2, %v11090_v44, %v4878_v30  ;;  %v11269_v56 = vsel %vm1255_vm2, %v4878_v30, %v11090_v44 }
 0x8bc   : > { %v4881_v16 = vsel %vm1255_vm2, %v4866_v18, %v4874_v59  ;;  %v11275_v28 = vsel %vm1255_vm2, %v4874_v59, %v4866_v18  ;;  %v11277_v29 = vmul.f32 %v4892_v47, %v4883_v38 }
 0x8bd   : > { %v11279_v58 = vmul.f32 %v4892_v47, %v4881_v16  ;;  %v11300_v16 = vld [vmem:[%s12588_s3 + $0x12] ss:$8 sm:$0x3] }
 0x8be   : > { %13621 = vst [vmem:[#allocation93_spill] sm:$0xff] %v11277_v29 }
 0x8bf   : > { %13622 = vst [vmem:[#allocation80_spill] sm:$0xff] %v11279_v58  ;;  %v4938_v58 = vperm.slane %v11300_v16, 1 }
 0x8c0   : > { %5485 = vrot.lane.b32.xlu2 %v10681_v4, %s13345_s25  ;;  %5299 = vrot.lane.b32.xlu1 %v10674_v10, %s13325_s23 }
 0x8c1   : > { %5301 = vrot.lane.b32.xlu0 %v10681_v4, %s13325_s23 }
 0x8c2   : > { %v5118_v44 = vpop.permute.xlu2 %5117  ;;  %v11287_v30 = vpop.permute.xlu1 %4913 }
 0x8c3   : > { %v4880_v40 = vpop.permute.xlu0 %4879 }
 0x8c4   : > { %v4884_v18 = vsel %vm1255_vm2, %v4872_v42, %v4880_v40  ;;  %v11293_v59 = vsel %vm1255_vm2, %v4880_v40, %v4872_v42 }
 0x8c5   : > { %v11295_v38 = vmul.f32 %v4892_v47, %v4884_v18 }
 0x8c7   : > { %13623 = vst [vmem:[#allocation85_spill] sm:$0xff] %v11295_v38 }
 0x8c8   : > { %5475 = vrot.lane.b32.xlu2 %v10650_v25, %s13345_s25  ;;  %5289 = vrot.lane.b32.xlu1 %v10645_v50, %s13325_s23 }
 0x8c9   : > { %5477 = vrot.lane.b32.xlu0 %v10655_v20, %s13345_s25 }
 0x8ca   : > { %v5108_v40 = vpop.permute.xlu2 %5107  ;;  %v4920_v42 = vpop.permute.xlu1 %4919 }
 0x8cb   : > { %v11309_v47 = vpop.permute.xlu0 %4915  ;;  %v4927_v18 = vsel %vm1303_vm1, %v11162_v60, %v4920_v42  ;;  %v11317_v29 = vsel %vm1303_vm1, %v4920_v42, %v11162_v60 }
 0x8cc   : > { %v4929_v38 = vsel %vm1303_vm1, %v11309_v47, %v11243_v32  ;;  %v11323_v61 = vmul.f32 %v4938_v58, %v4927_v18 }
 0x8cd   : > { %v11325_v26 = vmul.f32 %v4938_v58, %v4929_v38 }
 0x8ce   : > { %13624 = vst [vmem:[#allocation88_spill] sm:$0xff] %v11323_v61 }
 0x8cf   : > { %13625 = vst [vmem:[#allocation108_spill] sm:$0xff] %v11325_v26 }
 0x8d0   : > { %5295 = vrot.lane.b32.xlu2 %v10663_v14, %s13325_s23  ;;  %5483 = vrot.lane.b32.xlu1 %v10674_v10, %s13345_s25 }
 0x8d1   : > { %5297 = vrot.lane.b32.xlu0 %v10669_v33, %s13325_s23 }
 0x8d2   : > { %v5106_v60 = vpop.permute.xlu2 %5105  ;;  %v11333_v42 = vpop.permute.xlu1 %4925 }
 0x8d3   : > { %v11335_v52 = vpop.permute.xlu0 %4921  ;;  %v4930_v38 = vsel %vm1303_vm1, %v11209_v5, %v11333_v42 }
 0x8d4   : > { %v4928_v18 = vsel %vm1303_vm1, %v11287_v30, %v11335_v52  ;;  %v11345_v61 = vmul.f32 %v4938_v58, %v4930_v38  ;;  %v6625_v38 = vld [vmem:[%s12588_s3 + $0x17] ss:$8 sm:$0x3] }
 0x8d5   : > { %v11347_v39 = vmul.f32 %v4938_v58, %v4928_v18  ;;  %v5129_v58 = vperm.slane %v6625_v38, 0  ;;  %v5130_v18 = vperm.slane %v6625_v38, 1  ;;  %v11383_v38 = vperm.slane %v6622_v9, 0 }
 0x8d6   : > { %13626 = vst [vmem:[#allocation79_spill] sm:$0xff] %v11345_v61 }
 0x8d7   : > { %13627 = vst [vmem:[#allocation114_spill] sm:$0xff] %v11347_v39 }
 0x8d8   : > { %5247 = vrot.lane.b32.xlu2 %v10655_v20, %s13317_s22  ;;  %5473 = vrot.lane.b32.xlu1 %v10645_v50, %s13345_s25 }
 0x8d9   : > { %5287 = vrot.lane.b32.xlu0 %v10639_v31, %s13325_s23  ;;  %s13705_s23 = sld [smem:[#allocation133_spill]] }
 0x8da   : > { %v5104_v26 = vpop.permute.xlu2 %5103  ;;  %v4962_v48 = vpop.permute.xlu1 %4961 }
 0x8db   : > { %v11355_v34 = vpop.permute.xlu0 %4957 }
 0x8e0   : > { %5479 = vrot.lane.b32.xlu2 %v10663_v14, %s13345_s25  ;;  %5255 = vrot.lane.b32.xlu1 %v10681_v4, %s13317_s22 }
 0x8e1   : > { %5481 = vrot.lane.b32.xlu0 %v10669_v33, %s13345_s25 }
 0x8e2   : > { %v11366_v39 = vpop.permute.xlu2 %5063  ;;  %v4964_v61 = vpop.permute.xlu1 %4963 }
 0x8e3   : > { %v5110_v27 = vpop.permute.xlu0 %5109 }
 0x8e4   : > { %v5122_v24 = vsel %vm1503_vm4, %v5110_v27, %v5118_v44  ;;  %v5126_v45 = vsel %vm1503_vm4, %v5118_v44, %v5110_v27  ;;  %v11385_v27 = vperm.slane %v6622_v9, 1 }
 0x8e5   : > { %v5139_v62 = vmul.f32 %v5129_v58, %v5122_v24  ;;  %v11372_v49 = vmul.f32 %v5130_v18, %v5126_v45 }
 0x8e7   : > { %13628 = vst [vmem:[#allocation109_spill] sm:$0xff] %v11372_v49  ;;  %5914 = vmatpush.msra.mxu1 %v5139_v62 }
 0x8e8   : > { %5431 = vrot.lane.b32.xlu2 %v10655_v20, %s13338_s6  ;;  %5245 = vrot.lane.b32.xlu1 %v10650_v25, %s13317_s22 }
 0x8e9   : > { %5471 = vrot.lane.b32.xlu0 %v10639_v31, %s13345_s25 }
 0x8ea   : > { %v11387_v45 = vpop.permute.xlu2 %5069  ;;  %v5116_v24 = vpop.permute.xlu1 %5115 }
 0x8eb   : > { %v4972_v44 = vpop.permute.xlu0 %4971  ;;  %v5121_v62 = vsel %vm1503_vm4, %v5108_v40, %v5116_v24  ;;  %v5125_v49 = vsel %vm1503_vm4, %v5116_v24, %v5108_v40 }
 0x8ec   : > { %v4976_v53 = vsel %vm1351_vm15, %v4964_v61, %v4972_v44  ;;  %v4980_v43 = vsel %vm1351_vm15, %v4972_v44, %v4964_v61  ;;  %v5137_v23 = vmul.f32 %v5129_v58, %v5121_v62  ;;  %v11397_v1 = vmul.f32 %v5130_v18, %v5125_v49 }
 0x8ed   : > { %v4993_v9 = vmul.f32 %v11383_v38, %v4980_v43  ;;  %v11401_v51 = vmul.f32 %v11385_v27, %v4976_v53 }
 0x8ee   : > { %13629 = vst [vmem:[#allocation78_spill] sm:$0xff] %v11397_v1  ;;  %5915 = vmatpush.msra.mxu1 %v5137_v23 }
 0x8ef   : > { %5885 = vmatpush.msra.mxu0 %v4993_v9 }
 0x8f0   : > { %5251 = vrot.lane.b32.xlu2 %v10669_v33, %s13317_s22  ;;  %5439 = vrot.lane.b32.xlu1 %v10681_v4, %s13338_s6 }
 0x8f1   : > { %5253 = vrot.lane.b32.xlu0 %v10674_v10, %s13317_s22 }
 0x8f2   : > { %v11409_v61 = vpop.permute.xlu2 %5057  ;;  %v5114_v49 = vpop.permute.xlu1 %5113 }
 0x8f3   : > { %v4970_v40 = vpop.permute.xlu0 %4969  ;;  %v5120_v43 = vsel %vm1503_vm4, %v5106_v60, %v5114_v49  ;;  %v5124_v23 = vsel %vm1503_vm4, %v5114_v49, %v5106_v60 }
 0x8f4   : > { %v4975_v53 = vsel %vm1351_vm15, %v4962_v48, %v4970_v40  ;;  %v4979_v24 = vsel %vm1351_vm15, %v4970_v40, %v4962_v48  ;;  %v5135_v44 = vmul.f32 %v5129_v58, %v5120_v43  ;;  %v11419_v62 = vmul.f32 %v5130_v18, %v5124_v23 }
 0x8f5   : > { %v4991_v9 = vmul.f32 %v11383_v38, %v4979_v24  ;;  %v11423_v1 = vmul.f32 %v11385_v27, %v4975_v53 }
 0x8f6   : > { %13630 = vst [vmem:[#allocation81_spill] sm:$0xff] %v11419_v62  ;;  %5916 = vmatpush.msra.mxu1 %v5135_v44 }
 0x8f7   : > { %5886 = vmatpush.msra.mxu0 %v4991_v9 }
 0x8f8   : > { %5241 = vrot.lane.b32.xlu2 %v10639_v31, %s13317_s22  ;;  %5429 = vrot.lane.b32.xlu1 %v10650_v25, %s13338_s6 }
 0x8f9   : > { %5243 = vrot.lane.b32.xlu0 %v10645_v50, %s13317_s22 }
 0x8fa   : > { %v11431_v48 = vpop.permute.xlu2 %5025  ;;  %v5112_v60 = vpop.permute.xlu1 %5111 }
 0x8fb   : > { %v4968_v49 = vpop.permute.xlu0 %4967  ;;  %v5119_v40 = vsel %vm1503_vm4, %v5104_v26, %v5112_v60  ;;  %v5123_v43 = vsel %vm1503_vm4, %v5112_v60, %v5104_v26  ;;  %v6624_v26 = vld [vmem:[%s12588_s3 + $0x16] ss:$8 sm:$0x3] }
 0x8fc   : > { %v4974_v23 = vsel %vm1351_vm15, %v11261_v15, %v4968_v49  ;;  %v4978_v53 = vsel %vm1351_vm15, %v4968_v49, %v11261_v15  ;;  %v5133_v24 = vmul.f32 %v5129_v58, %v5119_v40  ;;  %v11443_v44 = vmul.f32 %v5130_v18, %v5123_v43 }
 0x8fd   : > { %v4989_v9 = vmul.f32 %v11383_v38, %v4978_v53  ;;  %v11447_v62 = vmul.f32 %v11385_v27, %v4974_v23  ;;  %v11456_v15 = vperm.slane %v6624_v26, 0  ;;  %v5084_v58 = vperm.slane %v6624_v26, 1 }
 0x8fe   : > { %13631 = vst [vmem:[#allocation115_spill] sm:$0xff] %v11443_v44  ;;  %5917 = vmatpush.msra.mxu1 %v5133_v24  ;;  %v4934_v49 = vsel %vm1303_vm1, %v11333_v42, %v11209_v5  ;;  %v4937_v42 = vperm.slane %v11300_v16, 0 }
 0x8ff   : > { %5887 = vmatpush.msra.mxu0 %v4989_v9 }
 0x900   : > { %5435 = vrot.lane.b32.xlu2 %v10669_v33, %s13338_s6  ;;  %5249 = vrot.lane.b32.xlu1 %v10663_v14, %s13317_s22 }
 0x901   : > { %5437 = vrot.lane.b32.xlu0 %v10674_v10, %s13338_s6 }
 0x902   : > { %v11460_v18 = vpop.permute.xlu2 %5013  ;;  %v5072_v60 = vpop.permute.xlu1 %5071 }
 0x903   : > { %v4966_v40 = vpop.permute.xlu0 %4965  ;;  %v5076_v43 = vsel %vm1455_vm5, %v11366_v39, %v5072_v60  ;;  %v5080_v23 = vsel %vm1455_vm5, %v5072_v60, %v11366_v39  ;;  %v4933_v39 = vsel %vm1303_vm1, %v11243_v32, %v11309_v47  ;;  %v4947_v60 = vmul.f32 %v4937_v42, %v4934_v49 }
 0x904   : > { %v4973_v53 = vsel %vm1351_vm15, %v11355_v34, %v4966_v40  ;;  %v4977_v24 = vsel %vm1351_vm15, %v4966_v40, %v11355_v34  ;;  %v5093_v9 = vmul.f32 %v11456_v15, %v5076_v43  ;;  %v11479_v5 = vmul.f32 %v5084_v58, %v5080_v23 }
 0x905   : > { %v4987_v26 = vmul.f32 %v11383_v38, %v4977_v24  ;;  %v11484_v44 = vmul.f32 %v11385_v27, %v4973_v53  ;;  %v4932_v34 = vsel %vm1303_vm1, %v11335_v52, %v11287_v30  ;;  %v4945_v16 = vmul.f32 %v4937_v42, %v4933_v39 }
 0x906   : > { %5918 = vmatpush.msra.mxu1 %v5093_v9  ;;  %v4943_v38 = vmul.f32 %v4937_v42, %v4932_v34  ;;  %v4891_v49 = vperm.slane %v11230_v37, 0  ;;  %v4941_v40 = vmul.f32 %v4937_v42, %v11317_v29  ;;  %v4845_v42 = vperm.slane %v11109_v55, 0  ;;  %v6623_v55 = vld [vmem:[%s12588_s3 + $0x15] ss:$8 sm:$0x3] }
 0x907   : > { %5888 = vmatpush.msra.mxu0 %v4987_v26  ;;  %vm13633_vm15 = vcmp.lt.s32.totalorder %v7218_v46, 31  ;;  %vm13634_vm1 = vcmp.lt.s32.totalorder %v7218_v46, 110 }
 0x908   : > { %5425 = vrot.lane.b32.xlu2 %v10639_v31, %s13338_s6  ;;  %5201 = vrot.lane.b32.xlu1 %v10655_v20, %s13308_s1  ;;  %v4901_v53 = vmul.f32 %v4891_v49, %v11293_v59  ;;  %v4897_v24 = vmul.f32 %v4891_v49, %v11251_v11  ;;  %vm13635_vm2 = vmmov %vm13634_vm1 }
 0x909   : > { %5427 = vrot.lane.b32.xlu0 %v10645_v50, %s13338_s6  ;;  %5889 = vmatpush.msra.mxu0 %v4947_v60  ;;  %v4895_v60 = vmul.f32 %v4891_v49, %v11275_v28  ;;  %v4853_v28 = vmul.f32 %v4845_v42, %v11219_v12  ;;  %vm13636_vm4 = vmmov %vm13633_vm15 }
 0x90a   : > { %v11500_v32 = vpop.permute.xlu2 %5019  ;;  %v5060_v47 = vpop.permute.xlu1 %5059 }
 0x90b   : > { %v5062_v27 = vpop.permute.xlu0 %5061  ;;  %5890 = vmatpush.msra.mxu0 %v4945_v16 }
 0x90c   : > { %v5075_v52 = vsel %vm1455_vm5, %v5062_v27, %v11387_v45  ;;  %v5079_v30 = vsel %vm1455_vm5, %v11387_v45, %v5062_v27  ;;  %v4899_v45 = vmul.f32 %v4891_v49, %v11269_v56  ;;  %v4849_v49 = vmul.f32 %v4845_v42, %v11137_v41 }
 0x90d   : > { %v5091_v43 = vmul.f32 %v11456_v15, %v5075_v52  ;;  %v11511_v23 = vmul.f32 %v5084_v58, %v5079_v30  ;;  %5891 = vmatpush.msra.mxu0 %v4943_v38  ;;  %v4855_v38 = vmul.f32 %v4845_v42, %v11182_v36 }
 0x90f   : > { %5892 = vmatpush.msra.mxu0 %v4941_v40  ;;  %5919 = vmatpush.msra.mxu1 %v5091_v43 }
 0x910   : > { %5207 = vrot.lane.b32.xlu2 %v10674_v10, %s13308_s1  ;;  %5433 = vrot.lane.b32.xlu1 %v10663_v14, %s13338_s6  ;;  %s13708_s6 = sld [smem:[#allocation129_spill]] }
 0x911   : > { %5209 = vrot.lane.b32.xlu0 %v10681_v4, %s13308_s1  ;;  %5893 = vmatpush.msra.mxu0 %v4901_v53  ;;  %v5564_v53 = vld [vmem:[%s12599_s14 + $0x8] sm:$0xff] }
 0x912   : > { %v11521_v37 = vpop.permute.xlu2 %5291  ;;  %v5066_v29 = vpop.permute.xlu1 %5065  ;;  %5872 = vmatmul.f32.vlgmr.msrb.gmra.mxu3 %v5564_v53  ;;  %v4608_v53 = vsel %vm13633_vm15, %v10869_v3, %v10901_v63  ;;  %v5566_v3 = vld [vmem:[%s12599_s14 + $0x18] sm:$0xff]  ;;  %v4607_v63 = vsel %vm13636_vm4, %v10819_v22, %v10881_v57  ;;  %vm13656_vm15 = vmmov %vm13643_vm0 }
 0x913   : > { %v5068_v59 = vpop.permute.xlu0 %5067  ;;  %5894 = vmatpush.msra.mxu0 %v4899_v45  ;;  %v5077_v9 = vsel %vm1455_vm5, %v5066_v29, %v11409_v61  ;;  %v5073_v16 = vsel %vm1455_vm5, %v11409_v61, %v5066_v29  ;;  %v5037_v61 = vperm.slane %v6623_v55, 0 }
 0x914   : > { %v5074_v56 = vsel %vm1455_vm5, %v5060_v47, %v5068_v59  ;;  %v5078_v26 = vsel %vm1455_vm5, %v5068_v59, %v5060_v47  ;;  %v11532_v39 = vmul.f32 %v5084_v58, %v5077_v9  ;;  %v5087_v47 = vmul.f32 %v11456_v15, %v5073_v16  ;;  %vm13637_vm5 = vmmov %vm13636_vm4 }
 0x915   : > { %v5089_v11 = vmul.f32 %v11456_v15, %v5074_v56  ;;  %v11536_v34 = vmul.f32 %v5084_v58, %v5078_v26  ;;  %5895 = vmatpush.msra.mxu0 %v4897_v24  ;;  %v5038_v58 = vperm.slane %v6623_v55, 1  ;;  %v4851_v15 = vmul.f32 %v4845_v42, %v11170_v2  ;;  %v11568_v2 = vld [vmem:[%s12599_s14] sm:$0xff] }
 0x916   : > { %5843 = vmatmul.f32.vlgmr.msrb.gmra.mxu2 %v11568_v2  ;;  %v5571_v55 = vld [vmem:[%s12599_s14 + $0x40] sm:$0xff] }
 0x917   : > { %5896 = vmatpush.msra.mxu0 %v4895_v60  ;;  %5920 = vmatpush.msra.mxu1 %v5089_v11  ;;  %v11599_v11 = vld [vmem:[%s12599_s14 + $0x38] sm:$0xff] }
 0x918   : > { %5197 = vrot.lane.b32.xlu2 %v10645_v50, %s13308_s1  ;;  %5385 = vrot.lane.b32.xlu1 %v10655_v20, %s13337_s5 }
 0x919   : > { %5199 = vrot.lane.b32.xlu0 %v10650_v25, %s13308_s1  ;;  %5897 = vmatpush.msra.mxu0 %v4855_v38  ;;  %v5565_v38 = vld [vmem:[%s12599_s14 + $0x10] sm:$0xff] }
 0x91a   : > { %5921 = vmatpush.msra.mxu1 %v5087_v47  ;;  %v11553_v36 = vpop.permute.xlu2 %5485  ;;  %v5016_v27 = vpop.permute.xlu1 %5015  ;;  %5875 = vmatmul.f32.gmra.mxu3 %v5571_v55 }
 0x91b   : > { %v5018_v52 = vpop.permute.xlu0 %5017  ;;  %5898 = vmatpush.msra.mxu0 %v4853_v28 }
 0x91c   : > { %v5030_v30 = vsel %vm1407_vm6, %v5018_v52, %v11431_v48  ;;  %v5034_v12 = vsel %vm1407_vm6, %v11431_v48, %v5018_v52 }
 0x91d   : > { %v5047_v40 = vmul.f32 %v5037_v61, %v5030_v30  ;;  %v11563_v43 = vmul.f32 %v5038_v58, %v5034_v12  ;;  %5899 = vmatpush.msra.mxu0 %v4851_v15  ;;  %v11629_v30 = vld [vmem:[%s12588_s3 + $0x23] ss:$8 sm:$0x3]  ;;  %v11634_v12 = vld [vmem:[%s12599_s14 + $0x70] sm:$0xff] }
 0x91e   : > { %5846 = vmatmul.f32.gmra.mxu2 %v11599_v11 }
 0x91f   : > { %5900 = vmatpush.msra.mxu0 %v4849_v49  ;;  %5922 = vmatpush.msra.mxu1 %v5047_v40  ;;  %v5578_v49 = vld [vmem:[%s12599_s14 + $0x78] sm:$0xff]  ;;  %v5572_v40 = vld [vmem:[%s12599_s14 + $0x48] sm:$0xff] }
 0x920   : > { %5391 = vrot.lane.b32.xlu2 %v10674_v10, %s13337_s5  ;;  %5205 = vrot.lane.b32.xlu1 %v10669_v33, %s13308_s1 }
 0x921   : > { %5393 = vrot.lane.b32.xlu0 %v10681_v4, %s13337_s5  ;;  %5901 = vmatmul.f32.vlgmr.msra.gmra.mxu0 %v5565_v38  ;;  %v13638_v38 = vld [vmem:[#allocation107_spill] sm:$0xff] }
 0x922   : > { %v11577_v41 = vpop.permute.xlu2 %5475  ;;  %v5022_v48 = vpop.permute.xlu1 %5021  ;;  %5878 = vmatmul.f32.gmra.mxu3 %v5578_v49  ;;  %v13640_v49 = vld [vmem:[#allocation42_spill] sm:$0xff] }
 0x923   : > { %v5024_v45 = vpop.permute.xlu0 %5023  ;;  %v5032_v29 = vsel %vm1407_vm6, %v5022_v48, %v11460_v18  ;;  %v5028_v9 = vsel %vm1407_vm6, %v11460_v18, %v5022_v48 }
 0x924   : > { %v5029_v24 = vsel %vm1407_vm6, %v5016_v27, %v5024_v45  ;;  %v5033_v59 = vsel %vm1407_vm6, %v5024_v45, %v5016_v27  ;;  %v11592_v42 = vmul.f32 %v5038_v58, %v5032_v29  ;;  %v5043_v60 = vmul.f32 %v5037_v61, %v5028_v9 }
 0x925   : > { %v5045_v56 = vmul.f32 %v5037_v61, %v5029_v24  ;;  %v11594_v26 = vmul.f32 %v5038_v58, %v5033_v59  ;;  %v4616_v29 = vperm.slane %v10892_v8, 1  ;;  %v6633_v8 = vld [vmem:[%s12588_s3 + $0x27] ss:$8 sm:$0x3] }
 0x926   : > { %5849 = vmatmul.f32.gmra.mxu2 %v11634_v12  ;;  %v11695_v57 = vperm.slane %v6633_v8, 0  ;;  %v11697_v55 = vperm.slane %v6633_v8, 1  ;;  %v13645_v8 = vld [vmem:[#allocation46_spill] sm:$0xff] }
 0x927   : > { %5923 = vmatpush.msra.mxu1 %v5045_v56  ;;  %v4626_v9 = vmul.f32 %v4616_v29, %v4608_v53  ;;  %v4606_v56 = vsel %vm13637_vm5, %v10871_v21, %v10831_v6  ;;  %v4624_v22 = vmul.f32 %v4616_v29, %v4607_v63  ;;  %v5573_v63 = vld [vmem:[%s12599_s14 + $0x50] sm:$0xff] }
 0x928   : > { %5381 = vrot.lane.b32.xlu2 %v10645_v50, %s13337_s5  ;;  %5195 = vrot.lane.b32.xlu1 %v10639_v31, %s13308_s1 }
 0x929   : > { %5383 = vrot.lane.b32.xlu0 %v10650_v25, %s13337_s5  ;;  %5924 = vmatpush.msra.mxu1 %v5043_v60 }
 0x92a   : > { %v11607_v18 = vpop.permute.xlu2 %5295  ;;  %v11609_v16 = vpop.permute.xlu1 %5293  ;;  %5904 = vmatmul.f32.gmra.mxu0 %v5572_v40  ;;  %v13641_v40 = vld [vmem:[#allocation43_spill] sm:$0xff] }
 0x92b   : > { %v5012_v47 = vpop.permute.xlu0 %5011 }
 0x92c   : > { %v5027_v28 = vsel %vm1407_vm6, %v5012_v47, %v11500_v32  ;;  %v5031_v27 = vsel %vm1407_vm6, %v11500_v32, %v5012_v47  ;;  %v11644_v32 = vperm.slane %v11629_v30, 0  ;;  %vm13639_vm6 = vmmov %vm13636_vm4 }
 0x92d   : > { %v5041_v15 = vmul.f32 %v5037_v61, %v5027_v28  ;;  %v11624_v52 = vmul.f32 %v5038_v58, %v5031_v27  ;;  %v4605_v6 = vsel %vm13639_vm6, %v13638_v38, %v10883_v13  ;;  %v5579_v28 = vld [vmem:[%s12599_s14 + $0x80] sm:$0xff]  ;;  %v4562_v13 = vsel %vm13642_vm10, %v13641_v40, %v13640_v49  ;;  %v13649_v38 = vld [vmem:[#allocation38_spill] sm:$0xff] }
 0x92e   : > { %vm13671_vm10 = vcmp.lt.s32.totalorder %v7218_v46, 34 }
 0x92f   : > { %13632 = vst [vmem:[#allocation94_spill] sm:$0xff] %v11624_v52  ;;  %5925 = vmatpush.msra.mxu1 %v5041_v15  ;;  %v4622_v15 = vmul.f32 %v4616_v29, %v4606_v56  ;;  %v13646_v56 = vld [vmem:[#allocation54_spill] sm:$0xff] }
 0x930   : > { %5163 = vrot.lane.b32.xlu2 %v10681_v4, %s13301_s18  ;;  %5389 = vrot.lane.b32.xlu1 %v10669_v33, %s13337_s5 }
 0x931   : > { %5203 = vrot.lane.b32.xlu0 %v10663_v14, %s13308_s1  ;;  %5926 = vmatpush.msra.mxu1 %v10655_v20 }
 0x932   : > { %v11646_v61 = vpop.permute.xlu2 %5247  ;;  %v11648_v58 = vpop.permute.xlu1 %5299  ;;  %5907 = vmatmul.f32.gmra.mxu0 %v5579_v28  ;;  %v13650_v28 = vld [vmem:[#allocation64_spill] sm:$0xff] }
 0x933   : > { %v11657_v48 = vpop.permute.xlu0 %5301  ;;  %5927 = vmatpush.msra.mxu1 %v10650_v25  ;;  %v5305_v59 = vsel %vm13635_vm2, %v11521_v37, %v11648_v58 }
 0x934   : > { %v5306_v45 = vsel %vm13634_vm1, %v11609_v16, %v11657_v48  ;;  %v5321_v60 = vmul.f32 %v11644_v32, %v5305_v59  ;;  %vm13659_vm1 = vcmp.lt.s32.totalorder %v7218_v46, 33 }
 0x935   : > { %v5323_v24 = vmul.f32 %v11644_v32, %v5306_v45  ;;  %5928 = vmatpush.msra.mxu1 %v10645_v50  ;;  %vm13662_vm4 = vmmov %vm13659_vm1 }
 0x936   : > { %vm13665_vm5 = vmmov %vm13659_vm1 }
 0x937   : > { %5929 = vmatpush.msra.mxu1 %v10639_v31  ;;  %5943 = vmatpush.msra.mxu2 %v5323_v24  ;;  %vm13668_vm6 = vmmov %vm13659_vm1 }
 0x938   : > { %5930 = vmatmul.f32.vlgmr.msra.gmra.mxu1 %v5566_v3  ;;  %5153 = vrot.lane.b32.xlu2 %v10650_v25, %s13301_s18  ;;  %v4620_v3 = vmul.f32 %v4616_v29, %v4605_v6  ;;  %v13652_v6 = vld [vmem:[#allocation31_spill] sm:$0xff] }
 0x939   : > { %6030 = vmatpush.msrb.mxu1 %v4626_v9  ;;  %5155 = vrot.lane.b32.xlu0 %v10655_v20, %s13301_s18  ;;  %v4570_v9 = vperm.slane %v13645_v8, 1  ;;  %v13658_v8 = vld [vmem:[#allocation50_spill] sm:$0xff] }
 0x93a   : > { %5379 = vrot.lane.b32.xlu1 %v10639_v31, %s13337_s5  ;;  %5944 = vmatpush.msra.mxu2 %v5321_v60  ;;  %v11705_v21 = vpop.permute.xlu2 %5479  ;;  %v11707_v47 = vpop.permute.xlu1 %5289  ;;  %v13647_v60 = vld [vmem:[#allocation59_spill] sm:$0xff] }
 0x93b   : > { %6031 = vmatpush.msrb.mxu1 %v4624_v22  ;;  %v5478_v27 = vpop.permute.xlu0 %5477  ;;  %v4561_v22 = vsel %vm13648_vm7, %v13647_v60, %v13646_v56 }
 0x93c   : > { %v5490_v53 = vsel %vm13643_vm0, %v5478_v27, %v11553_v36  ;;  %v5494_v45 = vsel %vm13644_vm9, %v11553_v36, %v5478_v27  ;;  %v4580_v36 = vmul.f32 %v4570_v9, %v4562_v13  ;;  %v4560_v27 = vsel %vm13651_vm8, %v13650_v28, %v13649_v38  ;;  %v5580_v28 = vld [vmem:[%s12599_s14 + $0x88] sm:$0xff]  ;;  %vm13672_vm0 = vmmov %vm13635_vm2 }
 0x93d   : > { %v5507_v24 = vmul.f32 %v11695_v57, %v5490_v53  ;;  %v11724_v59 = vmul.f32 %v11697_v55, %v5494_v45  ;;  %6032 = vmatpush.msrb.mxu1 %v4622_v15  ;;  %v4578_v29 = vmul.f32 %v4570_v9, %v4561_v22  ;;  %v13653_v15 = vld [vmem:[#allocation33_spill] sm:$0xff]  ;;  %vm13676_vm9 = vmmov %vm13671_vm10 }
 0x93e   : > { %v4559_v49 = vsel %vm13654_vm3, %v13653_v15, %v13652_v6  ;;  %v13660_v6 = vld [vmem:[#allocation73_spill] sm:$0xff]  ;;  %v13661_v15 = vld [vmem:[#allocation27_spill] sm:$0xff]  ;;  %vm13679_vm7 = vmmov %vm13676_vm9 }
 0x93f   : > { %6033 = vmatpush.msrb.mxu1 %v4620_v3  ;;  %5972 = vmatpush.msra.mxu3 %v5507_v24  ;;  %v4576_v3 = vmul.f32 %v4570_v9, %v4560_v27  ;;  %v6743_v27 = vld [vmem:[%s12588_s3 + $0x1] ss:$8 sm:$0x3]  ;;  %vm13682_vm8 = vmmov %vm13679_vm7 }
 0x940   : > { %5933 = vmatmul.f32.gmra.mxu1 %v5573_v63  ;;  %5347 = vrot.lane.b32.xlu2 %v10681_v4, %s13331_s2  ;;  %v13657_v63 = vld [vmem:[#allocation67_spill] sm:$0xff]  ;;  %vm13684_vm3 = vmmov %vm13672_vm0 }
 0x941   : > { %6034 = vmatpush.msrb.mxu1 %v4580_v36  ;;  %5387 = vrot.lane.b32.xlu0 %v10663_v14, %s13337_s5  ;;  %v4516_v56 = vsel %vm13659_vm1, %v13658_v8, %v13657_v63  ;;  %v13666_v63 = vld [vmem:[#allocation17_spill] sm:$0xff]  ;;  %v13667_v8 = vld [vmem:[#allocation70_spill] sm:$0xff]  ;;  %vm13686_vm1 = vmmov %vm13656_vm15 }
 0x942   : > { %5161 = vrot.lane.b32.xlu1 %v10674_v10, %s13301_s18  ;;  %v11748_v40 = vpop.permute.xlu2 %5431  ;;  %v5484_v13 = vpop.permute.xlu1 %5483 }
 0x943   : > { %6035 = vmatpush.msrb.mxu1 %v4578_v29  ;;  %v11750_v53 = vpop.permute.xlu0 %5297  ;;  %v5489_v45 = vsel %vm13655_vm11, %v11577_v41, %v5484_v13  ;;  %v5493_v24 = vsel %vm13656_vm15, %v5484_v13, %v11577_v41  ;;  %v4574_v41 = vmul.f32 %v4570_v9, %v4559_v49  ;;  %v4524_v29 = vperm.slane %v6743_v27, 1  ;;  %v13664_v9 = vld [vmem:[#allocation25_spill] sm:$0xff]  ;;  %v13670_v27 = vld [vmem:[#allocation16_spill] sm:$0xff] }
 0x944   : > { %v5304_v60 = vsel %vm13635_vm2, %v11707_v47, %v11750_v53  ;;  %v5505_v22 = vmul.f32 %v11695_v57, %v5489_v45  ;;  %v11768_v36 = vmul.f32 %v11697_v55, %v5493_v24  ;;  %v4515_v13 = vsel %vm13662_vm4, %v13661_v15, %v13660_v6  ;;  %v13663_v24 = vld [vmem:[#allocation18_spill] sm:$0xff]  ;;  %vm13687_vm2 = vmmov %vm13672_vm0 }
 0x945   : > { %v5319_v38 = vmul.f32 %v11644_v32, %v5304_v60  ;;  %6036 = vmatpush.msrb.mxu1 %v4576_v3  ;;  %v4534_v45 = vmul.f32 %v4524_v29, %v4516_v56  ;;  %v4514_v49 = vsel %vm13665_vm5, %v13664_v9, %v13663_v24  ;;  %v4532_v3 = vmul.f32 %v4524_v29, %v4515_v13  ;;  %v11808_v24 = vld [vmem:[%s12599_s14 + $0xc0] sm:$0xff]  ;;  %vm13688_vm4 = vmmov %vm13672_vm0 }
 0x946   : > { %5973 = vmatpush.msra.mxu3 %v5505_v22  ;;  %v4513_v60 = vsel %vm13668_vm6, %v13667_v8, %v13666_v63  ;;  %13673 = vst [vmem:[#allocation84_spill] sm:$0xff] %v11808_v24  ;;  %v6744_v9 = vld [vmem:[%s12588_s3] ss:$8 sm:$0x3]  ;;  %v13674_v63 = vld [vmem:[#allocation23_spill] sm:$0xff]  ;;  %vm13685_vm11 = vcmp.lt.s32.totalorder %v7218_v46, 111  ;;  %vm13689_vm5 = vmmov %vm13672_vm0 }
 0x947   : > { %6037 = vmatpush.msrb.mxu1 %v4574_v41  ;;  %5945 = vmatpush.msra.mxu2 %v5319_v38  ;;  %v4530_v41 = vmul.f32 %v4524_v29, %v4514_v49  ;;  %v4478_v49 = vperm.slane %v6744_v9, 1  ;;  %v13675_v8 = vld [vmem:[#allocation69_spill] sm:$0xff]  ;;  %vm13691_vm6 = vmmov %vm13685_vm11 }
 0x948   : > { %5936 = vmatmul.f32.gmra.mxu1 %v5580_v28  ;;  %5337 = vrot.lane.b32.xlu2 %v10650_v25, %s13331_s2  ;;  %v13669_v28 = vld [vmem:[#allocation36_spill] sm:$0xff] }
 0x949   : > { %6038 = vmatpush.msrb.mxu1 %v4534_v45  ;;  %5339 = vrot.lane.b32.xlu0 %v10655_v20, %s13331_s2  ;;  %v4470_v6 = vsel %vm13671_vm10, %v13670_v27, %v13669_v28  ;;  %v4528_v45 = vmul.f32 %v4524_v29, %v4513_v60  ;;  %v11823_v60 = vld [vmem:[%s12599_s14 + $0xa8] sm:$0xff]  ;;  %v13678_v28 = vld [vmem:[#allocation24_spill] sm:$0xff]  ;;  %vm13692_vm10 = vmmov %vm13686_vm1 }
 0x94a   : > { %5151 = vrot.lane.b32.xlu1 %v10645_v50, %s13301_s18  ;;  %v11795_v56 = vpop.permute.xlu2 %5251  ;;  %v5474_v22 = vpop.permute.xlu1 %5473  ;;  %v4488_v29 = vmul.f32 %v4478_v49, %v4470_v6  ;;  %5852 = vmatmul.f32.gmra.mxu2 %v11823_v60 }
 0x94b   : > { %6039 = vmatpush.msrb.mxu1 %v4532_v3  ;;  %v5288_v38 = vpop.permute.xlu0 %5287  ;;  %v6628_v3 = vld [vmem:[%s12588_s3 + $0x22] ss:$8 sm:$0x3] }
 0x94c   : > { %v5303_v15 = vsel %vm13672_vm0, %v5288_v38, %v11607_v18  ;;  %vm13693_vm0 = vmmov %vm13686_vm1 }
 0x94d   : > { %v5317_v13 = vmul.f32 %v11644_v32, %v5303_v15  ;;  %6040 = vmatpush.msrb.mxu1 %v4530_v41  ;;  %v4469_v32 = vsel %vm13676_vm9, %v13675_v8, %v13674_v63  ;;  %v13677_v41 = vld [vmem:[#allocation26_spill] sm:$0xff]  ;;  %v11832_v15 = vperm.slane %v6628_v3, 0  ;;  %v5314_v63 = vperm.slane %v11629_v30, 1 }
 0x94e   : > { %v4468_v27 = vsel %vm13679_vm7, %v13678_v28, %v13677_v41  ;;  %v4486_v6 = vmul.f32 %v4478_v49, %v4469_v32  ;;  %v5310_v32 = vsel %vm13684_vm3, %v11657_v48, %v11609_v16  ;;  %v5309_v16 = vsel %vm13687_vm2, %v11648_v58, %v11521_v37  ;;  %vm13698_vm3 = vmmov %vm13691_vm6 }
 0x94f   : > { %6041 = vmatpush.msrb.mxu1 %v4528_v45  ;;  %5946 = vmatpush.msra.mxu2 %v5317_v13  ;;  %v13680_v13 = vld [vmem:[#allocation56_spill] sm:$0xff]  ;;  %v13681_v45 = vld [vmem:[#allocation35_spill] sm:$0xff]  ;;  %v5307_v37 = vsel %vm13689_vm5, %v11607_v18, %v5288_v38  ;;  %v11884_v58 = vperm.slane %v6628_v3, 1  ;;  %vm13695_vm9 = vcmp.lt.s32.totalorder %v7218_v46, 96 }
 0x950   : > { %5939 = vmatmul.f32.gmra.mxu1 %v11808_v24  ;;  %5157 = vrot.lane.b32.xlu2 %v10663_v14, %s13301_s18  ;;  %v4467_v9 = vsel %vm13682_vm8, %v13681_v45, %v13680_v13  ;;  %v4484_v13 = vmul.f32 %v4478_v49, %v4468_v27  ;;  %v5318_v38 = vmul.f32 %v5314_v63, %v5307_v37  ;;  %vm13696_vm7 = vmmov %vm13695_vm9 }
 0x951   : > { %6042 = vmatpush.msrb.mxu1 %v4488_v29  ;;  %5159 = vrot.lane.b32.xlu0 %v10669_v33, %s13301_s18  ;;  %v11849_v29 = vld [vmem:[%s12599_s14 + $0xb0] sm:$0xff]  ;;  %v4482_v27 = vmul.f32 %v4478_v49, %v4467_v9  ;;  %vm13697_vm8 = vmmov %vm13691_vm6 }
 0x952   : > { %5345 = vrot.lane.b32.xlu1 %v10674_v10, %s13331_s2  ;;  %v11843_v8 = vpop.permute.xlu2 %5241  ;;  %v5256_v41 = vpop.permute.xlu1 %5255  ;;  %13683 = vst [vmem:[#allocation101_spill] sm:$0xff] %v11849_v29  ;;  %5881 = vmatmul.f32.gmra.mxu3 %v11849_v29  ;;  %v5324_v29 = vmul.f32 %v5314_v63, %v5310_v32 }
 0x953   : > { %6043 = vmatpush.msrb.mxu1 %v4486_v6  ;;  %v5482_v30 = vpop.permute.xlu0 %5481  ;;  %v5260_v28 = vsel %vm13685_vm11, %v11646_v61, %v5256_v41  ;;  %vm13699_vm11 = vmmov %vm13698_vm3 }
 0x954   : > { %v5488_v45 = vsel %vm13656_vm15, %v5474_v22, %v5482_v30  ;;  %v5492_v24 = vsel %vm13686_vm1, %v5482_v30, %v5474_v22  ;;  %v5277_v52 = vmul.f32 %v11832_v15, %v5260_v28  ;;  %v5308_v22 = vsel %vm13688_vm4, %v11750_v53, %v11707_v47  ;;  %vm13700_vm15 = vmmov %vm13698_vm3 }
 0x955   : > { %v5503_v48 = vmul.f32 %v11695_v57, %v5488_v45  ;;  %v11870_v6 = vmul.f32 %v11697_v55, %v5492_v24  ;;  %6044 = vmatpush.msrb.mxu1 %v4484_v13  ;;  %v5322_v30 = vmul.f32 %v5314_v63, %v5309_v16  ;;  %v11893_v24 = vld [vmem:[%s12599_s14 + $0xb8] sm:$0xff]  ;;  %vm13701_vm1 = vmmov %vm13698_vm3 }
 0x956   : > { %5947 = vmatpush.msra.mxu2 %v5277_v52  ;;  %v5320_v52 = vmul.f32 %v5314_v63, %v5308_v22  ;;  %13690 = vst [vmem:[#allocation116_spill] sm:$0xff] %v11893_v24  ;;  %5910 = vmatmul.f32.gmra.mxu0 %v11893_v24  ;;  %vm13702_vm2 = vmmov %vm13701_vm1 }
 0x957   : > { %6045 = vmatpush.msrb.mxu1 %v4482_v27  ;;  %5974 = vmatpush.msra.mxu3 %v5503_v48  ;;  %vm13703_vm4 = vmmov %vm13696_vm7 }
 0x958   : > { %5333 = vrot.lane.b32.xlu2 %v10639_v31, %s13331_s2  ;;  %6046 = vmatmul.f32.vlgmr.msrb.gmra.mxu1 %v11568_v2  ;;  %v5264_v2 = vsel %vm13691_vm6, %v5256_v41, %v11646_v61  ;;  %v6632_v61 = vld [vmem:[%s12588_s3 + $0x26] ss:$8 sm:$0x3]  ;;  %vm13704_vm5 = vmmov %vm13703_vm4 }
 0x959   : > { %6146 = vmatpush.msra.mxu1 %v5324_v29  ;;  %5149 = vrot.lane.b32.xlu0 %v10639_v31, %s13301_s18  ;;  %v5278_v63 = vmul.f32 %v11884_v58, %v5264_v2  ;;  %v11915_v41 = vperm.slane %v6632_v61, 0  ;;  %vm13706_vm6 = vmmov %vm13703_vm4  ;;  %s560_s18 = scalar_lea.vmem %s13828_s0, %s6541_s8 }
 0x95a   : > { %5335 = vrot.lane.b32.xlu1 %v10645_v50, %s13331_s2  ;;  %v11888_v47 = vpop.permute.xlu2 %5435  ;;  %v5246_v53 = vpop.permute.xlu1 %5245 }
 0x95b   : > { %6147 = vmatpush.msra.mxu1 %v5322_v30  ;;  %v5472_v18 = vpop.permute.xlu0 %5471 }
 0x95c   : > { %v5487_v49 = vsel %vm13692_vm10, %v5472_v18, %v11705_v21  ;;  %v5491_v3 = vsel %vm13693_vm0, %v11705_v21, %v5472_v18  ;;  %v11917_v21 = vperm.slane %v6632_v61, 1  ;;  %vm13707_vm10 = vmmov %vm13703_vm4 }
 0x95d   : > { %6148 = vmatpush.msra.mxu1 %v5320_v52  ;;  %v5501_v9 = vmul.f32 %v11695_v57, %v5487_v49  ;;  %v11907_v29 = vmul.f32 %v11697_v55, %v5491_v3  ;;  %vm13709_vm0 = vmmov %vm13703_vm4 }
 0x95f   : > { %6149 = vmatpush.msra.mxu1 %v5318_v38  ;;  %5975 = vmatpush.msra.mxu3 %v5501_v9 }
 0x960   : > { %5531 = vrot.lane.b32.xlu2 %v10681_v4, %s13694_s19  ;;  %6049 = vmatmul.f32.gmra.mxu1 %v11599_v11 }
 0x961   : > { %6150 = vmatpush.msra.mxu1 %v5278_v63  ;;  %5343 = vrot.lane.b32.xlu0 %v10669_v33, %s13331_s2  ;;  %v5793_v63 = vld [vmem:[%s13705_s23 + $0x10] sm:$0xff] }
 0x962   : > { %5341 = vrot.lane.b32.xlu1 %v10663_v14, %s13331_s2  ;;  %v11924_v57 = vpop.permute.xlu2 %5425  ;;  %v5440_v55 = vpop.permute.xlu1 %5439 }
 0x963   : > { %v5254_v32 = vpop.permute.xlu0 %5253  ;;  %v5444_v28 = vsel %vm13695_vm9, %v11748_v40, %v5440_v55  ;;  %v5448_v13 = vsel %vm13696_vm7, %v5440_v55, %v11748_v40  ;;  %vm13710_vm9 = vmmov %vm13709_vm0  ;;  %vm13711_vm7 = vcmp.lt.s32.totalorder %v7218_v46, 112 }
 0x964   : > { %v5259_v11 = vsel %vm13697_vm8, %v5246_v53, %v5254_v32  ;;  %v5263_v45 = vsel %vm13698_vm3, %v5254_v32, %v5246_v53  ;;  %v5461_v16 = vmul.f32 %v11915_v41, %v5444_v28  ;;  %v11938_v48 = vmul.f32 %v11917_v21, %v5448_v13  ;;  %vm13712_vm8 = vmmov %vm13711_vm7 }
 0x965   : > { %v5275_v27 = vmul.f32 %v11832_v15, %v5259_v11  ;;  %v5276_v22 = vmul.f32 %v11884_v58, %v5263_v45  ;;  %v5792_v45 = vld [vmem:[%s13705_s23 + $0x8] sm:$0xff]  ;;  %vm13714_vm3 = vmmov %vm13711_vm7 }
 0x966   : > { %5976 = vmatpush.msra.mxu3 %v5461_v16  ;;  %v6627_v16 = vld [vmem:[%s12588_s3 + $0x21] ss:$8 sm:$0x3] }
 0x967   : > { %5948 = vmatpush.msra.mxu2 %v5275_v27  ;;  %6151 = vmatpush.msra.mxu1 %v5276_v22  ;;  %v12016_v27 = vperm.slane %v6627_v16, 0  ;;  %v12018_v22 = vperm.slane %v6627_v16, 1 }
 0x968   : > { %5519 = vrot.lane.b32.xlu2 %v10645_v50, %s13694_s19  ;;  %6052 = vmatmul.f32.gmra.mxu1 %v11634_v12 }
 0x969   : > { %5523 = vrot.lane.b32.xlu0 %v10655_v20, %s13694_s19 }
 0x96a   : > { %5521 = vrot.lane.b32.xlu1 %v10650_v25, %s13694_s19  ;;  %v11949_v40 = vpop.permute.xlu2 %5207  ;;  %v5430_v30 = vpop.permute.xlu1 %5429 }
 0x96b   : > { %v5244_v37 = vpop.permute.xlu0 %5243 }
 0x96c   : > { %v5258_v52 = vsel %vm13699_vm11, %v5244_v37, %v11795_v56  ;;  %v5262_v50 = vsel %vm13700_vm15, %v11795_v56, %v5244_v37  ;;  %vm13715_vm11 = vmmov %vm13714_vm3 }
 0x96d   : > { %v5273_v12 = vmul.f32 %v11832_v15, %v5258_v52  ;;  %v5274_v53 = vmul.f32 %v11884_v58, %v5262_v50  ;;  %vm13716_vm15 = vmmov %vm13714_vm3 }
 0x96f   : > { %5949 = vmatpush.msra.mxu2 %v5273_v12  ;;  %6152 = vmatpush.msra.mxu1 %v5274_v53 }
 0x970   : > { %5525 = vrot.lane.b32.xlu2 %v10663_v14, %s13694_s19  ;;  %6055 = vmatmul.f32.gmra.mxu1 %v11823_v60  ;;  %v13748_v14 = vld [vmem:[#allocation60_spill] sm:$0xff] }
 0x971   : > { %5529 = vrot.lane.b32.xlu0 %v10674_v10, %s13694_s19 }
 0x972   : > { %5527 = vrot.lane.b32.xlu1 %v10669_v33, %s13694_s19  ;;  %v11966_v25 = vpop.permute.xlu2 %5197  ;;  %v5250_v20 = vpop.permute.xlu1 %5249  ;;  %v13749_v33 = vld [vmem:[#allocation45_spill] sm:$0xff] }
 0x973   : > { %v5438_v56 = vpop.permute.xlu0 %5437  ;;  %v5257_v2 = vsel %vm13701_vm1, %v11843_v8, %v5250_v20  ;;  %v5261_v18 = vsel %vm13702_vm2, %v5250_v20, %v11843_v8  ;;  %v5791_v8 = vld [vmem:[%s13705_s23] sm:$0xff]  ;;  %vm13717_vm1 = vmmov %vm13714_vm3  ;;  %vm13718_vm2 = vcmp.lt.s32.totalorder %v7218_v46, 97 }
 0x974   : > { %v5443_v38 = vsel %vm13703_vm4, %v5430_v30, %v5438_v56  ;;  %v5447_v60 = vsel %vm13704_vm5, %v5438_v56, %v5430_v30  ;;  %v5271_v49 = vmul.f32 %v11832_v15, %v5257_v2  ;;  %v5272_v3 = vmul.f32 %v11884_v58, %v5261_v18  ;;  %vm13719_vm4 = vmmov %vm13718_vm2 }
 0x975   : > { %v5459_v9 = vmul.f32 %v11915_v41, %v5443_v38  ;;  %v11982_v61 = vmul.f32 %v11917_v21, %v5447_v60  ;;  %v6371_v60 = vld [vmem:[%s13713_s13] sm:$0xff]  ;;  %vm13720_vm5 = vmmov %vm13718_vm2 }
 0x976   : > { %5950 = vmatpush.msra.mxu2 %v5271_v49  ;;  %6153 = vmatpush.msra.mxu1 %v5272_v3 }
 0x977   : > { %5977 = vmatpush.msra.mxu3 %v5459_v9 }
 0x978   : > { %5807 = vperm.xlu2 %6689, %v5793_v63  }
 0x979   : > { %5517 = vrot.lane.b32.xlu0 %v10639_v31, %s13694_s19  ;;  %v6254_v31 = vld [vmem:[%s13708_s6 + $0x8] sm:$0xff] }
 0x97a   : > { %5797 = vperm.xlu1 %6691, %v5791_v8   ;;  %v11992_v15 = vpop.permute.xlu2 %5391  ;;  %v5202_v58 = vpop.permute.xlu1 %5201 }
 0x97b   : > { %v5428_v55 = vpop.permute.xlu0 %5427 }
 0x97c   : > { %v5442_v32 = vsel %vm13706_vm6, %v5428_v55, %v11888_v47  ;;  %v5446_v28 = vsel %vm13707_vm10, %v11888_v47, %v5428_v55  ;;  %v5794_v47 = vld [vmem:[%s13705_s23 + $0x18] sm:$0xff]  ;;  %vm13721_vm6 = vmmov %vm13718_vm2 }
 0x97d   : > { %v5457_v13 = vmul.f32 %v11915_v41, %v5442_v32  ;;  %v12002_v11 = vmul.f32 %v11917_v21, %v5446_v28  ;;  %v6374_v55 = vld [vmem:[%s13713_s13 + $0x18] sm:$0xff]  ;;  %v6631_v28 = vld [vmem:[%s12588_s3 + $0x25] ss:$8 sm:$0x3]  ;;  %vm13722_vm10 = vmmov %vm13718_vm2 }
 0x97e   : > { %v6256_v32 = vld [vmem:[%s13708_s6 + $0x18] sm:$0xff] }
 0x97f   : > { %5978 = vmatpush.msra.mxu3 %v5457_v13  ;;  %v5405_v13 = vperm.slane %v6631_v28, 0 }
 0x980   : > { %6264 = vperm.xlu2 %6689, %v6254_v31   ;;  %v5406_v31 = vperm.slane %v6631_v28, 1 }
 0x981   : > { %5802 = vperm.xlu0 %6690, %v5792_v45  }
 0x982   : > { %5812 = vperm.xlu1 %6691, %v5794_v47   ;;  %v12020_v30 = vpop.permute.xlu2 %5381  ;;  %v5434_v37 = vpop.permute.xlu1 %5433 }
 0x983   : > { %v5210_v52 = vpop.permute.xlu0 %5209  ;;  %v5441_v50 = vsel %vm13709_vm0, %v11924_v57, %v5434_v37  ;;  %v5445_v12 = vsel %vm13710_vm9, %v5434_v37, %v11924_v57  ;;  %v6253_v57 = vld [vmem:[%s13708_s6] sm:$0xff]  ;;  %vm13723_vm0 = vmmov %vm13718_vm2 }
 0x984   : > { %v5214_v53 = vsel %vm13711_vm7, %v5202_v58, %v5210_v52  ;;  %v5218_v20 = vsel %vm13712_vm8, %v5210_v52, %v5202_v58  ;;  %v5455_v56 = vmul.f32 %v11915_v41, %v5441_v50  ;;  %v12034_v2 = vmul.f32 %v11917_v21, %v5445_v12  ;;  %v6255_v41 = vld [vmem:[%s13708_s6 + $0x10] sm:$0xff]  ;;  %vm13724_vm9 = vmmov %vm13717_vm1 }
 0x985   : > { %v5231_v18 = vmul.f32 %v12016_v27, %v5214_v53  ;;  %v5232_v38 = vmul.f32 %v12018_v22, %v5218_v20  ;;  %vm13725_vm7 = vmmov %vm13717_vm1  ;;  %vm13726_vm8 = vcmp.lt.s32.totalorder %v7218_v46, 113 }
 0x986   : > { %5979 = vmatpush.msra.mxu3 %v5455_v56 }
 0x987   : > { %5951 = vmatpush.msra.mxu2 %v5231_v18  ;;  %6154 = vmatpush.msra.mxu1 %v5232_v38  ;;  %v6373_v38 = vld [vmem:[%s13713_s13 + $0x10] sm:$0xff] }
 0x988   : > { %6377 = vperm.xlu2 %6689, %v6371_v60  }
 0x989   : > { %6259 = vperm.xlu0 %6690, %v6253_v57  }
 0x98a   : > { %6269 = vperm.xlu1 %6691, %v6255_v41   ;;  %v12047_v21 = vpop.permute.xlu2 %5163  ;;  %v5386_v49 = vpop.permute.xlu1 %5385 }
 0x98b   : > { %v5200_v3 = vpop.permute.xlu0 %5199 }
 0x98c   : > { %v5213_v9 = vsel %vm13714_vm3, %v5200_v3, %v11949_v40  ;;  %v5217_v63 = vsel %vm13715_vm11, %v11949_v40, %v5200_v3  ;;  %v6372_v40 = vld [vmem:[%s13713_s13 + $0x8] sm:$0xff]  ;;  %vm13727_vm3 = vmmov %vm13726_vm8 }
 0x98d   : > { %v5229_v8 = vmul.f32 %v12016_v27, %v5213_v9  ;;  %v5230_v58 = vmul.f32 %v12018_v22, %v5217_v63  ;;  %vm13728_vm11 = vmmov %vm13723_vm0 }
 0x98f   : > { %5952 = vmatpush.msra.mxu2 %v5229_v8  ;;  %6155 = vmatpush.msra.mxu1 %v5230_v58 }
 0x990   : > { %6392 = vperm.xlu2 %6689, %v6374_v55  }
 0x991   : > { %6274 = vperm.xlu0 %6690, %v6256_v32  }
 0x992   : > { %6382 = vperm.xlu1 %6691, %v6372_v40   ;;  %v5154_v45 = vpop.permute.xlu2 %5153  ;;  %v5206_v16 = vpop.permute.xlu1 %5205 }
 0x993   : > { %v5394_v47 = vpop.permute.xlu0 %5393  ;;  %v5212_v37 = vsel %vm13716_vm15, %v11966_v25, %v5206_v16  ;;  %v5216_v52 = vsel %vm13717_vm1, %v5206_v16, %v11966_v25  ;;  %vm13729_vm15 = vmmov %vm13723_vm0 }
 0x994   : > { %v5398_v50 = vsel %vm13718_vm2, %v5386_v49, %v5394_v47  ;;  %v5402_v12 = vsel %vm13719_vm4, %v5394_v47, %v5386_v49  ;;  %v5227_v53 = vmul.f32 %v12016_v27, %v5212_v37  ;;  %v5228_v20 = vmul.f32 %v12018_v22, %v5216_v52  ;;  %v6626_v52 = vld [vmem:[%s12588_s3 + $0x20] ss:$8 sm:$0x3]  ;;  %vm13730_vm1 = vmmov %vm13727_vm3 }
 0x995   : > { %v5415_v56 = vmul.f32 %v5405_v13, %v5398_v50  ;;  %v12081_v18 = vmul.f32 %v5406_v31, %v5402_v12  ;;  %v5176_v50 = vperm.slane %v6626_v52, 1  ;;  %vm13731_vm2 = vmmov %vm13730_vm1  ;;  %vm13732_vm4 = vcmp.lt.s32.totalorder %v7218_v46, 98 }
 0x996   : > { %5953 = vmatpush.msra.mxu2 %v5227_v53  ;;  %6156 = vmatpush.msra.mxu1 %v5228_v20 }
 0x997   : > { %5980 = vmatpush.msra.mxu3 %v5415_v56 }
 0x999   : > { %6387 = vperm.xlu0 %6690, %v6373_v38  }
 0x99a   : > { %v5348_v25 = vpop.permute.xlu2 %5347  ;;  %v5196_v60 = vpop.permute.xlu1 %5195 }
 0x99b   : > { %v5384_v57 = vpop.permute.xlu0 %5383 }
 0x99c   : > { %v5397_v41 = vsel %vm13720_vm5, %v5384_v57, %v11992_v15  ;;  %v5401_v49 = vsel %vm13721_vm6, %v11992_v15, %v5384_v57  ;;  %vm13733_vm5 = vmmov %vm13732_vm4 }
 0x99d   : > { %v5413_v3 = vmul.f32 %v5405_v13, %v5397_v41  ;;  %v12092_v9 = vmul.f32 %v5406_v31, %v5401_v49  ;;  %vm13734_vm6 = vmmov %vm13730_vm1 }
 0x99f   : > { %5981 = vmatpush.msra.mxu3 %v5413_v3 }
 0x9a2   : > { %v12094_v63 = vpop.permute.xlu2 %5337  ;;  %v5390_v8 = vpop.permute.xlu1 %5389 }
 0x9a3   : > { %v5204_v58 = vpop.permute.xlu0 %5203  ;;  %v5396_v55 = vsel %vm13722_vm10, %v12020_v30, %v5390_v8  ;;  %v5400_v32 = vsel %vm13723_vm0, %v5390_v8, %v12020_v30  ;;  %v5175_v30 = vperm.slane %v6626_v52, 0  ;;  %vm13735_vm10 = vmmov %vm13730_vm1 }
 0x9a4   : > { %v5211_v28 = vsel %vm13724_vm9, %v5196_v60, %v5204_v58  ;;  %v5215_v15 = vsel %vm13725_vm7, %v5204_v58, %v5196_v60  ;;  %v5411_v40 = vmul.f32 %v5405_v13, %v5396_v55  ;;  %v12106_v16 = vmul.f32 %v5406_v31, %v5400_v32  ;;  %vm13736_vm0 = vmmov %vm13732_vm4 }
 0x9a5   : > { %v5225_v47 = vmul.f32 %v12016_v27, %v5211_v28  ;;  %v5226_v37 = vmul.f32 %v12018_v22, %v5215_v15  ;;  %v6630_v15 = vld [vmem:[%s12588_s3 + $0x24] ss:$8 sm:$0x3]  ;;  %vm13737_vm9 = vmmov %vm13736_vm0 }
 0x9a6   : > { %5982 = vmatpush.msra.mxu3 %v5411_v40  ;;  %v12134_v40 = vperm.slane %v6630_v15, 0  ;;  %vm13738_vm7 = vmmov %vm13730_vm1 }
 0x9a7   : > { %5954 = vmatpush.msra.mxu2 %v5225_v47  ;;  %6157 = vmatpush.msra.mxu1 %v5226_v37 }
 0x9aa   : > { %v5158_v12 = vpop.permute.xlu2 %5157 }
 0x9ab   : > { %v5156_v53 = vpop.permute.xlu0 %5155 }
 0x9ac   : > { %v5168_v20 = vsel %vm13726_vm8, %v5156_v53, %v12047_v21  ;;  %v5172_v27 = vsel %vm13727_vm3, %v12047_v21, %v5156_v53  ;;  %v5380_v22 = vpop.permute.xlu1 %5379  ;;  %v12144_v53 = vpop.f32.mrf.mxu2  ;;  %vm13739_vm8 = vmmov %vm13730_vm1 }
 0x9ad   : > { %v5185_v56 = vmul.f32 %v5175_v30, %v5168_v20  ;;  %v5186_v38 = vmul.f32 %v5176_v50, %v5172_v27  ;;  %vm13744_vm3 = vmmov %vm13736_vm0 }
 0x9af   : > { %5955 = vmatpush.msra.mxu2 %v5185_v56  ;;  %6158 = vmatpush.msra.mxu1 %v5186_v38  ;;  %v12152_v56 = vpop.f32.mrf.mxu0 }
 0x9b2   : > { %v12119_v60 = vpop.permute.xlu2 %5333 }
 0x9b3   : > { %v5388_v57 = vpop.permute.xlu0 %5387 }
 0x9b4   : > { %v5395_v41 = vsel %vm13728_vm11, %v5380_v22, %v5388_v57  ;;  %v5399_v49 = vsel %vm13729_vm15, %v5388_v57, %v5380_v22  ;;  %v5162_v3 = vpop.permute.xlu1 %5161  ;;  %v12150_v22 = vpop.f32.mrf.mxu3  ;;  %vm13745_vm11 = vmmov %vm13736_vm0 }
 0x9b5   : > { %v5409_v8 = vmul.f32 %v5405_v13, %v5395_v41  ;;  %v12125_v58 = vmul.f32 %v5406_v31, %v5399_v49  ;;  %v5167_v21 = vsel %vm13730_vm1, %v5154_v45, %v5162_v3  ;;  %v5171_v55 = vsel %vm13731_vm2, %v5162_v3, %v5154_v45  ;;  %v12160_v3 = vpop.f32.mrf.mxu1 }
 0x9b6   : > { %v5183_v32 = vmul.f32 %v5175_v30, %v5167_v21  ;;  %v5184_v28 = vmul.f32 %v5176_v50, %v5171_v55  ;;  %v12136_v13 = vperm.slane %v6630_v15, 1 }
 0x9b7   : > { %5983 = vmatpush.msra.mxu3 %v5409_v8 }
 0x9b8   : > { %5956 = vmatpush.msra.mxu2 %v5183_v32  ;;  %6159 = vmatpush.msra.mxu1 %v5184_v28 }
 0x9ba   : > { %v12138_v31 = vpop.permute.xlu2 %5531 }
 0x9bb   : > { %v5340_v47 = vpop.permute.xlu0 %5339 }
 0x9bc   : > { %v5352_v37 = vsel %vm13732_vm4, %v5340_v47, %v5348_v25  ;;  %v5356_v45 = vsel %vm13733_vm5, %v5348_v25, %v5340_v47  ;;  %v5152_v52 = vpop.permute.xlu1 %5151  ;;  %v12172_v47 = vpop.f32.mrf.mxu2 }
 0x9bd   : > { %v5369_v20 = vmul.f32 %v12134_v40, %v5352_v37  ;;  %v12148_v27 = vmul.f32 %v12136_v13, %v5356_v45  ;;  %v12174_v37 = vpop.f32.mrf.mxu3 }
 0x9bf   : > { %5984 = vmatpush.msra.mxu3 %v5369_v20  ;;  %v12178_v20 = vpop.f32.mrf.mxu0 }
 0x9c2   : > { %v12154_v38 = vpop.permute.xlu2 %5519 }
 0x9c3   : > { %v5160_v57 = vpop.permute.xlu0 %5159 }
 0x9c4   : > { %v5166_v41 = vsel %vm13734_vm6, %v5152_v52, %v5160_v57  ;;  %v5170_v25 = vsel %vm13735_vm10, %v5160_v57, %v5152_v52  ;;  %v5346_v49 = vpop.permute.xlu1 %5345 }
 0x9c5   : > { %v5181_v8 = vmul.f32 %v5175_v30, %v5166_v41  ;;  %v5182_v21 = vmul.f32 %v5176_v50, %v5170_v25  ;;  %v5351_v55 = vsel %vm13736_vm0, %v12094_v63, %v5346_v49  ;;  %v5355_v32 = vsel %vm13737_vm9, %v5346_v49, %v12094_v63 }
 0x9c6   : > { %v5367_v28 = vmul.f32 %v12134_v40, %v5351_v55  ;;  %v12170_v15 = vmul.f32 %v12136_v13, %v5355_v32  ;;  %v5850_v55 = vpop.f32.mrf.mxu2  ;;  %v13740_v32 = vld [vmem:[#allocation14_spill] sm:$0xff] }
 0x9c7   : > { %5957 = vmatpush.msra.mxu2 %v5181_v8  ;;  %6160 = vmatpush.msra.mxu1 %v5182_v21  ;;  %v5567_v8 = vld [vmem:[%s12599_s14 + $0x20] sm:$0xff]  ;;  %v12189_v21 = vpop.f32.mrf.mxu1 }
 0x9c8   : > { %5985 = vmatpush.msra.mxu3 %v5367_v28  ;;  %v13742_v28 = vld [vmem:[#allocation63_spill] sm:$0xff] }
 0x9ca   : > { %v12176_v45 = vpop.permute.xlu2 %5525 }
 0x9cb   : > { %v5150_v52 = vpop.permute.xlu0 %5149 }
 0x9cc   : > { %v5165_v63 = vsel %vm13738_vm7, %v5150_v52, %v5158_v12  ;;  %v5169_v57 = vsel %vm13739_vm8, %v5158_v12, %v5150_v52  ;;  %v12184_v41 = vpop.permute.xlu1 %5335 }
 0x9cd   : > { %v5179_v25 = vmul.f32 %v5175_v30, %v5165_v63  ;;  %v5180_v49 = vmul.f32 %v5176_v50, %v5169_v57  ;;  %v13743_v30 = vld [vmem:[#allocation12_spill] sm:$0xff]  ;;  %v5879_v63 = vpop.f32.mrf.mxu3  ;;  %v4746_v57 = vsel %vm1111_vm12, %v11041_v19, %v11063_v17  ;;  %v6745_v19 = vld [vmem:[%s12588_s3 + $0x6] ss:$8 sm:$0x3] }
 0x9ce   : > { %v5574_v17 = vld [vmem:[%s12599_s14 + $0x58] sm:$0xff] }
 0x9cf   : > { %5958 = vmatpush.msra.mxu2 %v5179_v25  ;;  %6161 = vmatpush.msra.mxu1 %v5180_v49 }
 0x9d0   : > { %5959 = vmatmul.f32.vlgmr.msra.gmra.mxu2 %v5567_v8  ;;  %6162 = vmatmul.f32.vlgmr.msra.gmra.mxu1 %v5567_v8 }
 0x9d1   : > { %6059 = vmatpush.msrb.mxu2 %v11100_v0  ;;  %6330 = vmatpush.msrb.mxu1 %v13740_v32  ;;  %v4754_v32 = vperm.slane %v6745_v19, 1  ;;  %v4744_v19 = vsel %vm1111_vm12, %v13749_v33, %v13748_v14  ;;  %v13752_v14 = vld [vmem:[#allocation21_spill] sm:$0xff] }
 0x9d2   : > { %v12193_v12 = vpop.permute.xlu2 %5807 }
 0x9d3   : > { %13741 = vst [vmem:[#allocation117_spill] sm:$0xff] %v12193_v12  ;;  %6060 = vmatpush.msrb.mxu2 %v13742_v28  ;;  %6331 = vmatpush.msrb.mxu1 %v13743_v30  ;;  %v12197_v50 = vpop.permute.xlu0 %5343  ;;  %v5851_v52 = vadd.f32 %v5850_v55, %v12193_v12  ;;  %v5908_v55 = vpop.f32.mrf.mxu0  ;;  %v4745_v28 = vsel %vm1111_vm12, %v10966_v7, %v11053_v35  ;;  %v13746_v30 = vld [vmem:[#allocation13_spill] sm:$0xff]  ;;  %v13747_v12 = vld [vmem:[#allocation15_spill] sm:$0xff]  ;;  %v13750_v7 = vld [vmem:[#allocation10_spill] sm:$0xff] }
 0x9d4   : > { %v5350_v0 = vsel %vm13744_vm3, %v12184_v41, %v12197_v50  ;;  %v12208_v25 = vpop.permute.xlu1 %5341  ;;  %v4764_v24 = vmul.f32 %v4754_v32, %v4746_v57 }
 0x9d5   : > { %v5365_v49 = vmul.f32 %v12134_v40, %v5350_v0  ;;  %v5349_v8 = vsel %vm13745_vm11, %v12119_v60, %v12208_v25  ;;  %6061 = vmatpush.msrb.mxu2 %v11102_v54  ;;  %6332 = vmatpush.msrb.mxu1 %v13746_v30  ;;  %v5880_v0 = vadd.f32 %v5879_v63, %v5851_v52  ;;  %v12230_v54 = vld [vmem:[%s12588_s3 + $0x30] ss:$8 sm:$0x3]  ;;  %v12242_v52 = vld [vmem:[%s12599_s14 + $0x28] sm:$0xff]  ;;  %v5937_v63 = vpop.f32.mrf.mxu1 }
 0x9d6   : > { %v5363_v10 = vmul.f32 %v12134_v40, %v5349_v8  ;;  %v12245_v57 = vperm.slane %v12230_v54, 0 }
 0x9d7   : > { %6062 = vmatpush.msrb.mxu2 %v13747_v12  ;;  %5986 = vmatpush.msra.mxu3 %v5365_v49  ;;  %v5909_v35 = vadd.f32 %v5908_v55, %v5880_v0  ;;  %v4762_v12 = vmul.f32 %v4754_v32, %v4745_v28  ;;  %v13751_v49 = vld [vmem:[#allocation66_spill] sm:$0xff]  ;;  %v4760_v55 = vmul.f32 %v4754_v32, %v4744_v19  ;;  %v5581_v19 = vld [vmem:[%s12599_s14 + $0x90] sm:$0xff] }
 0x9d8   : > { %6333 = vmatpush.msrb.mxu1 %v13750_v7  ;;  %5962 = vmatmul.f32.gmra.mxu2 %v5574_v17  ;;  %v4743_v33 = vsel %vm1111_vm12, %v13752_v14, %v13751_v49  ;;  %vm13756_vm12 = vcmp.lt.s32.totalorder %v7218_v46, 94 }
 0x9d9   : > { %6063 = vmatpush.msrb.mxu2 %v4764_v24  ;;  %6165 = vmatmul.f32.gmra.mxu1 %v5574_v17  ;;  %v12251_v40 = vadd.f32 %v5937_v63, %v5909_v35  ;;  %v13754_v24 = vld [vmem:[#allocation55_spill] sm:$0xff]  ;;  %v13755_v17 = vld [vmem:[#allocation62_spill] sm:$0xff]  ;;  %v4758_v7 = vmul.f32 %v4754_v32, %v4743_v33  ;;  %v13759_v32 = vld [vmem:[#allocation28_spill] sm:$0xff] }
 0x9da   : > { %5987 = vmatpush.msra.mxu3 %v5363_v10  ;;  %v4700_v28 = vsel %vm1063_vm13, %v13755_v17, %v13754_v24  ;;  %v6746_v35 = vld [vmem:[%s12588_s3 + $0x5] ss:$8 sm:$0x3]  ;;  %v13757_v63 = vld [vmem:[#allocation75_spill] sm:$0xff]  ;;  %vm13766_vm15 = vmmov %vm13756_vm12 }
 0x9db   : > { %13753 = vst [vmem:[#allocation68_spill] sm:$0xff] %v12251_v40  ;;  %5988 = vmatmul.f32.vlgmr.msra.gmra.mxu3 %v12242_v52  ;;  %6064 = vmatpush.msrb.mxu2 %v4762_v12  ;;  %v12254_v8 = vpop.permute.xlu0 %5523  ;;  %v13758_v12 = vld [vmem:[#allocation72_spill] sm:$0xff]  ;;  %v13760_v33 = vld [vmem:[#allocation47_spill] sm:$0xff]  ;;  %v12287_v24 = vld [vmem:[%s12599_s14 + $0x60] sm:$0xff] }
 0x9dc   : > { %6088 = vmatpush.msrb.mxu3 %v11401_v51  ;;  %v5536_v10 = vsel %vm13756_vm12, %v12254_v8, %v12138_v31  ;;  %v12265_v30 = vpop.permute.xlu1 %5521  ;;  %v4708_v51 = vperm.slane %v6746_v35, 1  ;;  %v4699_v49 = vsel %vm1063_vm13, %v13758_v12, %v13757_v63  ;;  %v13764_v35 = vld [vmem:[#allocation40_spill] sm:$0xff]  ;;  %v13773_v40 = vld [vmem:[#allocation114_spill] sm:$0xff]  ;;  %vm13778_vm1 = vmmov %vm13756_vm12 }
 0x9dd   : > { %v5553_v0 = vmul.f32 %v12245_v57, %v5536_v10  ;;  %6065 = vmatpush.msrb.mxu2 %v4760_v55  ;;  %v4698_v55 = vsel %vm1063_vm13, %v13760_v33, %v13759_v32  ;;  %v13762_v10 = vld [vmem:[#allocation53_spill] sm:$0xff]  ;;  %v5588_v33 = vld [vmem:[%s12599_s14 + $0xc8] sm:$0xff]  ;;  %vm13790_vm4 = vmmov %vm13778_vm1 }
 0x9de   : > { %6089 = vmatpush.msrb.mxu3 %v11423_v1  ;;  %v4718_v14 = vmul.f32 %v4708_v51, %v4700_v28  ;;  %v4716_v17 = vmul.f32 %v4708_v51, %v4699_v49  ;;  %v13761_v1 = vld [vmem:[#allocation51_spill] sm:$0xff]  ;;  %vm13793_vm5 = vmmov %vm13778_vm1 }
 0x9df   : > { %6066 = vmatpush.msrb.mxu2 %v4758_v7  ;;  %6013 = vmatpush.msrb.mxu0 %v5553_v0  ;;  %v4697_v28 = vsel %vm1063_vm13, %v13762_v10, %v13761_v1  ;;  %v4714_v0 = vmul.f32 %v4708_v51, %v4698_v55  ;;  %v13763_v7 = vld [vmem:[#allocation39_spill] sm:$0xff]  ;;  %vm13767_vm13 = vmmov %vm13756_vm12  ;;  %v6747_v55 = vld [vmem:[%s12588_s3 + $0x4] ss:$8 sm:$0x3] }
 0x9e0   : > { %6090 = vmatpush.msrb.mxu3 %v11447_v62  ;;  %5965 = vmatmul.f32.gmra.mxu2 %v5581_v19  ;;  %v4654_v63 = vsel %vm1015_vm14, %v13764_v35, %v13763_v7  ;;  %v4712_v32 = vmul.f32 %v4708_v51, %v4697_v28  ;;  %v13768_v1 = vld [vmem:[#allocation49_spill] sm:$0xff]  ;;  %v13769_v10 = vld [vmem:[#allocation48_spill] sm:$0xff]  ;;  %v13771_v51 = vld [vmem:[#allocation34_spill] sm:$0xff] }
 0x9e1   : > { %6067 = vmatpush.msrb.mxu2 %v4718_v14  ;;  %6168 = vmatmul.f32.gmra.mxu1 %v5581_v19  ;;  %v13765_v19 = vld [vmem:[#allocation79_spill] sm:$0xff]  ;;  %v4653_v7 = vsel %vm1015_vm14, %v13769_v10, %v13768_v1  ;;  %v13770_v35 = vld [vmem:[#allocation108_spill] sm:$0xff]  ;;  %v13772_v28 = vld [vmem:[#allocation58_spill] sm:$0xff] }
 0x9e2   : > { %6091 = vmatpush.msrb.mxu3 %v11484_v44  ;;  %v13776_v10 = vld [vmem:[#allocation88_spill] sm:$0xff]  ;;  %vm13796_vm10 = vmmov %vm13778_vm1 }
 0x9e3   : > { %5991 = vmatmul.f32.gmra.mxu3 %v12287_v24  ;;  %6068 = vmatpush.msrb.mxu2 %v4716_v17  ;;  %v12295_v62 = vpop.permute.xlu0 %5529  ;;  %v4662_v17 = vperm.slane %v6747_v55, 1  ;;  %v12333_v55 = vld [vmem:[%s12599_s14 + $0x98] sm:$0xff]  ;;  %vm13798_vm9 = vmmov %vm13778_vm1 }
 0x9e4   : > { %6092 = vmatpush.msrb.mxu3 %v13765_v19  ;;  %v5535_v12 = vsel %vm13766_vm15, %v12265_v30, %v12295_v62  ;;  %v12306_v49 = vpop.permute.xlu1 %5527  ;;  %v4652_v19 = vsel %vm1015_vm14, %v13772_v28, %v13771_v51  ;;  %vm13803_vm12 = vmmov %vm13744_vm3 }
 0x9e5   : > { %v5551_v44 = vmul.f32 %v12245_v57, %v5535_v12  ;;  %v5534_v14 = vsel %vm13767_vm13, %v12154_v38, %v12306_v49  ;;  %6069 = vmatpush.msrb.mxu2 %v4714_v0  ;;  %v4672_v0 = vmul.f32 %v4662_v17, %v4654_v63  ;;  %v13775_v63 = vld [vmem:[#allocation37_spill] sm:$0xff] }
 0x9e6   : > { %6093 = vmatpush.msrb.mxu3 %v13770_v35  ;;  %v5549_v12 = vmul.f32 %v12245_v57, %v5534_v14  ;;  %v4668_v14 = vmul.f32 %v4662_v17, %v4652_v19  ;;  %v13777_v35 = vld [vmem:[#allocation85_spill] sm:$0xff]  ;;  %v12354_v19 = vld [vmem:[%s12599_s14 + $0x30] sm:$0xff] }
 0x9e7   : > { %6070 = vmatpush.msrb.mxu2 %v4712_v32  ;;  %6014 = vmatpush.msrb.mxu0 %v5551_v44  ;;  %v4670_v32 = vmul.f32 %v4662_v17, %v4653_v7  ;;  %v13774_v44 = vld [vmem:[#allocation57_spill] sm:$0xff] }
 0x9e8   : > { %6094 = vmatpush.msrb.mxu3 %v13773_v40  ;;  %5968 = vmatmul.f32.gmra.mxu2 %v5588_v33  ;;  %v4651_v1 = vsel %vm1015_vm14, %v13775_v63, %v13774_v44  ;;  %v13780_v44 = vld [vmem:[#allocation30_spill] sm:$0xff]  ;;  %vm13782_vm14 = vcmask 261120   ;;  %v13784_v63 = vld [vmem:[#allocation109_spill] sm:$0xff] }
 0x9e9   : > { %6071 = vmatpush.msrb.mxu2 %v4672_v0  ;;  %6171 = vmatmul.f32.gmra.mxu1 %v5588_v33  ;;  %v4666_v28 = vmul.f32 %v4662_v17, %v4651_v1  ;;  %v13783_v17 = vld [vmem:[#allocation80_spill] sm:$0xff]  ;;  %vm13785_vm2 = vmmov %vm13782_vm14 }
 0x9ea   : > { %6095 = vmatpush.msrb.mxu3 %v13776_v10  ;;  %6015 = vmatpush.msrb.mxu0 %v5549_v12  ;;  %v13779_v12 = vld [vmem:[#allocation93_spill] sm:$0xff]  ;;  %vm13794_vm6 = vmmov %vm13785_vm2 }
 0x9eb   : > { %5994 = vmatmul.f32.gmra.mxu3 %v12333_v55  ;;  %6072 = vmatpush.msrb.mxu2 %v4670_v32  ;;  %v5518_v40 = vpop.permute.xlu0 %5517  ;;  %vm13797_vm0 = vmmov %vm13785_vm2 }
 0x9ec   : > { %6096 = vmatpush.msrb.mxu3 %v13777_v35  ;;  %v5533_v33 = vsel %vm13778_vm1, %v5518_v40, %v12176_v45  ;;  %v12345_v7 = vpop.permute.xlu1 %5797  ;;  %v13787_v35 = vld [vmem:[#allocation32_spill] sm:$0xff]  ;;  %vm13799_vm7 = vmmov %vm13797_vm0 }
 0x9ed   : > { %v5547_v0 = vmul.f32 %v12245_v57, %v5533_v33  ;;  %v5845_v51 = vadd.f32 %v12144_v53, %v12345_v7  ;;  %6073 = vmatpush.msrb.mxu2 %v4668_v14  ;;  %v12362_v53 = vld [vmem:[%s13781_s16] sm:$0xff]  ;;  %v6748_v57 = vld [vmem:[%s12599_s14 + $0x8] sm:$0xff]  ;;  %vm13800_vm8 = vmmov %vm13797_vm0 }
 0x9ee   : > { %6097 = vmatpush.msrb.mxu3 %v13779_v12  ;;  %v13786_v14 = vld [vmem:[#allocation78_spill] sm:$0xff]  ;;  %vm13802_vm11 = vmmov %vm13797_vm0  ;;  %v5853_v12 = vpop.f32.mrf.mxu2 }
 0x9ef   : > { %v5874_v32 = vadd.f32 %v12150_v22, %v5845_v51  ;;  %6074 = vmatpush.msrb.mxu2 %v4666_v28  ;;  %6016 = vmatpush.msrb.mxu0 %v5547_v0  ;;  %v12372_v22 = vld [vmem:[%s12599_s14 + $0xd0] sm:$0xff]  ;;  %v13788_v0 = vld [vmem:[#allocation81_spill] sm:$0xff]  ;;  %vm13805_vm15 = vmmov %vm13797_vm0 }
 0x9f0   : > { %6098 = vmatpush.msrb.mxu3 %v13780_v44  ;;  %6635 = vmatmul.msk.f32.vlgmr.msrb.gmra.mxu0 %vm13782_vm14, %v12354_v19  ;;  %v13789_v51 = vld [vmem:[#allocation19_spill] sm:$0xff]  ;;  %v13792_v28 = vld [vmem:[#allocation61_spill] sm:$0xff]  ;;  %vm13814_vm13 = vmmov %vm13797_vm0 }
 0x9f1   : > { %6175 = vmatpush.msra.mxu2 %v11724_v59  ;;  %v5903_v59 = vadd.f32 %v12152_v56, %v5874_v32  ;;  %6117 = vmatpush.msra.mxu0 %v13784_v63  ;;  %vm13815_vm1 = vmmov %vm13797_vm0 }
 0x9f2   : > { %6075 = vmatmul.f32.vlgmr.msrb.gmra.mxu2 %v6748_v57  ;;  %6099 = vmatpush.msrb.mxu3 %v13783_v17  ;;  %vm13817_vm14 = vmmov %vm13797_vm0  ;;  %v5882_v57 = vpop.f32.mrf.mxu3 }
 0x9f3   : > { %6647 = vmatmul.msk.f32.vlgmr.msrb.gmra.mxu1 %vm13785_vm2, %v12362_v53  ;;  %6176 = vmatpush.msra.mxu2 %v11768_v36  ;;  %v12380_v1 = vpop.permute.xlu0 %5802  ;;  %v12383_v10 = vadd.f32 %v12160_v3, %v5903_v59  ;;  %v5544_v36 = vperm.slane %v12230_v54, 1  ;;  %v12399_v3 = vld [vmem:[%s12599_s14 + $0x68] sm:$0xff]  ;;  %v5539_v54 = vsel %vm13793_vm5, %v12295_v62, %v12265_v30  ;;  %v5538_v30 = vsel %vm13796_vm10, %v12306_v49, %v12154_v38  ;;  %v6755_v49 = vld [vmem:[%s12599_s14 + $0x50] sm:$0xff]  ;;  %vm13818_vm2 = vmmov %vm13797_vm0 }
 0x9f4   : > { %5997 = vmatmul.f32.gmra.mxu3 %v12372_v22  ;;  %6118 = vmatpush.msra.mxu0 %v13786_v14  ;;  %v5848_v56 = vadd.f32 %v12172_v47, %v12380_v1  ;;  %v13791_v47 = vld [vmem:[#allocation115_spill] sm:$0xff]  ;;  %vm13820_vm5 = vmmov %vm13797_vm0 }
 0x9f5   : > { %6100 = vmatpush.msrb.mxu3 %v13787_v35  ;;  %6177 = vmatpush.msra.mxu2 %v11870_v6  ;;  %v5540_v6 = vsel %vm13790_vm4, %v12138_v31, %v12254_v8  ;;  %v6749_v31 = vld [vmem:[%s12599_s14 + $0x40] sm:$0xff]  ;;  %v13795_v8 = vld [vmem:[#allocation22_spill] sm:$0xff]  ;;  %v5552_v62 = vmul.f32 %v5544_v36, %v5539_v54  ;;  %v5550_v38 = vmul.f32 %v5544_v36, %v5538_v30  ;;  %vm13819_vm4 = vmmov %vm13797_vm0 }
 0x9f6   : > { %v5877_v33 = vadd.f32 %v12174_v37, %v5848_v56  ;;  %6119 = vmatpush.msra.mxu0 %v13788_v0  ;;  %vm13822_vm10 = vmmov %vm13797_vm0 }
 0x9f7   : > { %6101 = vmatpush.msrb.mxu3 %v13789_v51  ;;  %6178 = vmatpush.msra.mxu2 %v11907_v29  ;;  %v12412_v29 = vld [vmem:[%s13781_s16 + $0x8] sm:$0xff]  ;;  %v13823_v51 = vld [vmem:[#allocation68_spill] sm:$0xff] }
 0x9f8   : > { %6120 = vmatpush.msra.mxu0 %v13791_v47  ;;  %v5906_v37 = vadd.f32 %v12178_v20, %v5877_v33  ;;  %v5554_v20 = vmul.f32 %v5544_v36, %v5540_v6  ;;  %v5911_v33 = vpop.f32.mrf.mxu0 }
 0x9f9   : > { %6102 = vmatpush.msrb.mxu3 %v13792_v28  ;;  %6179 = vmatpush.msra.mxu2 %v11938_v48 }
 0x9fa   : > { %6636 = vmatmul.msk.f32.gmra.mxu0 %vm13794_vm6, %v12399_v3  ;;  %6078 = vmatmul.f32.gmra.mxu2 %v6749_v31  ;;  %v12424_v48 = vadd.f32 %v12189_v21, %v5906_v37  ;;  %v5537_v21 = vsel %vm13798_vm9, %v12176_v45, %v5518_v40  ;;  %v6251_v45 = vld [vmem:[%s13781_s16 + $0x10] sm:$0xff]  ;;  %v13816_v40 = vld [vmem:[#allocation84_spill] sm:$0xff]  ;;  %vm13821_vm6 = vmmov %vm13797_vm0 }
 0x9fb   : > { %6103 = vmatpush.msrb.mxu3 %v13795_v8  ;;  %6121 = vmatpush.msra.mxu0 %v11479_v5  ;;  %v6750_v5 = vld [vmem:[%s12599_s14 + $0x10] sm:$0xff] }
 0x9fc   : > { %6648 = vmatmul.msk.f32.gmra.mxu1 %vm13797_vm0, %v12412_v29  ;;  %6180 = vmatpush.msra.mxu2 %v11982_v61  ;;  %v5583_v61 = vld [vmem:[%s12599_s14 + $0xa0] sm:$0xff] }
 0x9fd   : > { %6216 = vmatpush.msra.mxu3 %v5554_v20  ;;  %6122 = vmatpush.msra.mxu0 %v11511_v23  ;;  %v5548_v23 = vmul.f32 %v5544_v36, %v5537_v21 }
 0x9fe   : > { %6104 = vmatmul.f32.vlgmr.msrb.gmra.mxu3 %v6750_v5  ;;  %6181 = vmatpush.msra.mxu2 %v12002_v11  ;;  %v5590_v11 = vld [vmem:[%s12599_s14 + $0xd8] sm:$0xff] }
 0x9ff   : > { %6217 = vmatpush.msra.mxu3 %v5552_v62  ;;  %6123 = vmatpush.msra.mxu0 %v11536_v34  ;;  %v6751_v34 = vld [vmem:[%s12599_s14 + $0x78] sm:$0xff] }
 0xa00   : > { %6182 = vmatpush.msra.mxu2 %v12034_v2  ;;  %v13801_v2 = vld [vmem:[#allocation94_spill] sm:$0xff] }
 0xa01   : > { %6218 = vmatpush.msra.mxu3 %v5550_v38  ;;  %6124 = vmatpush.msra.mxu0 %v11532_v39  ;;  %v6752_v39 = vld [vmem:[%s12599_s14 + $0x48] sm:$0xff] }
 0xa02   : > { %6183 = vmatpush.msra.mxu2 %v12081_v18  ;;  %6637 = vmatmul.msk.f32.gmra.mxu0 %vm13799_vm7, %v5583_v61  ;;  %v13804_v18 = vld [vmem:[#allocation101_spill] sm:$0xff] }
 0xa03   : > { %6219 = vmatpush.msra.mxu3 %v5548_v23  ;;  %6081 = vmatmul.f32.gmra.mxu2 %v6751_v34 }
 0xa04   : > { %6125 = vmatpush.msra.mxu0 %v11563_v43  ;;  %6649 = vmatmul.msk.f32.gmra.mxu1 %vm13800_vm8, %v6251_v45  ;;  %v5354_v43 = vsel %vm13744_vm3, %v12197_v50, %v12184_v41  ;;  %v13810_v41 = vld [vmem:[#allocation11_spill] sm:$0xff]  ;;  %v13811_v50 = vld [vmem:[#allocation116_spill] sm:$0xff] }
 0xa05   : > { %6184 = vmatpush.msra.mxu2 %v12092_v9  ;;  %v5366_v9 = vmul.f32 %v12136_v13, %v5354_v43 }
 0xa06   : > { %6107 = vmatmul.f32.gmra.mxu3 %v6752_v39  ;;  %6126 = vmatpush.msra.mxu0 %v11594_v26  ;;  %v6252_v26 = vld [vmem:[%s13781_s16 + $0x18] sm:$0xff] }
 0xa07   : > { %6185 = vmatpush.msra.mxu2 %v12106_v16  ;;  %v6753_v16 = vld [vmem:[%s12599_s14 + $0x80] sm:$0xff] }
 0xa08   : > { %6127 = vmatpush.msra.mxu0 %v11592_v42  ;;  %v5353_v42 = vsel %vm13803_vm12, %v12208_v25, %v12119_v60  ;;  %v13807_v60 = vld [vmem:[#allocation52_spill] sm:$0xff]  ;;  %v13813_v25 = vld [vmem:[#allocation7_spill] sm:$0xff] }
 0xa09   : > { %6186 = vmatpush.msra.mxu2 %v12125_v58  ;;  %v13806_v58 = vld [vmem:[#allocation20_spill] sm:$0xff]  ;;  %v5364_v46 = vmul.f32 %v12136_v13, %v5353_v42 }
 0xa0a   : > { %6128 = vmatpush.msra.mxu0 %v13801_v2  ;;  %v13812_v13 = vld [vmem:[#allocation8_spill] sm:$0xff] }
 0xa0b   : > { %6187 = vmatpush.msra.mxu2 %v12148_v27  ;;  %6638 = vmatmul.msk.f32.gmra.mxu0 %vm13802_vm11, %v5590_v11  ;;  %v13809_v27 = vld [vmem:[#allocation9_spill] sm:$0xff] }
 0xa0c   : > { %6084 = vmatmul.f32.gmra.mxu2 %v13804_v18  ;;  %6129 = vmatpush.msra.mxu0 %v10681_v4  ;;  %v13808_v4 = vld [vmem:[#allocation65_spill] sm:$0xff] }
 0xa0d   : > { %6650 = vmatmul.msk.f32.gmra.mxu1 %vm13805_vm15, %v6252_v26  ;;  %6188 = vmatpush.msra.mxu2 %v12170_v15  ;;  %v6754_v15 = vld [vmem:[%s12599_s14 + $0x18] sm:$0xff] }
 0xa0e   : > { %6110 = vmatmul.f32.gmra.mxu3 %v6753_v16  ;;  %6130 = vmatpush.msra.mxu0 %v13806_v58 }
 0xa0f   : > { %6189 = vmatpush.msra.mxu2 %v5366_v9 }
 0xa10   : > { %6131 = vmatpush.msra.mxu0 %v13807_v60 }
 0xa11   : > { %6190 = vmatpush.msra.mxu2 %v5364_v46 }
 0xa12   : > { %6132 = vmatpush.msra.mxu0 %v13808_v4 }
 0xa13   : > { %6133 = vmatmul.f32.vlgmr.msra.gmra.mxu0 %v6754_v15 }
 0xa14   : > { %6301 = vmatpush.msrb.mxu0 %v13809_v27  ;;  %6191 = vmatmul.f32.vlgmr.msra.gmra.mxu2 %v12242_v52  ;;  %v6756_v52 = vld [vmem:[%s12599_s14 + $0x88] sm:$0xff] }
 0xa16   : > { %6302 = vmatpush.msrb.mxu0 %v13810_v41  ;;  %6113 = vmatmul.f32.gmra.mxu3 %v13811_v50 }
 0xa18   : > { %6303 = vmatpush.msrb.mxu0 %v13812_v13 }
 0xa1a   : > { %6304 = vmatpush.msrb.mxu0 %v13813_v25 }
 0xa1b   : > { %6136 = vmatmul.f32.gmra.mxu0 %v6755_v49 }
 0xa1c   : > { %6194 = vmatmul.f32.gmra.mxu2 %v12287_v24  ;;  %v5940_v24 = vpop.f32.mrf.mxu1 }
 0xa1e   : > { %6639 = vmatmul.msk.f32.vlgmr.msra.gmra.mxu3 %vm13814_vm13, %v12354_v19  ;;  %vm6464_vm13 = vcmask 1040384  }
 0xa23   : > { %6139 = vmatmul.f32.gmra.mxu0 %v6756_v52 }
 0xa24   : > { %6197 = vmatmul.f32.gmra.mxu2 %v12333_v55  ;;  %v6047_v55 = vpop.f32.mrf.mxu1 }
 0xa25   : > { %v6048_v46 = vadd.f32 %v6047_v55, %v12345_v7 }
 0xa26   : > { %6640 = vmatmul.msk.f32.gmra.mxu3 %vm13815_vm1, %v12399_v3 }
 0xa2b   : > { %6142 = vmatmul.f32.gmra.mxu0 %v13816_v40 }
 0xa2c   : > { %6200 = vmatmul.f32.gmra.mxu2 %v12372_v22  ;;  %v6050_v19 = vpop.f32.mrf.mxu1  ;;  %v12528_v22 = vpop.permute.xlu1 %5812 }
 0xa2d   : > { %v5854_v63 = vadd.f32 %v5853_v12, %v12528_v22  ;;  %v6051_v25 = vadd.f32 %v6050_v19, %v12380_v1 }
 0xa2e   : > { %6641 = vmatmul.msk.f32.gmra.mxu3 %vm13817_vm14, %v5583_v61 }
 0xa2f   : > { %v5883_v35 = vadd.f32 %v5882_v57, %v5854_v63  ;;  %v13824_v63 = vld [vmem:[#allocation117_spill] sm:$0xff] }
 0xa31   : > { %v5912_v6 = vadd.f32 %v5911_v33, %v5883_v35 }
 0xa33   : > { %6643 = vmatmul.msk.f32.vlgmr.msrb.gmra.mxu0 %vm13818_vm2, %v12362_v53  ;;  %v5941_v37 = vadd.f32 %v5940_v24, %v5912_v6 }
 0xa34   : > { %v6053_v59 = vpop.f32.mrf.mxu1  ;;  %v12548_v33 = vpop.permute.xlu1 %6269 }
 0xa36   : > { %6642 = vmatmul.msk.f32.gmra.mxu3 %vm13819_vm4, %v5590_v11 }
 0xa3b   : > { %6644 = vmatmul.msk.f32.gmra.mxu0 %vm13820_vm5, %v12412_v29 }
 0xa3c   : > { %v12532_v36 = vpop.f32.mrf.mxu1 }
 0xa43   : > { %6645 = vmatmul.msk.f32.gmra.mxu0 %vm13821_vm6, %v6251_v45 }
 0xa4b   : > { %6646 = vmatmul.msk.f32.gmra.mxu0 %vm13822_vm10, %v6252_v26 }
 0xa4d   : > { %v6163_v29 = vpop.f32.mrf.mxu1 }
 0xa53   : > { %v5960_v32 = vpop.f32.mrf.mxu2 }
 0xa54   : > { %v5961_v44 = vadd.f32 %v5960_v32, %v12383_v10 }
 0xa56   : > { %v6166_v62 = vpop.f32.mrf.mxu1 }
 0xa5b   : > { %v5963_v53 = vpop.f32.mrf.mxu2 }
 0xa5c   : > { %v5964_v17 = vadd.f32 %v5963_v53, %v12424_v48  ;;  %v6260_v53 = vpop.permute.xlu0 %6259 }
 0xa5e   : > { %v5989_v14 = vpop.f32.mrf.mxu3  ;;  %v6169_v34 = vpop.f32.mrf.mxu1 }
 0xa5f   : > { %v5990_v56 = vadd.f32 %v5989_v14, %v5961_v44  ;;  %v6054_v14 = vadd.f32 %v6053_v59, %v13824_v63 }
 0xa63   : > { %v5966_v0 = vpop.f32.mrf.mxu2 }
 0xa64   : > { %v5967_v3 = vadd.f32 %v5966_v0, %v13823_v51 }
 0xa66   : > { %v5992_v10 = vpop.f32.mrf.mxu3  ;;  %v12543_v18 = vpop.f32.mrf.mxu1 }
 0xa67   : > { %v5993_v47 = vadd.f32 %v5992_v10, %v5964_v17 }
 0xa6b   : > { %v5969_v28 = vpop.f32.mrf.mxu2 }
 0xa6c   : > { %v5970_v54 = vadd.f32 %v5969_v28, %v5941_v37 }
 0xa6d   : > { %v6018_v48 = vpop.f32.mrf.mxu0 }
 0xa6e   : > { %v5995_v31 = vpop.f32.mrf.mxu3  ;;  %v12535_v8 = vadd.f32 %v6018_v48, %v5990_v56  ;;  %v6265_v56 = vpop.permute.xlu2 %6264 }
 0xa6f   : > { %v5996_v20 = vadd.f32 %v5995_v31, %v5967_v3 }
 0xa70   : > { %v6335_v60 = vpop.f32.mrf.mxu1 }
 0xa71   : > { %v6336_v55 = vadd.f32 %v6335_v60, %v6260_v53 }
 0xa73   : > { %v6348_v51 = vmax.f32 %v6336_v55, 0.0 }
 0xa75   : > { %v6076_v30 = vpop.f32.mrf.mxu2 }
 0xa76   : > { %v6077_v4 = vadd.f32 %v6076_v30, %v6048_v46  ;;  %v6057_v30 = vadd.f32 %v12532_v36, %v12528_v22 }
 0xa77   : > { %v5998_v21 = vpop.f32.mrf.mxu3  ;;  %v6021_v5 = vpop.f32.mrf.mxu0 }
 0xa78   : > { %v5999_v38 = vadd.f32 %v5998_v21, %v5970_v54  ;;  %v12537_v61 = vadd.f32 %v6021_v5, %v5993_v47  ;;  %v13825_v47 = vld [vmem:[#allocation6_spill] sm:$0xff] }
 0xa79   : > { %v6338_v49 = vpop.f32.mrf.mxu1  ;;  %v6356_v59 = vmul.f32 %v6348_v51, %v13825_v47 }
 0xa7a   : > { %v6339_v0 = vadd.f32 %v6338_v49, %v6265_v56 }
 0xa7c   : > { %v6350_v54 = vmax.f32 %v6339_v0, 0.0 }
 0xa7d   : > { %v6079_v23 = vpop.f32.mrf.mxu2 }
 0xa7e   : > { %v6080_v52 = vadd.f32 %v6079_v23, %v6051_v25 }
 0xa7f   : > { %v6024_v45 = vpop.f32.mrf.mxu0 }
 0xa80   : > { %v12539_v39 = vadd.f32 %v6024_v45, %v5996_v20 }
 0xa81   : > { %v6105_v11 = vpop.f32.mrf.mxu3  ;;  %v6341_v3 = vpop.f32.mrf.mxu1 }
 0xa82   : > { %v6106_v15 = vadd.f32 %v6105_v11, %v6077_v4  ;;  %v6378_v11 = vpop.permute.xlu2 %6377 }
 0xa86   : > { %v6082_v43 = vpop.f32.mrf.mxu2 }
 0xa87   : > { %v6083_v1 = vadd.f32 %v6082_v43, %v6054_v14  ;;  %v6383_v43 = vpop.permute.xlu1 %6382 }
 0xa88   : > { %v6027_v2 = vpop.f32.mrf.mxu0 }
 0xa89   : > { %v12541_v26 = vadd.f32 %v6027_v2, %v5999_v38  ;;  %v6108_v42 = vpop.f32.mrf.mxu3  ;;  %v6342_v2 = vadd.f32 %v6341_v3, %v12548_v33 }
 0xa8a   : > { %v6109_v24 = vadd.f32 %v6108_v42, %v6080_v52 }
 0xa8f   : > { %v6085_v9 = vpop.f32.mrf.mxu2 }
 0xa90   : > { %v6134_v58 = vpop.f32.mrf.mxu0  ;;  %v6086_v38 = vadd.f32 %v6085_v9, %v6057_v30  ;;  %v6352_v9 = vmax.f32 %v6342_v2, 0.0 }
 0xa91   : > { %v6111_v16 = vpop.f32.mrf.mxu3  ;;  %v6135_v13 = vadd.f32 %v6134_v58, %v6106_v15 }
 0xa92   : > { %v6112_v6 = vadd.f32 %v6111_v16, %v6083_v1 }
 0xa93   : > { %v6164_v40 = vadd.f32 %v6163_v29, %v6135_v13  ;;  %v6344_v13 = vpop.f32.mrf.mxu1 }
 0xa97   : > { %v6192_v27 = vpop.f32.mrf.mxu2 }
 0xa98   : > { %v6137_v50 = vpop.f32.mrf.mxu0  ;;  %v6193_v12 = vadd.f32 %v6192_v27, %v6164_v40 }
 0xa99   : > { %v6114_v41 = vpop.f32.mrf.mxu3  ;;  %v6138_v17 = vadd.f32 %v6137_v50, %v6109_v24  ;;  %v6275_v50 = vpop.permute.xlu0 %6274 }
 0xa9a   : > { %v6115_v42 = vadd.f32 %v6114_v41, %v6086_v38  ;;  %v6345_v40 = vadd.f32 %v6344_v13, %v6275_v50 }
 0xa9b   : > { %v6167_v19 = vadd.f32 %v6166_v62, %v6138_v17  ;;  %v6358_v62 = vmul.f32 %v6350_v54, %v13825_v47  ;;  %v6393_v54 = vpop.permute.xlu2 %6392 }
 0xa9c   : > { %v6354_v63 = vmax.f32 %v6345_v40, 0.0 }
 0xa9f   : > { %v6195_v32 = vpop.f32.mrf.mxu2 }
 0xaa0   : > { %v6140_v44 = vpop.f32.mrf.mxu0  ;;  %v6196_v10 = vadd.f32 %v6195_v32, %v6167_v19  ;;  %v6360_v32 = vmul.f32 %v6352_v9, %v13825_v47 }
 0xaa1   : > { %v6221_v57 = vpop.f32.mrf.mxu3  ;;  %v6141_v31 = vadd.f32 %v6140_v44, %v6112_v6  ;;  %v6388_v51 = vpop.permute.xlu0 %6387  ;;  %v6362_v6 = vmul.f32 %v6354_v63, %v13825_v47 }
 0xaa2   : > { %v6222_v7 = vadd.f32 %v6221_v57, %v6193_v12  ;;  %v6233_v12 = vmax.f32 %v12535_v8, 0.0  ;;  %v6235_v57 = vmax.f32 %v12537_v61, 0.0 }
 0xaa3   : > { %v6170_v23 = vadd.f32 %v6169_v34, %v6141_v31 }
 0xaa4   : > { %v6234_v35 = vmax.f32 %v6222_v7, 0.0 }
 0xaa6   : > { %v6242_v37 = vmul.f32 %v6234_v35, %v13825_v47 }
 0xaa7   : > { %v6198_v20 = vpop.f32.mrf.mxu2 }
 0xaa8   : > { %v6143_v28 = vpop.f32.mrf.mxu0  ;;  %v6364_v5 = vadd.f32 %v6356_v59, %v6242_v37  ;;  %v6199_v16 = vadd.f32 %v6198_v20, %v6170_v23 }
 0xaa9   : > { %v6224_v29 = vpop.f32.mrf.mxu3  ;;  %v6144_v27 = vadd.f32 %v6143_v28, %v6115_v42 }
 0xaaa   : > { %v6225_v48 = vadd.f32 %v6224_v29, %v6196_v10  ;;  %v6396_v46 = vmul.f32 %v6378_v11, %v6364_v5 }
 0xaab   : > { %v6173_v24 = vadd.f32 %v12543_v18, %v6144_v27 }
 0xaac   : > { %v6236_v21 = vmax.f32 %v6225_v48, 0.0 }
 0xaae   : > { %v6244_v45 = vmul.f32 %v6236_v21, %v13825_v47 }
 0xaaf   : > { %v6201_v49 = vpop.f32.mrf.mxu2 }
 0xab0   : > { %v6366_v58 = vadd.f32 %v6358_v62, %v6244_v45  ;;  %v6306_v4 = vpop.f32.mrf.mxu0  ;;  %v6202_v44 = vadd.f32 %v6201_v49, %v6173_v24 }
 0xab1   : > { %v6227_v60 = vpop.f32.mrf.mxu3  ;;  %v6307_v15 = vadd.f32 %v6306_v4, %v6260_v53  ;;  %v13826_v53 = vld [vmem:[#allocation5_spill] sm:$0xff] }
 0xab2   : > { %v6398_v22 = vmul.f32 %v6383_v43, %v6366_v58  ;;  %v6228_v36 = vadd.f32 %v6227_v60, %v6199_v16  ;;  %v6241_v1 = vmul.f32 %v6233_v12, %v13826_v53  ;;  %v6243_v8 = vmul.f32 %v6235_v57, %v13826_v53 }
 0xab3   : > { %v6347_v52 = vmax.f32 %v6307_v15, 0.0 }
 0xab4   : > { %v6412_v34 = vadd.f32 %v6398_v22, %v6396_v46  ;;  %v6238_v25 = vmax.f32 %v6228_v36, 0.0 }
 0xab5   : > { %v6355_v17 = vmul.f32 %v6347_v52, %v13826_v53 }
 0xab6   : > { %v6246_v41 = vmul.f32 %v6238_v25, %v13825_v47 }
 0xab7   : > { %v6363_v3 = vadd.f32 %v6355_v17, %v6241_v1 }
 0xab8   : > { %v6309_v55 = vpop.f32.mrf.mxu0  ;;  %v6368_v14 = vadd.f32 %v6360_v32, %v6246_v41 }
 0xab9   : > { %v6230_v7 = vpop.f32.mrf.mxu3  ;;  %v6310_v0 = vadd.f32 %v6309_v55, %v6265_v56  ;;  %v6237_v56 = vmax.f32 %v12539_v39, 0.0  ;;  %v6395_v31 = vmul.f32 %v6378_v11, %v6363_v3  ;;  %v6239_v39 = vmax.f32 %v12541_v26, 0.0 }
 0xaba   : > { %v6231_v35 = vadd.f32 %v6230_v7, %v6202_v44  ;;  %v6400_v10 = vmul.f32 %v6388_v51, %v6368_v14 }
 0xabb   : > { %v6349_v19 = vmax.f32 %v6310_v0, 0.0  ;;  %v6245_v23 = vmul.f32 %v6237_v56, %v13826_v53 }
 0xabc   : > { %v6240_v18 = vmax.f32 %v6231_v35, 0.0  ;;  %v6413_v59 = vadd.f32 %v6412_v34, %v6400_v10 }
 0xabd   : > { %v6357_v37 = vmul.f32 %v6349_v19, %v13826_v53 }
 0xabe   : > { %v6248_v61 = vmul.f32 %v6240_v18, %v13825_v47 }
 0xabf   : > { %v6365_v29 = vadd.f32 %v6357_v37, %v6243_v8 }
 0xac0   : > { %v6370_v28 = vadd.f32 %v6362_v6, %v6248_v61  ;;  %v6312_v48 = vpop.f32.mrf.mxu0 }
 0xac1   : > { %v6397_v30 = vmul.f32 %v6383_v43, %v6365_v29  ;;  %v6313_v21 = vadd.f32 %v6312_v48, %v12548_v33  ;;  %v6247_v33 = vmul.f32 %v6239_v39, %v13826_v53 }
 0xac2   : > { %v6402_v20 = vmul.f32 %v6393_v54, %v6370_v28 }
 0xac3   : > { %v6403_v62 = vadd.f32 %v6397_v30, %v6395_v31  ;;  %v6351_v38 = vmax.f32 %v6313_v21, 0.0 }
 0xac4   : > { %v6414_v5 = vadd.f32 %v6413_v59, %v6402_v20  ;;  %v13829_v59 = vlaneseq }
 0xac5   : > { %v6359_v2 = vmul.f32 %v6351_v38, %v13826_v53 }
 0xac6   : > { %v6415_v45 = vrot.slane %v6414_v5, 4  ;;  %vm6469_vm1 = vcmp.lt.s32.totalorder %v13829_v59, 256 }
 0xac7   : > { %v6367_v16 = vadd.f32 %v6359_v2, %v6245_v23 }
 0xac8   : > { %v6416_v42 = vadd.f32 %v6415_v45, %v6414_v5  ;;  %v6315_v58 = vpop.f32.mrf.mxu0 }
 0xac9   : > { %v6399_v46 = vmul.f32 %v6388_v51, %v6367_v16  ;;  %v6316_v60 = vadd.f32 %v6315_v58, %v6275_v50 }
 0xaca   : > { %v6417_v11 = vrot.slane %v6416_v42, 2 }
 0xacb   : > { %v6404_v43 = vadd.f32 %v6403_v62, %v6399_v46  ;;  %v6353_v27 = vmax.f32 %v6316_v60, 0.0 }
 0xacc   : > { %v6418_v4 = vadd.f32 %v6417_v11, %v6416_v42 }
 0xacd   : > { %v6361_v36 = vmul.f32 %v6353_v27, %v13826_v53 }
 0xace   : > { %v6419_v22 = vrot.slane %v6418_v4, 1 }
 0xacf   : > { %v6369_v13 = vadd.f32 %v6361_v36, %v6247_v33 }
 0xad0   : > { %v6420_v15 = vadd.f32 %v6419_v22, %v6418_v4 }
 0xad1   : > { %v6401_v34 = vmul.f32 %v6393_v54, %v6369_v13 }
 0xad2   : > { %v6652_v9 = vmul.f32 -1.442695, %v6420_v15 }
 0xad3   : > { %v6405_v25 = vadd.f32 %v6404_v43, %v6401_v34 }
 0xad4   : > { %6697 = vpow2.f32 %v6652_v9 }
 0xad5   : > { %v6406_v49 = vrot.slane %v6405_v25, 4 }
 0xad7   : > { %v6407_v52 = vadd.f32 %v6406_v49, %v6405_v25 }
 0xad9   : > { %v6408_v40 = vrot.slane %v6407_v52, 2 }
 0xada   : > { %v6698_v26 = vpop.eup %6697 }
 0xadb   : > { %v6428_v24 = vadd.f32 1.0, %v6698_v26  ;;  %v6409_v50 = vadd.f32 %v6408_v40, %v6407_v52 }
 0xadd   : > { %6699 = vrcp.f32 %v6428_v24  ;;  %v6410_v41 = vrot.slane %v6409_v50, 1  ;;  %v6455_v35 = vand.u32 2147483648, %v6428_v24  ;;  %vm6449_vm9 = vweird.f32 %v6428_v24 }
 0xade   : > { %v6453_v0 = vand.u32 2147483647, %v6428_v24 }
 0xadf   : > { %v6411_v12 = vadd.f32 %v6410_v41, %v6409_v50  ;;  %v6456_v51 = vor.u32 1.1754944e-38, %v6455_v35 }
 0xae0   : > { %vm6454_vm8 = vcmp.eq.f32.partialorder %v6453_v0, 8.507059e+37 }
 0xae1   : > { %v6651_v32 = vmul.f32 -1.442695, %v6411_v12 }
 0xae3   : > { %v6700_v44 = vpop.eup %6699  ;;  %6701 = vpow2.f32 %v6651_v32 }
 0xae4   : > { %v6445_v57 = vmul.f32 %v6700_v44, %v6428_v24  ;;  %vm6450_vm0 = vweird.f32 %v6700_v44 }
 0xae5   : > { %vm6451_vm7 = vmor %vm6449_vm9, %vm6450_vm0 }
 0xae6   : > { %v6446_v17 = vsub.f32 1.0, %v6445_v57 }
 0xae8   : > { %v6447_v63 = vmul.f32 %v6700_v44, %v6446_v17 }
 0xae9   : > { %v6702_v7 = vpop.eup %6701 }
 0xaea   : > { %v6427_v55 = vadd.f32 1.0, %v6702_v7  ;;  %v6448_v14 = vadd.f32 %v6700_v44, %v6447_v63 }
 0xaec   : > { %6703 = vrcp.f32 %v6427_v55  ;;  %v6452_v18 = vsel %vm6451_vm7, %v6700_v44, %v6448_v14  ;;  %v6440_v6 = vand.u32 2147483648, %v6427_v55  ;;  %v6438_v61 = vand.u32 2147483647, %v6427_v55 }
 0xaed   : > { %v6457_v3 = vsel %vm6454_vm8, %v6456_v51, %v6452_v18  ;;  %vm6434_vm11 = vweird.f32 %v6427_v55 }
 0xaee   : > { %v6460_v37 = vmul.f32 %v6457_v3, %v13825_v47  ;;  %v6441_v29 = vor.u32 1.1754944e-38, %v6440_v6  ;;  %vm6439_vm15 = vcmp.eq.f32.partialorder %v6438_v61, 8.507059e+37 }
 0xaf0   : > { %v6463_v31 = vrot.slane %v6460_v37, 7 }
 0xaf2   : > { %v6704_v1 = vpop.eup %6703 }
 0xaf3   : > { %v6430_v19 = vmul.f32 %v6704_v1, %v6427_v55  ;;  %vm6435_vm3 = vweird.f32 %v6704_v1 }
 0xaf4   : > { %vm6436_vm12 = vmor %vm6434_vm11, %vm6435_vm3 }
 0xaf5   : > { %v6431_v8 = vsub.f32 1.0, %v6430_v19 }
 0xaf7   : > { %v6432_v10 = vmul.f32 %v6704_v1, %v6431_v8 }
 0xaf9   : > { %v6433_v28 = vadd.f32 %v6704_v1, %v6432_v10 }
 0xafb   : > { %v6437_v54 = vsel %vm6436_vm12, %v6704_v1, %v6433_v28 }
 0xafc   : > { %v6442_v56 = vsel %vm6439_vm15, %v6441_v29, %v6437_v54 }
 0xafd   : > { %v6459_v48 = vmul.f32 %v6442_v56, %v13826_v53 }
 0xaff   : > { %v6465_v20 = vsel %vm6464_vm13, %v6459_v48, %v6463_v31 }
 0xb00   : > { %6471 = vst.msk [vmem:[%s560_s18] sm:$0x3] %vm6469_vm1, %v6465_v20 }
 0xb01 PF: > { %s13830_s24 = sld [smem:[#allocation3_spill]] }
 0xb07   : > { %s27_s24 = sadd.s32 1, %s13830_s24  }
 0xb08   : > { %p24_p4 = scmp.ge.s32.totalorder %s27_s24, 4  }
 0xb0a   :  { %26 = sbr.rel (!%p24_p4) target bundleno = 16 (0x10), region = 144 }

</bundles_post_ra>
